<compile_context>
chip_gen: v6e
topology: v6e:2x2x1
jax: 0.10.0
libtpu: 0.0.40
codegen_flags: <defaults>
</compile_context>

<pallas_src>
import jax
import jax.numpy as jnp
from jax.experimental import pallas as pl
from jax.experimental.pallas import tpu as pltpu

_LANES = 128


def _round_up(x, m):
    return ((x + m - 1) // m) * m


def _pool_fc_kernel(x_ref, w_ref, b_ref, feat_ref, logits_ref, mmax_ref):
    # Grid: (batch tile i = program_id(0), spatial tile h = program_id(1)).
    # The h axis is a reduction (running max); for small spatial maps it has 1 step.
    #
    # x_ref:      (n_tile, C, hw_tile)   native-layout feature-map tile (HW on lanes)
    # w_ref:      (C, ncls_pad)          fc weight (padded to 128 lanes, fetched once)
    # b_ref:      (1, ncls_pad)          fc bias (padded, fetched once)
    # feat_ref:   (n_tile, C)            pooled features (resident across h)
    # logits_ref: (n_tile, ncls_pad)     lane-dense padded logits (resident across h)
    # mmax_ref:   (n_tile, C) f32        running-max scratch
    h = pl.program_id(1)

    @pl.when(h == 0)
    def _init():
        mmax_ref[...] = jnp.full_like(mmax_ref, -jnp.inf)

    # AdaptiveMaxPool2d(1): cross-lane max over the spatial axis of this tile.
    x = x_ref[...]
    mmax_ref[...] = jnp.maximum(mmax_ref[...],
                                jnp.max(x, axis=-1).astype(jnp.float32))

    @pl.when(h == pl.num_programs(1) - 1)
    def _finalize():
        feat = mmax_ref[...]                                    # (n_tile, C) f32
        feat_ref[...] = feat.astype(feat_ref.dtype)
        # Tiny FC epilogue: (n_tile, C) @ (C, ncls_pad) + bias, lane-dense output.
        logits_ref[...] = (jnp.dot(feat, w_ref[...],
                                   preferred_element_type=jnp.float32)
                           + b_ref[...])


def shuffle_my_head(feat_map_nchw, fc_weight, fc_bias):
    """feat_map_nchw: (N, C, H, W) backbone output (f32 or bf16), native NCHW.
    fc_weight: (num_cls, C) as in torch.nn.Linear. fc_bias: (num_cls,).
    Returns (x_feat (N, C), logits (N, num_cls))."""
    N, C, H, W = feat_map_nchw.shape
    num_cls, c_in = fc_weight.shape
    assert c_in == C, "fc weight must match channel count"
    HW = H * W

    # Free metadata reshape of the contiguous NCHW tensor -- no HBM round trip.
    x = feat_map_nchw.reshape(N, C, HW)
    x_isz = jnp.dtype(feat_map_nchw.dtype).itemsize
    feat_isz = x_isz
    ncls_pad = _round_up(num_cls, _LANES)

    # ---- generation-aware VMEM budget -------------------------------------
    try:
        vmem_cap = pltpu.get_tpu_info().vmem_capacity_bytes     # 128 MiB v5e/v6e, 64 MiB v7x
    except Exception:
        vmem_cap = 64 * 1024 * 1024                             # conservative fallback
    budget = min(int(vmem_cap * 3 // 4), 96 * 1024 * 1024)      # ~48 MiB v7x, ~96 MiB v5e/v6e

    # ---- spatial (lane-axis) tile ------------------------------------------
    # Full extent unless the map is large and cleanly splittable into 128-multiples.
    hw_tile = HW
    if HW % _LANES == 0 and HW > 1024:
        hw_tile = 1024
        while HW % hw_tile != 0:
            hw_tile //= 2                                        # stays a multiple of 128
    n_hw = HW // hw_tile
    hw_vmem = _round_up(hw_tile, _LANES)                         # lane-padding inflation

    # ---- batch tile ---------------------------------------------------------
    def vmem_need(nt):
        xb = 2 * nt * C * hw_vmem * x_isz                        # x block, double-buffered
        fb = 2 * nt * _round_up(C, _LANES) * feat_isz            # feat output block
        lb = 2 * nt * ncls_pad * 4                               # logits output block
        wb = 2 * _round_up(C, 8) * ncls_pad * 4                  # fc weight (fetched once)
        sb = nt * _round_up(C, _LANES) * 4                       # running-max scratch
        return xb + fb + lb + wb + sb + (1 << 20)                # + 1 MiB slack

    cap_tile = 128
    if N >= 16:
        # Keep >= 2 steps on the "parallel" batch axis so v7x megacore engages.
        cap_tile = min(cap_tile, max(8, (N // 2) // 8 * 8))
    n_tile = None
    cand = cap_tile
    while cand >= 8:
        if N % cand == 0 and vmem_need(cand) <= budget:
            n_tile = cand
            break
        cand -= 8
    if n_tile is None:
        # No multiple-of-8 batch tiling divides N: whole batch in one step (legal:
        # full-extent block). TODO(synk): for large N not divisible by 8 this is a
        # perf cliff / VMEM risk; pad N to a multiple of 8 upstream instead.
        n_tile = N

    vmem_limit = min(max(budget, vmem_need(n_tile)), int(vmem_cap * 0.95))

    # ---- FC weight/bias: pad to a lane-dense 128-wide output slab -----------
    w_pad = jnp.zeros((C, ncls_pad), jnp.float32).at[:, :num_cls].set(
        jnp.transpose(fc_weight).astype(jnp.float32))
    b_pad = jnp.zeros((1, ncls_pad), jnp.float32).at[:, :num_cls].set(
        fc_bias.astype(jnp.float32))

    grid = (N // n_tile, n_hw)

    cost = pl.CostEstimate(
        flops=2 * N * C * num_cls,
        transcendentals=0,
        bytes_accessed=(N * C * HW * x_isz + N * C * feat_isz
                        + N * ncls_pad * 4 + C * ncls_pad * 4),
    )

    feat, logits_pad = pl.pallas_call(
        _pool_fc_kernel,
        out_shape=(
            jax.ShapeDtypeStruct((N, C), feat_map_nchw.dtype),
            jax.ShapeDtypeStruct((N, ncls_pad), jnp.float32),
        ),
        grid=grid,
        in_specs=[
            pl.BlockSpec((n_tile, C, hw_tile), lambda i, h: (i, 0, h)),
            pl.BlockSpec((C, ncls_pad), lambda i, h: (0, 0)),
            pl.BlockSpec((1, ncls_pad), lambda i, h: (0, 0)),
        ],
        out_specs=(
            # Constant block index across the h axis -> resident output blocks,
            # written back once per batch tile.
            pl.BlockSpec((n_tile, C), lambda i, h: (i, 0)),
            pl.BlockSpec((n_tile, ncls_pad), lambda i, h: (i, 0)),
        ),
        scratch_shapes=[pltpu.VMEM((n_tile, C), jnp.float32)],
        compiler_params=pltpu.CompilerParams(
            dimension_semantics=("parallel", "arbitrary"),
            vmem_limit_bytes=vmem_limit),
        cost_estimate=cost,
    )(x, w_pad, b_pad)

    logits = logits_pad[:, :num_cls]
    return feat, logits


if __name__ == "__main__":
    key = jax.random.PRNGKey(0)
    k_x, k_w, k_b = jax.random.split(key, 3)

    # Small shapes consistent with the module: the backbone feeds a 1024-channel
    # feature map into AdaptiveMaxPool2d(1) and Linear(1024, 2).
    N, C, H, W = 2, 1024, 4, 4
    NUM_CLS = 2

    feat_map = jax.random.normal(k_x, (N, C, H, W), dtype=jnp.float32)

    # Deterministic Linear(1024, 2) init (PyTorch default: U(-1/sqrt(fan_in), ...)).
    bound = 1.0 / (C ** 0.5)
    fc_weight = jax.random.uniform(k_w, (NUM_CLS, C), minval=-bound, maxval=bound,
                                   dtype=jnp.float32)
    fc_bias = jax.random.uniform(k_b, (NUM_CLS,), minval=-bound, maxval=bound,
                                 dtype=jnp.float32)

    feat, logits = shuffle_my_head(feat_map, fc_weight, fc_bias)
    jax.block_until_ready((feat, logits))

    # Reference check in plain JAX.
    ref_feat = jnp.max(feat_map.reshape(N, C, H * W), axis=-1)
    ref_logits = ref_feat @ fc_weight.T + fc_bias
    assert feat.shape == (N, C) and logits.shape == (N, NUM_CLS)
    assert jnp.allclose(feat, ref_feat, atol=1e-5), "feature mismatch"
    assert jnp.allclose(logits, ref_logits, atol=1e-4), "logits mismatch"

    print("KERNEL_OK")
</pallas_src>

<mosaic_0001>
module attributes {stable_mosaic.version = 11 : i64} {
  func.func @_pool_fc_kernel(%arg0: i32, %arg1: i32, %arg2: memref<2x1024x16xf32, #tpu.memory_space<vmem>>, %arg3: memref<1024x128xf32, #tpu.memory_space<vmem>>, %arg4: memref<1x128xf32, #tpu.memory_space<vmem>>, %arg5: memref<2x1024xf32, #tpu.memory_space<vmem>>, %arg6: memref<2x128xf32, #tpu.memory_space<vmem>>, %arg7: memref<2x1024xf32, #tpu.memory_space<vmem>>) attributes {dimension_semantics = [#tpu.dimension_semantics<parallel>, #tpu.dimension_semantics<arbitrary>], iteration_bounds = array<i64: 1, 1>, scalar_prefetch = 0 : i64, scratch_operands = 1 : i64, tpu.core_type = #tpu.core_type<tc>, window_params = [{transform_indices = @transform_0, window_bounds = array<i64: 2, 1024, 16>}, {pipeline_mode = #tpu.pipeline_mode<synchronous>, transform_indices = @transform_1, window_bounds = array<i64: 1024, 128>}, {pipeline_mode = #tpu.pipeline_mode<synchronous>, transform_indices = @transform_2, window_bounds = array<i64: 1, 128>}, {transform_indices = @transform_3, window_bounds = array<i64: 2, 1024>}, {transform_indices = @transform_4, window_bounds = array<i64: 2, 128>}]} {
    %c0_i32 = arith.constant 0 : i32
    %0 = arith.cmpi eq, %arg1, %c0_i32 : i32
    %1 = arith.extui %0 : i1 to i32
    %c0_i32_0 = arith.constant 0 : i32
    %2 = arith.cmpi ne, %1, %c0_i32_0 : i32
    scf.if %2 {
      %cst_9 = arith.constant 0xFF800000 : f32
      %11 = vector.broadcast %cst_9 : f32 to vector<2x1024xf32>
      %c0_10 = arith.constant 0 : index
      %c0_11 = arith.constant 0 : index
      %12 = vector.load %arg7[%c0_10, %c0_11] : memref<2x1024xf32, #tpu.memory_space<vmem>>, vector<2x1024xf32>
      tpu.vector_store %arg7[%c0_10, %c0_11], %11 {strides = array<i32>} : memref<2x1024xf32, #tpu.memory_space<vmem>>, vector<2x1024xf32>,
    } else {
    }
    %c0 = arith.constant 0 : index
    %c0_1 = arith.constant 0 : index
    %c0_2 = arith.constant 0 : index
    %3 = vector.load %arg2[%c0, %c0_1, %c0_2] : memref<2x1024x16xf32, #tpu.memory_space<vmem>>, vector<2x1024x16xf32>
    %c0_3 = arith.constant 0 : index
    %c0_4 = arith.constant 0 : index
    %4 = vector.load %arg7[%c0_3, %c0_4] : memref<2x1024xf32, #tpu.memory_space<vmem>>, vector<2x1024xf32>
    %cst = arith.constant dense<0xFF800000> : vector<2x1024xf32>
    %5 = vector.multi_reduction <maximumf>, %3, %cst [2] : vector<2x1024x16xf32> to vector<2x1024xf32>
    %6 = arith.maximumf %4, %5 : vector<2x1024xf32>
    %c0_5 = arith.constant 0 : index
    %c0_6 = arith.constant 0 : index
    %7 = vector.load %arg7[%c0_5, %c0_6] : memref<2x1024xf32, #tpu.memory_space<vmem>>, vector<2x1024xf32>
    tpu.vector_store %arg7[%c0_5, %c0_6], %6 {strides = array<i32>} : memref<2x1024xf32, #tpu.memory_space<vmem>>, vector<2x1024xf32>,
    %c0_i32_7 = arith.constant 0 : i32
    %8 = arith.cmpi eq, %arg1, %c0_i32_7 : i32
    %9 = arith.extui %8 : i1 to i32
    %c0_i32_8 = arith.constant 0 : i32
    %10 = arith.cmpi ne, %9, %c0_i32_8 : i32
    scf.if %10 {
      %c0_9 = arith.constant 0 : index
      %c0_10 = arith.constant 0 : index
      %11 = vector.load %arg7[%c0_9, %c0_10] : memref<2x1024xf32, #tpu.memory_space<vmem>>, vector<2x1024xf32>
      %c0_11 = arith.constant 0 : index
      %c0_12 = arith.constant 0 : index
      %12 = vector.load %arg5[%c0_11, %c0_12] : memref<2x1024xf32, #tpu.memory_space<vmem>>, vector<2x1024xf32>
      tpu.vector_store %arg5[%c0_11, %c0_12], %11 {strides = array<i32>} : memref<2x1024xf32, #tpu.memory_space<vmem>>, vector<2x1024xf32>,
      %c0_13 = arith.constant 0 : index
      %c0_14 = arith.constant 0 : index
      %13 = vector.load %arg3[%c0_13, %c0_14] : memref<1024x128xf32, #tpu.memory_space<vmem>>, vector<1024x128xf32>
      %cst_15 = arith.constant dense<0.000000e+00> : vector<2x128xf32>
      %14 = tpu.matmul %11, %13, %cst_15 {dimension_numbers = #tpu.dot_dimension_numbers<[1], [0], [0], [1], [0, 0, 1, 1], [], []>} : vector<2x1024xf32>, vector<1024x128xf32>, vector<2x128xf32> -> vector<2x128xf32>
      %c0_16 = arith.constant 0 : index
      %c0_17 = arith.constant 0 : index
      %15 = vector.load %arg4[%c0_16, %c0_17] : memref<1x128xf32, #tpu.memory_space<vmem>>, vector<1x128xf32>
      %16 = vector.broadcast %15 : vector<1x128xf32> to vector<2x128xf32>
      %17 = arith.addf %14, %16 : vector<2x128xf32>
      %c0_18 = arith.constant 0 : index
      %c0_19 = arith.constant 0 : index
      %18 = vector.load %arg6[%c0_18, %c0_19] : memref<2x128xf32, #tpu.memory_space<vmem>>, vector<2x128xf32>
      tpu.vector_store %arg6[%c0_18, %c0_19], %17 {strides = array<i32>} : memref<2x128xf32, #tpu.memory_space<vmem>>, vector<2x128xf32>,
    } else {
    }
    return
  }
  func.func @transform_0(%arg0: i32, %arg1: i32) -> (i32, i32, i32) {
    %c0_i32 = arith.constant 0 : i32
    %c0_i32_0 = arith.constant 0 : i32
    return %arg0, %c0_i32, %arg1 : i32, i32, i32
  }
  func.func @transform_1(%arg0: i32, %arg1: i32) -> (i32, i32) {
    %c0_i32 = arith.constant 0 : i32
    %c0_i32_0 = arith.constant 0 : i32
    %c0_i32_1 = arith.constant 0 : i32
    return %c0_i32, %c0_i32_0 : i32, i32
  }
  func.func @transform_2(%arg0: i32, %arg1: i32) -> (i32, i32) {
    %c0_i32 = arith.constant 0 : i32
    %c0_i32_0 = arith.constant 0 : i32
    %c0_i32_1 = arith.constant 0 : i32
    return %c0_i32, %c0_i32_0 : i32, i32
  }
  func.func @transform_3(%arg0: i32, %arg1: i32) -> (i32, i32) {
    %c0_i32 = arith.constant 0 : i32
    %c0_i32_0 = arith.constant 0 : i32
    return %arg0, %c0_i32 : i32, i32
  }
  func.func @transform_4(%arg0: i32, %arg1: i32) -> (i32, i32) {
    %c0_i32 = arith.constant 0 : i32
    %c0_i32_0 = arith.constant 0 : i32
    return %arg0, %c0_i32 : i32, i32
  }
}

</mosaic_0001>

<bundles_post_ra>
// kernel: tpu_custom_call.1
= control target key start
LH: loop header
LB: loop body
LE: loop exit
PB: predicated region body
PF: predicated region fallthrough
CT: control target
= control target key end

     0   :  { %10 = vsyncpa [#allocation4], 0  ;;  %vm282_vm0 = vcmask 130048   ;;  %s23127_s0 = inlined_call_operand.vmem [shape: f32[2,1024,16], index: 0, kind: input, shape index: {}]   ;;  %s23128_s1 = inlined_call_operand.vmem [shape: f32[1024,128], index: 1, kind: input, shape index: {}]   ;;  %s23129_s2 = inlined_call_operand.vmem [shape: f32[1,128], index: 2, kind: input, shape index: {}]   ;;  %s23130_s3 = inlined_call_operand.hbm [shape: f32[2,1024], index: 3, kind: output, shape index: {0}]   ;;  %s23131_s4 = inlined_call_operand.hbm [shape: f32[2,128], index: 4, kind: output, shape index: {1}]  }
   0x1   :  { %v26_v0 = vld [vmem:[%s23127_s0 + $0x10] sm:$0xff]  ;;  %v24_v1 = vld [vmem:[%s23127_s0] sm:$0xff]  ;;  %v27_v2 = vld [vmem:[%s23127_s0 + $0x18] sm:$0xff] }
   0x2   :  { %v289_v3 = vsel %vm282_vm0, %v26_v0, -inf  ;;  %v283_v4 = vsel %vm282_vm0, %v24_v1, -inf  ;;  %v25_v5 = vld [vmem:[%s23127_s0 + $0x8] sm:$0xff]  ;;  %v292_v6 = vsel %vm282_vm0, %v27_v2, -inf  ;;  %v28_v9 = vld [vmem:[%s23127_s0 + $0x20] sm:$0xff]  ;;  %v31_v12 = vld [vmem:[%s23127_s0 + $0x38] sm:$0xff] }
   0x3   :  { %290 = vmax.xlane.f32.xlu1 %v289_v3  ;;  %284 = vmax.xlane.f32.xlu0 %v283_v4  ;;  %v286_v7 = vsel %vm282_vm0, %v25_v5, -inf  ;;  %v29_v8 = vld [vmem:[%s23127_s0 + $0x28] sm:$0xff]  ;;  %v295_v11 = vsel %vm282_vm0, %v28_v9, -inf  ;;  %v30_v13 = vld [vmem:[%s23127_s0 + $0x30] sm:$0xff]  ;;  %v304_v14 = vsel %vm282_vm0, %v31_v12, -inf  ;;  %v32_v17 = vld [vmem:[%s23127_s0 + $0x40] sm:$0xff] }
   0x4   :  { %v298_v10 = vsel %vm282_vm0, %v29_v8, -inf  ;;  %v301_v15 = vsel %vm282_vm0, %v30_v13, -inf  ;;  %v33_v16 = vld [vmem:[%s23127_s0 + $0x48] sm:$0xff]  ;;  %v307_v19 = vsel %vm282_vm0, %v32_v17, -inf  ;;  %v35_v20 = vld [vmem:[%s23127_s0 + $0x58] sm:$0xff]  ;;  %v34_v21 = vld [vmem:[%s23127_s0 + $0x50] sm:$0xff] }
   0x5   :  { %v310_v18 = vsel %vm282_vm0, %v33_v16, -inf  ;;  %v316_v22 = vsel %vm282_vm0, %v35_v20, -inf  ;;  %v313_v23 = vsel %vm282_vm0, %v34_v21, -inf  ;;  %v37_v24 = vld [vmem:[%s23127_s0 + $0x68] sm:$0xff]  ;;  %v36_v25 = vld [vmem:[%s23127_s0 + $0x60] sm:$0xff]  ;;  %v39_v28 = vld [vmem:[%s23127_s0 + $0x78] sm:$0xff] }
   0x6   :  { %v322_v26 = vsel %vm282_vm0, %v37_v24, -inf  ;;  %v319_v27 = vsel %vm282_vm0, %v36_v25, -inf  ;;  %v38_v29 = vld [vmem:[%s23127_s0 + $0x70] sm:$0xff]  ;;  %v328_v30 = vsel %vm282_vm0, %v39_v28, -inf  ;;  %v41_v32 = vld [vmem:[%s23127_s0 + $0x88] sm:$0xff]  ;;  %v40_v33 = vld [vmem:[%s23127_s0 + $0x80] sm:$0xff] }
   0x7   :  { %293 = vmax.xlane.f32.xlu1 %v292_v6  ;;  %287 = vmax.xlane.f32.xlu0 %v286_v7  ;;  %v325_v31 = vsel %vm282_vm0, %v38_v29, -inf }
   0xb   :  { %299 = vmax.xlane.f32.xlu1 %v298_v10  ;;  %296 = vmax.xlane.f32.xlu0 %v295_v11 }
   0xf   :  { %305 = vmax.xlane.f32.xlu1 %v304_v14  ;;  %302 = vmax.xlane.f32.xlu0 %v301_v15 }
  0x13   :  { %311 = vmax.xlane.f32.xlu1 %v310_v18  ;;  %308 = vmax.xlane.f32.xlu0 %v307_v19 }
  0x17   :  { %317 = vmax.xlane.f32.xlu1 %v316_v22  ;;  %314 = vmax.xlane.f32.xlu0 %v313_v23 }
  0x1b   :  { %323 = vmax.xlane.f32.xlu1 %v322_v26  ;;  %320 = vmax.xlane.f32.xlu0 %v319_v27 }
  0x1c   :  { %11 = vsyncpa [#allocation6], 0  ;;  %v334_v34 = vsel %vm282_vm0, %v41_v32, -inf  ;;  %v331_v35 = vsel %vm282_vm0, %v40_v33, -inf  ;;  %v43_v36 = vld [vmem:[%s23127_s0 + $0x98] sm:$0xff]  ;;  %v42_v37 = vld [vmem:[%s23127_s0 + $0x90] sm:$0xff] }
  0x1d   :  { %v340_v38 = vsel %vm282_vm0, %v43_v36, -inf  ;;  %v337_v39 = vsel %vm282_vm0, %v42_v37, -inf  ;;  %v45_v40 = vld [vmem:[%s23127_s0 + $0xa8] sm:$0xff]  ;;  %v44_v41 = vld [vmem:[%s23127_s0 + $0xa0] sm:$0xff]  ;;  %v47_v44 = vld [vmem:[%s23127_s0 + $0xb8] sm:$0xff]  ;;  %vm13606_vm1 = vcmask 130112  }
  0x1e   :  { %v346_v42 = vsel %vm282_vm0, %v45_v40, -inf  ;;  %v343_v43 = vsel %vm282_vm0, %v44_v41, -inf  ;;  %v46_v45 = vld [vmem:[%s23127_s0 + $0xb0] sm:$0xff]  ;;  %v352_v46 = vsel %vm282_vm0, %v47_v44, -inf  ;;  %v49_v48 = vld [vmem:[%s23127_s0 + $0xc8] sm:$0xff]  ;;  %v48_v49 = vld [vmem:[%s23127_s0 + $0xc0] sm:$0xff] }
  0x1f   :  { %329 = vmax.xlane.f32.xlu1 %v328_v30  ;;  %326 = vmax.xlane.f32.xlu0 %v325_v31  ;;  %v349_v47 = vsel %vm282_vm0, %v46_v45, -inf  ;;  %v358_v50 = vsel %vm282_vm0, %v49_v48, -inf  ;;  %v355_v51 = vsel %vm282_vm0, %v48_v49, -inf  ;;  %v51_v52 = vld [vmem:[%s23127_s0 + $0xd8] sm:$0xff]  ;;  %v50_v53 = vld [vmem:[%s23127_s0 + $0xd0] sm:$0xff]  ;;  %v53_v56 = vld [vmem:[%s23127_s0 + $0xe8] sm:$0xff] }
  0x20   :  { %v364_v54 = vsel %vm282_vm0, %v51_v52, -inf  ;;  %v361_v55 = vsel %vm282_vm0, %v50_v53, -inf  ;;  %v52_v57 = vld [vmem:[%s23127_s0 + $0xe0] sm:$0xff]  ;;  %v370_v58 = vsel %vm282_vm0, %v53_v56, -inf  ;;  %v55_v60 = vld [vmem:[%s23127_s0 + $0xf8] sm:$0xff]  ;;  %v54_v61 = vld [vmem:[%s23127_s0 + $0xf0] sm:$0xff] }
  0x21   :  { %v367_v59 = vsel %vm282_vm0, %v52_v57, -inf  ;;  %v376_v62 = vsel %vm282_vm0, %v55_v60, -inf  ;;  %v373_v63 = vsel %vm282_vm0, %v54_v61, -inf  ;;  %v57_v0 = vld [vmem:[%s23127_s0 + $0x108] sm:$0xff]  ;;  %v56_v1 = vld [vmem:[%s23127_s0 + $0x100] sm:$0xff]  ;;  %v59_v4 = vld [vmem:[%s23127_s0 + $0x118] sm:$0xff] }
  0x22   :  { %v382_v2 = vsel %vm282_vm0, %v57_v0, -inf  ;;  %v379_v3 = vsel %vm282_vm0, %v56_v1, -inf  ;;  %v58_v5 = vld [vmem:[%s23127_s0 + $0x110] sm:$0xff]  ;;  %v388_v6 = vsel %vm282_vm0, %v59_v4, -inf  ;;  %v61_v8 = vld [vmem:[%s23127_s0 + $0x128] sm:$0xff]  ;;  %v60_v9 = vld [vmem:[%s23127_s0 + $0x120] sm:$0xff] }
  0x23   :  { %335 = vmax.xlane.f32.xlu1 %v334_v34  ;;  %332 = vmax.xlane.f32.xlu0 %v331_v35  ;;  %v385_v7 = vsel %vm282_vm0, %v58_v5, -inf  ;;  %v394_v10 = vsel %vm282_vm0, %v61_v8, -inf  ;;  %v391_v11 = vsel %vm282_vm0, %v60_v9, -inf  ;;  %v63_v12 = vld [vmem:[%s23127_s0 + $0x138] sm:$0xff]  ;;  %v62_v13 = vld [vmem:[%s23127_s0 + $0x130] sm:$0xff]  ;;  %v65_v16 = vld [vmem:[%s23127_s0 + $0x148] sm:$0xff] }
  0x24   :  { %v400_v14 = vsel %vm282_vm0, %v63_v12, -inf  ;;  %v397_v15 = vsel %vm282_vm0, %v62_v13, -inf  ;;  %v64_v17 = vld [vmem:[%s23127_s0 + $0x140] sm:$0xff]  ;;  %v406_v18 = vsel %vm282_vm0, %v65_v16, -inf  ;;  %v67_v20 = vld [vmem:[%s23127_s0 + $0x158] sm:$0xff]  ;;  %v66_v21 = vld [vmem:[%s23127_s0 + $0x150] sm:$0xff] }
  0x25   :  { %v403_v19 = vsel %vm282_vm0, %v64_v17, -inf  ;;  %v412_v22 = vsel %vm282_vm0, %v67_v20, -inf  ;;  %v409_v23 = vsel %vm282_vm0, %v66_v21, -inf  ;;  %v69_v24 = vld [vmem:[%s23127_s0 + $0x168] sm:$0xff]  ;;  %v68_v25 = vld [vmem:[%s23127_s0 + $0x160] sm:$0xff]  ;;  %v71_v28 = vld [vmem:[%s23127_s0 + $0x178] sm:$0xff] }
  0x26   :  { %v418_v26 = vsel %vm282_vm0, %v69_v24, -inf  ;;  %v415_v27 = vsel %vm282_vm0, %v68_v25, -inf  ;;  %v70_v29 = vld [vmem:[%s23127_s0 + $0x170] sm:$0xff]  ;;  %v424_v30 = vsel %vm282_vm0, %v71_v28, -inf  ;;  %v73_v32 = vld [vmem:[%s23127_s0 + $0x188] sm:$0xff]  ;;  %v72_v33 = vld [vmem:[%s23127_s0 + $0x180] sm:$0xff] }
  0x27   :  { %341 = vmax.xlane.f32.xlu1 %v340_v38  ;;  %338 = vmax.xlane.f32.xlu0 %v337_v39  ;;  %v421_v31 = vsel %vm282_vm0, %v70_v29, -inf  ;;  %v430_v34 = vsel %vm282_vm0, %v73_v32, -inf  ;;  %v427_v35 = vsel %vm282_vm0, %v72_v33, -inf  ;;  %v75_v36 = vld [vmem:[%s23127_s0 + $0x198] sm:$0xff]  ;;  %v74_v37 = vld [vmem:[%s23127_s0 + $0x190] sm:$0xff]  ;;  %v77_v40 = vld [vmem:[%s23127_s0 + $0x1a8] sm:$0xff] }
  0x28   :  { %v436_v38 = vsel %vm282_vm0, %v75_v36, -inf  ;;  %v433_v39 = vsel %vm282_vm0, %v74_v37, -inf  ;;  %v76_v41 = vld [vmem:[%s23127_s0 + $0x1a0] sm:$0xff]  ;;  %v79_v44 = vld [vmem:[%s23127_s0 + $0x1b8] sm:$0xff]  ;;  %v78_v45 = vld [vmem:[%s23127_s0 + $0x1b0] sm:$0xff]  ;;  %vm13613_vm2 = vcmask 195712  }
  0x29   :  { %v81_v48 = vld [vmem:[%s23127_s0 + $0x1c8] sm:$0xff]  ;;  %v80_v49 = vld [vmem:[%s23127_s0 + $0x1c0] sm:$0xff]  ;;  %v83_v52 = vld [vmem:[%s23127_s0 + $0x1d8] sm:$0xff]  ;;  %vm13620_vm3 = vcmask 261312   ;;  %vm13627_vm4 = vcmask 326912   ;;  %vm13634_vm5 = vcmask 392512  }
  0x2a   :  { %v82_v53 = vld [vmem:[%s23127_s0 + $0x1d0] sm:$0xff]  ;;  %v85_v56 = vld [vmem:[%s23127_s0 + $0x1e8] sm:$0xff]  ;;  %v84_v57 = vld [vmem:[%s23127_s0 + $0x1e0] sm:$0xff]  ;;  %vm13641_vm6 = vcmask 458112   ;;  %vm13648_vm7 = vcmask 523712   ;;  %vm13655_vm8 = vcmask 589312  }
  0x2b   :  { %347 = vmax.xlane.f32.xlu1 %v346_v42  ;;  %344 = vmax.xlane.f32.xlu0 %v343_v43  ;;  %v442_v42 = vsel %vm282_vm0, %v77_v40, -inf  ;;  %v439_v43 = vsel %vm282_vm0, %v76_v41, -inf  ;;  %v87_v60 = vld [vmem:[%s23127_s0 + $0x1f8] sm:$0xff]  ;;  %v86_v61 = vld [vmem:[%s23127_s0 + $0x1f0] sm:$0xff]  ;;  %v89_v0 = vld [vmem:[%s23127_s0 + $0x208] sm:$0xff]  ;;  %vm13662_vm9 = vcmask 654912  }
  0x2c   :  { %v88_v1 = vld [vmem:[%s23127_s0 + $0x200] sm:$0xff]  ;;  %v91_v4 = vld [vmem:[%s23127_s0 + $0x218] sm:$0xff]  ;;  %v90_v5 = vld [vmem:[%s23127_s0 + $0x210] sm:$0xff]  ;;  %vm13669_vm10 = vcmask 720512   ;;  %vm13676_vm11 = vcmask 786112   ;;  %vm13683_vm12 = vcmask 851712  }
  0x2d   :  { %v93_v8 = vld [vmem:[%s23127_s0 + $0x228] sm:$0xff]  ;;  %v92_v9 = vld [vmem:[%s23127_s0 + $0x220] sm:$0xff]  ;;  %v95_v12 = vld [vmem:[%s23127_s0 + $0x238] sm:$0xff]  ;;  %vm13690_vm13 = vcmask 917312   ;;  %vm13697_vm14 = vcmask 982912   ;;  %vm13704_vm15 = vcmask 1048512  }
  0x2e   :  { %v94_v13 = vld [vmem:[%s23127_s0 + $0x230] sm:$0xff]  ;;  %v99_v24 = vld [vmem:[%s23127_s0 + $0x258] sm:$0xff] }
  0x2f   :  { %353 = vmax.xlane.f32.xlu1 %v352_v46  ;;  %350 = vmax.xlane.f32.xlu0 %v349_v47  ;;  %v448_v46 = vsel %vm282_vm0, %v79_v44, -inf  ;;  %v445_v47 = vsel %vm282_vm0, %v78_v45, -inf  ;;  %v493_v16 = vsel %vm282_vm0, %v94_v13, -inf  ;;  %v98_v25 = vld [vmem:[%s23127_s0 + $0x250] sm:$0xff]  ;;  %v103_v36 = vld [vmem:[%s23127_s0 + $0x278] sm:$0xff] }
  0x30   :  { %v505_v28 = vsel %vm282_vm0, %v98_v25, -inf  ;;  %v102_v37 = vld [vmem:[%s23127_s0 + $0x270] sm:$0xff] }
  0x31   :  { %v517_v40 = vsel %vm282_vm0, %v102_v37, -inf  ;;  %v118_v25 = vld [vmem:[%s23127_s0 + $0x2f0] sm:$0xff] }
  0x33   :  { %359 = vmax.xlane.f32.xlu1 %v358_v50  ;;  %356 = vmax.xlane.f32.xlu0 %v355_v51  ;;  %v454_v50 = vsel %vm282_vm0, %v81_v48, -inf  ;;  %v451_v51 = vsel %vm282_vm0, %v80_v49, -inf  ;;  %v107_v48 = vld [vmem:[%s23127_s0 + $0x298] sm:$0xff]  ;;  %v106_v49 = vld [vmem:[%s23127_s0 + $0x290] sm:$0xff] }
  0x37   :  { %365 = vmax.xlane.f32.xlu1 %v364_v54  ;;  %362 = vmax.xlane.f32.xlu0 %v361_v55  ;;  %v460_v54 = vsel %vm282_vm0, %v83_v52, -inf  ;;  %v457_v55 = vsel %vm282_vm0, %v82_v53, -inf  ;;  %v529_v52 = vsel %vm282_vm0, %v106_v49, -inf }
  0x3b   :  { %371 = vmax.xlane.f32.xlu1 %v370_v58  ;;  %368 = vmax.xlane.f32.xlu0 %v367_v59  ;;  %v466_v58 = vsel %vm282_vm0, %v85_v56, -inf  ;;  %v463_v59 = vsel %vm282_vm0, %v84_v57, -inf }
  0x3f   :  { %377 = vmax.xlane.f32.xlu1 %v376_v62  ;;  %374 = vmax.xlane.f32.xlu0 %v373_v63  ;;  %v472_v62 = vsel %vm282_vm0, %v87_v60, -inf  ;;  %v469_v63 = vsel %vm282_vm0, %v86_v61, -inf  ;;  %v111_v60 = vld [vmem:[%s23127_s0 + $0x2b8] sm:$0xff]  ;;  %v110_v61 = vld [vmem:[%s23127_s0 + $0x2b0] sm:$0xff] }
  0x43   :  { %383 = vmax.xlane.f32.xlu1 %v382_v2  ;;  %380 = vmax.xlane.f32.xlu0 %v379_v3  ;;  %v478_v2 = vsel %vm282_vm0, %v89_v0, -inf  ;;  %v475_v3 = vsel %vm282_vm0, %v88_v1, -inf  ;;  %v541_v0 = vsel %vm282_vm0, %v110_v61, -inf  ;;  %v126_v61 = vld [vmem:[%s23127_s0 + $0x330] sm:$0xff] }
  0x47   :  { %389 = vmax.xlane.f32.xlu1 %v388_v6  ;;  %386 = vmax.xlane.f32.xlu0 %v385_v7  ;;  %v484_v6 = vsel %vm282_vm0, %v91_v4, -inf  ;;  %v481_v7 = vsel %vm282_vm0, %v90_v5, -inf }
  0x4b   :  { %395 = vmax.xlane.f32.xlu1 %v394_v10  ;;  %392 = vmax.xlane.f32.xlu0 %v391_v11  ;;  %v490_v10 = vsel %vm282_vm0, %v93_v8, -inf  ;;  %v487_v11 = vsel %vm282_vm0, %v92_v9, -inf  ;;  %v115_v8 = vld [vmem:[%s23127_s0 + $0x2d8] sm:$0xff]  ;;  %v114_v9 = vld [vmem:[%s23127_s0 + $0x2d0] sm:$0xff] }
  0x4f   :  { %401 = vmax.xlane.f32.xlu1 %v400_v14  ;;  %398 = vmax.xlane.f32.xlu0 %v397_v15  ;;  %v496_v15 = vsel %vm282_vm0, %v95_v12, -inf  ;;  %v553_v12 = vsel %vm282_vm0, %v114_v9, -inf }
  0x53   :  { %407 = vmax.xlane.f32.xlu1 %v406_v18  ;;  %404 = vmax.xlane.f32.xlu0 %v403_v19  ;;  %v97_v18 = vld [vmem:[%s23127_s0 + $0x248] sm:$0xff]  ;;  %v96_v19 = vld [vmem:[%s23127_s0 + $0x240] sm:$0xff] }
  0x54   :  { %v502_v21 = vsel %vm282_vm0, %v97_v18, -inf }
  0x57   :  { %413 = vmax.xlane.f32.xlu1 %v412_v22  ;;  %410 = vmax.xlane.f32.xlu0 %v409_v23  ;;  %v499_v22 = vsel %vm282_vm0, %v96_v19, -inf }
  0x5b   :  { %419 = vmax.xlane.f32.xlu1 %v418_v26  ;;  %416 = vmax.xlane.f32.xlu0 %v415_v27  ;;  %v508_v27 = vsel %vm282_vm0, %v99_v24, -inf  ;;  %v119_v24 = vld [vmem:[%s23127_s0 + $0x2f8] sm:$0xff] }
  0x5f   :  { %425 = vmax.xlane.f32.xlu1 %v424_v30  ;;  %422 = vmax.xlane.f32.xlu0 %v421_v31  ;;  %v101_v30 = vld [vmem:[%s23127_s0 + $0x268] sm:$0xff]  ;;  %v100_v31 = vld [vmem:[%s23127_s0 + $0x260] sm:$0xff] }
  0x60   :  { %v514_v33 = vsel %vm282_vm0, %v101_v30, -inf  ;;  %v565_v30 = vsel %vm282_vm0, %v118_v25, -inf }
  0x63   :  { %431 = vmax.xlane.f32.xlu1 %v430_v34  ;;  %428 = vmax.xlane.f32.xlu0 %v427_v35  ;;  %v511_v34 = vsel %vm282_vm0, %v100_v31, -inf }
  0x67   :  { %437 = vmax.xlane.f32.xlu1 %v436_v38  ;;  %434 = vmax.xlane.f32.xlu0 %v433_v39  ;;  %v520_v39 = vsel %vm282_vm0, %v103_v36, -inf }
  0x6b   :  { %443 = vmax.xlane.f32.xlu1 %v442_v42  ;;  %440 = vmax.xlane.f32.xlu0 %v439_v43  ;;  %v105_v42 = vld [vmem:[%s23127_s0 + $0x288] sm:$0xff]  ;;  %v104_v43 = vld [vmem:[%s23127_s0 + $0x280] sm:$0xff] }
  0x6c   :  { %v526_v45 = vsel %vm282_vm0, %v105_v42, -inf  ;;  %v123_v42 = vld [vmem:[%s23127_s0 + $0x318] sm:$0xff] }
  0x6f   :  { %449 = vmax.xlane.f32.xlu1 %v448_v46  ;;  %446 = vmax.xlane.f32.xlu0 %v445_v47  ;;  %v523_v46 = vsel %vm282_vm0, %v104_v43, -inf  ;;  %v122_v43 = vld [vmem:[%s23127_s0 + $0x310] sm:$0xff] }
  0x73   :  { %455 = vmax.xlane.f32.xlu1 %v454_v50  ;;  %452 = vmax.xlane.f32.xlu0 %v451_v51  ;;  %v532_v51 = vsel %vm282_vm0, %v107_v48, -inf  ;;  %v577_v48 = vsel %vm282_vm0, %v122_v43, -inf  ;;  %v134_v43 = vld [vmem:[%s23127_s0 + $0x370] sm:$0xff] }
  0x77   :  { %461 = vmax.xlane.f32.xlu1 %v460_v54  ;;  %458 = vmax.xlane.f32.xlu0 %v457_v55  ;;  %v109_v54 = vld [vmem:[%s23127_s0 + $0x2a8] sm:$0xff]  ;;  %v108_v55 = vld [vmem:[%s23127_s0 + $0x2a0] sm:$0xff] }
  0x78   :  { %v538_v57 = vsel %vm282_vm0, %v109_v54, -inf }
  0x7b   :  { %467 = vmax.xlane.f32.xlu1 %v466_v58  ;;  %464 = vmax.xlane.f32.xlu0 %v463_v59  ;;  %v535_v58 = vsel %vm282_vm0, %v108_v55, -inf }
  0x7f   :  { %473 = vmax.xlane.f32.xlu1 %v472_v62  ;;  %470 = vmax.xlane.f32.xlu0 %v469_v63  ;;  %v544_v63 = vsel %vm282_vm0, %v111_v60, -inf  ;;  %v127_v60 = vld [vmem:[%s23127_s0 + $0x338] sm:$0xff] }
  0x83   :  { %479 = vmax.xlane.f32.xlu1 %v478_v2  ;;  %476 = vmax.xlane.f32.xlu0 %v475_v3  ;;  %v113_v2 = vld [vmem:[%s23127_s0 + $0x2c8] sm:$0xff]  ;;  %v112_v3 = vld [vmem:[%s23127_s0 + $0x2c0] sm:$0xff] }
  0x84   :  { %v550_v5 = vsel %vm282_vm0, %v113_v2, -inf  ;;  %v589_v2 = vsel %vm282_vm0, %v126_v61, -inf }
  0x87   :  { %485 = vmax.xlane.f32.xlu1 %v484_v6  ;;  %482 = vmax.xlane.f32.xlu0 %v481_v7  ;;  %v547_v6 = vsel %vm282_vm0, %v112_v3, -inf }
  0x8b   :  { %491 = vmax.xlane.f32.xlu1 %v490_v10  ;;  %488 = vmax.xlane.f32.xlu0 %v487_v11  ;;  %v556_v11 = vsel %vm282_vm0, %v115_v8, -inf }
  0x8c   :  { %v15951_v14 = vpop.xlane.xlu1 %290  ;;  %v15955_v17 = vpop.xlane.xlu0 %284 }
  0x8f   :  { %497 = vmax.xlane.f32.xlu1 %v496_v15  ;;  %494 = vmax.xlane.f32.xlu0 %v493_v16  ;;  %v117_v15 = vld [vmem:[%s23127_s0 + $0x2e8] sm:$0xff]  ;;  %v116_v16 = vld [vmem:[%s23127_s0 + $0x2e0] sm:$0xff] }
  0x90   :  { %v15963_v20 = vpop.xlane.xlu1 %293  ;;  %v15967_v23 = vpop.xlane.xlu0 %287  ;;  %v562_v19 = vsel %vm282_vm0, %v117_v15, -inf  ;;  %v131_v15 = vld [vmem:[%s23127_s0 + $0x358] sm:$0xff] }
  0x93   :  { %503 = vmax.xlane.f32.xlu1 %v502_v21  ;;  %500 = vmax.xlane.f32.xlu0 %v499_v22  ;;  %v559_v21 = vsel %vm282_vm0, %v116_v16, -inf  ;;  %v130_v16 = vld [vmem:[%s23127_s0 + $0x350] sm:$0xff] }
  0x94   :  { %v15975_v26 = vpop.xlane.xlu1 %299  ;;  %v15979_v29 = vpop.xlane.xlu0 %296 }
  0x97   :  { %509 = vmax.xlane.f32.xlu1 %v508_v27  ;;  %506 = vmax.xlane.f32.xlu0 %v505_v28  ;;  %v568_v28 = vsel %vm282_vm0, %v119_v24, -inf  ;;  %v601_v24 = vsel %vm282_vm0, %v130_v16, -inf }
  0x98   :  { %v15987_v32 = vpop.xlane.xlu1 %305  ;;  %v15991_v35 = vpop.xlane.xlu0 %302 }
  0x9b   :  { %515 = vmax.xlane.f32.xlu1 %v514_v33  ;;  %512 = vmax.xlane.f32.xlu0 %v511_v34  ;;  %v121_v33 = vld [vmem:[%s23127_s0 + $0x308] sm:$0xff]  ;;  %v120_v34 = vld [vmem:[%s23127_s0 + $0x300] sm:$0xff] }
  0x9c   :  { %v15999_v38 = vpop.xlane.xlu1 %311  ;;  %v16003_v41 = vpop.xlane.xlu0 %308  ;;  %v574_v37 = vsel %vm282_vm0, %v121_v33, -inf }
  0x9f   :  { %521 = vmax.xlane.f32.xlu1 %v520_v39  ;;  %518 = vmax.xlane.f32.xlu0 %v517_v40  ;;  %v571_v39 = vsel %vm282_vm0, %v120_v34, -inf }
  0xa0   :  { %v16011_v44 = vpop.xlane.xlu1 %317  ;;  %v16015_v47 = vpop.xlane.xlu0 %314 }
  0xa3   :  { %527 = vmax.xlane.f32.xlu1 %v526_v45  ;;  %524 = vmax.xlane.f32.xlu0 %v523_v46  ;;  %v580_v46 = vsel %vm282_vm0, %v123_v42, -inf  ;;  %v135_v42 = vld [vmem:[%s23127_s0 + $0x378] sm:$0xff] }
  0xa4   :  { %v16023_v50 = vpop.xlane.xlu1 %323  ;;  %v16027_v53 = vpop.xlane.xlu0 %320 }
  0xa7   :  { %533 = vmax.xlane.f32.xlu1 %v532_v51  ;;  %530 = vmax.xlane.f32.xlu0 %v529_v52  ;;  %v125_v51 = vld [vmem:[%s23127_s0 + $0x328] sm:$0xff]  ;;  %v124_v52 = vld [vmem:[%s23127_s0 + $0x320] sm:$0xff] }
  0xa8   :  { %v16035_v56 = vpop.xlane.xlu1 %329  ;;  %v16039_v59 = vpop.xlane.xlu0 %326  ;;  %v586_v55 = vsel %vm282_vm0, %v125_v51, -inf  ;;  %v613_v51 = vsel %vm282_vm0, %v134_v43, -inf  ;;  %v142_v43 = vld [vmem:[%s23127_s0 + $0x3b0] sm:$0xff] }
  0xab   :  { %539 = vmax.xlane.f32.xlu1 %v538_v57  ;;  %536 = vmax.xlane.f32.xlu0 %v535_v58  ;;  %v583_v57 = vsel %vm282_vm0, %v124_v52, -inf }
  0xac   :  { %v16047_v62 = vpop.xlane.xlu1 %335  ;;  %v16051_v1 = vpop.xlane.xlu0 %332 }
  0xaf   :  { %545 = vmax.xlane.f32.xlu1 %v544_v63  ;;  %542 = vmax.xlane.f32.xlu0 %v541_v0  ;;  %v592_v0 = vsel %vm282_vm0, %v127_v60, -inf }
  0xb0   :  { %v16059_v4 = vpop.xlane.xlu1 %341  ;;  %v16063_v7 = vpop.xlane.xlu0 %338 }
  0xb3   :  { %551 = vmax.xlane.f32.xlu1 %v550_v5  ;;  %548 = vmax.xlane.f32.xlu0 %v547_v6  ;;  %v129_v5 = vld [vmem:[%s23127_s0 + $0x348] sm:$0xff]  ;;  %v128_v6 = vld [vmem:[%s23127_s0 + $0x340] sm:$0xff] }
  0xb4   :  { %v16071_v10 = vpop.xlane.xlu1 %347  ;;  %v16075_v13 = vpop.xlane.xlu0 %344  ;;  %v598_v9 = vsel %vm282_vm0, %v129_v5, -inf  ;;  %v139_v5 = vld [vmem:[%s23127_s0 + $0x398] sm:$0xff] }
  0xb7   :  { %557 = vmax.xlane.f32.xlu1 %v556_v11  ;;  %554 = vmax.xlane.f32.xlu0 %v553_v12  ;;  %v595_v11 = vsel %vm282_vm0, %v128_v6, -inf  ;;  %v138_v6 = vld [vmem:[%s23127_s0 + $0x390] sm:$0xff] }
  0xb8   :  { %v16083_v18 = vpop.xlane.xlu1 %353  ;;  %v16087_v22 = vpop.xlane.xlu0 %350 }
  0xbb   :  { %563 = vmax.xlane.f32.xlu1 %v562_v19  ;;  %560 = vmax.xlane.f32.xlu0 %v559_v21  ;;  %v604_v21 = vsel %vm282_vm0, %v131_v15, -inf  ;;  %v625_v15 = vsel %vm282_vm0, %v138_v6, -inf }
  0xbc   :  { %v16095_v27 = vpop.xlane.xlu1 %359  ;;  %v16099_v31 = vpop.xlane.xlu0 %356 }
  0xbf   :  { %569 = vmax.xlane.f32.xlu1 %v568_v28  ;;  %566 = vmax.xlane.f32.xlu0 %v565_v30  ;;  %v133_v28 = vld [vmem:[%s23127_s0 + $0x368] sm:$0xff]  ;;  %v132_v30 = vld [vmem:[%s23127_s0 + $0x360] sm:$0xff] }
  0xc0   :  { %v16107_v36 = vpop.xlane.xlu1 %365  ;;  %v16111_v40 = vpop.xlane.xlu0 %362  ;;  %v610_v34 = vsel %vm282_vm0, %v133_v28, -inf }
  0xc3   :  { %575 = vmax.xlane.f32.xlu1 %v574_v37  ;;  %572 = vmax.xlane.f32.xlu0 %v571_v39  ;;  %v607_v37 = vsel %vm282_vm0, %v132_v30, -inf }
  0xc4   :  { %v16119_v45 = vpop.xlane.xlu1 %371  ;;  %v16123_v49 = vpop.xlane.xlu0 %368 }
  0xc7   :  { %581 = vmax.xlane.f32.xlu1 %v580_v46  ;;  %578 = vmax.xlane.f32.xlu0 %v577_v48  ;;  %v616_v48 = vsel %vm282_vm0, %v135_v42, -inf  ;;  %v143_v42 = vld [vmem:[%s23127_s0 + $0x3b8] sm:$0xff] }
  0xc8   :  { %v16131_v54 = vpop.xlane.xlu1 %377  ;;  %v16135_v58 = vpop.xlane.xlu0 %374 }
  0xc9   :  { %23390 = vst [vmem:[#allocation9_spill] sm:$0xff] %v16131_v54  ;;  %23391 = vst [vmem:[#allocation10_spill] sm:$0xff] %v16135_v58 }
  0xcb   :  { %587 = vmax.xlane.f32.xlu1 %v586_v55  ;;  %584 = vmax.xlane.f32.xlu0 %v583_v57  ;;  %v137_v55 = vld [vmem:[%s23127_s0 + $0x388] sm:$0xff]  ;;  %v136_v57 = vld [vmem:[%s23127_s0 + $0x380] sm:$0xff] }
  0xcc   :  { %v16143_v63 = vpop.xlane.xlu1 %383  ;;  %v16147_v3 = vpop.xlane.xlu0 %380  ;;  %v622_v61 = vsel %vm282_vm0, %v137_v55, -inf  ;;  %v637_v55 = vsel %vm282_vm0, %v142_v43, -inf }
  0xcd   :  { %23392 = vst [vmem:[#allocation11_spill] sm:$0xff] %v16143_v63  ;;  %23393 = vst [vmem:[#allocation12_spill] sm:$0xff] %v16147_v3 }
  0xcf   :  { %593 = vmax.xlane.f32.xlu1 %v592_v0  ;;  %590 = vmax.xlane.f32.xlu0 %v589_v2  ;;  %v619_v0 = vsel %vm282_vm0, %v136_v57, -inf }
  0xd0   :  { %v16155_v8 = vpop.xlane.xlu1 %389  ;;  %v16159_v12 = vpop.xlane.xlu0 %386 }
  0xd1   :  { %23394 = vst [vmem:[#allocation13_spill] sm:$0xff] %v16155_v8  ;;  %23395 = vst [vmem:[#allocation14_spill] sm:$0xff] %v16159_v12 }
  0xd3   :  { %599 = vmax.xlane.f32.xlu1 %v598_v9  ;;  %596 = vmax.xlane.f32.xlu0 %v595_v11  ;;  %v628_v11 = vsel %vm282_vm0, %v139_v5, -inf }
  0xd4   :  { %v16167_v19 = vpop.xlane.xlu1 %395  ;;  %v16171_v25 = vpop.xlane.xlu0 %392 }
  0xd5   :  { %23396 = vst [vmem:[#allocation15_spill] sm:$0xff] %v16167_v19  ;;  %23397 = vst [vmem:[#allocation16_spill] sm:$0xff] %v16171_v25 }
  0xd7   :  { %605 = vmax.xlane.f32.xlu1 %v604_v21  ;;  %602 = vmax.xlane.f32.xlu0 %v601_v24  ;;  %v141_v21 = vld [vmem:[%s23127_s0 + $0x3a8] sm:$0xff]  ;;  %v140_v24 = vld [vmem:[%s23127_s0 + $0x3a0] sm:$0xff] }
  0xd8   :  { %v16179_v33 = vpop.xlane.xlu1 %401  ;;  %v16183_v39 = vpop.xlane.xlu0 %398  ;;  %v634_v30 = vsel %vm282_vm0, %v141_v21, -inf  ;;  %v147_v21 = vld [vmem:[%s23127_s0 + $0x3d8] sm:$0xff] }
  0xd9   :  { %23398 = vst [vmem:[#allocation17_spill] sm:$0xff] %v16179_v33  ;;  %23399 = vst [vmem:[#allocation18_spill] sm:$0xff] %v16183_v39 }
  0xdb   :  { %611 = vmax.xlane.f32.xlu1 %v610_v34  ;;  %608 = vmax.xlane.f32.xlu0 %v607_v37  ;;  %v631_v34 = vsel %vm282_vm0, %v140_v24, -inf  ;;  %v146_v24 = vld [vmem:[%s23127_s0 + $0x3d0] sm:$0xff] }
  0xdc   :  { %v16191_v46 = vpop.xlane.xlu1 %407  ;;  %v16195_v52 = vpop.xlane.xlu0 %404 }
  0xdd   :  { %23400 = vst [vmem:[#allocation19_spill] sm:$0xff] %v16191_v46  ;;  %23401 = vst [vmem:[#allocation20_spill] sm:$0xff] %v16195_v52 }
  0xdf   :  { %617 = vmax.xlane.f32.xlu1 %v616_v48  ;;  %614 = vmax.xlane.f32.xlu0 %v613_v51  ;;  %v640_v51 = vsel %vm282_vm0, %v143_v42, -inf  ;;  %v649_v42 = vsel %vm282_vm0, %v146_v24, -inf  ;;  %v150_v24 = vld [vmem:[%s23127_s0 + $0x3f0] sm:$0xff] }
  0xe0   :  { %v16203_v60 = vpop.xlane.xlu1 %413  ;;  %v16207_v2 = vpop.xlane.xlu0 %410 }
  0xe1   :  { %23402 = vst [vmem:[#allocation21_spill] sm:$0xff] %v16203_v60  ;;  %23403 = vst [vmem:[#allocation22_spill] sm:$0xff] %v16207_v2 }
  0xe3   :  { %623 = vmax.xlane.f32.xlu1 %v622_v61  ;;  %620 = vmax.xlane.f32.xlu0 %v619_v0  ;;  %v145_v61 = vld [vmem:[%s23127_s0 + $0x3c8] sm:$0xff]  ;;  %v144_v0 = vld [vmem:[%s23127_s0 + $0x3c0] sm:$0xff] }
  0xe4   :  { %v16215_v9 = vpop.xlane.xlu1 %419  ;;  %v16219_v16 = vpop.xlane.xlu0 %416  ;;  %v646_v6 = vsel %vm282_vm0, %v145_v61, -inf }
  0xe5   :  { %23404 = vst [vmem:[#allocation23_spill] sm:$0xff] %v16215_v9  ;;  %23405 = vst [vmem:[#allocation24_spill] sm:$0xff] %v16219_v16 }
  0xe7   :  { %629 = vmax.xlane.f32.xlu1 %v628_v11  ;;  %626 = vmax.xlane.f32.xlu0 %v625_v15  ;;  %v643_v11 = vsel %vm282_vm0, %v144_v0, -inf }
  0xe8   :  { %v16227_v28 = vpop.xlane.xlu1 %425  ;;  %v16231_v37 = vpop.xlane.xlu0 %422 }
  0xe9   :  { %23406 = vst [vmem:[#allocation25_spill] sm:$0xff] %v16227_v28  ;;  %23407 = vst [vmem:[#allocation26_spill] sm:$0xff] %v16231_v37 }
  0xeb   :  { %635 = vmax.xlane.f32.xlu1 %v634_v30  ;;  %632 = vmax.xlane.f32.xlu0 %v631_v34  ;;  %v652_v34 = vsel %vm282_vm0, %v147_v21, -inf  ;;  %v151_v21 = vld [vmem:[%s23127_s0 + $0x3f8] sm:$0xff] }
  0xec   :  { %v16239_v48 = vpop.xlane.xlu1 %431  ;;  %v16243_v57 = vpop.xlane.xlu0 %428 }
  0xed   :  { %23408 = vst [vmem:[#allocation27_spill] sm:$0xff] %v16239_v48  ;;  %23409 = vst [vmem:[#allocation28_spill] sm:$0xff] %v16243_v57  ;;  %v15635_v48 = vmov 1987475062  }
  0xee   :  { %v1329_v37 = vunpack.c.l.s4 %v15635_v48 }
  0xef   :  { %641 = vmax.xlane.f32.xlu1 %v640_v51  ;;  %638 = vmax.xlane.f32.xlu0 %v637_v55  ;;  %v149_v51 = vld [vmem:[%s23127_s0 + $0x3e8] sm:$0xff]  ;;  %v148_v55 = vld [vmem:[%s23127_s0 + $0x3e0] sm:$0xff] }
  0xf0   :  { %v16251_v5 = vpop.xlane.xlu1 %437  ;;  %v16255_v15 = vpop.xlane.xlu0 %434  ;;  %v658_v0 = vsel %vm282_vm0, %v149_v51, -inf  ;;  %v661_v51 = vsel %vm282_vm0, %v150_v24, -inf  ;;  %v155_v24 = vld [vmem:[%s23127_s0 + $0x418] sm:$0xff]  ;;  %v1330_v28 = vunpack.c.0.s8 %v1329_v37 }
  0xf1   :  { %23410 = vst [vmem:[#allocation29_spill] sm:$0xff] %v16251_v5  ;;  %23411 = vst [vmem:[#allocation30_spill] sm:$0xff] %v16255_v15  ;;  %v15634_v5 = vmov 1414812756  }
  0xf2   :  { %v1322_v57 = vunpack.c.l.s4 %v15634_v5 }
  0xf3   :  { %647 = vmax.xlane.f32.xlu1 %v646_v6  ;;  %644 = vmax.xlane.f32.xlu0 %v643_v11  ;;  %v655_v6 = vsel %vm282_vm0, %v148_v55, -inf  ;;  %v153_v55 = vld [vmem:[%s23127_s0 + $0x408] sm:$0xff] }
  0xf4   :  { %v16263_v30 = vpop.xlane.xlu1 %443  ;;  %v16267_v43 = vpop.xlane.xlu0 %440 }
  0xf5   :  { %23412 = vst [vmem:[#allocation31_spill] sm:$0xff] %v16263_v30  ;;  %23413 = vst [vmem:[#allocation32_spill] sm:$0xff] %v16267_v43  ;;  %v15632_v43 = vmov 269488144  }
  0xf6   :  { %v1308_v30 = vunpack.c.l.s4 %v15632_v43  ;;  %v201_v43 = vld [vmem:[%s23127_s0 + $0x588] sm:$0xff] }
  0xf7   :  { %653 = vmax.xlane.f32.xlu1 %v652_v34  ;;  %650 = vmax.xlane.f32.xlu0 %v649_v42  ;;  %v664_v42 = vsel %vm282_vm0, %v151_v21, -inf  ;;  %v814_v5 = vsel %vm282_vm0, %v201_v43, -inf }
  0xf8   :  { %v16275_v61 = vpop.xlane.xlu1 %449  ;;  %v16279_v11 = vpop.xlane.xlu0 %446 }
  0xf9   :  { %23414 = vst [vmem:[#allocation33_spill] sm:$0xff] %v16275_v61  ;;  %23415 = vst [vmem:[#allocation34_spill] sm:$0xff] %v16279_v11  ;;  %v152_v11 = vld [vmem:[%s23127_s0 + $0x400] sm:$0xff] }
  0xfa   :  { %v667_v21 = vsel %vm282_vm0, %v152_v11, -inf  ;;  %v157_v11 = vld [vmem:[%s23127_s0 + $0x428] sm:$0xff] }
  0xfb   :  { %659 = vmax.xlane.f32.xlu1 %v658_v0  ;;  %656 = vmax.xlane.f32.xlu0 %v655_v6  ;;  %v670_v6 = vsel %vm282_vm0, %v153_v55, -inf }
  0xfc   :  { %v16287_v34 = vpop.xlane.xlu1 %455  ;;  %v16291_v61 = vpop.xlane.xlu0 %452 }
  0xfd   :  { %23416 = vst [vmem:[#allocation35_spill] sm:$0xff] %v16287_v34  ;;  %23417 = vst [vmem:[#allocation36_spill] sm:$0xff] %v16291_v61  ;;  %v154_v61 = vld [vmem:[%s23127_s0 + $0x410] sm:$0xff] }
  0xfe   :  { %v673_v55 = vsel %vm282_vm0, %v154_v61, -inf  ;;  %v159_v61 = vld [vmem:[%s23127_s0 + $0x438] sm:$0xff] }
  0xff   :  { %665 = vmax.xlane.f32.xlu1 %v664_v42  ;;  %662 = vmax.xlane.f32.xlu0 %v661_v51  ;;  %v676_v51 = vsel %vm282_vm0, %v155_v24, -inf }
 0x100   :  { %v16299_v0 = vpop.xlane.xlu1 %461  ;;  %v16303_v34 = vpop.xlane.xlu0 %458 }
 0x101   :  { %23418 = vst [vmem:[#allocation37_spill] sm:$0xff] %v16299_v0  ;;  %23419 = vst [vmem:[#allocation38_spill] sm:$0xff] %v16303_v34  ;;  %v156_v34 = vld [vmem:[%s23127_s0 + $0x420] sm:$0xff] }
 0x102   :  { %v679_v24 = vsel %vm282_vm0, %v156_v34, -inf  ;;  %v161_v34 = vld [vmem:[%s23127_s0 + $0x448] sm:$0xff] }
 0x103   :  { %671 = vmax.xlane.f32.xlu1 %v670_v6  ;;  %668 = vmax.xlane.f32.xlu0 %v667_v21  ;;  %v682_v21 = vsel %vm282_vm0, %v157_v11, -inf }
 0x104   :  { %v16311_v42 = vpop.xlane.xlu1 %467  ;;  %v16315_v0 = vpop.xlane.xlu0 %464 }
 0x105   :  { %23420 = vst [vmem:[#allocation39_spill] sm:$0xff] %v16311_v42  ;;  %23421 = vst [vmem:[#allocation40_spill] sm:$0xff] %v16315_v0  ;;  %v158_v0 = vld [vmem:[%s23127_s0 + $0x430] sm:$0xff] }
 0x106   :  { %v685_v11 = vsel %vm282_vm0, %v158_v0, -inf  ;;  %v163_v0 = vld [vmem:[%s23127_s0 + $0x458] sm:$0xff] }
 0x107   :  { %677 = vmax.xlane.f32.xlu1 %v676_v51  ;;  %674 = vmax.xlane.f32.xlu0 %v673_v55  ;;  %v688_v55 = vsel %vm282_vm0, %v159_v61, -inf }
 0x108   :  { %v16323_v6 = vpop.xlane.xlu1 %473  ;;  %v16327_v42 = vpop.xlane.xlu0 %470 }
 0x109   :  { %23422 = vst [vmem:[#allocation41_spill] sm:$0xff] %v16323_v6  ;;  %23423 = vst [vmem:[#allocation42_spill] sm:$0xff] %v16327_v42  ;;  %v160_v42 = vld [vmem:[%s23127_s0 + $0x440] sm:$0xff] }
 0x10a   :  { %v691_v61 = vsel %vm282_vm0, %v160_v42, -inf  ;;  %v165_v42 = vld [vmem:[%s23127_s0 + $0x468] sm:$0xff] }
 0x10b   :  { %683 = vmax.xlane.f32.xlu1 %v682_v21  ;;  %680 = vmax.xlane.f32.xlu0 %v679_v24  ;;  %v694_v24 = vsel %vm282_vm0, %v161_v34, -inf }
 0x10c   :  { %v16335_v51 = vpop.xlane.xlu1 %479  ;;  %v16339_v6 = vpop.xlane.xlu0 %476 }
 0x10d   :  { %23424 = vst [vmem:[#allocation43_spill] sm:$0xff] %v16335_v51  ;;  %23425 = vst [vmem:[#allocation44_spill] sm:$0xff] %v16339_v6  ;;  %v162_v6 = vld [vmem:[%s23127_s0 + $0x450] sm:$0xff] }
 0x10e   :  { %v697_v34 = vsel %vm282_vm0, %v162_v6, -inf  ;;  %v167_v6 = vld [vmem:[%s23127_s0 + $0x478] sm:$0xff] }
 0x10f   :  { %689 = vmax.xlane.f32.xlu1 %v688_v55  ;;  %686 = vmax.xlane.f32.xlu0 %v685_v11  ;;  %v700_v11 = vsel %vm282_vm0, %v163_v0, -inf }
 0x110   :  { %v16347_v21 = vpop.xlane.xlu1 %485  ;;  %v16351_v51 = vpop.xlane.xlu0 %482 }
 0x111   :  { %23426 = vst [vmem:[#allocation45_spill] sm:$0xff] %v16347_v21  ;;  %23427 = vst [vmem:[#allocation46_spill] sm:$0xff] %v16351_v51  ;;  %v164_v51 = vld [vmem:[%s23127_s0 + $0x460] sm:$0xff] }
 0x112   :  { %v703_v0 = vsel %vm282_vm0, %v164_v51, -inf  ;;  %v169_v51 = vld [vmem:[%s23127_s0 + $0x488] sm:$0xff] }
 0x113   :  { %695 = vmax.xlane.f32.xlu1 %v694_v24  ;;  %692 = vmax.xlane.f32.xlu0 %v691_v61  ;;  %v706_v61 = vsel %vm282_vm0, %v165_v42, -inf }
 0x114   :  { %v16359_v55 = vpop.xlane.xlu1 %491  ;;  %v16363_v21 = vpop.xlane.xlu0 %488 }
 0x115   :  { %23428 = vst [vmem:[#allocation47_spill] sm:$0xff] %v16359_v55  ;;  %23429 = vst [vmem:[#allocation48_spill] sm:$0xff] %v16363_v21  ;;  %v166_v21 = vld [vmem:[%s23127_s0 + $0x470] sm:$0xff] }
 0x116   :  { %v709_v42 = vsel %vm282_vm0, %v166_v21, -inf  ;;  %v171_v21 = vld [vmem:[%s23127_s0 + $0x498] sm:$0xff] }
 0x117   :  { %701 = vmax.xlane.f32.xlu1 %v700_v11  ;;  %698 = vmax.xlane.f32.xlu0 %v697_v34  ;;  %v712_v34 = vsel %vm282_vm0, %v167_v6, -inf }
 0x118   :  { %v16371_v24 = vpop.xlane.xlu1 %497  ;;  %v16375_v55 = vpop.xlane.xlu0 %494 }
 0x119   :  { %23430 = vst [vmem:[#allocation49_spill] sm:$0xff] %v16371_v24  ;;  %23431 = vst [vmem:[#allocation50_spill] sm:$0xff] %v16375_v55  ;;  %v168_v55 = vld [vmem:[%s23127_s0 + $0x480] sm:$0xff] }
 0x11a   :  { %v715_v6 = vsel %vm282_vm0, %v168_v55, -inf  ;;  %v173_v55 = vld [vmem:[%s23127_s0 + $0x4a8] sm:$0xff] }
 0x11b   :  { %707 = vmax.xlane.f32.xlu1 %v706_v61  ;;  %704 = vmax.xlane.f32.xlu0 %v703_v0  ;;  %v718_v0 = vsel %vm282_vm0, %v169_v51, -inf }
 0x11c   :  { %v16383_v11 = vpop.xlane.xlu1 %503  ;;  %v16387_v24 = vpop.xlane.xlu0 %500 }
 0x11d   :  { %23432 = vst [vmem:[#allocation51_spill] sm:$0xff] %v16383_v11  ;;  %23433 = vst [vmem:[#allocation52_spill] sm:$0xff] %v16387_v24  ;;  %v170_v24 = vld [vmem:[%s23127_s0 + $0x490] sm:$0xff] }
 0x11e   :  { %v721_v51 = vsel %vm282_vm0, %v170_v24, -inf  ;;  %v175_v24 = vld [vmem:[%s23127_s0 + $0x4b8] sm:$0xff] }
 0x11f   :  { %713 = vmax.xlane.f32.xlu1 %v712_v34  ;;  %710 = vmax.xlane.f32.xlu0 %v709_v42  ;;  %v724_v42 = vsel %vm282_vm0, %v171_v21, -inf }
 0x120   :  { %v16395_v61 = vpop.xlane.xlu1 %509  ;;  %v16399_v11 = vpop.xlane.xlu0 %506 }
 0x121   :  { %23434 = vst [vmem:[#allocation53_spill] sm:$0xff] %v16395_v61  ;;  %23435 = vst [vmem:[#allocation54_spill] sm:$0xff] %v16399_v11  ;;  %v172_v11 = vld [vmem:[%s23127_s0 + $0x4a0] sm:$0xff] }
 0x122   :  { %v727_v21 = vsel %vm282_vm0, %v172_v11, -inf  ;;  %v177_v11 = vld [vmem:[%s23127_s0 + $0x4c8] sm:$0xff] }
 0x123   :  { %719 = vmax.xlane.f32.xlu1 %v718_v0  ;;  %716 = vmax.xlane.f32.xlu0 %v715_v6  ;;  %v730_v6 = vsel %vm282_vm0, %v173_v55, -inf }
 0x124   :  { %v16407_v34 = vpop.xlane.xlu1 %515  ;;  %v16411_v61 = vpop.xlane.xlu0 %512 }
 0x125   :  { %23436 = vst [vmem:[#allocation55_spill] sm:$0xff] %v16407_v34  ;;  %23437 = vst [vmem:[#allocation56_spill] sm:$0xff] %v16411_v61  ;;  %v174_v61 = vld [vmem:[%s23127_s0 + $0x4b0] sm:$0xff] }
 0x126   :  { %v733_v55 = vsel %vm282_vm0, %v174_v61, -inf  ;;  %v179_v61 = vld [vmem:[%s23127_s0 + $0x4d8] sm:$0xff] }
 0x127   :  { %725 = vmax.xlane.f32.xlu1 %v724_v42  ;;  %722 = vmax.xlane.f32.xlu0 %v721_v51  ;;  %v736_v51 = vsel %vm282_vm0, %v175_v24, -inf }
 0x128   :  { %v16419_v0 = vpop.xlane.xlu1 %521  ;;  %v16423_v34 = vpop.xlane.xlu0 %518 }
 0x129   :  { %23438 = vst [vmem:[#allocation57_spill] sm:$0xff] %v16419_v0  ;;  %23439 = vst [vmem:[#allocation58_spill] sm:$0xff] %v16423_v34  ;;  %v176_v34 = vld [vmem:[%s23127_s0 + $0x4c0] sm:$0xff] }
 0x12a   :  { %v739_v24 = vsel %vm282_vm0, %v176_v34, -inf  ;;  %v181_v34 = vld [vmem:[%s23127_s0 + $0x4e8] sm:$0xff] }
 0x12b   :  { %731 = vmax.xlane.f32.xlu1 %v730_v6  ;;  %728 = vmax.xlane.f32.xlu0 %v727_v21  ;;  %v742_v21 = vsel %vm282_vm0, %v177_v11, -inf }
 0x12c   :  { %v16431_v42 = vpop.xlane.xlu1 %527  ;;  %v16435_v0 = vpop.xlane.xlu0 %524 }
 0x12d   :  { %23440 = vst [vmem:[#allocation59_spill] sm:$0xff] %v16431_v42  ;;  %23441 = vst [vmem:[#allocation60_spill] sm:$0xff] %v16435_v0  ;;  %v178_v0 = vld [vmem:[%s23127_s0 + $0x4d0] sm:$0xff] }
 0x12e   :  { %v745_v11 = vsel %vm282_vm0, %v178_v0, -inf  ;;  %v183_v0 = vld [vmem:[%s23127_s0 + $0x4f8] sm:$0xff] }
 0x12f   :  { %737 = vmax.xlane.f32.xlu1 %v736_v51  ;;  %734 = vmax.xlane.f32.xlu0 %v733_v55  ;;  %v748_v55 = vsel %vm282_vm0, %v179_v61, -inf }
 0x130   :  { %v16443_v6 = vpop.xlane.xlu1 %533  ;;  %v16447_v42 = vpop.xlane.xlu0 %530 }
 0x131   :  { %23442 = vst [vmem:[#allocation61_spill] sm:$0xff] %v16443_v6  ;;  %23443 = vst [vmem:[#allocation62_spill] sm:$0xff] %v16447_v42  ;;  %v180_v42 = vld [vmem:[%s23127_s0 + $0x4e0] sm:$0xff] }
 0x132   :  { %v751_v61 = vsel %vm282_vm0, %v180_v42, -inf  ;;  %v185_v42 = vld [vmem:[%s23127_s0 + $0x508] sm:$0xff] }
 0x133   :  { %743 = vmax.xlane.f32.xlu1 %v742_v21  ;;  %740 = vmax.xlane.f32.xlu0 %v739_v24  ;;  %v754_v24 = vsel %vm282_vm0, %v181_v34, -inf }
 0x134   :  { %v16455_v51 = vpop.xlane.xlu1 %539  ;;  %v16459_v6 = vpop.xlane.xlu0 %536 }
 0x135   :  { %23444 = vst [vmem:[#allocation63_spill] sm:$0xff] %v16455_v51  ;;  %23445 = vst [vmem:[#allocation64_spill] sm:$0xff] %v16459_v6  ;;  %v182_v6 = vld [vmem:[%s23127_s0 + $0x4f0] sm:$0xff] }
 0x136   :  { %v757_v34 = vsel %vm282_vm0, %v182_v6, -inf  ;;  %v187_v6 = vld [vmem:[%s23127_s0 + $0x518] sm:$0xff] }
 0x137   :  { %749 = vmax.xlane.f32.xlu1 %v748_v55  ;;  %746 = vmax.xlane.f32.xlu0 %v745_v11  ;;  %v760_v11 = vsel %vm282_vm0, %v183_v0, -inf }
 0x138   :  { %v16467_v21 = vpop.xlane.xlu1 %545  ;;  %v16471_v51 = vpop.xlane.xlu0 %542 }
 0x139   :  { %23446 = vst [vmem:[#allocation65_spill] sm:$0xff] %v16467_v21  ;;  %23447 = vst [vmem:[#allocation66_spill] sm:$0xff] %v16471_v51  ;;  %v184_v51 = vld [vmem:[%s23127_s0 + $0x500] sm:$0xff] }
 0x13a   :  { %v763_v0 = vsel %vm282_vm0, %v184_v51, -inf  ;;  %v189_v51 = vld [vmem:[%s23127_s0 + $0x528] sm:$0xff] }
 0x13b   :  { %755 = vmax.xlane.f32.xlu1 %v754_v24  ;;  %752 = vmax.xlane.f32.xlu0 %v751_v61  ;;  %v766_v61 = vsel %vm282_vm0, %v185_v42, -inf }
 0x13c   :  { %v16479_v55 = vpop.xlane.xlu1 %551  ;;  %v16483_v21 = vpop.xlane.xlu0 %548 }
 0x13d   :  { %23448 = vst [vmem:[#allocation67_spill] sm:$0xff] %v16479_v55  ;;  %23449 = vst [vmem:[#allocation68_spill] sm:$0xff] %v16483_v21  ;;  %v186_v21 = vld [vmem:[%s23127_s0 + $0x510] sm:$0xff] }
 0x13e   :  { %v769_v42 = vsel %vm282_vm0, %v186_v21, -inf  ;;  %v191_v21 = vld [vmem:[%s23127_s0 + $0x538] sm:$0xff] }
 0x13f   :  { %761 = vmax.xlane.f32.xlu1 %v760_v11  ;;  %758 = vmax.xlane.f32.xlu0 %v757_v34  ;;  %v772_v34 = vsel %vm282_vm0, %v187_v6, -inf }
 0x140   :  { %v16491_v24 = vpop.xlane.xlu1 %557  ;;  %v16495_v55 = vpop.xlane.xlu0 %554 }
 0x141   :  { %23450 = vst [vmem:[#allocation69_spill] sm:$0xff] %v16491_v24  ;;  %23451 = vst [vmem:[#allocation70_spill] sm:$0xff] %v16495_v55  ;;  %v188_v55 = vld [vmem:[%s23127_s0 + $0x520] sm:$0xff] }
 0x142   :  { %v775_v6 = vsel %vm282_vm0, %v188_v55, -inf  ;;  %v193_v55 = vld [vmem:[%s23127_s0 + $0x548] sm:$0xff] }
 0x143   :  { %767 = vmax.xlane.f32.xlu1 %v766_v61  ;;  %764 = vmax.xlane.f32.xlu0 %v763_v0  ;;  %v778_v0 = vsel %vm282_vm0, %v189_v51, -inf }
 0x144   :  { %v16503_v11 = vpop.xlane.xlu1 %563  ;;  %v16507_v24 = vpop.xlane.xlu0 %560 }
 0x145   :  { %23452 = vst [vmem:[#allocation71_spill] sm:$0xff] %v16503_v11  ;;  %23453 = vst [vmem:[#allocation72_spill] sm:$0xff] %v16507_v24  ;;  %v190_v24 = vld [vmem:[%s23127_s0 + $0x530] sm:$0xff] }
 0x146   :  { %v781_v51 = vsel %vm282_vm0, %v190_v24, -inf  ;;  %v195_v24 = vld [vmem:[%s23127_s0 + $0x558] sm:$0xff] }
 0x147   :  { %773 = vmax.xlane.f32.xlu1 %v772_v34  ;;  %770 = vmax.xlane.f32.xlu0 %v769_v42  ;;  %v784_v42 = vsel %vm282_vm0, %v191_v21, -inf }
 0x148   :  { %v16515_v61 = vpop.xlane.xlu1 %569  ;;  %v16519_v11 = vpop.xlane.xlu0 %566 }
 0x149   :  { %23454 = vst [vmem:[#allocation73_spill] sm:$0xff] %v16515_v61  ;;  %23455 = vst [vmem:[#allocation74_spill] sm:$0xff] %v16519_v11  ;;  %v192_v11 = vld [vmem:[%s23127_s0 + $0x540] sm:$0xff] }
 0x14a   :  { %v787_v21 = vsel %vm282_vm0, %v192_v11, -inf  ;;  %v197_v11 = vld [vmem:[%s23127_s0 + $0x568] sm:$0xff] }
 0x14b   :  { %779 = vmax.xlane.f32.xlu1 %v778_v0  ;;  %776 = vmax.xlane.f32.xlu0 %v775_v6  ;;  %v790_v6 = vsel %vm282_vm0, %v193_v55, -inf }
 0x14c   :  { %v16527_v34 = vpop.xlane.xlu1 %575  ;;  %v16531_v61 = vpop.xlane.xlu0 %572 }
 0x14d   :  { %23456 = vst [vmem:[#allocation75_spill] sm:$0xff] %v16527_v34  ;;  %23457 = vst [vmem:[#allocation76_spill] sm:$0xff] %v16531_v61  ;;  %v194_v61 = vld [vmem:[%s23127_s0 + $0x550] sm:$0xff] }
 0x14e   :  { %v793_v55 = vsel %vm282_vm0, %v194_v61, -inf  ;;  %v199_v61 = vld [vmem:[%s23127_s0 + $0x578] sm:$0xff] }
 0x14f   :  { %785 = vmax.xlane.f32.xlu1 %v784_v42  ;;  %782 = vmax.xlane.f32.xlu0 %v781_v51  ;;  %v796_v51 = vsel %vm282_vm0, %v195_v24, -inf }
 0x150   :  { %v16539_v0 = vpop.xlane.xlu1 %581  ;;  %v16543_v34 = vpop.xlane.xlu0 %578 }
 0x151   :  { %23458 = vst [vmem:[#allocation77_spill] sm:$0xff] %v16539_v0  ;;  %23459 = vst [vmem:[#allocation78_spill] sm:$0xff] %v16543_v34  ;;  %v196_v34 = vld [vmem:[%s23127_s0 + $0x560] sm:$0xff] }
 0x152   :  { %v799_v24 = vsel %vm282_vm0, %v196_v34, -inf  ;;  %v808_v34 = vsel %vm282_vm0, %v199_v61, -inf }
 0x153   :  { %791 = vmax.xlane.f32.xlu1 %v790_v6  ;;  %788 = vmax.xlane.f32.xlu0 %v787_v21  ;;  %v802_v21 = vsel %vm282_vm0, %v197_v11, -inf }
 0x154   :  { %v16551_v42 = vpop.xlane.xlu1 %587  ;;  %v16555_v0 = vpop.xlane.xlu0 %584 }
 0x155   :  { %23460 = vst [vmem:[#allocation79_spill] sm:$0xff] %v16551_v42  ;;  %23461 = vst [vmem:[#allocation80_spill] sm:$0xff] %v16555_v0  ;;  %v198_v0 = vld [vmem:[%s23127_s0 + $0x570] sm:$0xff] }
 0x157   :  { %797 = vmax.xlane.f32.xlu1 %v796_v51  ;;  %794 = vmax.xlane.f32.xlu0 %v793_v55  ;;  %v23192_v51 = vlaneseq  ;;  %v15633_v55 = vmov 842150450  }
 0x158   :  { %v16563_v6 = vpop.xlane.xlu1 %593  ;;  %v16567_v42 = vpop.xlane.xlu0 %590 }
 0x159   :  { %23462 = vst [vmem:[#allocation81_spill] sm:$0xff] %v16563_v6  ;;  %23463 = vst [vmem:[#allocation82_spill] sm:$0xff] %v16567_v42  ;;  %v1315_v6 = vunpack.c.l.s4 %v15633_v55  ;;  %v805_v42 = vsel %vm282_vm0, %v198_v0, -inf  ;;  %v16588_v55 = vshrl.u32 %v23192_v51, 7 }
 0x15b   :  { %803 = vmax.xlane.f32.xlu1 %v802_v21  ;;  %800 = vmax.xlane.f32.xlu0 %v799_v24  ;;  %v200_v21 = vld [vmem:[%s23127_s0 + $0x580] sm:$0xff]  ;;  %v1309_v24 = vunpack.c.0.s8 %v1308_v30  ;;  %23466 = vst [vmem:[#allocation85_spill] sm:$0xff] %v16588_v55  ;;  %v1316_v0 = vunpack.c.0.s8 %v1315_v6  ;;  %v203_v30 = vld [vmem:[%s23127_s0 + $0x598] sm:$0xff] }
 0x15c   :  { %v16575_v11 = vpop.xlane.xlu1 %599  ;;  %v16579_v15 = vpop.xlane.xlu0 %596  ;;  %v811_v48 = vsel %vm282_vm0, %v200_v21, -inf  ;;  %v820_v37 = vsel %vm282_vm0, %v203_v30, -inf }
 0x15d   :  { %23464 = vst [vmem:[#allocation83_spill] sm:$0xff] %v16575_v11  ;;  %23465 = vst [vmem:[#allocation84_spill] sm:$0xff] %v16579_v15  ;;  %v1323_v11 = vunpack.c.0.s8 %v1322_v57  ;;  %v16603_v43 = vsub.s32 %v1309_v24, %v16588_v55  ;;  %v16606_v21 = vsub.s32 %v1316_v0, %v16588_v55  ;;  %v205_v24 = vld [vmem:[%s23127_s0 + $0x5a8] sm:$0xff]  ;;  %v204_v0 = vld [vmem:[%s23127_s0 + $0x5a0] sm:$0xff] }
 0x15f   :  { %809 = vmax.xlane.f32.xlu1 %v808_v34  ;;  %806 = vmax.xlane.f32.xlu0 %v805_v42  ;;  %v202_v34 = vld [vmem:[%s23127_s0 + $0x590] sm:$0xff]  ;;  %v15636_v42 = vmov 1983009808   ;;  %v1369_v30 = vrot.slane %v15951_v14, %v16603_v43  ;;  %v1348_v16 = vrot.slane %v15967_v23, %v16606_v21  ;;  %v1397_v60 = vrot.slane %v15963_v20, %v16603_v43 }
 0x160   :  { %v16590_v61 = vpop.xlane.xlu1 %605  ;;  %v16594_v15 = vpop.xlane.xlu0 %602  ;;  %v8478_v6 = vunpack.c.l.s4 %v15636_v42  ;;  %v817_v51 = vsel %vm282_vm0, %v202_v34, -inf  ;;  %v823_v42 = vsel %vm282_vm0, %v204_v0, -inf  ;;  %v206_v0 = vld [vmem:[%s23127_s0 + $0x5b0] sm:$0xff] }
 0x161   :  { %23467 = vst [vmem:[#allocation86_spill] sm:$0xff] %v16590_v61  ;;  %23468 = vst [vmem:[#allocation87_spill] sm:$0xff] %v16594_v15  ;;  %v16615_v61 = vsub.s32 %v1323_v11, %v16588_v55  ;;  %v1376_v11 = vrot.slane %v15951_v14, %v16606_v21  ;;  %v829_v39 = vsel %vm282_vm0, %v206_v0, -inf }
 0x163   :  { %815 = vmax.xlane.f32.xlu1 %v814_v5  ;;  %812 = vmax.xlane.f32.xlu0 %v811_v48  ;;  %v16618_v5 = vsub.s32 %v1330_v28, %v16588_v55  ;;  %v8479_v48 = vunpack.c.0.s8 %v8478_v6  ;;  %v826_v28 = vsel %vm282_vm0, %v205_v24, -inf  ;;  %v1313_v6 = vrot.slane %v15955_v17, %v16603_v43  ;;  %v207_v24 = vld [vmem:[%s23127_s0 + $0x5b8] sm:$0xff] }
 0x164   :  { %v16608_v57 = vpop.xlane.xlu1 %611  ;;  %v16612_v15 = vpop.xlane.xlu0 %608  ;;  %v1355_v9 = vrot.slane %v15967_v23, %v16615_v61  ;;  %v832_v46 = vsel %vm282_vm0, %v207_v24, -inf  ;;  %v16672_v25 = vcombine.low %v1369_v30, %v1376_v11  ;;  %v1411_v30 = vrot.slane %v15963_v20, %v16615_v61 }
 0x165   :  { %23469 = vst [vmem:[#allocation88_spill] sm:$0xff] %v16608_v57  ;;  %23470 = vst [vmem:[#allocation89_spill] sm:$0xff] %v16612_v15  ;;  %v1383_v57 = vrot.slane %v15951_v14, %v16615_v61  ;;  %v1362_v2 = vrot.slane %v15967_v23, %v16618_v5  ;;  %v1418_v11 = vrot.slane %v15963_v20, %v16618_v5 }
 0x167   :  { %821 = vmax.xlane.f32.xlu1 %v820_v37  ;;  %818 = vmax.xlane.f32.xlu0 %v817_v51  ;;  %v1390_v51 = vrot.slane %v15951_v14, %v16618_v5  ;;  %v1320_v37 = vrot.slane %v15955_v17, %v16606_v21  ;;  %v1334_v14 = vrot.slane %v15955_v17, %v16618_v5 }
 0x168   :  { %v16630_v34 = vpop.xlane.xlu1 %617  ;;  %v16634_v15 = vpop.xlane.xlu0 %614  ;;  %v8493_v19 = vcombine.low %v1355_v9, %v1362_v2  ;;  %v210_v2 = vld [vmem:[%s23127_s0 + $0x5d0] sm:$0xff]  ;;  %v1432_v9 = vrot.slane %v15979_v29, %v16606_v21 }
 0x169   :  { %23471 = vst [vmem:[#allocation90_spill] sm:$0xff] %v16630_v34  ;;  %23472 = vst [vmem:[#allocation91_spill] sm:$0xff] %v16634_v15  ;;  %v1327_v15 = vrot.slane %v15955_v17, %v16615_v61  ;;  %v1341_v34 = vrot.slane %v15967_v23, %v16603_v43  ;;  %v1404_v17 = vrot.slane %v15963_v20, %v16606_v21  ;;  %v209_v23 = vld [vmem:[%s23127_s0 + $0x5c8] sm:$0xff] }
 0x16a   :  { %v16685_v24 = vcombine.low %v1313_v6, %v1320_v37  ;;  %v1467_v20 = vrot.slane %v15975_v26, %v16615_v61  ;;  %v1439_v6 = vrot.slane %v15979_v29, %v16615_v61 }
 0x16b   :  { %827 = vmax.xlane.f32.xlu1 %v826_v28  ;;  %824 = vmax.xlane.f32.xlu0 %v823_v42  ;;  %v208_v28 = vld [vmem:[%s23127_s0 + $0x5c0] sm:$0xff]  ;;  %v16681_v42 = vsub.s32 %v8479_v48, %v16588_v55  ;;  %v16687_v0 = vcombine.low %v1327_v15, %v1334_v14  ;;  %v16693_v12 = vcombine.low %v1397_v60, %v1404_v17  ;;  %v838_v15 = vsel %vm282_vm0, %v209_v23, -inf  ;;  %v211_v60 = vld [vmem:[%s23127_s0 + $0x5d8] sm:$0xff] }
 0x16c   :  { %v16666_v52 = vpop.xlane.xlu1 %623  ;;  %v16670_v33 = vpop.xlane.xlu0 %620  ;;  %v1509_v14 = vrot.slane %v15987_v32, %v16603_v43  ;;  %v1516_v17 = vrot.slane %v15987_v32, %v16606_v21  ;;  %v1530_v55 = vrot.slane %v15987_v32, %v16618_v5 }
 0x16d   :  { %23473 = vst [vmem:[#allocation92_spill] sm:$0xff] %v16666_v52  ;;  %23474 = vst [vmem:[#allocation93_spill] sm:$0xff] %v16670_v33  ;;  %v16683_v52 = vcombine.low %v1383_v57, %v1390_v51  ;;  %v8492_v33 = vcombine.low %v1341_v34, %v1348_v16  ;;  %v1453_v57 = vrot.slane %v15975_v26, %v16603_v43  ;;  %v835_v16 = vsel %vm282_vm0, %v208_v28, -inf }
 0x16e   :  { %23475 = vst [vmem:[#allocation94_spill] sm:$0xff] %v16681_v42  ;;  %v1460_v51 = vrot.slane %v15975_v26, %v16606_v21  ;;  %v8507_v23 = vrot.slane %v8493_v19, %v16681_v42  ;;  %v1523_v28 = vrot.slane %v15987_v32, %v16615_v61  ;;  %v1488_v19 = vrot.slane %v15991_v35, %v16606_v21 }
 0x16f   :  { %833 = vmax.xlane.f32.xlu1 %v832_v46  ;;  %830 = vmax.xlane.f32.xlu0 %v829_v39  ;;  %v1474_v39 = vrot.slane %v15975_v26, %v16618_v5  ;;  %v1425_v46 = vrot.slane %v15979_v29, %v16603_v43  ;;  %v1446_v26 = vrot.slane %v15979_v29, %v16618_v5  ;;  %v844_v29 = vsel %vm282_vm0, %v211_v60, -inf  ;;  %v213_v60 = vld [vmem:[%s23127_s0 + $0x5e8] sm:$0xff] }
 0x170   :  { %v16697_v48 = vpop.xlane.xlu1 %629  ;;  %v16701_v34 = vpop.xlane.xlu0 %626  ;;  %v8500_v37 = vrot.slane %v8492_v33, %v16681_v42  ;;  %v841_v33 = vsel %vm282_vm0, %v210_v2, -inf  ;;  %v1502_v32 = vrot.slane %v15991_v35, %v16618_v5  ;;  %v212_v2 = vld [vmem:[%s23127_s0 + $0x5e0] sm:$0xff]  ;;  %v8517_v8 = vrot.slane %v16672_v25, %v16681_v42 }
 0x171   :  { %23476 = vst [vmem:[#allocation95_spill] sm:$0xff] %v16697_v48  ;;  %23477 = vst [vmem:[#allocation96_spill] sm:$0xff] %v16701_v34  ;;  %v8524_v3 = vrot.slane %v16683_v52, %v16681_v42  ;;  %v16761_v63 = vcombine.low %v1467_v20, %v1474_v39  ;;  %v16765_v58 = vcombine.low %v1439_v6, %v1446_v26  ;;  %v847_v25 = vsel %vm282_vm0, %v212_v2, -inf }
 0x172   :  { %v16767_v54 = vcombine.low %v1509_v14, %v1516_v17  ;;  %v1565_v52 = vrot.slane %v15999_v38, %v16603_v43  ;;  %v1572_v6 = vrot.slane %v15999_v38, %v16606_v21  ;;  %v1579_v26 = vrot.slane %v15999_v38, %v16615_v61 }
 0x173   :  { %839 = vmax.xlane.f32.xlu1 %v838_v15  ;;  %836 = vmax.xlane.f32.xlu0 %v835_v16  ;;  %v1481_v15 = vrot.slane %v15991_v35, %v16603_v43  ;;  %v1495_v16 = vrot.slane %v15991_v35, %v16615_v61  ;;  %v16763_v35 = vcombine.low %v1425_v46, %v1432_v9  ;;  %v214_v46 = vld [vmem:[%s23127_s0 + $0x5f0] sm:$0xff] }
 0x174   :  { %v16733_v34 = vpop.xlane.xlu1 %635  ;;  %v16737_v48 = vpop.xlane.xlu0 %632  ;;  %23480 = vst [vmem:[#allocation99_spill] sm:$0xff] %v16767_v54  ;;  %v16789_v9 = vcombine.low %v8500_v37, %v8507_v23  ;;  %v1586_v14 = vrot.slane %v15999_v38, %v16618_v5  ;;  %v1537_v17 = vrot.slane %v16003_v41, %v16603_v43  ;;  %v1558_v37 = vrot.slane %v16003_v41, %v16618_v5 }
 0x175   :  { %23478 = vst [vmem:[#allocation97_spill] sm:$0xff] %v16733_v34  ;;  %23479 = vst [vmem:[#allocation98_spill] sm:$0xff] %v16737_v48  ;;  %v16753_v48 = vcombine.low %v1411_v30, %v1418_v11  ;;  %v16755_v34 = vcombine.low %v1453_v57, %v1460_v51  ;;  %v16769_v30 = vcombine.low %v1523_v28, %v1530_v55  ;;  %v850_v57 = vsel %vm282_vm0, %v213_v60, -inf  ;;  %v215_v55 = vld [vmem:[%s23127_s0 + $0x5f8] sm:$0xff] }
 0x176   :  { %v16779_v20 = vcombine.low %v1481_v15, %v1488_v19  ;;  %v16781_v39 = vcombine.low %v1495_v16, %v1502_v32  ;;  %23485 = vst [vmem:[#allocation104_spill] sm:$0xff] %v16789_v9  ;;  %v1544_v28 = vrot.slane %v16003_v41, %v16606_v21  ;;  %v853_v38 = vsel %vm282_vm0, %v214_v46, -inf }
 0x177   :  { %845 = vmax.xlane.f32.xlu1 %v844_v29  ;;  %842 = vmax.xlane.f32.xlu0 %v841_v33  ;;  %23481 = vst [vmem:[#allocation100_spill] sm:$0xff] %v16769_v30  ;;  %v1551_v29 = vrot.slane %v16003_v41, %v16615_v61  ;;  %v856_v33 = vsel %vm282_vm0, %v215_v55, -inf  ;;  %v8483_v19 = vrot.slane %v16685_v24, %v16681_v42  ;;  %v216_v24 = vld [vmem:[%s23127_s0 + $0x600] sm:$0xff] }
 0x178   :  { %v16771_v11 = vpop.xlane.xlu1 %641  ;;  %v16775_v51 = vpop.xlane.xlu0 %638  ;;  %23484 = vst [vmem:[#allocation103_spill] sm:$0xff] %v16781_v39  ;;  %v8490_v16 = vrot.slane %v16687_v0, %v16681_v42  ;;  %v1621_v32 = vrot.slane %v16011_v44, %v16603_v43  ;;  %v1628_v41 = vrot.slane %v16011_v44, %v16606_v21  ;;  %v1635_v60 = vrot.slane %v16011_v44, %v16615_v61 }
 0x179   :  { %23482 = vst [vmem:[#allocation101_spill] sm:$0xff] %v16771_v11  ;;  %23483 = vst [vmem:[#allocation102_spill] sm:$0xff] %v16775_v51  ;;  %v1642_v2 = vrot.slane %v16011_v44, %v16618_v5  ;;  %v1593_v0 = vrot.slane %v16015_v47, %v16603_v43  ;;  %v1607_v55 = vrot.slane %v16015_v47, %v16615_v61  ;;  %v859_v54 = vsel %vm282_vm0, %v216_v24, -inf }
 0x17a   :  { %v1614_v44 = vrot.slane %v16015_v47, %v16618_v5  ;;  %v16837_v46 = vcombine.low %v1565_v52, %v1572_v6  ;;  %v16843_v51 = vcombine.low %v1537_v17, %v1544_v28  ;;  %v16845_v11 = vcombine.low %v1551_v29, %v1558_v37  ;;  %v219_v6 = vld [vmem:[%s23127_s0 + $0x618] sm:$0xff] }
 0x17b   :  { %851 = vmax.xlane.f32.xlu1 %v850_v57  ;;  %848 = vmax.xlane.f32.xlu0 %v847_v25  ;;  %v217_v57 = vld [vmem:[%s23127_s0 + $0x608] sm:$0xff]  ;;  %v1600_v25 = vrot.slane %v16015_v47, %v16606_v21  ;;  %v16853_v47 = vcombine.low %v1621_v32, %v1628_v41  ;;  %v16855_v52 = vcombine.low %v1635_v60, %v1642_v2 }
 0x17c   :  { %v16805_v23 = vpop.xlane.xlu1 %647  ;;  %v16809_v15 = vpop.xlane.xlu0 %644  ;;  %v862_v30 = vsel %vm282_vm0, %v217_v57, -inf  ;;  %v16869_v17 = vcombine.low %v1607_v55, %v1614_v44  ;;  %v16871_v28 = vcombine.low %v8483_v19, %v8490_v16  ;;  %v8534_v29 = vrot.slane %v16693_v12, %v16681_v42  ;;  %v221_v2 = vld [vmem:[%s23127_s0 + $0x628] sm:$0xff]  ;;  %v220_v57 = vld [vmem:[%s23127_s0 + $0x620] sm:$0xff] }
 0x17d   :  { %23486 = vst [vmem:[#allocation105_spill] sm:$0xff] %v16805_v23  ;;  %23487 = vst [vmem:[#allocation106_spill] sm:$0xff] %v16809_v15  ;;  %v16839_v15 = vcombine.low %v1579_v26, %v1586_v14  ;;  %v16841_v23 = vcombine.low %v8517_v8, %v8524_v3  ;;  %v1677_v3 = vrot.slane %v16023_v50, %v16603_v43  ;;  %v218_v26 = vld [vmem:[%s23127_s0 + $0x610] sm:$0xff]  ;;  %v868_v12 = vsel %vm282_vm0, %v219_v6, -inf }
 0x17e   :  { %v1684_v8 = vrot.slane %v16023_v50, %v16606_v21  ;;  %v16867_v14 = vcombine.low %v1593_v0, %v1600_v25  ;;  %23491 = vst [vmem:[#allocation110_spill] sm:$0xff] %v16871_v28  ;;  %v1691_v37 = vrot.slane %v16023_v50, %v16615_v61  ;;  %v1656_v32 = vrot.slane %v16027_v53, %v16606_v21 }
 0x17f   :  { %857 = vmax.xlane.f32.xlu1 %v856_v33  ;;  %854 = vmax.xlane.f32.xlu0 %v853_v38  ;;  %23488 = vst [vmem:[#allocation107_spill] sm:$0xff] %v16841_v23  ;;  %v1698_v33 = vrot.slane %v16023_v50, %v16618_v5  ;;  %v1649_v38 = vrot.slane %v16027_v53, %v16603_v43  ;;  %v865_v41 = vsel %vm282_vm0, %v218_v26, -inf }
 0x180   :  { %v16847_v9 = vpop.xlane.xlu1 %653  ;;  %v16851_v39 = vpop.xlane.xlu0 %650  ;;  %v1663_v19 = vrot.slane %v16027_v53, %v16615_v61  ;;  %v16891_v50 = vcombine.low %v1677_v3, %v1684_v8  ;;  %v8541_v24 = vrot.slane %v16753_v48, %v16681_v42  ;;  %v1740_v0 = vrot.slane %v16035_v56, %v16606_v21 }
 0x181   :  { %23489 = vst [vmem:[#allocation108_spill] sm:$0xff] %v16847_v9  ;;  %23490 = vst [vmem:[#allocation109_spill] sm:$0xff] %v16851_v39  ;;  %v1747_v25 = vrot.slane %v16035_v56, %v16615_v61  ;;  %v1705_v55 = vrot.slane %v16039_v59, %v16603_v43  ;;  %v1712_v44 = vrot.slane %v16039_v59, %v16606_v21 }
 0x182   :  { %v1719_v3 = vrot.slane %v16039_v59, %v16615_v61  ;;  %v1726_v48 = vrot.slane %v16039_v59, %v16618_v5  ;;  %v16919_v8 = vcombine.low %v1691_v37, %v1698_v33  ;;  %v16921_v6 = vcombine.low %v1649_v38, %v1656_v32  ;;  %v223_v37 = vld [vmem:[%s23127_s0 + $0x638] sm:$0xff]  ;;  %v222_v33 = vld [vmem:[%s23127_s0 + $0x630] sm:$0xff] }
 0x183   :  { %863 = vmax.xlane.f32.xlu1 %v862_v30  ;;  %860 = vmax.xlane.f32.xlu0 %v859_v54  ;;  %v1733_v30 = vrot.slane %v16035_v56, %v16603_v43  ;;  %v1670_v54 = vrot.slane %v16027_v53, %v16618_v5  ;;  %v1754_v53 = vrot.slane %v16035_v56, %v16618_v5  ;;  %v874_v56 = vsel %vm282_vm0, %v221_v2, -inf }
 0x184   :  { %v16885_v16 = vpop.xlane.xlu1 %659  ;;  %v16889_v60 = vpop.xlane.xlu0 %656  ;;  %v1789_v9 = vrot.slane %v16047_v62, %v16603_v43  ;;  %v1796_v59 = vrot.slane %v16047_v62, %v16606_v21  ;;  %v8636_v38 = vrot.slane %v16837_v46, %v16681_v42  ;;  %v16953_v2 = vcombine.low %v1719_v3, %v1726_v48  ;;  %v224_v3 = vld [vmem:[%s23127_s0 + $0x640] sm:$0xff] }
 0x185   :  { %23492 = vst [vmem:[#allocation111_spill] sm:$0xff] %v16885_v16  ;;  %23493 = vst [vmem:[#allocation112_spill] sm:$0xff] %v16889_v60  ;;  %v871_v60 = vsel %vm282_vm0, %v220_v57, -inf  ;;  %v16929_v39 = vcombine.low %v1663_v19, %v1670_v54  ;;  %v16943_v32 = vcombine.low %v1733_v30, %v1740_v0  ;;  %v16945_v19 = vcombine.low %v1747_v25, %v1754_v53 }
 0x186   :  { %v16951_v54 = vcombine.low %v1705_v55, %v1712_v44  ;;  %v16955_v57 = vcombine.low %v8534_v29, %v8541_v24  ;;  %v1761_v46 = vrot.slane %v16051_v1, %v16603_v43  ;;  %v880_v0 = vsel %vm282_vm0, %v223_v37, -inf  ;;  %v225_v44 = vld [vmem:[%s23127_s0 + $0x648] sm:$0xff] }
 0x187   :  { %869 = vmax.xlane.f32.xlu1 %v868_v12  ;;  %866 = vmax.xlane.f32.xlu0 %v865_v41  ;;  %v1803_v12 = vrot.slane %v16047_v62, %v16615_v61  ;;  %v1810_v41 = vrot.slane %v16047_v62, %v16618_v5  ;;  %v877_v25 = vsel %vm282_vm0, %v222_v33, -inf  ;;  %v8643_v62 = vrot.slane %v16839_v15, %v16681_v42 }
 0x188   :  { %v16923_v26 = vpop.xlane.xlu1 %665  ;;  %v16927_v16 = vpop.xlane.xlu0 %662  ;;  %23496 = vst [vmem:[#allocation115_spill] sm:$0xff] %v16955_v57  ;;  %v16967_v55 = vcombine.low %v1789_v9, %v1796_v59  ;;  %v1768_v29 = vrot.slane %v16051_v1, %v16606_v21  ;;  %v1782_v24 = vrot.slane %v16051_v1, %v16618_v5  ;;  %v1845_v9 = vrot.slane %v16059_v4, %v16603_v43 }
 0x189   :  { %23494 = vst [vmem:[#allocation113_spill] sm:$0xff] %v16923_v26  ;;  %23495 = vst [vmem:[#allocation114_spill] sm:$0xff] %v16927_v16  ;;  %v16981_v15 = vcombine.low %v1803_v12, %v1810_v41  ;;  %v1852_v48 = vrot.slane %v16059_v4, %v16606_v21  ;;  %v1817_v59 = vrot.slane %v16063_v7, %v16603_v43  ;;  %v15637_v16 = vmov 0  }
 0x18a   :  { %v1824_v37 = vrot.slane %v16063_v7, %v16606_v21  ;;  %v1831_v33 = vrot.slane %v16063_v7, %v16615_v61  ;;  %v1838_v12 = vrot.slane %v16063_v7, %v16618_v5  ;;  %15587 = vset.pattern.permute.xlu1 %v15637_v16  ;;  %15586 = vset.pattern.permute.xlu0 %v15637_v16  ;;  %v226_v7 = vld [vmem:[%s23127_s0 + $0x650] sm:$0xff] }
 0x18b   :  { %875 = vmax.xlane.f32.xlu1 %v874_v56  ;;  %872 = vmax.xlane.f32.xlu0 %v871_v60  ;;  %v1775_v60 = vrot.slane %v16051_v1, %v16615_v61  ;;  %v1859_v56 = vrot.slane %v16059_v4, %v16615_v61  ;;  %v1866_v1 = vrot.slane %v16059_v4, %v16618_v5  ;;  %v883_v4 = vsel %vm282_vm0, %v224_v3, -inf }
 0x18c   :  { %v16959_v30 = vpop.xlane.xlu1 %671  ;;  %v16963_v53 = vpop.xlane.xlu0 %668  ;;  %v17005_v26 = vcombine.low %v1761_v46, %v1768_v29  ;;  %v8551_v3 = vrot.slane %v16763_v35, %v16681_v42  ;;  %v1901_v16 = vrot.slane %v16071_v10, %v16603_v43  ;;  %v1908_v46 = vrot.slane %v16071_v10, %v16606_v21 }
 0x18d   :  { %23497 = vst [vmem:[#allocation116_spill] sm:$0xff] %v16959_v30  ;;  %23498 = vst [vmem:[#allocation117_spill] sm:$0xff] %v16963_v53  ;;  %v886_v53 = vsel %vm282_vm0, %v225_v44, -inf  ;;  %v17015_v44 = vcombine.low %v8636_v38, %v8643_v62  ;;  %v1915_v29 = vrot.slane %v16071_v10, %v16615_v61  ;;  %v17031_v38 = vcombine.low %v1817_v59, %v1824_v37 }
 0x18e   :  { %v17033_v35 = vcombine.low %v1831_v33, %v1838_v12  ;;  %v17057_v59 = vcombine.low %v1901_v16, %v1908_v46  ;;  %v1957_v33 = vrot.slane %v16083_v18, %v16603_v43  ;;  %v1894_v12 = vrot.slane %v16075_v13, %v16618_v5 }
 0x18f   :  { %881 = vmax.xlane.f32.xlu1 %v880_v0  ;;  %878 = vmax.xlane.f32.xlu0 %v877_v25  ;;  %v17007_v0 = vcombine.low %v1775_v60, %v1782_v24  ;;  %v227_v25 = vld [vmem:[%s23127_s0 + $0x658] sm:$0xff]  ;;  %23501 = vst [vmem:[#allocation120_spill] sm:$0xff] %v17015_v44  ;;  %v1922_v60 = vrot.slane %v16071_v10, %v16618_v5  ;;  %v889_v44 = vsel %vm282_vm0, %v226_v7, -inf }
 0x190   :  { %v16999_v41 = vpop.xlane.xlu1 %677  ;;  %v17003_v30 = vpop.xlane.xlu0 %674  ;;  %v17027_v24 = vcombine.low %v1845_v9, %v1852_v48  ;;  %23502 = vst [vmem:[#allocation121_spill] sm:$0xff] %v17033_v35  ;;  %v8558_v10 = vrot.slane %v16765_v58, %v16681_v42  ;;  %v1873_v9 = vrot.slane %v16075_v13, %v16603_v43  ;;  %v1887_v48 = vrot.slane %v16075_v13, %v16615_v61 }
 0x191   :  { %23499 = vst [vmem:[#allocation118_spill] sm:$0xff] %v16999_v41  ;;  %23500 = vst [vmem:[#allocation119_spill] sm:$0xff] %v17003_v30  ;;  %v17029_v30 = vcombine.low %v1859_v56, %v1866_v1  ;;  %v892_v41 = vsel %vm282_vm0, %v227_v25, -inf  ;;  %v229_v56 = vld [vmem:[%s23127_s0 + $0x668] sm:$0xff]  ;;  %v228_v1 = vld [vmem:[%s23127_s0 + $0x660] sm:$0xff]  ;;  %v8670_v58 = vrot.slane %v16853_v47, %v16681_v42  ;;  %v17059_v37 = vcombine.low %v1915_v29, %v1922_v60 }
 0x192   :  { %v1971_v25 = vrot.slane %v16083_v18, %v16615_v61  ;;  %v1978_v7 = vrot.slane %v16083_v18, %v16618_v5  ;;  %v1929_v47 = vrot.slane %v16087_v22, %v16603_v43  ;;  %v1936_v16 = vrot.slane %v16087_v22, %v16606_v21 }
 0x193   :  { %887 = vmax.xlane.f32.xlu1 %v886_v53  ;;  %884 = vmax.xlane.f32.xlu0 %v883_v4  ;;  %v1880_v53 = vrot.slane %v16075_v13, %v16606_v21  ;;  %v1964_v4 = vrot.slane %v16083_v18, %v16606_v21  ;;  %v898_v13 = vsel %vm282_vm0, %v229_v56, -inf  ;;  %v895_v29 = vsel %vm282_vm0, %v228_v1, -inf  ;;  %v230_v56 = vld [vmem:[%s23127_s0 + $0x670] sm:$0xff] }
 0x194   :  { %v17035_v62 = vpop.xlane.xlu1 %683  ;;  %v17039_v57 = vpop.xlane.xlu0 %680  ;;  %v1943_v18 = vrot.slane %v16087_v22, %v16615_v61  ;;  %v8677_v1 = vrot.slane %v16855_v52, %v16681_v42  ;;  %v2034_v28 = vrot.slane %v16095_v27, %v16618_v5  ;;  %v17109_v52 = vcombine.low %v1971_v25, %v1978_v7  ;;  %v232_v25 = vld [vmem:[%s23127_s0 + $0x680] sm:$0xff] }
 0x195   :  { %23503 = vst [vmem:[#allocation122_spill] sm:$0xff] %v17035_v62  ;;  %23504 = vst [vmem:[#allocation123_spill] sm:$0xff] %v17039_v57  ;;  %v17081_v57 = vcombine.low %v1873_v9, %v1880_v53  ;;  %v2013_v9 = vrot.slane %v16095_v27, %v16603_v43  ;;  %v2020_v53 = vrot.slane %v16095_v27, %v16606_v21 }
 0x196   :  { %v2027_v62 = vrot.slane %v16095_v27, %v16615_v61  ;;  %v233_v27 = vld [vmem:[%s23127_s0 + $0x688] sm:$0xff]  ;;  %v17129_v7 = vcombine.low %v8670_v58, %v8677_v1  ;;  %v2069_v58 = vrot.slane %v16107_v36, %v16603_v43 }
 0x197   :  { %893 = vmax.xlane.f32.xlu1 %v892_v41  ;;  %890 = vmax.xlane.f32.xlu0 %v889_v44  ;;  %23507 = vst [vmem:[#allocation126_spill] sm:$0xff] %v17081_v57  ;;  %v1950_v41 = vrot.slane %v16087_v22, %v16618_v5  ;;  %v231_v44 = vld [vmem:[%s23127_s0 + $0x678] sm:$0xff]  ;;  %v17101_v22 = vcombine.low %v8551_v3, %v8558_v10  ;;  %v901_v3 = vsel %vm282_vm0, %v230_v56, -inf }
 0x198   :  { %v17075_v46 = vpop.xlane.xlu1 %689  ;;  %v17079_v60 = vpop.xlane.xlu0 %686  ;;  %v904_v23 = vsel %vm282_vm0, %v231_v44, -inf  ;;  %23514 = vst [vmem:[#allocation133_spill] sm:$0xff] %v17129_v7  ;;  %v2076_v44 = vrot.slane %v16107_v36, %v16606_v21  ;;  %v2083_v56 = vrot.slane %v16107_v36, %v16615_v61  ;;  %v2104_v7 = vrot.slane %v16123_v49, %v16606_v21 }
 0x199   :  { %23505 = vst [vmem:[#allocation124_spill] sm:$0xff] %v17075_v46  ;;  %23506 = vst [vmem:[#allocation125_spill] sm:$0xff] %v17079_v60  ;;  %v17095_v60 = vcombine.low %v1887_v48, %v1894_v12  ;;  %v17103_v46 = vcombine.low %v1957_v33, %v1964_v4  ;;  %v17111_v48 = vcombine.low %v1929_v47, %v1936_v16 }
 0x19a   :  { %23509 = vst [vmem:[#allocation128_spill] sm:$0xff] %v17101_v22  ;;  %v17119_v33 = vcombine.low %v1943_v18, %v1950_v41  ;;  %v1985_v4 = vrot.slane %v16099_v31, %v16603_v43  ;;  %v8568_v47 = vrot.slane %v16755_v34, %v16681_v42  ;;  %v17133_v16 = vcombine.low %v2013_v9, %v2020_v53 }
 0x19b   :  { %23508 = vst [vmem:[#allocation127_spill] sm:$0xff] %v17095_v60  ;;  %899 = vmax.xlane.f32.xlu1 %v898_v13  ;;  %896 = vmax.xlane.f32.xlu0 %v895_v29  ;;  %23510 = vst [vmem:[#allocation129_spill] sm:$0xff] %v17111_v48  ;;  %v1992_v13 = vrot.slane %v16099_v31, %v16606_v21  ;;  %v1999_v29 = vrot.slane %v16099_v31, %v16615_v61 }
 0x19c   :  { %v17113_v12 = vpop.xlane.xlu1 %695  ;;  %v17117_v10 = vpop.xlane.xlu0 %692  ;;  %23513 = vst [vmem:[#allocation132_spill] sm:$0xff] %v17119_v33  ;;  %v2006_v18 = vrot.slane %v16099_v31, %v16618_v5  ;;  %v17141_v41 = vcombine.low %v2027_v62, %v2034_v28  ;;  %v8575_v34 = vrot.slane %v16761_v63, %v16681_v42  ;;  %v910_v31 = vsel %vm282_vm0, %v233_v27, -inf  ;;  %v234_v27 = vld [vmem:[%s23127_s0 + $0x690] sm:$0xff] }
 0x19d   :  { %23511 = vst [vmem:[#allocation130_spill] sm:$0xff] %v17113_v12  ;;  %23512 = vst [vmem:[#allocation131_spill] sm:$0xff] %v17117_v10  ;;  %v907_v28 = vsel %vm282_vm0, %v232_v25, -inf  ;;  %v2041_v63 = vrot.slane %v16111_v40, %v16603_v43  ;;  %v2048_v9 = vrot.slane %v16111_v40, %v16606_v21  ;;  %v2055_v53 = vrot.slane %v16111_v40, %v16615_v61 }
 0x19e   :  { %v2132_v25 = vrot.slane %v16119_v45, %v16606_v21  ;;  %v2146_v10 = vrot.slane %v16119_v45, %v16618_v5  ;;  %v2097_v12 = vrot.slane %v16123_v49, %v16603_v43  ;;  %v2111_v22 = vrot.slane %v16123_v49, %v16615_v61 }
 0x19f   :  { %905 = vmax.xlane.f32.xlu1 %v904_v23  ;;  %902 = vmax.xlane.f32.xlu0 %v901_v3  ;;  %v2090_v23 = vrot.slane %v16107_v36, %v16618_v5  ;;  %v235_v3 = vld [vmem:[%s23127_s0 + $0x698] sm:$0xff]  ;;  %v2125_v36 = vrot.slane %v16119_v45, %v16603_v43  ;;  %v2118_v33 = vrot.slane %v16123_v49, %v16618_v5  ;;  %v236_v49 = vld [vmem:[%s23127_s0 + $0x6a0] sm:$0xff] }
 0x1a0   :  { %v17151_v1 = vpop.xlane.xlu1 %701  ;;  %v17155_v62 = vpop.xlane.xlu0 %698  ;;  %v17195_v57 = vcombine.low %v1985_v4, %v1992_v13  ;;  %v17197_v35 = vcombine.low %v1999_v29, %v2006_v18  ;;  %v17213_v13 = vcombine.low %v2041_v63, %v2048_v9 }
 0x1a1   :  { %23515 = vst [vmem:[#allocation134_spill] sm:$0xff] %v17151_v1  ;;  %23516 = vst [vmem:[#allocation135_spill] sm:$0xff] %v17155_v62  ;;  %v2139_v62 = vrot.slane %v16119_v45, %v16615_v61  ;;  %v2062_v1 = vrot.slane %v16111_v40, %v16618_v5  ;;  %v916_v40 = vsel %vm282_vm0, %v235_v3, -inf  ;;  %v913_v45 = vsel %vm282_vm0, %v234_v27, -inf }
 0x1a2   :  { %23519 = vst [vmem:[#allocation138_spill] sm:$0xff] %v17195_v57  ;;  %23520 = vst [vmem:[#allocation139_spill] sm:$0xff] %v17197_v35  ;;  %v8711_v3 = vrot.slane %v16919_v8, %v16681_v42  ;;  %v17209_v27 = vcombine.low %v2069_v58, %v2076_v44  ;;  %v17211_v4 = vcombine.low %v2083_v56, %v2090_v23  ;;  %v919_v44 = vsel %vm282_vm0, %v236_v49, -inf }
 0x1a3   :  { %911 = vmax.xlane.f32.xlu1 %v910_v31  ;;  %908 = vmax.xlane.f32.xlu0 %v907_v28  ;;  %v237_v31 = vld [vmem:[%s23127_s0 + $0x6a8] sm:$0xff]  ;;  %v8704_v28 = vrot.slane %v16891_v50, %v16681_v42  ;;  %23521 = vst [vmem:[#allocation140_spill] sm:$0xff] %v17213_v13  ;;  %v17215_v29 = vcombine.low %v2055_v53, %v2062_v1  ;;  %v23528_v1 = vld [vmem:[#allocation9_spill] sm:$0xff] }
 0x1a4   :  { %v17189_v48 = vpop.xlane.xlu1 %707  ;;  %v17193_v60 = vpop.xlane.xlu0 %704  ;;  %v17217_v18 = vcombine.low %v2125_v36, %v2132_v25  ;;  %v17223_v50 = vcombine.low %v2097_v12, %v2104_v7  ;;  %v17225_v35 = vcombine.low %v2111_v22, %v2118_v33  ;;  %v922_v58 = vsel %vm282_vm0, %v237_v31, -inf  ;;  %v239_v22 = vld [vmem:[%s23127_s0 + $0x6b8] sm:$0xff]  ;;  %v238_v33 = vld [vmem:[%s23127_s0 + $0x6b0] sm:$0xff]  ;;  %v23531_v53 = vld [vmem:[#allocation11_spill] sm:$0xff] }
 0x1a5   :  { %23517 = vst [vmem:[#allocation136_spill] sm:$0xff] %v17189_v48  ;;  %23518 = vst [vmem:[#allocation137_spill] sm:$0xff] %v17193_v60  ;;  %v17219_v60 = vcombine.low %v2139_v62, %v2146_v10  ;;  %v17221_v48 = vcombine.low %v8568_v47, %v8575_v34  ;;  %v2181_v10 = vrot.slane %v23528_v1, %v16603_v43  ;;  %v23530_v34 = vld [vmem:[#allocation10_spill] sm:$0xff] }
 0x1a6   :  { %23522 = vst [vmem:[#allocation141_spill] sm:$0xff] %v17215_v29  ;;  %23524 = vst [vmem:[#allocation143_spill] sm:$0xff] %v17223_v50  ;;  %v2188_v62 = vrot.slane %v23528_v1, %v16606_v21  ;;  %v2195_v12 = vrot.slane %v23528_v1, %v16615_v61  ;;  %v17245_v7 = vcombine.low %v8704_v28, %v8711_v3  ;;  %v928_v28 = vsel %vm282_vm0, %v239_v22, -inf  ;;  %v241_v22 = vld [vmem:[%s23127_s0 + $0x6c8] sm:$0xff] }
 0x1a7   :  { %917 = vmax.xlane.f32.xlu1 %v916_v40  ;;  %914 = vmax.xlane.f32.xlu0 %v913_v45  ;;  %23523 = vst [vmem:[#allocation142_spill] sm:$0xff] %v17221_v48  ;;  %23525 = vst [vmem:[#allocation144_spill] sm:$0xff] %v17225_v35  ;;  %v2202_v47 = vrot.slane %v23528_v1, %v16618_v5  ;;  %v2153_v23 = vrot.slane %v23530_v34, %v16603_v43  ;;  %v925_v3 = vsel %vm282_vm0, %v238_v33, -inf  ;;  %v240_v33 = vld [vmem:[%s23127_s0 + $0x6c0] sm:$0xff] }
 0x1a8   :  { %v17227_v8 = vpop.xlane.xlu1 %713  ;;  %v17231_v56 = vpop.xlane.xlu0 %710  ;;  %23529 = vst [vmem:[#allocation9_spill] sm:$0xff] %v17245_v7  ;;  %v2160_v63 = vrot.slane %v23530_v34, %v16606_v21  ;;  %v2167_v9 = vrot.slane %v23530_v34, %v16615_v61  ;;  %v2237_v36 = vrot.slane %v23531_v53, %v16603_v43  ;;  %v2244_v25 = vrot.slane %v23531_v53, %v16606_v21  ;;  %v23555_v48 = vld [vmem:[#allocation99_spill] sm:$0xff] }
 0x1a9   :  { %23526 = vst [vmem:[#allocation145_spill] sm:$0xff] %v17227_v8  ;;  %23527 = vst [vmem:[#allocation146_spill] sm:$0xff] %v17231_v56  ;;  %v2174_v40 = vrot.slane %v23530_v34, %v16618_v5  ;;  %v2251_v45 = vrot.slane %v23531_v53, %v16615_v61  ;;  %v2258_v31 = vrot.slane %v23531_v53, %v16618_v5  ;;  %v23534_v56 = vld [vmem:[#allocation12_spill] sm:$0xff] }
 0x1aa   :  { %v2209_v8 = vrot.slane %v23534_v56, %v16603_v43  ;;  %v2230_v34 = vrot.slane %v23534_v56, %v16618_v5  ;;  %v17285_v53 = vcombine.low %v2181_v10, %v2188_v62  ;;  %v8585_v35 = vrot.slane %v16779_v20, %v16681_v42 }
 0x1ab   :  { %923 = vmax.xlane.f32.xlu1 %v922_v58  ;;  %920 = vmax.xlane.f32.xlu0 %v919_v44  ;;  %v2216_v58 = vrot.slane %v23534_v56, %v16606_v21  ;;  %v2223_v44 = vrot.slane %v23534_v56, %v16615_v61  ;;  %v17293_v50 = vcombine.low %v2167_v9, %v2174_v40  ;;  %v23537_v56 = vld [vmem:[#allocation103_spill] sm:$0xff]  ;;  %v931_v20 = vsel %vm282_vm0, %v240_v33, -inf }
 0x1ac   :  { %v17265_v49 = vpop.xlane.xlu1 %719  ;;  %v17269_v1 = vpop.xlane.xlu0 %716  ;;  %v8592_v29 = vrot.slane %v23537_v56, %v16681_v42  ;;  %v8738_v13 = vrot.slane %v16943_v32, %v16681_v42  ;;  %v17299_v57 = vcombine.low %v2237_v36, %v2244_v25  ;;  %v17301_v10 = vcombine.low %v2251_v45, %v2258_v31  ;;  %v243_v36 = vld [vmem:[%s23127_s0 + $0x6d8] sm:$0xff]  ;;  %v242_v25 = vld [vmem:[%s23127_s0 + $0x6d0] sm:$0xff] }
 0x1ad   :  { %23532 = vst [vmem:[#allocation10_spill] sm:$0xff] %v17265_v49  ;;  %23533 = vst [vmem:[#allocation11_spill] sm:$0xff] %v17269_v1  ;;  %v17287_v1 = vcombine.low %v2195_v12, %v2202_v47  ;;  %v17289_v49 = vcombine.low %v2153_v23, %v2160_v63  ;;  %v934_v12 = vsel %vm282_vm0, %v241_v22, -inf  ;;  %v23542_v23 = vld [vmem:[#allocation13_spill] sm:$0xff]  ;;  %v17313_v40 = vcombine.low %v2209_v8, %v2216_v58  ;;  %v23546_v22 = vld [vmem:[#allocation15_spill] sm:$0xff] }
 0x1ae   :  { %23536 = vst [vmem:[#allocation147_spill] sm:$0xff] %v17293_v50  ;;  %23538 = vst [vmem:[#allocation103_spill] sm:$0xff] %v17299_v57  ;;  %v2293_v63 = vrot.slane %v23542_v23, %v16603_v43  ;;  %v2300_v9 = vrot.slane %v23542_v23, %v16606_v21  ;;  %v17315_v32 = vcombine.low %v2223_v44, %v2230_v34 }
 0x1af   :  { %23535 = vst [vmem:[#allocation12_spill] sm:$0xff] %v17289_v49  ;;  %929 = vmax.xlane.f32.xlu1 %v928_v28  ;;  %926 = vmax.xlane.f32.xlu0 %v925_v3  ;;  %23539 = vst [vmem:[#allocation148_spill] sm:$0xff] %v17301_v10  ;;  %v2307_v45 = vrot.slane %v23542_v23, %v16615_v61  ;;  %v2314_v31 = vrot.slane %v23542_v23, %v16618_v5  ;;  %v23545_v28 = vld [vmem:[#allocation14_spill] sm:$0xff] }
 0x1b0   :  { %v17303_v62 = vpop.xlane.xlu1 %725  ;;  %v17307_v47 = vpop.xlane.xlu0 %722  ;;  %23543 = vst [vmem:[#allocation13_spill] sm:$0xff] %v17313_v40  ;;  %23544 = vst [vmem:[#allocation151_spill] sm:$0xff] %v17315_v32  ;;  %v2265_v8 = vrot.slane %v23545_v28, %v16603_v43  ;;  %v2272_v3 = vrot.slane %v23545_v28, %v16606_v21  ;;  %v2279_v58 = vrot.slane %v23545_v28, %v16615_v61 }
 0x1b1   :  { %23540 = vst [vmem:[#allocation149_spill] sm:$0xff] %v17303_v62  ;;  %23541 = vst [vmem:[#allocation150_spill] sm:$0xff] %v17307_v47  ;;  %v2286_v44 = vrot.slane %v23545_v28, %v16618_v5  ;;  %v8745_v34 = vrot.slane %v16945_v19, %v16681_v42  ;;  %v2349_v33 = vrot.slane %v23546_v22, %v16603_v43  ;;  %v940_v47 = vsel %vm282_vm0, %v243_v36, -inf  ;;  %v245_v36 = vld [vmem:[%s23127_s0 + $0x6e8] sm:$0xff] }
 0x1b2   :  { %v2356_v56 = vrot.slane %v23546_v22, %v16606_v21  ;;  %v937_v62 = vsel %vm282_vm0, %v242_v25, -inf  ;;  %v2370_v19 = vrot.slane %v23546_v22, %v16618_v5  ;;  %v244_v25 = vld [vmem:[%s23127_s0 + $0x6e0] sm:$0xff]  ;;  %v17365_v50 = vcombine.low %v2265_v8, %v2272_v3  ;;  %v247_v8 = vld [vmem:[%s23127_s0 + $0x6f8] sm:$0xff]  ;;  %v246_v3 = vld [vmem:[%s23127_s0 + $0x6f0] sm:$0xff] }
 0x1b3   :  { %935 = vmax.xlane.f32.xlu1 %v934_v12  ;;  %932 = vmax.xlane.f32.xlu0 %v931_v20  ;;  %v2363_v12 = vrot.slane %v23546_v22, %v16615_v61  ;;  %v23549_v20 = vld [vmem:[#allocation16_spill] sm:$0xff]  ;;  %v17367_v22 = vcombine.low %v8585_v35, %v8592_v29  ;;  %v17369_v49 = vcombine.low %v2279_v58, %v2286_v44  ;;  %v946_v35 = vsel %vm282_vm0, %v245_v36, -inf }
 0x1b4   :  { %v17341_v23 = vpop.xlane.xlu1 %731  ;;  %v17345_v32 = vpop.xlane.xlu0 %728  ;;  %v2321_v28 = vrot.slane %v23549_v20, %v16603_v43  ;;  %v2328_v40 = vrot.slane %v23549_v20, %v16606_v21  ;;  %23552 = vst [vmem:[#allocation153_spill] sm:$0xff] %v17365_v50  ;;  %v17371_v7 = vcombine.low %v8738_v13, %v8745_v34  ;;  %v8602_v10 = vrot.slane %v23555_v48, %v16681_v42  ;;  %v23560_v48 = vld [vmem:[#allocation17_spill] sm:$0xff] }
 0x1b5   :  { %23547 = vst [vmem:[#allocation14_spill] sm:$0xff] %v17341_v23  ;;  %23548 = vst [vmem:[#allocation15_spill] sm:$0xff] %v17345_v32  ;;  %v17361_v32 = vcombine.low %v2293_v63, %v2300_v9  ;;  %v17363_v23 = vcombine.low %v2307_v45, %v2314_v31  ;;  %v2335_v57 = vrot.slane %v23549_v20, %v16615_v61  ;;  %v943_v29 = vsel %vm282_vm0, %v244_v25, -inf }
 0x1b6   :  { %23553 = vst [vmem:[#allocation154_spill] sm:$0xff] %v17369_v49  ;;  %23554 = vst [vmem:[#allocation155_spill] sm:$0xff] %v17371_v7  ;;  %v2342_v63 = vrot.slane %v23549_v20, %v16618_v5  ;;  %v17387_v13 = vcombine.low %v2363_v12, %v2370_v19  ;;  %v17391_v31 = vcombine.low %v2321_v28, %v2328_v40  ;;  %v23562_v40 = vld [vmem:[#allocation18_spill] sm:$0xff]  ;;  %v952_v36 = vsel %vm282_vm0, %v247_v8, -inf }
 0x1b7   :  { %23550 = vst [vmem:[#allocation16_spill] sm:$0xff] %v17361_v32  ;;  %23551 = vst [vmem:[#allocation152_spill] sm:$0xff] %v17363_v23  ;;  %941 = vmax.xlane.f32.xlu1 %v940_v47  ;;  %938 = vmax.xlane.f32.xlu0 %v937_v62  ;;  %v17385_v62 = vcombine.low %v2349_v33, %v2356_v56  ;;  %v2405_v47 = vrot.slane %v23560_v48, %v16603_v43  ;;  %v949_v25 = vsel %vm282_vm0, %v246_v3, -inf  ;;  %v23569_v3 = vld [vmem:[#allocation20_spill] sm:$0xff] }
 0x1b8   :  { %v17379_v9 = vpop.xlane.xlu1 %737  ;;  %v17383_v45 = vpop.xlane.xlu0 %734  ;;  %23559 = vst [vmem:[#allocation158_spill] sm:$0xff] %v17387_v13  ;;  %23561 = vst [vmem:[#allocation17_spill] sm:$0xff] %v17391_v31  ;;  %v2412_v58 = vrot.slane %v23560_v48, %v16606_v21  ;;  %v2419_v44 = vrot.slane %v23560_v48, %v16615_v61  ;;  %v2426_v34 = vrot.slane %v23560_v48, %v16618_v5  ;;  %v23567_v31 = vld [vmem:[#allocation19_spill] sm:$0xff] }
 0x1b9   :  { %23556 = vst [vmem:[#allocation99_spill] sm:$0xff] %v17379_v9  ;;  %23557 = vst [vmem:[#allocation156_spill] sm:$0xff] %v17383_v45  ;;  %v2377_v33 = vrot.slane %v23562_v40, %v16603_v43  ;;  %v2384_v56 = vrot.slane %v23562_v40, %v16606_v21  ;;  %v2391_v12 = vrot.slane %v23562_v40, %v16615_v61  ;;  %v23566_v45 = vld [vmem:[#allocation100_spill] sm:$0xff] }
 0x1ba   :  { %23558 = vst [vmem:[#allocation157_spill] sm:$0xff] %v17385_v62  ;;  %v2398_v19 = vrot.slane %v23562_v40, %v16618_v5  ;;  %v17413_v20 = vcombine.low %v2335_v57, %v2342_v63  ;;  %v8609_v9 = vrot.slane %v23566_v45, %v16681_v42  ;;  %v2461_v49 = vrot.slane %v23567_v31, %v16603_v43  ;;  %v248_v45 = vld [vmem:[%s23127_s0 + $0x700] sm:$0xff] }
 0x1bb   :  { %947 = vmax.xlane.f32.xlu1 %v946_v35  ;;  %944 = vmax.xlane.f32.xlu0 %v943_v29  ;;  %v2468_v35 = vrot.slane %v23567_v31, %v16606_v21  ;;  %v2475_v57 = vrot.slane %v23567_v31, %v16615_v61  ;;  %v2482_v63 = vrot.slane %v23567_v31, %v16618_v5  ;;  %v249_v29 = vld [vmem:[%s23127_s0 + $0x708] sm:$0xff] }
 0x1bc   :  { %23563 = vst [vmem:[#allocation18_spill] sm:$0xff] %v17413_v20  ;;  %v17415_v28 = vpop.xlane.xlu1 %743  ;;  %v17419_v48 = vpop.xlane.xlu0 %740  ;;  %v17437_v8 = vcombine.low %v2405_v47, %v2412_v58  ;;  %v2433_v40 = vrot.slane %v23569_v3, %v16603_v43  ;;  %v17445_v31 = vcombine.low %v2419_v44, %v2426_v34  ;;  %v17447_v20 = vcombine.low %v2377_v33, %v2384_v56 }
 0x1bd   :  { %23564 = vst [vmem:[#allocation159_spill] sm:$0xff] %v17415_v28  ;;  %23565 = vst [vmem:[#allocation160_spill] sm:$0xff] %v17419_v48  ;;  %v2440_v48 = vrot.slane %v23569_v3, %v16606_v21  ;;  %v8772_v28 = vrot.slane %v16967_v55, %v16681_v42  ;;  %v17449_v50 = vcombine.low %v2391_v12, %v2398_v19  ;;  %v958_v47 = vsel %vm282_vm0, %v249_v29, -inf  ;;  %v251_v12 = vld [vmem:[%s23127_s0 + $0x718] sm:$0xff] }
 0x1be   :  { %23568 = vst [vmem:[#allocation100_spill] sm:$0xff] %v17437_v8  ;;  %23570 = vst [vmem:[#allocation19_spill] sm:$0xff] %v17445_v31  ;;  %v955_v58 = vsel %vm282_vm0, %v248_v45, -inf  ;;  %v17457_v62 = vcombine.low %v8602_v10, %v8609_v9  ;;  %v8779_v55 = vrot.slane %v16981_v15, %v16681_v42  ;;  %v17461_v44 = vcombine.low %v2461_v49, %v2468_v35  ;;  %v250_v10 = vld [vmem:[%s23127_s0 + $0x710] sm:$0xff]  ;;  %v23580_v35 = vld [vmem:[#allocation22_spill] sm:$0xff] }
 0x1bf   :  { %23571 = vst [vmem:[#allocation20_spill] sm:$0xff] %v17447_v20  ;;  %23572 = vst [vmem:[#allocation161_spill] sm:$0xff] %v17449_v50  ;;  %953 = vmax.xlane.f32.xlu1 %v952_v36  ;;  %950 = vmax.xlane.f32.xlu0 %v949_v25  ;;  %v17463_v34 = vcombine.low %v2475_v57, %v2482_v63  ;;  %v2447_v33 = vrot.slane %v23569_v3, %v16615_v61  ;;  %v23578_v15 = vld [vmem:[#allocation21_spill] sm:$0xff] }
 0x1c0   :  { %v17451_v13 = vpop.xlane.xlu1 %749  ;;  %v17455_v8 = vpop.xlane.xlu0 %746  ;;  %23575 = vst [vmem:[#allocation164_spill] sm:$0xff] %v17457_v62  ;;  %23576 = vst [vmem:[#allocation165_spill] sm:$0xff] %v17461_v44  ;;  %v2454_v56 = vrot.slane %v23569_v3, %v16618_v5  ;;  %v2517_v49 = vrot.slane %v23578_v15, %v16603_v43  ;;  %v2524_v9 = vrot.slane %v23578_v15, %v16606_v21 }
 0x1c1   :  { %23573 = vst [vmem:[#allocation162_spill] sm:$0xff] %v17451_v13  ;;  %23574 = vst [vmem:[#allocation163_spill] sm:$0xff] %v17455_v8  ;;  %v2531_v19 = vrot.slane %v23578_v15, %v16615_v61  ;;  %v17481_v36 = vcombine.low %v2433_v40, %v2440_v48  ;;  %v2538_v25 = vrot.slane %v23578_v15, %v16618_v5  ;;  %v964_v48 = vsel %vm282_vm0, %v251_v12, -inf  ;;  %v23583_v8 = vld [vmem:[#allocation23_spill] sm:$0xff] }
 0x1c2   :  { %23577 = vst [vmem:[#allocation166_spill] sm:$0xff] %v17463_v34  ;;  %v2489_v57 = vrot.slane %v23580_v35, %v16603_v43  ;;  %v2496_v63 = vrot.slane %v23580_v35, %v16606_v21  ;;  %v2503_v29 = vrot.slane %v23580_v35, %v16615_v61  ;;  %v2510_v45 = vrot.slane %v23580_v35, %v16618_v5  ;;  %v253_v12 = vld [vmem:[%s23127_s0 + $0x728] sm:$0xff] }
 0x1c3   :  { %23579 = vst [vmem:[#allocation21_spill] sm:$0xff] %v17481_v36  ;;  %959 = vmax.xlane.f32.xlu1 %v958_v47  ;;  %956 = vmax.xlane.f32.xlu0 %v955_v58  ;;  %v961_v40 = vsel %vm282_vm0, %v250_v10, -inf  ;;  %v2573_v13 = vrot.slane %v23583_v8, %v16603_v43  ;;  %v2580_v47 = vrot.slane %v23583_v8, %v16606_v21  ;;  %v252_v10 = vld [vmem:[%s23127_s0 + $0x720] sm:$0xff]  ;;  %v970_v62 = vsel %vm282_vm0, %v253_v12, -inf }
 0x1c4   :  { %v17493_v3 = vpop.xlane.xlu1 %755  ;;  %v17497_v15 = vpop.xlane.xlu0 %752  ;;  %v2587_v58 = vrot.slane %v23583_v8, %v16615_v61  ;;  %v2594_v35 = vrot.slane %v23583_v8, %v16618_v5  ;;  %v17521_v20 = vcombine.low %v2447_v33, %v2454_v56  ;;  %v17523_v34 = vcombine.low %v8772_v28, %v8779_v55  ;;  %v254_v28 = vld [vmem:[%s23127_s0 + $0x730] sm:$0xff]  ;;  %v23596_v12 = vld [vmem:[#allocation27_spill] sm:$0xff] }
 0x1c5   :  { %23581 = vst [vmem:[#allocation22_spill] sm:$0xff] %v17493_v3  ;;  %23582 = vst [vmem:[#allocation167_spill] sm:$0xff] %v17497_v15  ;;  %v23584_v15 = vld [vmem:[#allocation24_spill] sm:$0xff]  ;;  %v8619_v44 = vrot.slane %v16843_v51, %v16681_v42  ;;  %v17527_v31 = vcombine.low %v2517_v49, %v2524_v9  ;;  %v17529_v23 = vcombine.low %v2531_v19, %v2538_v25  ;;  %v967_v7 = vsel %vm282_vm0, %v252_v10, -inf  ;;  %v255_v51 = vld [vmem:[%s23127_s0 + $0x738] sm:$0xff] }
 0x1c6   :  { %v2545_v3 = vrot.slane %v23584_v15, %v16603_v43  ;;  %v2552_v36 = vrot.slane %v23584_v15, %v16606_v21  ;;  %v2559_v50 = vrot.slane %v23584_v15, %v16615_v61  ;;  %v2566_v8 = vrot.slane %v23584_v15, %v16618_v5  ;;  %23585 = vst [vmem:[#allocation23_spill] sm:$0xff] %v17521_v20 }
 0x1c7   :  { %965 = vmax.xlane.f32.xlu1 %v964_v48  ;;  %962 = vmax.xlane.f32.xlu0 %v961_v40  ;;  %v17537_v33 = vcombine.low %v2489_v57, %v2496_v63  ;;  %v17539_v56 = vcombine.low %v2503_v29, %v2510_v45  ;;  %v8626_v55 = vrot.slane %v16845_v11, %v16681_v42  ;;  %v23592_v63 = vld [vmem:[#allocation25_spill] sm:$0xff] }
 0x1c8   :  { %v17531_v32 = vpop.xlane.xlu1 %761  ;;  %v17535_v15 = vpop.xlane.xlu0 %758  ;;  %v8806_v49 = vrot.slane %v17027_v24, %v16681_v42  ;;  %v17551_v9 = vcombine.low %v2573_v13, %v2580_v47  ;;  %v17553_v19 = vcombine.low %v2587_v58, %v2594_v35  ;;  %v17555_v25 = vcombine.low %v2545_v3, %v2552_v36  ;;  %v257_v58 = vld [vmem:[%s23127_s0 + $0x748] sm:$0xff]  ;;  %v256_v35 = vld [vmem:[%s23127_s0 + $0x740] sm:$0xff] }
 0x1c9   :  { %23586 = vst [vmem:[#allocation24_spill] sm:$0xff] %v17531_v32  ;;  %23587 = vst [vmem:[#allocation168_spill] sm:$0xff] %v17535_v15  ;;  %v17557_v57 = vcombine.low %v2559_v50, %v2566_v8  ;;  %v2629_v29 = vrot.slane %v23592_v63, %v16603_v43  ;;  %v2636_v45 = vrot.slane %v23592_v63, %v16606_v21  ;;  %v976_v50 = vsel %vm282_vm0, %v255_v51, -inf }
 0x1ca   :  { %23588 = vst [vmem:[#allocation169_spill] sm:$0xff] %v17537_v33  ;;  %23589 = vst [vmem:[#allocation170_spill] sm:$0xff] %v17539_v56  ;;  %v8813_v11 = vrot.slane %v17029_v30, %v16681_v42  ;;  %v2643_v24 = vrot.slane %v23592_v63, %v16615_v61  ;;  %v2650_v13 = vrot.slane %v23592_v63, %v16618_v5  ;;  %v973_v3 = vsel %vm282_vm0, %v254_v28, -inf  ;;  %v23597_v63 = vld [vmem:[#allocation28_spill] sm:$0xff] }
 0x1cb   :  { %23590 = vst [vmem:[#allocation171_spill] sm:$0xff] %v17555_v25  ;;  %23591 = vst [vmem:[#allocation172_spill] sm:$0xff] %v17557_v57  ;;  %971 = vmax.xlane.f32.xlu1 %v970_v62  ;;  %968 = vmax.xlane.f32.xlu0 %v967_v7  ;;  %v23595_v62 = vld [vmem:[#allocation26_spill] sm:$0xff]  ;;  %v2685_v10 = vrot.slane %v23596_v12, %v16603_v43  ;;  %v2692_v8 = vrot.slane %v23596_v12, %v16606_v21  ;;  %v982_v25 = vsel %vm282_vm0, %v257_v58, -inf }
 0x1cc   :  { %v17569_v36 = vpop.xlane.xlu1 %767  ;;  %v17573_v48 = vpop.xlane.xlu0 %764  ;;  %v2601_v7 = vrot.slane %v23595_v62, %v16603_v43  ;;  %v2608_v30 = vrot.slane %v23595_v62, %v16606_v21  ;;  %v2615_v40 = vrot.slane %v23595_v62, %v16615_v61  ;;  %v2622_v47 = vrot.slane %v23595_v62, %v16618_v5 }
 0x1cd   :  { %23593 = vst [vmem:[#allocation25_spill] sm:$0xff] %v17569_v36  ;;  %23594 = vst [vmem:[#allocation173_spill] sm:$0xff] %v17573_v48  ;;  %v2699_v51 = vrot.slane %v23596_v12, %v16615_v61  ;;  %v2706_v28 = vrot.slane %v23596_v12, %v16618_v5  ;;  %v2657_v62 = vrot.slane %v23597_v63, %v16603_v43  ;;  %v979_v12 = vsel %vm282_vm0, %v256_v35, -inf }
 0x1ce   :  { %v2664_v48 = vrot.slane %v23597_v63, %v16606_v21  ;;  %v17601_v36 = vcombine.low %v8619_v44, %v8626_v55  ;;  %v17603_v15 = vcombine.low %v2629_v29, %v2636_v45  ;;  %v17605_v32 = vcombine.low %v2643_v24, %v2650_v13  ;;  %v259_v44 = vld [vmem:[%s23127_s0 + $0x758] sm:$0xff]  ;;  %v258_v55 = vld [vmem:[%s23127_s0 + $0x750] sm:$0xff] }
 0x1cf   :  { %977 = vmax.xlane.f32.xlu1 %v976_v50  ;;  %974 = vmax.xlane.f32.xlu0 %v973_v3  ;;  %v17613_v33 = vcombine.low %v2601_v7, %v2608_v30  ;;  %v17615_v20 = vcombine.low %v2615_v40, %v2622_v47  ;;  %v17623_v29 = vcombine.low %v8806_v49, %v8813_v11  ;;  %v23605_v7 = vld [vmem:[#allocation29_spill] sm:$0xff]  ;;  %v988_v58 = vsel %vm282_vm0, %v259_v44, -inf }
 0x1d0   :  { %23598 = vst [vmem:[#allocation26_spill] sm:$0xff] %v17605_v32  ;;  %v17607_v57 = vpop.xlane.xlu1 %773  ;;  %v17611_v56 = vpop.xlane.xlu0 %770  ;;  %v8653_v45 = vrot.slane %v16867_v14, %v16681_v42  ;;  %v17627_v24 = vcombine.low %v2685_v10, %v2692_v8  ;;  %v17629_v13 = vcombine.low %v2699_v51, %v2706_v28  ;;  %v2671_v50 = vrot.slane %v23597_v63, %v16615_v61  ;;  %v261_v28 = vld [vmem:[%s23127_s0 + $0x768] sm:$0xff] }
 0x1d1   :  { %23599 = vst [vmem:[#allocation27_spill] sm:$0xff] %v17607_v57  ;;  %23600 = vst [vmem:[#allocation28_spill] sm:$0xff] %v17611_v56  ;;  %v2678_v3 = vrot.slane %v23597_v63, %v16618_v5  ;;  %v2741_v30 = vrot.slane %v23605_v7, %v16603_v43  ;;  %v17637_v40 = vcombine.low %v2657_v62, %v2664_v48  ;;  %v985_v35 = vsel %vm282_vm0, %v258_v55, -inf  ;;  %v23609_v48 = vld [vmem:[#allocation30_spill] sm:$0xff]  ;;  %v23610_v62 = vld [vmem:[#allocation31_spill] sm:$0xff] }
 0x1d2   :  { %23601 = vst [vmem:[#allocation174_spill] sm:$0xff] %v17613_v33  ;;  %23602 = vst [vmem:[#allocation175_spill] sm:$0xff] %v17615_v20  ;;  %v8660_v14 = vrot.slane %v16869_v17, %v16681_v42  ;;  %v2748_v49 = vrot.slane %v23605_v7, %v16606_v21  ;;  %v2755_v11 = vrot.slane %v23605_v7, %v16615_v61  ;;  %v260_v63 = vld [vmem:[%s23127_s0 + $0x760] sm:$0xff] }
 0x1d3   :  { %23603 = vst [vmem:[#allocation176_spill] sm:$0xff] %v17627_v24  ;;  %23604 = vst [vmem:[#allocation177_spill] sm:$0xff] %v17629_v13  ;;  %983 = vmax.xlane.f32.xlu1 %v982_v25  ;;  %980 = vmax.xlane.f32.xlu0 %v979_v12  ;;  %v2762_v25 = vrot.slane %v23605_v7, %v16618_v5  ;;  %v2713_v17 = vrot.slane %v23609_v48, %v16603_v43 }
 0x1d4   :  { %23606 = vst [vmem:[#allocation29_spill] sm:$0xff] %v17637_v40  ;;  %v17645_v47 = vpop.xlane.xlu1 %779  ;;  %v17649_v10 = vpop.xlane.xlu0 %776  ;;  %v2720_v8 = vrot.slane %v23609_v48, %v16606_v21  ;;  %v2727_v51 = vrot.slane %v23609_v48, %v16615_v61  ;;  %v2797_v12 = vrot.slane %v23610_v62, %v16603_v43  ;;  %v2804_v44 = vrot.slane %v23610_v62, %v16606_v21 }
 0x1d5   :  { %23607 = vst [vmem:[#allocation178_spill] sm:$0xff] %v17645_v47  ;;  %23608 = vst [vmem:[#allocation179_spill] sm:$0xff] %v17649_v10  ;;  %v2811_v55 = vrot.slane %v23610_v62, %v16615_v61  ;;  %v2734_v7 = vrot.slane %v23609_v48, %v16618_v5  ;;  %v2818_v10 = vrot.slane %v23610_v62, %v16618_v5  ;;  %v23611_v47 = vld [vmem:[#allocation32_spill] sm:$0xff]  ;;  %v994_v48 = vsel %vm282_vm0, %v261_v28, -inf }
 0x1d6   :  { %v2769_v56 = vrot.slane %v23611_v47, %v16603_v43  ;;  %v2776_v57 = vrot.slane %v23611_v47, %v16606_v21  ;;  %v2783_v40 = vrot.slane %v23611_v47, %v16615_v61  ;;  %v2790_v20 = vrot.slane %v23611_v47, %v16618_v5  ;;  %v262_v47 = vld [vmem:[%s23127_s0 + $0x770] sm:$0xff] }
 0x1d7   :  { %989 = vmax.xlane.f32.xlu1 %v988_v58  ;;  %986 = vmax.xlane.f32.xlu0 %v985_v35  ;;  %v991_v62 = vsel %vm282_vm0, %v260_v63, -inf  ;;  %v17689_v24 = vcombine.low %v2741_v30, %v2748_v49  ;;  %v17691_v32 = vcombine.low %v2755_v11, %v2762_v25  ;;  %v17693_v58 = vcombine.low %v2671_v50, %v2678_v3  ;;  %v263_v35 = vld [vmem:[%s23127_s0 + $0x778] sm:$0xff] }
 0x1d8   :  { %v17683_v33 = vpop.xlane.xlu1 %785  ;;  %v17687_v13 = vpop.xlane.xlu0 %782  ;;  %v8840_v28 = vrot.slane %v17057_v59, %v16681_v42  ;;  %v17703_v63 = vcombine.low %v2713_v17, %v2720_v8  ;;  %v17707_v30 = vcombine.low %v8653_v45, %v8660_v14  ;;  %v8847_v50 = vrot.slane %v17059_v37, %v16681_v42  ;;  %v23621_v25 = vld [vmem:[#allocation33_spill] sm:$0xff] }
 0x1d9   :  { %23612 = vst [vmem:[#allocation30_spill] sm:$0xff] %v17683_v33  ;;  %23613 = vst [vmem:[#allocation31_spill] sm:$0xff] %v17687_v13  ;;  %v17705_v13 = vcombine.low %v2727_v51, %v2734_v7  ;;  %v17711_v3 = vcombine.low %v2797_v12, %v2804_v44  ;;  %v17713_v49 = vcombine.low %v2811_v55, %v2818_v10  ;;  %v1000_v45 = vsel %vm282_vm0, %v263_v35, -inf  ;;  %v265_v51 = vld [vmem:[%s23127_s0 + $0x788] sm:$0xff]  ;;  %v264_v12 = vld [vmem:[%s23127_s0 + $0x780] sm:$0xff] }
 0x1da   :  { %23614 = vst [vmem:[#allocation32_spill] sm:$0xff] %v17691_v32  ;;  %23615 = vst [vmem:[#allocation180_spill] sm:$0xff] %v17693_v58  ;;  %v17715_v11 = vcombine.low %v2769_v56, %v2776_v57  ;;  %v2853_v59 = vrot.slane %v23621_v25, %v16603_v43  ;;  %v17719_v17 = vcombine.low %v2783_v40, %v2790_v20  ;;  %v997_v14 = vsel %vm282_vm0, %v262_v47, -inf  ;;  %v23625_v20 = vld [vmem:[#allocation34_spill] sm:$0xff]  ;;  %v23626_v44 = vld [vmem:[#allocation35_spill] sm:$0xff] }
 0x1db   :  { %23616 = vst [vmem:[#allocation181_spill] sm:$0xff] %v17703_v63  ;;  %23617 = vst [vmem:[#allocation182_spill] sm:$0xff] %v17705_v13  ;;  %995 = vmax.xlane.f32.xlu1 %v994_v48  ;;  %992 = vmax.xlane.f32.xlu0 %v991_v62  ;;  %v2860_v10 = vrot.slane %v23621_v25, %v16606_v21  ;;  %v2867_v56 = vrot.slane %v23621_v25, %v16615_v61 }
 0x1dc   :  { %23618 = vst [vmem:[#allocation183_spill] sm:$0xff] %v17711_v3  ;;  %23619 = vst [vmem:[#allocation184_spill] sm:$0xff] %v17713_v49  ;;  %v17721_v8 = vpop.xlane.xlu1 %791  ;;  %v17725_v37 = vpop.xlane.xlu0 %788  ;;  %v2874_v57 = vrot.slane %v23621_v25, %v16618_v5  ;;  %v2825_v40 = vrot.slane %v23625_v20, %v16603_v43  ;;  %v2909_v55 = vrot.slane %v23626_v44, %v16603_v43 }
 0x1dd   :  { %23620 = vst [vmem:[#allocation185_spill] sm:$0xff] %v17715_v11  ;;  %23622 = vst [vmem:[#allocation33_spill] sm:$0xff] %v17719_v17  ;;  %v2832_v7 = vrot.slane %v23625_v20, %v16606_v21  ;;  %v2839_v48 = vrot.slane %v23625_v20, %v16615_v61  ;;  %v2846_v62 = vrot.slane %v23625_v20, %v16618_v5  ;;  %v1006_v20 = vsel %vm282_vm0, %v265_v51, -inf }
 0x1de   :  { %23623 = vst [vmem:[#allocation186_spill] sm:$0xff] %v17721_v8  ;;  %23624 = vst [vmem:[#allocation187_spill] sm:$0xff] %v17725_v37  ;;  %v2916_v35 = vrot.slane %v23626_v44, %v16606_v21  ;;  %v2923_v47 = vrot.slane %v23626_v44, %v16615_v61  ;;  %v2930_v25 = vrot.slane %v23626_v44, %v16618_v5  ;;  %v23627_v37 = vld [vmem:[#allocation36_spill] sm:$0xff]  ;;  %v1003_v11 = vsel %vm282_vm0, %v264_v12, -inf }
 0x1df   :  { %1001 = vmax.xlane.f32.xlu1 %v1000_v45  ;;  %998 = vmax.xlane.f32.xlu0 %v997_v14  ;;  %v2881_v8 = vrot.slane %v23627_v37, %v16603_v43  ;;  %v2888_v33 = vrot.slane %v23627_v37, %v16606_v21  ;;  %v17765_v63 = vcombine.low %v2853_v59, %v2860_v10  ;;  %v267_v45 = vld [vmem:[%s23127_s0 + $0x798] sm:$0xff]  ;;  %v266_v14 = vld [vmem:[%s23127_s0 + $0x790] sm:$0xff] }
 0x1e0   :  { %v17759_v17 = vpop.xlane.xlu1 %797  ;;  %v17763_v13 = vpop.xlane.xlu0 %794  ;;  %v17767_v58 = vcombine.low %v2867_v56, %v2874_v57  ;;  %v17775_v44 = vcombine.low %v8840_v28, %v8847_v50  ;;  %v8687_v51 = vrot.slane %v16921_v6, %v16681_v42  ;;  %v17779_v12 = vcombine.low %v2825_v40, %v2832_v7 }
 0x1e1   :  { %23628 = vst [vmem:[#allocation34_spill] sm:$0xff] %v17759_v17  ;;  %23629 = vst [vmem:[#allocation35_spill] sm:$0xff] %v17763_v13  ;;  %v2895_v59 = vrot.slane %v23627_v37, %v16615_v61  ;;  %v2902_v10 = vrot.slane %v23627_v37, %v16618_v5  ;;  %v8694_v56 = vrot.slane %v16929_v39, %v16681_v42  ;;  %v1012_v37 = vsel %vm282_vm0, %v267_v45, -inf }
 0x1e2   :  { %23630 = vst [vmem:[#allocation36_spill] sm:$0xff] %v17765_v63  ;;  %23631 = vst [vmem:[#allocation188_spill] sm:$0xff] %v17767_v58  ;;  %v17787_v57 = vcombine.low %v2909_v55, %v2916_v35  ;;  %v17789_v13 = vcombine.low %v2839_v48, %v2846_v62  ;;  %v8874_v6 = vrot.slane %v17103_v46, %v16681_v42  ;;  %v1009_v7 = vsel %vm282_vm0, %v266_v14, -inf  ;;  %v23639_v55 = vld [vmem:[#allocation37_spill] sm:$0xff]  ;;  %v268_v62 = vld [vmem:[%s23127_s0 + $0x7a0] sm:$0xff] }
 0x1e3   :  { %23632 = vst [vmem:[#allocation189_spill] sm:$0xff] %v17779_v12  ;;  %1007 = vmax.xlane.f32.xlu1 %v1006_v20  ;;  %1004 = vmax.xlane.f32.xlu0 %v1003_v11  ;;  %v17793_v28 = vcombine.low %v2923_v47, %v2930_v25  ;;  %v17795_v50 = vcombine.low %v2881_v8, %v2888_v33  ;;  %v269_v8 = vld [vmem:[%s23127_s0 + $0x7a8] sm:$0xff]  ;;  %v23641_v47 = vld [vmem:[#allocation38_spill] sm:$0xff] }
 0x1e4   :  { %23633 = vst [vmem:[#allocation190_spill] sm:$0xff] %v17787_v57  ;;  %23634 = vst [vmem:[#allocation191_spill] sm:$0xff] %v17789_v13  ;;  %v17797_v40 = vpop.xlane.xlu1 %803  ;;  %v17801_v39 = vpop.xlane.xlu0 %800  ;;  %v2965_v48 = vrot.slane %v23639_v55, %v16603_v43  ;;  %v2972_v11 = vrot.slane %v23639_v55, %v16606_v21  ;;  %v2979_v46 = vrot.slane %v23639_v55, %v16615_v61 }
 0x1e5   :  { %23635 = vst [vmem:[#allocation192_spill] sm:$0xff] %v17793_v28  ;;  %23636 = vst [vmem:[#allocation193_spill] sm:$0xff] %v17795_v50  ;;  %v2986_v33 = vrot.slane %v23639_v55, %v16618_v5  ;;  %v17817_v35 = vcombine.low %v2895_v59, %v2902_v10  ;;  %v2937_v25 = vrot.slane %v23641_v47, %v16603_v43  ;;  %v23642_v59 = vld [vmem:[#allocation39_spill] sm:$0xff] }
 0x1e6   :  { %23637 = vst [vmem:[#allocation194_spill] sm:$0xff] %v17797_v40  ;;  %23638 = vst [vmem:[#allocation195_spill] sm:$0xff] %v17801_v39  ;;  %v17821_v20 = vcombine.low %v8687_v51, %v8694_v56  ;;  %v8881_v45 = vrot.slane %v17109_v52, %v16681_v42  ;;  %v2944_v14 = vrot.slane %v23641_v47, %v16606_v21  ;;  %v1018_v52 = vsel %vm282_vm0, %v269_v8, -inf  ;;  %v270_v8 = vld [vmem:[%s23127_s0 + $0x7b0] sm:$0xff] }
 0x1e7   :  { %23640 = vst [vmem:[#allocation37_spill] sm:$0xff] %v17817_v35  ;;  %v2951_v55 = vrot.slane %v23641_v47, %v16615_v61  ;;  %v2958_v39 = vrot.slane %v23641_v47, %v16618_v5  ;;  %1013 = vmax.xlane.f32.xlu1 %v1012_v37  ;;  %1010 = vmax.xlane.f32.xlu0 %v1009_v7  ;;  %v1015_v40 = vsel %vm282_vm0, %v268_v62, -inf  ;;  %v271_v47 = vld [vmem:[%s23127_s0 + $0x7b8] sm:$0xff]  ;;  %v23647_v62 = vld [vmem:[#allocation40_spill] sm:$0xff] }
 0x1e8   :  { %v3021_v10 = vrot.slane %v23642_v59, %v16603_v43  ;;  %v3028_v51 = vrot.slane %v23642_v59, %v16606_v21  ;;  %v17835_v56 = vpop.xlane.xlu1 %809  ;;  %v17839_v17 = vpop.xlane.xlu0 %806  ;;  %v17841_v35 = vcombine.low %v2965_v48, %v2972_v11  ;;  %v17843_v50 = vcombine.low %v2979_v46, %v2986_v33 }
 0x1e9   :  { %23643 = vst [vmem:[#allocation38_spill] sm:$0xff] %v17835_v56  ;;  %23644 = vst [vmem:[#allocation39_spill] sm:$0xff] %v17839_v17  ;;  %v3035_v37 = vrot.slane %v23642_v59, %v16615_v61  ;;  %v3042_v7 = vrot.slane %v23642_v59, %v16618_v5  ;;  %v2993_v48 = vrot.slane %v23647_v62, %v16603_v43 }
 0x1ea   :  { %23645 = vst [vmem:[#allocation196_spill] sm:$0xff] %v17841_v35  ;;  %23646 = vst [vmem:[#allocation197_spill] sm:$0xff] %v17843_v50  ;;  %v3000_v11 = vrot.slane %v23647_v62, %v16606_v21  ;;  %v3007_v46 = vrot.slane %v23647_v62, %v16615_v61  ;;  %v3014_v33 = vrot.slane %v23647_v62, %v16618_v5  ;;  %v1024_v50 = vsel %vm282_vm0, %v271_v47, -inf }
 0x1eb   :  { %v17863_v59 = vcombine.low %v2937_v25, %v2944_v14  ;;  %v17865_v17 = vcombine.low %v2951_v55, %v2958_v39  ;;  %1019 = vmax.xlane.f32.xlu1 %v1018_v52  ;;  %1016 = vmax.xlane.f32.xlu0 %v1015_v40  ;;  %v17867_v56 = vcombine.low %v8874_v6, %v8881_v45  ;;  %v1021_v35 = vsel %vm282_vm0, %v270_v8, -inf  ;;  %v23653_v39 = vld [vmem:[#allocation41_spill] sm:$0xff]  ;;  %v273_v55 = vld [vmem:[%s23127_s0 + $0x7c8] sm:$0xff]  ;;  %v23657_v8 = vld [vmem:[#allocation42_spill] sm:$0xff] }
 0x1ec   :  { %v17869_v13 = vcombine.low %v3021_v10, %v3028_v51  ;;  %v17871_v12 = vpop.xlane.xlu1 %815  ;;  %v17875_v28 = vpop.xlane.xlu0 %812  ;;  %v8721_v25 = vrot.slane %v16951_v54, %v16681_v42  ;;  %v3077_v14 = vrot.slane %v23653_v39, %v16603_v43  ;;  %v3084_v6 = vrot.slane %v23653_v39, %v16606_v21  ;;  %v272_v54 = vld [vmem:[%s23127_s0 + $0x7c0] sm:$0xff] }
 0x1ed   :  { %23648 = vst [vmem:[#allocation40_spill] sm:$0xff] %v17863_v59  ;;  %23649 = vst [vmem:[#allocation198_spill] sm:$0xff] %v17865_v17  ;;  %v3091_v40 = vrot.slane %v23653_v39, %v16615_v61  ;;  %v3098_v45 = vrot.slane %v23653_v39, %v16618_v5  ;;  %v17893_v10 = vcombine.low %v3035_v37, %v3042_v7 }
 0x1ee   :  { %23650 = vst [vmem:[#allocation199_spill] sm:$0xff] %v17869_v13  ;;  %23651 = vst [vmem:[#allocation200_spill] sm:$0xff] %v17871_v12  ;;  %v17895_v51 = vcombine.low %v2993_v48, %v3000_v11  ;;  %v17897_v52 = vcombine.low %v3007_v46, %v3014_v33  ;;  %v8728_v47 = vrot.slane %v16953_v2, %v16681_v42  ;;  %v1030_v2 = vsel %vm282_vm0, %v273_v55, -inf  ;;  %v274_v55 = vld [vmem:[%s23127_s0 + $0x7d0] sm:$0xff] }
 0x1ef   :  { %23652 = vst [vmem:[#allocation201_spill] sm:$0xff] %v17875_v28  ;;  %23654 = vst [vmem:[#allocation41_spill] sm:$0xff] %v17893_v10  ;;  %v3049_v62 = vrot.slane %v23657_v8, %v16603_v43  ;;  %v3056_v39 = vrot.slane %v23657_v8, %v16606_v21  ;;  %1025 = vmax.xlane.f32.xlu1 %v1024_v50  ;;  %1022 = vmax.xlane.f32.xlu0 %v1021_v35  ;;  %v1027_v11 = vsel %vm282_vm0, %v272_v54, -inf  ;;  %v23668_v10 = vld [vmem:[#allocation45_spill] sm:$0xff] }
 0x1f0   :  { %23655 = vst [vmem:[#allocation202_spill] sm:$0xff] %v17895_v51  ;;  %23656 = vst [vmem:[#allocation203_spill] sm:$0xff] %v17897_v52  ;;  %v8908_v28 = vrot.slane %v17133_v16, %v16681_v42  ;;  %v3063_v37 = vrot.slane %v23657_v8, %v16615_v61  ;;  %v3070_v7 = vrot.slane %v23657_v8, %v16618_v5  ;;  %v17911_v48 = vpop.xlane.xlu1 %821  ;;  %v17915_v46 = vpop.xlane.xlu0 %818  ;;  %v23662_v16 = vld [vmem:[#allocation43_spill] sm:$0xff]  ;;  %v275_v8 = vld [vmem:[%s23127_s0 + $0x7d8] sm:$0xff] }
 0x1f1   :  { %23658 = vst [vmem:[#allocation42_spill] sm:$0xff] %v17911_v48  ;;  %23659 = vst [vmem:[#allocation204_spill] sm:$0xff] %v17915_v46  ;;  %v17917_v33 = vcombine.low %v3077_v14, %v3084_v6  ;;  %v17919_v50 = vcombine.low %v3091_v40, %v3098_v45  ;;  %v3133_v35 = vrot.slane %v23662_v16, %v16603_v43  ;;  %v23663_v40 = vld [vmem:[#allocation44_spill] sm:$0xff]  ;;  %v1036_v59 = vsel %vm282_vm0, %v275_v8, -inf }
 0x1f2   :  { %v3140_v12 = vrot.slane %v23662_v16, %v16606_v21  ;;  %v3147_v14 = vrot.slane %v23662_v16, %v16615_v61  ;;  %v3154_v6 = vrot.slane %v23662_v16, %v16618_v5  ;;  %v3105_v45 = vrot.slane %v23663_v40, %v16603_v43 }
 0x1f3   :  { %23660 = vst [vmem:[#allocation205_spill] sm:$0xff] %v17917_v33  ;;  %23661 = vst [vmem:[#allocation206_spill] sm:$0xff] %v17919_v50  ;;  %v3112_v54 = vrot.slane %v23663_v40, %v16606_v21  ;;  %v3119_v46 = vrot.slane %v23663_v40, %v16615_v61  ;;  %v3126_v48 = vrot.slane %v23663_v40, %v16618_v5  ;;  %1031 = vmax.xlane.f32.xlu1 %v1030_v2 }
 0x1f4   :  { %1028 = vmax.xlane.f32.xlu0 %v1027_v11  ;;  %v8915_v52 = vrot.slane %v17141_v41, %v16681_v42  ;;  %v17945_v51 = vcombine.low %v3049_v62, %v3056_v39  ;;  %v17947_v16 = vcombine.low %v3063_v37, %v3070_v7  ;;  %v17949_v17 = vpop.xlane.xlu1 %827  ;;  %v1033_v50 = vsel %vm282_vm0, %v274_v55, -inf  ;;  %v17953_v33 = vpop.xlane.xlu0 %824  ;;  %v277_v39 = vld [vmem:[%s23127_s0 + $0x7e8] sm:$0xff]  ;;  %v276_v37 = vld [vmem:[%s23127_s0 + $0x7e0] sm:$0xff] }
 0x1f5   :  { %23666 = vst [vmem:[#allocation207_spill] sm:$0xff] %v17949_v17  ;;  %23667 = vst [vmem:[#allocation208_spill] sm:$0xff] %v17953_v33  ;;  %v3189_v40 = vrot.slane %v23668_v10, %v16603_v43  ;;  %v3196_v2 = vrot.slane %v23668_v10, %v16606_v21  ;;  %v3203_v41 = vrot.slane %v23668_v10, %v16615_v61 }
 0x1f6   :  { %23664 = vst [vmem:[#allocation43_spill] sm:$0xff] %v17945_v51  ;;  %23665 = vst [vmem:[#allocation44_spill] sm:$0xff] %v17947_v16  ;;  %v3210_v62 = vrot.slane %v23668_v10, %v16618_v5  ;;  %v17969_v7 = vcombine.low %v3133_v35, %v3140_v12  ;;  %v17971_v11 = vcombine.low %v3147_v14, %v3154_v6  ;;  %v23673_v16 = vld [vmem:[#allocation46_spill] sm:$0xff]  ;;  %v23678_v14 = vld [vmem:[#allocation47_spill] sm:$0xff] }
 0x1f7   :  { %v17973_v8 = vcombine.low %v3105_v45, %v3112_v54  ;;  %v17975_v55 = vcombine.low %v8721_v25, %v8728_v47  ;;  %v17977_v33 = vcombine.low %v3119_v46, %v3126_v48  ;;  %1037 = vmax.xlane.f32.xlu1 %v1036_v59  ;;  %v17979_v10 = vcombine.low %v8908_v28, %v8915_v52  ;;  %v279_v46 = vld [vmem:[%s23127_s0 + $0x7f8] sm:$0xff] }
 0x1f8   :  { %23669 = vst [vmem:[#allocation45_spill] sm:$0xff] %v17969_v7  ;;  %23670 = vst [vmem:[#allocation209_spill] sm:$0xff] %v17971_v11  ;;  %1034 = vmax.xlane.f32.xlu0 %v1033_v50  ;;  %v8755_v17 = vrot.slane %v17005_v26, %v16681_v42  ;;  %v3161_v51 = vrot.slane %v23673_v16, %v16603_v43  ;;  %v3168_v12 = vrot.slane %v23673_v16, %v16606_v21  ;;  %v17987_v35 = vpop.xlane.xlu1 %833  ;;  %v17991_v48 = vpop.xlane.xlu0 %830  ;;  %v278_v50 = vld [vmem:[%s23127_s0 + $0x7f0] sm:$0xff] }
 0x1f9   :  { %23671 = vst [vmem:[#allocation210_spill] sm:$0xff] %v17973_v8  ;;  %23672 = vst [vmem:[#allocation211_spill] sm:$0xff] %v17977_v33  ;;  %v1042_v25 = vsel %vm282_vm0, %v277_v39, -inf  ;;  %v1039_v47 = vsel %vm282_vm0, %v276_v37, -inf  ;;  %v17993_v59 = vcombine.low %v3189_v40, %v3196_v2  ;;  %v17995_v28 = vcombine.low %v3203_v41, %v3210_v62  ;;  %v23679_v2 = vld [vmem:[#allocation48_spill] sm:$0xff]  ;;  %v23682_v33 = vld [vmem:[#allocation49_spill] sm:$0xff] }
 0x1fa   :  { %23674 = vst [vmem:[#allocation46_spill] sm:$0xff] %v17987_v35  ;;  %23675 = vst [vmem:[#allocation212_spill] sm:$0xff] %v17991_v48  ;;  %v3175_v26 = vrot.slane %v23673_v16, %v16615_v61  ;;  %v3182_v52 = vrot.slane %v23673_v16, %v16618_v5  ;;  %v3245_v6 = vrot.slane %v23678_v14, %v16603_v43 }
 0x1fb   :  { %23676 = vst [vmem:[#allocation213_spill] sm:$0xff] %v17993_v59  ;;  %23677 = vst [vmem:[#allocation214_spill] sm:$0xff] %v17995_v28  ;;  %v3252_v45 = vrot.slane %v23678_v14, %v16606_v21  ;;  %v3259_v54 = vrot.slane %v23678_v14, %v16615_v61  ;;  %v8762_v16 = vrot.slane %v17007_v0, %v16681_v42  ;;  %1043 = vmax.xlane.f32.xlu1 %v1042_v25 }
 0x1fc   :  { %v3266_v40 = vrot.slane %v23678_v14, %v16618_v5  ;;  %v3217_v41 = vrot.slane %v23679_v2, %v16603_v43  ;;  %v3224_v62 = vrot.slane %v23679_v2, %v16606_v21  ;;  %1040 = vmax.xlane.f32.xlu0 %v1039_v47  ;;  %v3231_v39 = vrot.slane %v23679_v2, %v16615_v61  ;;  %v18025_v48 = vpop.xlane.xlu1 %839  ;;  %v18029_v35 = vpop.xlane.xlu0 %836 }
 0x1fd   :  { %v3238_v37 = vrot.slane %v23679_v2, %v16618_v5  ;;  %23680 = vst [vmem:[#allocation47_spill] sm:$0xff] %v18025_v48  ;;  %v1048_v0 = vsel %vm282_vm0, %v279_v46, -inf  ;;  %v1045_v14 = vsel %vm282_vm0, %v278_v50, -inf  ;;  %23681 = vst [vmem:[#allocation48_spill] sm:$0xff] %v18029_v35  ;;  %v3301_v8 = vrot.slane %v23682_v33, %v16603_v43  ;;  %v23683_v48 = vld [vmem:[#allocation50_spill] sm:$0xff] }
 0x1fe   :  { %v3308_v25 = vrot.slane %v23682_v33, %v16606_v21  ;;  %v3315_v47 = vrot.slane %v23682_v33, %v16615_v61  ;;  %v3322_v2 = vrot.slane %v23682_v33, %v16618_v5  ;;  %v3273_v28 = vrot.slane %v23683_v48, %v16603_v43 }
 0x1ff   :  { %v3280_v46 = vrot.slane %v23683_v48, %v16606_v21  ;;  %v3287_v50 = vrot.slane %v23683_v48, %v16615_v61  ;;  %v3294_v35 = vrot.slane %v23683_v48, %v16618_v5  ;;  %v18047_v59 = vcombine.low %v3161_v51, %v3168_v12  ;;  %1049 = vmax.xlane.f32.xlu1 %v1048_v0  ;;  %v23692_v48 = vld [vmem:[#allocation51_spill] sm:$0xff] }
 0x200   :  { %1046 = vmax.xlane.f32.xlu0 %v1045_v14  ;;  %v8942_v11 = vrot.slane %v17209_v27, %v16681_v42  ;;  %v8949_v33 = vrot.slane %v17211_v4, %v16681_v42  ;;  %v18053_v7 = vcombine.low %v3245_v6, %v3252_v45  ;;  %v18055_v13 = vcombine.low %v3259_v54, %v3266_v40  ;;  %v18061_v63 = vpop.xlane.xlu1 %845  ;;  %v18063_v51 = vpop.xlane.xlu0 %842 }
 0x201   :  { %23684 = vst [vmem:[#allocation49_spill] sm:$0xff] %v18047_v59  ;;  %v18057_v57 = vcombine.low %v3175_v26, %v3182_v52  ;;  %v18059_v58 = vcombine.low %v3217_v41, %v3224_v62  ;;  %23689 = vst [vmem:[#allocation218_spill] sm:$0xff] %v18061_v63  ;;  %v18065_v12 = vcombine.low %v3231_v39, %v3238_v37  ;;  %vm14891_vm0 = vcmask 1041409  }
 0x202   :  { %23685 = vst [vmem:[#allocation50_spill] sm:$0xff] %v18053_v7  ;;  %23686 = vst [vmem:[#allocation215_spill] sm:$0xff] %v18055_v13  ;;  %v3357_v27 = vrot.slane %v23692_v48, %v16603_v43  ;;  %v3364_v4 = vrot.slane %v23692_v48, %v16606_v21  ;;  %v18071_v6 = vcombine.low %v8755_v17, %v8762_v16 }
 0x203   :  { %23687 = vst [vmem:[#allocation216_spill] sm:$0xff] %v18057_v57  ;;  %23688 = vst [vmem:[#allocation217_spill] sm:$0xff] %v18059_v58  ;;  %v18073_v45 = vcombine.low %v3301_v8, %v3308_v25  ;;  %v18075_v26 = vcombine.low %v3315_v47, %v3322_v2  ;;  %v18077_v52 = vcombine.low %v3273_v28, %v3280_v46  ;;  %v23697_v8 = vld [vmem:[#allocation52_spill] sm:$0xff]  ;;  %v23702_v25 = vld [vmem:[#allocation121_spill] sm:$0xff] }
 0x204   :  { %23690 = vst [vmem:[#allocation219_spill] sm:$0xff] %v18063_v51  ;;  %23691 = vst [vmem:[#allocation220_spill] sm:$0xff] %v18065_v12  ;;  %v18079_v54 = vcombine.low %v3287_v50, %v3294_v35  ;;  %v3371_v40 = vrot.slane %v23692_v48, %v16615_v61  ;;  %v3378_v41 = vrot.slane %v23692_v48, %v16618_v5  ;;  %v18097_v37 = vpop.xlane.xlu1 %851  ;;  %v18099_v0 = vpop.xlane.xlu0 %848  ;;  %v23703_v48 = vld [vmem:[#allocation54_spill] sm:$0xff] }
 0x205   :  { %23693 = vst [vmem:[#allocation51_spill] sm:$0xff] %v18073_v45  ;;  %23694 = vst [vmem:[#allocation221_spill] sm:$0xff] %v18075_v26  ;;  %v18085_v62 = vcombine.low %v8942_v11, %v8949_v33  ;;  %v8789_v17 = vrot.slane %v17031_v38, %v16681_v42  ;;  %v3329_v16 = vrot.slane %v23697_v8, %v16603_v43  ;;  %v23701_v38 = vld [vmem:[#allocation53_spill] sm:$0xff] }
 0x206   :  { %23695 = vst [vmem:[#allocation222_spill] sm:$0xff] %v18077_v52  ;;  %23696 = vst [vmem:[#allocation223_spill] sm:$0xff] %v18079_v54  ;;  %v3336_v28 = vrot.slane %v23697_v8, %v16606_v21  ;;  %v3343_v35 = vrot.slane %v23697_v8, %v16615_v61  ;;  %v3350_v39 = vrot.slane %v23697_v8, %v16618_v5  ;;  %v23714_v45 = vld [vmem:[#allocation57_spill] sm:$0xff] }
 0x207   :  { %23698 = vst [vmem:[#allocation52_spill] sm:$0xff] %v18097_v37  ;;  %23699 = vst [vmem:[#allocation224_spill] sm:$0xff] %v18099_v0  ;;  %v18101_v11 = vcombine.low %v3357_v27, %v3364_v4  ;;  %v3413_v14 = vrot.slane %v23701_v38, %v16603_v43  ;;  %v8796_v47 = vrot.slane %v23702_v25, %v16681_v42  ;;  %v23704_v0 = vld [vmem:[#allocation55_spill] sm:$0xff] }
 0x208   :  { %v8976_v2 = vrot.slane %v17217_v18, %v16681_v42  ;;  %v3420_v46 = vrot.slane %v23701_v38, %v16606_v21  ;;  %v3427_v50 = vrot.slane %v23701_v38, %v16615_v61  ;;  %v3434_v33 = vrot.slane %v23701_v38, %v16618_v5  ;;  %v18133_v54 = vpop.xlane.xlu1 %857  ;;  %v18135_v52 = vpop.xlane.xlu0 %854 }
 0x209   :  { %23700 = vst [vmem:[#allocation225_spill] sm:$0xff] %v18101_v11  ;;  %v3385_v27 = vrot.slane %v23703_v48, %v16603_v43  ;;  %v3392_v4 = vrot.slane %v23703_v48, %v16606_v21  ;;  %v3399_v8 = vrot.slane %v23703_v48, %v16615_v61  ;;  %v3406_v18 = vrot.slane %v23703_v48, %v16618_v5  ;;  %v23707_v48 = vld [vmem:[#allocation56_spill] sm:$0xff] }
 0x20a   :  { %v8983_v25 = vrot.slane %v17219_v60, %v16681_v42  ;;  %v3469_v37 = vrot.slane %v23704_v0, %v16603_v43  ;;  %v3476_v38 = vrot.slane %v23704_v0, %v16606_v21  ;;  %v3483_v51 = vrot.slane %v23704_v0, %v16615_v61  ;;  %23705 = vst [vmem:[#allocation53_spill] sm:$0xff] %v18133_v54 }
 0x20b   :  { %v3490_v63 = vrot.slane %v23704_v0, %v16618_v5  ;;  %23706 = vst [vmem:[#allocation121_spill] sm:$0xff] %v18135_v52  ;;  %v3441_v12 = vrot.slane %v23707_v48, %v16603_v43  ;;  %v3448_v60 = vrot.slane %v23707_v48, %v16606_v21  ;;  %v3455_v58 = vrot.slane %v23707_v48, %v16615_v61 }
 0x20c   :  { %v3462_v57 = vrot.slane %v23707_v48, %v16618_v5  ;;  %v18145_v59 = vcombine.low %v3371_v40, %v3378_v41  ;;  %v18147_v11 = vcombine.low %v3413_v14, %v3420_v46  ;;  %v18149_v0 = vcombine.low %v3329_v16, %v3336_v28  ;;  %v18167_v16 = vpop.xlane.xlu1 %863  ;;  %v18169_v28 = vpop.xlane.xlu0 %860  ;;  %v23730_v48 = vld [vmem:[#allocation60_spill] sm:$0xff] }
 0x20d   :  { %v18151_v54 = vcombine.low %v3343_v35, %v3350_v39  ;;  %v18153_v52 = vcombine.low %v3427_v50, %v3434_v33  ;;  %v18155_v26 = vcombine.low %v3385_v27, %v3392_v4  ;;  %v3525_v13 = vrot.slane %v23714_v45, %v16603_v43  ;;  %23718 = vst [vmem:[#allocation231_spill] sm:$0xff] %v18167_v16  ;;  %v23722_v50 = vld [vmem:[#allocation126_spill] sm:$0xff]  ;;  %v23726_v4 = vld [vmem:[#allocation59_spill] sm:$0xff] }
 0x20e   :  { %23708 = vst [vmem:[#allocation54_spill] sm:$0xff] %v18145_v59  ;;  %23709 = vst [vmem:[#allocation55_spill] sm:$0xff] %v18147_v11  ;;  %v3532_v7 = vrot.slane %v23714_v45, %v16606_v21  ;;  %v18161_v49 = vcombine.low %v3469_v37, %v3476_v38  ;;  %v18163_v40 = vcombine.low %v3483_v51, %v3490_v63  ;;  %v23723_v33 = vld [vmem:[#allocation58_spill] sm:$0xff] }
 0x20f   :  { %23710 = vst [vmem:[#allocation56_spill] sm:$0xff] %v18149_v0  ;;  %23711 = vst [vmem:[#allocation226_spill] sm:$0xff] %v18151_v54  ;;  %v18165_v41 = vcombine.low %v3399_v8, %v3406_v18  ;;  %v18171_v35 = vcombine.low %v8789_v17, %v8796_v47  ;;  %v18173_v39 = vcombine.low %v3441_v12, %v3448_v60  ;;  %v23725_v47 = vld [vmem:[#allocation127_spill] sm:$0xff]  ;;  %v23732_v16 = vld [vmem:[#allocation62_spill] sm:$0xff] }
 0x210   :  { %23712 = vst [vmem:[#allocation227_spill] sm:$0xff] %v18153_v52  ;;  %23713 = vst [vmem:[#allocation228_spill] sm:$0xff] %v18155_v26  ;;  %v18175_v14 = vcombine.low %v3455_v58, %v3462_v57  ;;  %v18177_v46 = vcombine.low %v8976_v2, %v8983_v25  ;;  %v8823_v37 = vrot.slane %v23722_v50, %v16681_v42  ;;  %v23728_v25 = vld [vmem:[#allocation104_spill] sm:$0xff]  ;;  %v18208_v38 = vpop.xlane.xlu0 %866 }
 0x211   :  { %23715 = vst [vmem:[#allocation57_spill] sm:$0xff] %v18161_v49  ;;  %23716 = vst [vmem:[#allocation229_spill] sm:$0xff] %v18163_v40  ;;  %v3539_v63 = vrot.slane %v23714_v45, %v16615_v61  ;;  %v3546_v51 = vrot.slane %v23714_v45, %v16618_v5  ;;  %v3497_v27 = vrot.slane %v23723_v33, %v16603_v43  ;;  %12831 = vperm.xlu1 %15587, %v23728_v25  }
 0x212   :  { %23717 = vst [vmem:[#allocation230_spill] sm:$0xff] %v18165_v41  ;;  %23719 = vst [vmem:[#allocation232_spill] sm:$0xff] %v18169_v28  ;;  %v3504_v12 = vrot.slane %v23723_v33, %v16606_v21  ;;  %v18189_v17 = vcombine.low %v3525_v13, %v3532_v7  ;;  %v3511_v58 = vrot.slane %v23723_v33, %v16615_v61  ;;  %v18205_v7 = vpop.xlane.xlu1 %869 }
 0x213   :  { %23720 = vst [vmem:[#allocation233_spill] sm:$0xff] %v18173_v39  ;;  %23721 = vst [vmem:[#allocation234_spill] sm:$0xff] %v18175_v14  ;;  %v3518_v57 = vrot.slane %v23723_v33, %v16618_v5  ;;  %v8830_v2 = vrot.slane %v23725_v47, %v16681_v42  ;;  %v3581_v45 = vrot.slane %v23726_v4, %v16603_v43 }
 0x214   :  { %23724 = vst [vmem:[#allocation126_spill] sm:$0xff] %v18189_v17  ;;  %v3588_v8 = vrot.slane %v23726_v4, %v16606_v21  ;;  %v3595_v18 = vrot.slane %v23726_v4, %v16615_v61  ;;  %v3602_v13 = vrot.slane %v23726_v4, %v16618_v5  ;;  %23727 = vst [vmem:[#allocation58_spill] sm:$0xff] %v18205_v7  ;;  %v23731_v4 = vld [vmem:[#allocation61_spill] sm:$0xff]  ;;  %v23736_v17 = vld [vmem:[#allocation107_spill] sm:$0xff] }
 0x215   :  { %23729 = vst [vmem:[#allocation127_spill] sm:$0xff] %v18208_v38  ;;  %v3553_v60 = vrot.slane %v23730_v48, %v16603_v43  ;;  %v3560_v50 = vrot.slane %v23730_v48, %v16606_v21  ;;  %v3567_v33 = vrot.slane %v23730_v48, %v16615_v61  ;;  %v3574_v47 = vrot.slane %v23730_v48, %v16618_v5 }
 0x216   :  { %v3637_v28 = vrot.slane %v23731_v4, %v16603_v43  ;;  %v3644_v25 = vrot.slane %v23731_v4, %v16606_v21  ;;  %v3651_v38 = vrot.slane %v23731_v4, %v16615_v61  ;;  %v3658_v7 = vrot.slane %v23731_v4, %v16618_v5  ;;  %v18238_v0 = vpop.xlane.xlu1 %875  ;;  %12834 = vperm.xlu1 %15587, %v23736_v17   ;;  %v18241_v4 = vpop.xlane.xlu0 %872 }
 0x217   :  { %v3609_v14 = vrot.slane %v23732_v16, %v16603_v43  ;;  %v3616_v39 = vrot.slane %v23732_v16, %v16606_v21  ;;  %v3623_v48 = vrot.slane %v23732_v16, %v16615_v61  ;;  %v3630_v41 = vrot.slane %v23732_v16, %v16618_v5  ;;  %23735 = vst [vmem:[#allocation60_spill] sm:$0xff] %v18238_v0 }
 0x218   :  { %v18234_v26 = vcombine.low %v3539_v63, %v3546_v51  ;;  %v18236_v54 = vcombine.low %v3497_v27, %v3504_v12  ;;  %23737 = vst [vmem:[#allocation61_spill] sm:$0xff] %v18241_v4  ;;  %v9010_v40 = vrot.slane %v17285_v53, %v16681_v42  ;;  %v9017_v49 = vrot.slane %v17287_v1, %v16681_v42  ;;  %v23742_v51 = vld [vmem:[#allocation110_spill] sm:$0xff]  ;;  %v23744_v12 = vld [vmem:[#allocation63_spill] sm:$0xff] }
 0x219   :  { %v18247_v52 = vcombine.low %v3581_v45, %v3588_v8  ;;  %v18249_v11 = vcombine.low %v3595_v18, %v3602_v13  ;;  %v18251_v16 = vcombine.low %v3511_v58, %v3518_v57  ;;  %v18253_v63 = vcombine.low %v3553_v60, %v3560_v50  ;;  %12828 = vperm.xlu0 %15586, %v23742_v51   ;;  %v23750_v60 = vld [vmem:[#allocation115_spill] sm:$0xff] }
 0x21a   :  { %23733 = vst [vmem:[#allocation59_spill] sm:$0xff] %v18234_v26  ;;  %23734 = vst [vmem:[#allocation104_spill] sm:$0xff] %v18236_v54  ;;  %v18256_v27 = vcombine.low %v3567_v33, %v3574_v47  ;;  %v3693_v17 = vrot.slane %v23744_v12, %v16603_v43  ;;  %v3700_v53 = vrot.slane %v23744_v12, %v16606_v21  ;;  %v18276_v13 = vpop.xlane.xlu1 %881  ;;  %12837 = vperm.xlu1 %15587, %v23750_v60   ;;  %v23754_v33 = vld [vmem:[#allocation120_spill] sm:$0xff]  ;;  %v23758_v51 = vld [vmem:[#allocation103_spill] sm:$0xff] }
 0x21b   :  { %23738 = vst [vmem:[#allocation62_spill] sm:$0xff] %v18247_v52  ;;  %23739 = vst [vmem:[#allocation107_spill] sm:$0xff] %v18249_v11  ;;  %v18262_v4 = vcombine.low %v8823_v37, %v8830_v2  ;;  %v18264_v1 = vcombine.low %v3637_v28, %v3644_v25  ;;  %v18266_v45 = vcombine.low %v3651_v38, %v3658_v7  ;;  %v18279_v37 = vpop.xlane.xlu0 %878  ;;  %v23752_v2 = vld [vmem:[#allocation129_spill] sm:$0xff]  ;;  %v23757_v25 = vld [vmem:[#allocation132_spill] sm:$0xff] }
 0x21c   :  { %23740 = vst [vmem:[#allocation235_spill] sm:$0xff] %v18251_v16  ;;  %23741 = vst [vmem:[#allocation236_spill] sm:$0xff] %v18253_v63  ;;  %v18268_v58 = vcombine.low %v3609_v14, %v3616_v39  ;;  %v18270_v57 = vcombine.low %v3623_v48, %v3630_v41  ;;  %v3707_v8 = vrot.slane %v23744_v12, %v16615_v61  ;;  %v23753_v41 = vld [vmem:[#allocation64_spill] sm:$0xff]  ;;  %v23772_v26 = vld [vmem:[#allocation69_spill] sm:$0xff] }
 0x21d   :  { %23743 = vst [vmem:[#allocation110_spill] sm:$0xff] %v18256_v27  ;;  %23745 = vst [vmem:[#allocation63_spill] sm:$0xff] %v18264_v1  ;;  %v3714_v18 = vrot.slane %v23744_v12, %v16618_v5  ;;  %v18281_v28 = vcombine.low %v9010_v40, %v9017_v49  ;;  %v8857_v39 = vrot.slane %v23752_v2, %v16681_v42  ;;  %12855 = vperm.xlu0 %15586, %v23754_v33   ;;  %v23756_v49 = vld [vmem:[#allocation65_spill] sm:$0xff] }
 0x21e   :  { %23746 = vst [vmem:[#allocation237_spill] sm:$0xff] %v18266_v45  ;;  %23747 = vst [vmem:[#allocation238_spill] sm:$0xff] %v18268_v58  ;;  %v3665_v14 = vrot.slane %v23753_v41, %v16603_v43  ;;  %v3672_v7 = vrot.slane %v23753_v41, %v16606_v21  ;;  %v3679_v38 = vrot.slane %v23753_v41, %v16615_v61  ;;  %v23764_v58 = vld [vmem:[#allocation67_spill] sm:$0xff] }
 0x21f   :  { %23748 = vst [vmem:[#allocation239_spill] sm:$0xff] %v18270_v57  ;;  %23749 = vst [vmem:[#allocation240_spill] sm:$0xff] %v18276_v13  ;;  %v3686_v50 = vrot.slane %v23753_v41, %v16618_v5  ;;  %v18294_v47 = vcombine.low %v3693_v17, %v3700_v53  ;;  %v3749_v40 = vrot.slane %v23756_v49, %v16603_v43  ;;  %v23759_v17 = vld [vmem:[#allocation66_spill] sm:$0xff]  ;;  %v23761_v13 = vld [vmem:[#allocation128_spill] sm:$0xff]  ;;  %v18319_v0 = vpop.xlane.xlu0 %884 }
 0x220   :  { %23751 = vst [vmem:[#allocation115_spill] sm:$0xff] %v18279_v37  ;;  %v8864_v48 = vrot.slane %v23757_v25, %v16681_v42  ;;  %v9044_v12 = vrot.slane %v23758_v51, %v16681_v42  ;;  %v3756_v60 = vrot.slane %v23756_v49, %v16606_v21  ;;  %v3763_v2 = vrot.slane %v23756_v49, %v16615_v61  ;;  %v18316_v37 = vpop.xlane.xlu1 %887 }
 0x221   :  { %23755 = vst [vmem:[#allocation129_spill] sm:$0xff] %v18294_v47  ;;  %v3770_v41 = vrot.slane %v23756_v49, %v16618_v5  ;;  %v3721_v53 = vrot.slane %v23759_v17, %v16603_v43  ;;  %v3728_v33 = vrot.slane %v23759_v17, %v16606_v21  ;;  %v3735_v25 = vrot.slane %v23759_v17, %v16615_v61  ;;  %v23763_v49 = vld [vmem:[#allocation148_spill] sm:$0xff] }
 0x222   :  { %v3742_v51 = vrot.slane %v23759_v17, %v16618_v5  ;;  %23760 = vst [vmem:[#allocation64_spill] sm:$0xff] %v18316_v37  ;;  %12840 = vperm.xlu1 %15587, %v23761_v13   ;;  %23762 = vst [vmem:[#allocation120_spill] sm:$0xff] %v18319_v0  ;;  %v9051_v57 = vrot.slane %v23763_v49, %v16681_v42  ;;  %v3805_v27 = vrot.slane %v23764_v58, %v16603_v43  ;;  %v23765_v37 = vld [vmem:[#allocation133_spill] sm:$0xff]  ;;  %v23766_v13 = vld [vmem:[#allocation68_spill] sm:$0xff] }
 0x223   :  { %v3812_v63 = vrot.slane %v23764_v58, %v16606_v21  ;;  %v3819_v16 = vrot.slane %v23764_v58, %v16615_v61  ;;  %v3826_v17 = vrot.slane %v23764_v58, %v16618_v5  ;;  %12861 = vperm.xlu0 %15586, %v23765_v37   ;;  %v3777_v0 = vrot.slane %v23766_v13, %v16603_v43 }
 0x224   :  { %v3784_v49 = vrot.slane %v23766_v13, %v16606_v21  ;;  %v3791_v54 = vrot.slane %v23766_v13, %v16615_v61  ;;  %v3798_v47 = vrot.slane %v23766_v13, %v16618_v5  ;;  %v18340_v45 = vcombine.low %v3707_v8, %v3714_v18  ;;  %v18356_v32 = vpop.xlane.xlu1 %893  ;;  %v23774_v8 = vld [vmem:[#allocation142_spill] sm:$0xff]  ;;  %v18359_v18 = vpop.xlane.xlu0 %890 }
 0x225   :  { %v18342_v1 = vcombine.low %v3749_v40, %v3756_v60  ;;  %v18344_v11 = vcombine.low %v3665_v14, %v3672_v7  ;;  %v18346_v58 = vcombine.low %v3679_v38, %v3686_v50  ;;  %v18348_v37 = vcombine.low %v3763_v2, %v3770_v41  ;;  %23773 = vst [vmem:[#allocation148_spill] sm:$0xff] %v18356_v32  ;;  %v23779_v50 = vld [vmem:[#allocation9_spill] sm:$0xff] }
 0x226   :  { %v18350_v52 = vcombine.low %v3721_v53, %v3728_v33  ;;  %v3861_v59 = vrot.slane %v23772_v26, %v16603_v43  ;;  %v3868_v3 = vrot.slane %v23772_v26, %v16606_v21  ;;  %12843 = vperm.xlu1 %15587, %v23774_v8   ;;  %23775 = vst [vmem:[#allocation67_spill] sm:$0xff] %v18359_v18  ;;  %v23782_v53 = vld [vmem:[#allocation138_spill] sm:$0xff] }
 0x227   :  { %23767 = vst [vmem:[#allocation65_spill] sm:$0xff] %v18342_v1  ;;  %23768 = vst [vmem:[#allocation132_spill] sm:$0xff] %v18344_v11  ;;  %v18361_v14 = vcombine.low %v3805_v27, %v3812_v63  ;;  %v18363_v7 = vcombine.low %v3819_v16, %v3826_v17  ;;  %v18365_v38 = vcombine.low %v3735_v25, %v3742_v51  ;;  %12867 = vperm.xlu0 %15586, %v23779_v50   ;;  %v23783_v27 = vld [vmem:[#allocation70_spill] sm:$0xff]  ;;  %v23788_v51 = vld [vmem:[#allocation71_spill] sm:$0xff] }
 0x228   :  { %23769 = vst [vmem:[#allocation103_spill] sm:$0xff] %v18346_v58  ;;  %23770 = vst [vmem:[#allocation66_spill] sm:$0xff] %v18348_v37  ;;  %v18368_v40 = vcombine.low %v8857_v39, %v8864_v48  ;;  %v18370_v60 = vcombine.low %v3777_v0, %v3784_v49  ;;  %v18372_v2 = vcombine.low %v3791_v54, %v3798_v47  ;;  %v18392_v47 = vpop.xlane.xlu1 %899  ;;  %v18395_v48 = vpop.xlane.xlu0 %896  ;;  %v23789_v49 = vld [vmem:[#allocation155_spill] sm:$0xff]  ;;  %v23792_v18 = vld [vmem:[#allocation74_spill] sm:$0xff] }
 0x229   :  { %23771 = vst [vmem:[#allocation128_spill] sm:$0xff] %v18350_v52  ;;  %23776 = vst [vmem:[#allocation133_spill] sm:$0xff] %v18361_v14  ;;  %v18374_v41 = vcombine.low %v9044_v12, %v9051_v57  ;;  %v8891_v33 = vrot.slane %v23782_v53, %v16681_v42  ;;  %v3875_v63 = vrot.slane %v23772_v26, %v16615_v61  ;;  %v23794_v52 = vld [vmem:[#allocation164_spill] sm:$0xff] }
 0x22a   :  { %23777 = vst [vmem:[#allocation68_spill] sm:$0xff] %v18363_v7  ;;  %23778 = vst [vmem:[#allocation69_spill] sm:$0xff] %v18365_v38  ;;  %v3882_v16 = vrot.slane %v23772_v26, %v16618_v5  ;;  %v3833_v25 = vrot.slane %v23783_v27, %v16603_v43  ;;  %v3840_v0 = vrot.slane %v23783_v27, %v16606_v21  ;;  %12846 = vperm.xlu1 %15587, %v17367_v22   ;;  %v23787_v26 = vld [vmem:[#allocation139_spill] sm:$0xff]  ;;  %v23790_v22 = vld [vmem:[#allocation72_spill] sm:$0xff] }
 0x22b   :  { %23780 = vst [vmem:[#allocation142_spill] sm:$0xff] %v18370_v60  ;;  %23781 = vst [vmem:[#allocation9_spill] sm:$0xff] %v18372_v2  ;;  %v18386_v39 = vcombine.low %v3861_v59, %v3868_v3  ;;  %v3847_v54 = vrot.slane %v23783_v27, %v16615_v61  ;;  %v3854_v57 = vrot.slane %v23783_v27, %v16618_v5  ;;  %12873 = vperm.xlu0 %15586, %v23789_v49   ;;  %v23798_v14 = vld [vmem:[#allocation152_spill] sm:$0xff] }
 0x22c   :  { %23785 = vst [vmem:[#allocation70_spill] sm:$0xff] %v18392_v47  ;;  %23786 = vst [vmem:[#allocation241_spill] sm:$0xff] %v18395_v48  ;;  %v8898_v12 = vrot.slane %v23787_v26, %v16681_v42  ;;  %v3917_v17 = vrot.slane %v23788_v51, %v16603_v43  ;;  %v3924_v3 = vrot.slane %v23788_v51, %v16606_v21  ;;  %v23791_v26 = vld [vmem:[#allocation73_spill] sm:$0xff]  ;;  %v18432_v38 = vpop.xlane.xlu1 %905  ;;  %v18435_v58 = vpop.xlane.xlu0 %902 }
 0x22d   :  { %23784 = vst [vmem:[#allocation138_spill] sm:$0xff] %v18386_v39  ;;  %v3931_v59 = vrot.slane %v23788_v51, %v16615_v61  ;;  %v3938_v13 = vrot.slane %v23788_v51, %v16618_v5  ;;  %v3889_v8 = vrot.slane %v23790_v22, %v16603_v43  ;;  %v3896_v50 = vrot.slane %v23790_v22, %v16606_v21  ;;  %v23797_v39 = vld [vmem:[#allocation16_spill] sm:$0xff] }
 0x22e   :  { %v3903_v53 = vrot.slane %v23790_v22, %v16615_v61  ;;  %v3910_v27 = vrot.slane %v23790_v22, %v16618_v5  ;;  %v3973_v48 = vrot.slane %v23791_v26, %v16603_v43  ;;  %v3980_v51 = vrot.slane %v23791_v26, %v16606_v21  ;;  %23793 = vst [vmem:[#allocation139_spill] sm:$0xff] %v18432_v38 }
 0x22f   :  { %v3987_v49 = vrot.slane %v23791_v26, %v16615_v61  ;;  %v3994_v47 = vrot.slane %v23791_v26, %v16618_v5  ;;  %v3945_v32 = vrot.slane %v23792_v18, %v16603_v43  ;;  %v3952_v2 = vrot.slane %v23792_v18, %v16606_v21  ;;  %12849 = vperm.xlu1 %15587, %v23794_v52  }
 0x230   :  { %v3959_v22 = vrot.slane %v23792_v18, %v16615_v61  ;;  %v3966_v60 = vrot.slane %v23792_v18, %v16618_v5  ;;  %23795 = vst [vmem:[#allocation71_spill] sm:$0xff] %v18435_v58  ;;  %v18437_v11 = vcombine.low %v3875_v63, %v3882_v16  ;;  %v18439_v26 = vcombine.low %v3833_v25, %v3840_v0  ;;  %v23802_v16 = vld [vmem:[#allocation75_spill] sm:$0xff] }
 0x231   :  { %12879 = vperm.xlu0 %15586, %v17523_v34   ;;  %v9078_v7 = vrot.slane %v23797_v39, %v16681_v42  ;;  %v9085_v37 = vrot.slane %v23798_v14, %v16681_v42  ;;  %v18446_v1 = vcombine.low %v3917_v17, %v3924_v3  ;;  %v18448_v18 = vcombine.low %v3931_v59, %v3938_v13  ;;  %v18473_v3 = vpop.xlane.xlu0 %908 }
 0x232   :  { %23796 = vst [vmem:[#allocation155_spill] sm:$0xff] %v18439_v26  ;;  %v18450_v38 = vcombine.low %v3847_v54, %v3854_v57  ;;  %v18452_v52 = vcombine.low %v3889_v8, %v3896_v50  ;;  %v18454_v63 = vcombine.low %v3903_v53, %v3910_v27  ;;  %v4029_v25 = vrot.slane %v23802_v16, %v16603_v43  ;;  %v18470_v57 = vpop.xlane.xlu1 %911  ;;  %v23814_v53 = vld [vmem:[#allocation157_spill] sm:$0xff] }
 0x233   :  { %v4036_v34 = vrot.slane %v23802_v16, %v16606_v21  ;;  %v18460_v0 = vcombine.low %v8891_v33, %v8898_v12  ;;  %v18462_v39 = vcombine.low %v3973_v48, %v3980_v51  ;;  %v18464_v14 = vcombine.low %v3987_v49, %v3994_v47  ;;  %23807 = vst [vmem:[#allocation242_spill] sm:$0xff] %v18470_v57 }
 0x234   :  { %23799 = vst [vmem:[#allocation72_spill] sm:$0xff] %v18450_v38  ;;  %23800 = vst [vmem:[#allocation73_spill] sm:$0xff] %v18452_v52  ;;  %v18466_v17 = vcombine.low %v3945_v32, %v3952_v2  ;;  %v18468_v54 = vcombine.low %v3959_v22, %v3966_v60  ;;  %12852 = vperm.xlu1 %15587, %v17601_v36   ;;  %v4043_v59 = vrot.slane %v23802_v16, %v16615_v61  ;;  %v23809_v32 = vld [vmem:[#allocation140_spill] sm:$0xff] }
 0x235   :  { %23801 = vst [vmem:[#allocation74_spill] sm:$0xff] %v18454_v63  ;;  %23803 = vst [vmem:[#allocation164_spill] sm:$0xff] %v18462_v39  ;;  %v4050_v33 = vrot.slane %v23802_v16, %v16618_v5  ;;  %12885 = vperm.xlu0 %15586, %v17623_v29   ;;  %v18480_v47 = vcombine.low %v9078_v7, %v9085_v37  ;;  %v8925_v60 = vrot.slane %v23809_v32, %v16681_v42  ;;  %v23810_v2 = vld [vmem:[#allocation76_spill] sm:$0xff]  ;;  %v23812_v29 = vld [vmem:[#allocation77_spill] sm:$0xff]  ;;  %v18511_v32 = vpop.xlane.xlu0 %914 }
 0x236   :  { %23804 = vst [vmem:[#allocation16_spill] sm:$0xff] %v18464_v14  ;;  %23805 = vst [vmem:[#allocation152_spill] sm:$0xff] %v18466_v17  ;;  %v4001_v48 = vrot.slane %v23810_v2, %v16603_v43  ;;  %v4008_v36 = vrot.slane %v23810_v2, %v16606_v21  ;;  %v4015_v12 = vrot.slane %v23810_v2, %v16615_v61  ;;  %v23813_v7 = vld [vmem:[#allocation141_spill] sm:$0xff]  ;;  %v23815_v16 = vld [vmem:[#allocation78_spill] sm:$0xff] }
 0x237   :  { %23806 = vst [vmem:[#allocation75_spill] sm:$0xff] %v18468_v54  ;;  %23808 = vst [vmem:[#allocation243_spill] sm:$0xff] %v18473_v3  ;;  %v4022_v13 = vrot.slane %v23810_v2, %v16618_v5  ;;  %v18492_v8 = vcombine.low %v4029_v25, %v4036_v34  ;;  %v4085_v37 = vrot.slane %v23812_v29, %v16603_v43  ;;  %v18508_v34 = vpop.xlane.xlu1 %917  ;;  %v23820_v54 = vld [vmem:[#allocation80_spill] sm:$0xff] }
 0x238   :  { %v8932_v50 = vrot.slane %v23813_v7, %v16681_v42  ;;  %v9112_v27 = vrot.slane %v23814_v53, %v16681_v42  ;;  %v4092_v51 = vrot.slane %v23812_v29, %v16606_v21  ;;  %v4099_v49 = vrot.slane %v23812_v29, %v16615_v61  ;;  %23816 = vst [vmem:[#allocation76_spill] sm:$0xff] %v18508_v34  ;;  %v23819_v34 = vld [vmem:[#allocation79_spill] sm:$0xff] }
 0x239   :  { %23811 = vst [vmem:[#allocation140_spill] sm:$0xff] %v18492_v8  ;;  %v4106_v22 = vrot.slane %v23812_v29, %v16618_v5  ;;  %v4057_v25 = vrot.slane %v23815_v16, %v16603_v43  ;;  %12858 = vperm.xlu1 %15587, %v17707_v30   ;;  %23817 = vst [vmem:[#allocation77_spill] sm:$0xff] %v18511_v32  ;;  %v4064_v2 = vrot.slane %v23815_v16, %v16606_v21  ;;  %v23818_v29 = vld [vmem:[#allocation158_spill] sm:$0xff]  ;;  %v18549_v8 = vpop.xlane.xlu0 %920 }
 0x23a   :  { %v4071_v7 = vrot.slane %v23815_v16, %v16615_v61  ;;  %v4078_v53 = vrot.slane %v23815_v16, %v16618_v5  ;;  %12891 = vperm.xlu0 %15586, %v17775_v44   ;;  %v9119_v3 = vrot.slane %v23818_v29, %v16681_v42  ;;  %v4141_v57 = vrot.slane %v23819_v34, %v16603_v43 }
 0x23b   :  { %v4148_v30 = vrot.slane %v23819_v34, %v16606_v21  ;;  %v4155_v32 = vrot.slane %v23819_v34, %v16615_v61  ;;  %v4162_v58 = vrot.slane %v23819_v34, %v16618_v5  ;;  %v4113_v16 = vrot.slane %v23820_v54, %v16603_v43  ;;  %v18546_v34 = vpop.xlane.xlu1 %923  ;;  %23824 = vst [vmem:[#allocation158_spill] sm:$0xff] %v18549_v8 }
 0x23c   :  { %v4120_v44 = vrot.slane %v23820_v54, %v16606_v21  ;;  %v4127_v29 = vrot.slane %v23820_v54, %v16615_v61  ;;  %v4134_v17 = vrot.slane %v23820_v54, %v16618_v5  ;;  %v18538_v63 = vcombine.low %v4043_v59, %v4050_v33  ;;  %23823 = vst [vmem:[#allocation78_spill] sm:$0xff] %v18546_v34  ;;  %v23826_v54 = vld [vmem:[#allocation81_spill] sm:$0xff] }
 0x23d   :  { %v18540_v52 = vcombine.low %v4085_v37, %v4092_v51  ;;  %v18542_v38 = vcombine.low %v4001_v48, %v4008_v36  ;;  %v18544_v26 = vcombine.low %v4015_v12, %v4022_v13  ;;  %12864 = vperm.xlu1 %15587, %v17821_v20   ;;  %v18551_v14 = vcombine.low %v4099_v49, %v4106_v22  ;;  %v23831_v49 = vld [vmem:[#allocation143_spill] sm:$0xff] }
 0x23e   :  { %v18553_v39 = vcombine.low %v4057_v25, %v4064_v2  ;;  %v4197_v59 = vrot.slane %v23826_v54, %v16603_v43  ;;  %v4204_v33 = vrot.slane %v23826_v54, %v16606_v21  ;;  %12897 = vperm.xlu0 %15586, %v17867_v56   ;;  %v18560_v48 = vcombine.low %v4141_v57, %v4148_v30  ;;  %v23832_v57 = vld [vmem:[#allocation82_spill] sm:$0xff]  ;;  %v23836_v2 = vld [vmem:[#allocation144_spill] sm:$0xff] }
 0x23f   :  { %23821 = vst [vmem:[#allocation141_spill] sm:$0xff] %v18542_v38  ;;  %23822 = vst [vmem:[#allocation157_spill] sm:$0xff] %v18544_v26  ;;  %v18562_v36 = vcombine.low %v4155_v32, %v4162_v58  ;;  %v18564_v12 = vcombine.low %v4071_v7, %v4078_v53  ;;  %v18566_v20 = vcombine.low %v8925_v60, %v8932_v50  ;;  %v18584_v50 = vpop.xlane.xlu1 %929  ;;  %v23837_v53 = vld [vmem:[#allocation83_spill] sm:$0xff] }
 0x240   :  { %23825 = vst [vmem:[#allocation79_spill] sm:$0xff] %v18553_v39  ;;  %v18568_v13 = vcombine.low %v4113_v16, %v4120_v44  ;;  %v18570_v37 = vcombine.low %v4127_v29, %v4134_v17  ;;  %v18572_v51 = vcombine.low %v9112_v27, %v9119_v3  ;;  %v8959_v22 = vrot.slane %v23831_v49, %v16681_v42  ;;  %v18587_v17 = vpop.xlane.xlu0 %926  ;;  %v23838_v29 = vld [vmem:[#allocation84_spill] sm:$0xff]  ;;  %v23839_v49 = vld [vmem:[#allocation86_spill] sm:$0xff] }
 0x241   :  { %23827 = vst [vmem:[#allocation80_spill] sm:$0xff] %v18562_v36  ;;  %23828 = vst [vmem:[#allocation81_spill] sm:$0xff] %v18564_v12  ;;  %v4211_v56 = vrot.slane %v23826_v54, %v16615_v61  ;;  %v4218_v58 = vrot.slane %v23826_v54, %v16618_v5  ;;  %v4169_v25 = vrot.slane %v23832_v57, %v16603_v43  ;;  %12870 = vperm.xlu1 %15587, %v17975_v55  }
 0x242   :  { %23829 = vst [vmem:[#allocation244_spill] sm:$0xff] %v18568_v13  ;;  %23830 = vst [vmem:[#allocation245_spill] sm:$0xff] %v18570_v37  ;;  %v4176_v60 = vrot.slane %v23832_v57, %v16606_v21  ;;  %v18589_v3 = vcombine.low %v4197_v59, %v4204_v33  ;;  %v4183_v27 = vrot.slane %v23832_v57, %v16615_v61  ;;  %12903 = vperm.xlu0 %15586, %v17979_v10  }
 0x243   :  { %23833 = vst [vmem:[#allocation143_spill] sm:$0xff] %v18584_v50  ;;  %23834 = vst [vmem:[#allocation82_spill] sm:$0xff] %v18587_v17  ;;  %v4190_v32 = vrot.slane %v23832_v57, %v16618_v5  ;;  %v8966_v7 = vrot.slane %v23836_v2, %v16681_v42  ;;  %v4253_v30 = vrot.slane %v23837_v53, %v16603_v43  ;;  %v18622_v50 = vpop.xlane.xlu1 %935 }
 0x244   :  { %23835 = vst [vmem:[#allocation246_spill] sm:$0xff] %v18589_v3  ;;  %v4260_v55 = vrot.slane %v23837_v53, %v16606_v21  ;;  %v4267_v16 = vrot.slane %v23837_v53, %v16615_v61  ;;  %v4274_v44 = vrot.slane %v23837_v53, %v16618_v5  ;;  %v4225_v54 = vrot.slane %v23838_v29, %v16603_v43  ;;  %v18625_v8 = vpop.xlane.xlu0 %932 }
 0x245   :  { %v4232_v10 = vrot.slane %v23838_v29, %v16606_v21  ;;  %v4239_v59 = vrot.slane %v23838_v29, %v16615_v61  ;;  %v4246_v33 = vrot.slane %v23838_v29, %v16618_v5  ;;  %v4309_v57 = vrot.slane %v23839_v49, %v16603_v43  ;;  %23840 = vst [vmem:[#allocation144_spill] sm:$0xff] %v18622_v50  ;;  %v23842_v29 = vld [vmem:[#allocation87_spill] sm:$0xff] }
 0x246   :  { %v4316_v2 = vrot.slane %v23839_v49, %v16606_v21  ;;  %v4323_v53 = vrot.slane %v23839_v49, %v16615_v61  ;;  %v4330_v17 = vrot.slane %v23839_v49, %v16618_v5  ;;  %12876 = vperm.xlu1 %15587, %v18071_v6   ;;  %23841 = vst [vmem:[#allocation83_spill] sm:$0xff] %v18625_v8  ;;  %v23846_v8 = vld [vmem:[#allocation100_spill] sm:$0xff] }
 0x247   :  { %v4281_v34 = vrot.slane %v23842_v29, %v16603_v43  ;;  %v4288_v37 = vrot.slane %v23842_v29, %v16606_v21  ;;  %v4295_v13 = vrot.slane %v23842_v29, %v16615_v61  ;;  %v4302_v12 = vrot.slane %v23842_v29, %v16618_v5  ;;  %12909 = vperm.xlu0 %15586, %v18085_v62  }
 0x248   :  { %v18636_v49 = vcombine.low %v4211_v56, %v4218_v58  ;;  %v18638_v50 = vcombine.low %v4169_v25, %v4176_v60  ;;  %v18640_v6 = vcombine.low %v4183_v27, %v4190_v32  ;;  %v9146_v39 = vrot.slane %v23846_v8, %v16681_v42  ;;  %v18656_v56 = vpop.xlane.xlu1 %941  ;;  %v18659_v58 = vpop.xlane.xlu0 %938  ;;  %v23855_v8 = vld [vmem:[#allocation19_spill] sm:$0xff]  ;;  %v23856_v27 = vld [vmem:[#allocation88_spill] sm:$0xff] }
 0x249   :  { %v18644_v26 = vcombine.low %v4253_v30, %v4260_v55  ;;  %v18646_v38 = vcombine.low %v4267_v16, %v4274_v44  ;;  %v18648_v3 = vcombine.low %v4225_v54, %v4232_v10  ;;  %v18650_v36 = vcombine.low %v4239_v59, %v4246_v33  ;;  %23853 = vst [vmem:[#allocation252_spill] sm:$0xff] %v18656_v56  ;;  %v23860_v44 = vld [vmem:[#allocation89_spill] sm:$0xff]  ;;  %v23862_v10 = vld [vmem:[#allocation90_spill] sm:$0xff] }
 0x24a   :  { %23843 = vst [vmem:[#allocation84_spill] sm:$0xff] %v18636_v49  ;;  %23844 = vst [vmem:[#allocation86_spill] sm:$0xff] %v18638_v50  ;;  %v18652_v29 = vcombine.low %v4309_v57, %v4316_v2  ;;  %v18654_v62 = vcombine.low %v4323_v53, %v4330_v17  ;;  %12882 = vperm.xlu1 %15587, %v18171_v35   ;;  %v18661_v25 = vcombine.low %v8959_v22, %v8966_v7  ;;  %v23859_v17 = vld [vmem:[#allocation12_spill] sm:$0xff] }
 0x24b   :  { %23845 = vst [vmem:[#allocation87_spill] sm:$0xff] %v18640_v6  ;;  %23847 = vst [vmem:[#allocation100_spill] sm:$0xff] %v18644_v26  ;;  %v9153_v60 = vrot.slane %v23855_v8, %v16681_v42  ;;  %v4365_v32 = vrot.slane %v23856_v27, %v16603_v43  ;;  %v18667_v30 = vcombine.low %v4281_v34, %v4288_v37  ;;  %12915 = vperm.xlu0 %15586, %v18177_v46   ;;  %v23861_v37 = vld [vmem:[#allocation147_spill] sm:$0xff] }
 0x24c   :  { %23848 = vst [vmem:[#allocation247_spill] sm:$0xff] %v18646_v38  ;;  %23849 = vst [vmem:[#allocation248_spill] sm:$0xff] %v18648_v3  ;;  %v18669_v55 = vcombine.low %v4295_v13, %v4302_v12  ;;  %v8993_v16 = vrot.slane %v23859_v17, %v16681_v42  ;;  %v4372_v35 = vrot.slane %v23856_v27, %v16606_v21  ;;  %v18698_v53 = vpop.xlane.xlu1 %947  ;;  %v18701_v8 = vpop.xlane.xlu0 %944 }
 0x24d   :  { %23850 = vst [vmem:[#allocation249_spill] sm:$0xff] %v18650_v36  ;;  %23851 = vst [vmem:[#allocation250_spill] sm:$0xff] %v18652_v29  ;;  %v4379_v22 = vrot.slane %v23856_v27, %v16615_v61  ;;  %v4386_v7 = vrot.slane %v23856_v27, %v16618_v5  ;;  %v4337_v34 = vrot.slane %v23860_v44, %v16603_v43  ;;  %v23865_v27 = vld [vmem:[#allocation91_spill] sm:$0xff] }
 0x24e   :  { %23852 = vst [vmem:[#allocation251_spill] sm:$0xff] %v18654_v62  ;;  %23854 = vst [vmem:[#allocation253_spill] sm:$0xff] %v18659_v58  ;;  %v4344_v12 = vrot.slane %v23860_v44, %v16606_v21  ;;  %v4351_v46 = vrot.slane %v23860_v44, %v16615_v61  ;;  %v4358_v13 = vrot.slane %v23860_v44, %v16618_v5  ;;  %12888 = vperm.xlu1 %15587, %v18262_v4  }
 0x24f   :  { %23857 = vst [vmem:[#allocation19_spill] sm:$0xff] %v18667_v30  ;;  %23858 = vst [vmem:[#allocation88_spill] sm:$0xff] %v18669_v55  ;;  %v9000_v54 = vrot.slane %v23861_v37, %v16681_v42  ;;  %v4421_v59 = vrot.slane %v23862_v10, %v16603_v43  ;;  %v4428_v33 = vrot.slane %v23862_v10, %v16606_v21  ;;  %12921 = vperm.xlu0 %15586, %v18281_v28   ;;  %v23867_v55 = vld [vmem:[#allocation93_spill] sm:$0xff] }
 0x250   :  { %v4435_v57 = vrot.slane %v23862_v10, %v16615_v61  ;;  %v4442_v2 = vrot.slane %v23862_v10, %v16618_v5  ;;  %23863 = vst [vmem:[#allocation12_spill] sm:$0xff] %v18698_v53  ;;  %23864 = vst [vmem:[#allocation89_spill] sm:$0xff] %v18701_v8  ;;  %v4393_v17 = vrot.slane %v23865_v27, %v16603_v43  ;;  %v23866_v10 = vld [vmem:[#allocation92_spill] sm:$0xff]  ;;  %v18734_v62 = vpop.xlane.xlu1 %953 }
 0x251   :  { %v4400_v44 = vrot.slane %v23865_v27, %v16606_v21  ;;  %v4407_v37 = vrot.slane %v23865_v27, %v16615_v61  ;;  %v4414_v58 = vrot.slane %v23865_v27, %v16618_v5  ;;  %v4477_v53 = vrot.slane %v23866_v10, %v16603_v43  ;;  %23868 = vst [vmem:[#allocation147_spill] sm:$0xff] %v18734_v62  ;;  %v23886_v62 = vld [vmem:[#allocation101_spill] sm:$0xff] }
 0x252   :  { %v4484_v4 = vrot.slane %v23866_v10, %v16606_v21  ;;  %v4491_v8 = vrot.slane %v23866_v10, %v16615_v61  ;;  %v4498_v56 = vrot.slane %v23866_v10, %v16618_v5  ;;  %v4449_v30 = vrot.slane %v23867_v55, %v16603_v43  ;;  %12894 = vperm.xlu1 %15587, %v18368_v40   ;;  %v18737_v10 = vpop.xlane.xlu0 %950 }
 0x253   :  { %v4456_v27 = vrot.slane %v23867_v55, %v16606_v21  ;;  %v4463_v28 = vrot.slane %v23867_v55, %v16615_v61  ;;  %v4470_v36 = vrot.slane %v23867_v55, %v16618_v5  ;;  %v18728_v3 = vcombine.low %v4365_v32, %v4372_v35  ;;  %23869 = vst [vmem:[#allocation90_spill] sm:$0xff] %v18737_v10  ;;  %v23870_v32 = vld [vmem:[#allocation165_spill] sm:$0xff] }
 0x254   :  { %v18730_v6 = vcombine.low %v4379_v22, %v4386_v7  ;;  %v18732_v50 = vcombine.low %v4337_v34, %v4344_v12  ;;  %v18739_v29 = vcombine.low %v9146_v39, %v9153_v60  ;;  %v18741_v38 = vcombine.low %v4421_v59, %v4428_v33  ;;  %12927 = vperm.xlu0 %15586, %v18374_v41   ;;  %v23873_v39 = vld [vmem:[#allocation166_spill] sm:$0xff]  ;;  %v23876_v41 = vld [vmem:[#allocation95_spill] sm:$0xff]  ;;  %v18774_v59 = vpop.xlane.xlu1 %959 }
 0x255   :  { %v18743_v26 = vcombine.low %v4435_v57, %v4442_v2  ;;  %v18745_v49 = vcombine.low %v4351_v46, %v4358_v13  ;;  %v9180_v55 = vrot.slane %v23870_v32, %v16681_v42  ;;  %v18750_v35 = vcombine.low %v4393_v17, %v4400_v44  ;;  %23877 = vst [vmem:[#allocation166_spill] sm:$0xff] %v18774_v59  ;;  %v23885_v59 = vld [vmem:[#allocation151_spill] sm:$0xff] }
 0x256   :  { %v18752_v22 = vcombine.low %v4407_v37, %v4414_v58  ;;  %v18754_v40 = vcombine.low %v8993_v16, %v9000_v54  ;;  %v9187_v60 = vrot.slane %v23873_v39, %v16681_v42  ;;  %v18758_v7 = vcombine.low %v4477_v53, %v4484_v4  ;;  %12900 = vperm.xlu1 %15587, %v18460_v0   ;;  %v23880_v53 = vld [vmem:[#allocation97_spill] sm:$0xff]  ;;  %v23881_v37 = vld [vmem:[#allocation98_spill] sm:$0xff] }
 0x257   :  { %23871 = vst [vmem:[#allocation91_spill] sm:$0xff] %v18750_v35  ;;  %v18760_v34 = vcombine.low %v4491_v8, %v4498_v56  ;;  %v18762_v12 = vcombine.low %v4449_v30, %v4456_v27  ;;  %v18764_v46 = vcombine.low %v4463_v28, %v4470_v36  ;;  %v4533_v13 = vrot.slane %v23876_v41, %v16603_v43  ;;  %v18777_v56 = vpop.xlane.xlu0 %956  ;;  %v23879_v36 = vld [vmem:[#allocation96_spill] sm:$0xff] }
 0x258   :  { %23872 = vst [vmem:[#allocation92_spill] sm:$0xff] %v18752_v22  ;;  %v4540_v58 = vrot.slane %v23876_v41, %v16606_v21  ;;  %v4547_v16 = vrot.slane %v23876_v41, %v16615_v61  ;;  %v4554_v54 = vrot.slane %v23876_v41, %v16618_v5  ;;  %23878 = vst [vmem:[#allocation95_spill] sm:$0xff] %v18777_v56  ;;  %12933 = vperm.xlu0 %15586, %v18480_v47   ;;  %v18806_v39 = vpop.xlane.xlu1 %965 }
 0x259   :  { %23874 = vst [vmem:[#allocation93_spill] sm:$0xff] %v18762_v12  ;;  %23875 = vst [vmem:[#allocation165_spill] sm:$0xff] %v18764_v46  ;;  %v4505_v30 = vrot.slane %v23879_v36, %v16603_v43  ;;  %v4512_v33 = vrot.slane %v23879_v36, %v16606_v21  ;;  %v4519_v57 = vrot.slane %v23879_v36, %v16615_v61 }
 0x25a   :  { %v4526_v2 = vrot.slane %v23879_v36, %v16618_v5  ;;  %v4589_v8 = vrot.slane %v23880_v53, %v16603_v43  ;;  %v4596_v0 = vrot.slane %v23880_v53, %v16606_v21  ;;  %v4603_v17 = vrot.slane %v23880_v53, %v16615_v61  ;;  %23882 = vst [vmem:[#allocation96_spill] sm:$0xff] %v18806_v39 }
 0x25b   :  { %v4610_v44 = vrot.slane %v23880_v53, %v16618_v5  ;;  %v4561_v4 = vrot.slane %v23881_v37, %v16603_v43  ;;  %v4568_v27 = vrot.slane %v23881_v37, %v16606_v21  ;;  %v4575_v47 = vrot.slane %v23881_v37, %v16615_v61  ;;  %12906 = vperm.xlu1 %15587, %v18566_v20   ;;  %v18809_v41 = vpop.xlane.xlu0 %962  ;;  %v23884_v53 = vld [vmem:[#allocation13_spill] sm:$0xff] }
 0x25c   :  { %v4582_v28 = vrot.slane %v23881_v37, %v16618_v5  ;;  %v18804_v32 = vcombine.low %v4533_v13, %v4540_v58  ;;  %23883 = vst [vmem:[#allocation97_spill] sm:$0xff] %v18809_v41  ;;  %v9188_v36 = vcombine.low %v9180_v55, %v9187_v60  ;;  %v9027_v56 = vrot.slane %v23884_v53, %v16681_v42 }
 0x25d   :  { %v9034_v10 = vrot.slane %v23885_v59, %v16681_v42  ;;  %v4645_v46 = vrot.slane %v23886_v62, %v16603_v43  ;;  %v4652_v13 = vrot.slane %v23886_v62, %v16606_v21  ;;  %v4659_v58 = vrot.slane %v23886_v62, %v16615_v61  ;;  %12939 = vperm.xlu0 %15586, %v18572_v51  }
 0x25e   :  { %v4666_v20 = vrot.slane %v23886_v62, %v16618_v5  ;;  %v18824_v55 = vcombine.low %v4547_v16, %v4554_v54  ;;  %v18826_v60 = vcombine.low %v4505_v30, %v4512_v33  ;;  %v18828_v37 = vcombine.low %v4519_v57, %v4526_v2  ;;  %v23891_v62 = vld [vmem:[#allocation102_spill] sm:$0xff]  ;;  %v18844_v54 = vpop.xlane.xlu1 %971 }
 0x25f   :  { %v9214_v59 = vrot.slane %v17527_v31, %v16681_v42  ;;  %v18832_v53 = vcombine.low %v4589_v8, %v4596_v0  ;;  %v18834_v41 = vcombine.low %v4603_v17, %v4610_v44  ;;  %v18836_v39 = vcombine.low %v4561_v4, %v4568_v27  ;;  %23892 = vst [vmem:[#allocation102_spill] sm:$0xff] %v18844_v54  ;;  %v18847_v30 = vpop.xlane.xlu0 %968  ;;  %v23897_v4 = vld [vmem:[#allocation106_spill] sm:$0xff] }
 0x260   :  { %23887 = vst [vmem:[#allocation98_spill] sm:$0xff] %v18826_v60  ;;  %23888 = vst [vmem:[#allocation13_spill] sm:$0xff] %v18828_v37  ;;  %v18838_v12 = vcombine.low %v4575_v47, %v4582_v28  ;;  %v4617_v51 = vrot.slane %v23891_v62, %v16603_v43  ;;  %v4624_v16 = vrot.slane %v23891_v62, %v16606_v21  ;;  %12912 = vperm.xlu1 %15587, %v18661_v25   ;;  %v23895_v25 = vld [vmem:[#allocation105_spill] sm:$0xff]  ;;  %v23898_v28 = vld [vmem:[#allocation108_spill] sm:$0xff] }
 0x261   :  { %23889 = vst [vmem:[#allocation151_spill] sm:$0xff] %v18836_v39  ;;  %23893 = vst [vmem:[#allocation254_spill] sm:$0xff] %v18847_v30  ;;  %v9035_v31 = vcombine.low %v9027_v56, %v9034_v10  ;;  %v9221_v33 = vrot.slane %v17529_v23, %v16681_v42  ;;  %v18851_v57 = vcombine.low %v4645_v46, %v4652_v13  ;;  %12945 = vperm.xlu0 %15586, %v18739_v29   ;;  %v23896_v46 = vld [vmem:[#allocation153_spill] sm:$0xff] }
 0x262   :  { %23890 = vst [vmem:[#allocation101_spill] sm:$0xff] %v18838_v12  ;;  %v18853_v2 = vcombine.low %v4659_v58, %v4666_v20  ;;  %v4631_v8 = vrot.slane %v23891_v62, %v16615_v61  ;;  %v4638_v0 = vrot.slane %v23891_v62, %v16618_v5  ;;  %v4701_v17 = vrot.slane %v23895_v25, %v16603_v43  ;;  %v18882_v62 = vpop.xlane.xlu1 %977  ;;  %v23902_v39 = vld [vmem:[#allocation109_spill] sm:$0xff] }
 0x263   :  { %v4708_v10 = vrot.slane %v23895_v25, %v16606_v21  ;;  %v4715_v23 = vrot.slane %v23895_v25, %v16615_v61  ;;  %v9061_v56 = vrot.slane %v23896_v46, %v16681_v42  ;;  %v4722_v44 = vrot.slane %v23895_v25, %v16618_v5  ;;  %23899 = vst [vmem:[#allocation105_spill] sm:$0xff] %v18882_v62  ;;  %v18885_v25 = vpop.xlane.xlu0 %974  ;;  %v23901_v46 = vld [vmem:[#allocation154_spill] sm:$0xff] }
 0x264   :  { %23894 = vst [vmem:[#allocation255_spill] sm:$0xff] %v18853_v2  ;;  %v4673_v27 = vrot.slane %v23897_v4, %v16603_v43  ;;  %v4680_v29 = vrot.slane %v23897_v4, %v16606_v21  ;;  %v4687_v47 = vrot.slane %v23897_v4, %v16615_v61  ;;  %v4757_v13 = vrot.slane %v23898_v28, %v16603_v43 }
 0x265   :  { %v4764_v58 = vrot.slane %v23898_v28, %v16606_v21  ;;  %v4694_v20 = vrot.slane %v23897_v4, %v16618_v5  ;;  %12918 = vperm.xlu1 %15587, %v18754_v40   ;;  %23900 = vst [vmem:[#allocation153_spill] sm:$0xff] %v18885_v25  ;;  %v9068_v30 = vrot.slane %v23901_v46, %v16681_v42 }
 0x266   :  { %v4771_v54 = vrot.slane %v23898_v28, %v16615_v61  ;;  %v4778_v12 = vrot.slane %v23898_v28, %v16618_v5  ;;  %v4729_v37 = vrot.slane %v23902_v39, %v16603_v43  ;;  %v4736_v4 = vrot.slane %v23902_v39, %v16606_v21  ;;  %12951 = vperm.xlu0 %15586, %v9188_v36  }
 0x267   :  { %v18897_v62 = vcombine.low %v4701_v17, %v4708_v10  ;;  %v18899_v40 = vcombine.low %v4617_v51, %v4624_v16  ;;  %v18901_v25 = vcombine.low %v4631_v8, %v4638_v0  ;;  %v9222_v46 = vcombine.low %v9214_v59, %v9221_v33  ;;  %v18919_v16 = vpop.xlane.xlu1 %983  ;;  %v18921_v33 = vpop.xlane.xlu0 %980  ;;  %v23911_v0 = vld [vmem:[#allocation17_spill] sm:$0xff]  ;;  %v23912_v10 = vld [vmem:[#allocation111_spill] sm:$0xff] }
 0x268   :  { %v18903_v60 = vcombine.low %v4715_v23, %v4722_v44  ;;  %v18905_v22 = vcombine.low %v4673_v27, %v4680_v29  ;;  %v9248_v28 = vrot.slane %v17551_v9, %v16681_v42  ;;  %v9255_v35 = vrot.slane %v17553_v19, %v16681_v42  ;;  %23907 = vst [vmem:[#allocation256_spill] sm:$0xff] %v18919_v16  ;;  %v23913_v44 = vld [vmem:[#allocation18_spill] sm:$0xff]  ;;  %v23915_v29 = vld [vmem:[#allocation112_spill] sm:$0xff] }
 0x269   :  { %23903 = vst [vmem:[#allocation106_spill] sm:$0xff] %v18899_v40  ;;  %23904 = vst [vmem:[#allocation108_spill] sm:$0xff] %v18901_v25  ;;  %v18911_v2 = vcombine.low %v4757_v13, %v4764_v58  ;;  %v18913_v36 = vcombine.low %v4687_v47, %v4694_v20  ;;  %v4743_v51 = vrot.slane %v23902_v39, %v16615_v61  ;;  %12924 = vperm.xlu1 %15587, %v9035_v31  }
 0x26a   :  { %23905 = vst [vmem:[#allocation154_spill] sm:$0xff] %v18905_v22  ;;  %v4750_v59 = vrot.slane %v23902_v39, %v16618_v5  ;;  %23908 = vst [vmem:[#allocation257_spill] sm:$0xff] %v18921_v33  ;;  %v18923_v8 = vcombine.low %v4771_v54, %v4778_v12  ;;  %v18925_v9 = vcombine.low %v4729_v37, %v4736_v4  ;;  %12957 = vperm.xlu0 %15586, %v9222_v46  }
 0x26b   :  { %23906 = vst [vmem:[#allocation109_spill] sm:$0xff] %v18913_v36  ;;  %v9069_v19 = vcombine.low %v9061_v56, %v9068_v30  ;;  %v9095_v17 = vrot.slane %v23911_v0, %v16681_v42  ;;  %v4813_v23 = vrot.slane %v23912_v10, %v16603_v43  ;;  %v4820_v39 = vrot.slane %v23912_v10, %v16606_v21  ;;  %v23914_v56 = vld [vmem:[#allocation26_spill] sm:$0xff]  ;;  %v18951_v4 = vpop.xlane.xlu1 %989  ;;  %v23922_v36 = vld [vmem:[#allocation176_spill] sm:$0xff] }
 0x26c   :  { %23909 = vst [vmem:[#allocation258_spill] sm:$0xff] %v18923_v8  ;;  %23910 = vst [vmem:[#allocation259_spill] sm:$0xff] %v18925_v9  ;;  %v4827_v31 = vrot.slane %v23912_v10, %v16615_v61  ;;  %v9102_v12 = vrot.slane %v23913_v44, %v16681_v42  ;;  %v4834_v37 = vrot.slane %v23912_v10, %v16618_v5  ;;  %v23919_v44 = vld [vmem:[#allocation114_spill] sm:$0xff] }
 0x26d   :  { %v9256_v54 = vcombine.low %v9248_v28, %v9255_v35  ;;  %v9282_v30 = vrot.slane %v17603_v15, %v16681_v42  ;;  %v9289_v27 = vrot.slane %v23914_v56, %v16681_v42  ;;  %v4785_v47 = vrot.slane %v23915_v29, %v16603_v43  ;;  %23916 = vst [vmem:[#allocation17_spill] sm:$0xff] %v18951_v4  ;;  %v18953_v35 = vpop.xlane.xlu0 %986  ;;  %v23918_v15 = vld [vmem:[#allocation113_spill] sm:$0xff] }
 0x26e   :  { %v4792_v13 = vrot.slane %v23915_v29, %v16606_v21  ;;  %v4799_v58 = vrot.slane %v23915_v29, %v16615_v61  ;;  %v4806_v20 = vrot.slane %v23915_v29, %v16618_v5  ;;  %12930 = vperm.xlu1 %15587, %v9069_v19   ;;  %23917 = vst [vmem:[#allocation111_spill] sm:$0xff] %v18953_v35  ;;  %v23920_v19 = vld [vmem:[#allocation20_spill] sm:$0xff]  ;;  %v23921_v4 = vld [vmem:[#allocation161_spill] sm:$0xff] }
 0x26f   :  { %v4869_v46 = vrot.slane %v23918_v15, %v16603_v43  ;;  %v4876_v28 = vrot.slane %v23918_v15, %v16606_v21  ;;  %v4883_v0 = vrot.slane %v23918_v15, %v16615_v61  ;;  %v4890_v10 = vrot.slane %v23918_v15, %v16618_v5  ;;  %12963 = vperm.xlu0 %15586, %v9256_v54   ;;  %v23923_v15 = vld [vmem:[#allocation177_spill] sm:$0xff] }
 0x270   :  { %v4841_v56 = vrot.slane %v23919_v44, %v16603_v43  ;;  %v9103_v29 = vcombine.low %v9095_v17, %v9102_v12  ;;  %v9129_v35 = vrot.slane %v23920_v19, %v16681_v42  ;;  %v9136_v33 = vrot.slane %v23921_v4, %v16681_v42  ;;  %v18983_v19 = vpop.xlane.xlu1 %995 }
 0x271   :  { %v4848_v16 = vrot.slane %v23919_v44, %v16606_v21  ;;  %v9290_v9 = vcombine.low %v9282_v30, %v9289_v27  ;;  %v9316_v22 = vrot.slane %v23922_v36, %v16681_v42  ;;  %v9323_v54 = vrot.slane %v23923_v15, %v16681_v42  ;;  %23928 = vst [vmem:[#allocation114_spill] sm:$0xff] %v18983_v19  ;;  %v18985_v4 = vpop.xlane.xlu0 %992  ;;  %v23944_v19 = vld [vmem:[#allocation183_spill] sm:$0xff] }
 0x272   :  { %v18975_v25 = vcombine.low %v4813_v23, %v4820_v39  ;;  %v18977_v40 = vcombine.low %v4827_v31, %v4834_v37  ;;  %v18979_v17 = vcombine.low %v4743_v51, %v4750_v59  ;;  %v18981_v12 = vcombine.low %v4785_v47, %v4792_v13  ;;  %12936 = vperm.xlu1 %15587, %v9103_v29   ;;  %v23933_v39 = vld [vmem:[#allocation21_spill] sm:$0xff]  ;;  %v23934_v37 = vld [vmem:[#allocation23_spill] sm:$0xff] }
 0x273   :  { %23929 = vst [vmem:[#allocation20_spill] sm:$0xff] %v18985_v4  ;;  %v18987_v30 = vcombine.low %v4869_v46, %v4876_v28  ;;  %v18989_v27 = vcombine.low %v4799_v58, %v4806_v20  ;;  %v4855_v36 = vrot.slane %v23919_v44, %v16615_v61  ;;  %v4862_v23 = vrot.slane %v23919_v44, %v16618_v5  ;;  %v23936_v46 = vld [vmem:[#allocation32_spill] sm:$0xff] }
 0x274   :  { %23924 = vst [vmem:[#allocation18_spill] sm:$0xff] %v18975_v25  ;;  %23925 = vst [vmem:[#allocation26_spill] sm:$0xff] %v18977_v40  ;;  %12969 = vperm.xlu0 %15586, %v9290_v9   ;;  %v18995_v51 = vcombine.low %v4883_v0, %v4890_v10  ;;  %v9137_v59 = vcombine.low %v9129_v35, %v9136_v33  ;;  %v9163_v31 = vrot.slane %v23933_v39, %v16681_v42  ;;  %v23937_v9 = vld [vmem:[#allocation116_spill] sm:$0xff]  ;;  %v19015_v10 = vpop.xlane.xlu1 %1001 }
 0x275   :  { %23926 = vst [vmem:[#allocation112_spill] sm:$0xff] %v18979_v17  ;;  %23927 = vst [vmem:[#allocation113_spill] sm:$0xff] %v18981_v12  ;;  %v9170_v47 = vrot.slane %v23934_v37, %v16681_v42  ;;  %v19001_v13 = vcombine.low %v4841_v56, %v4848_v16  ;;  %v9324_v58 = vcombine.low %v9316_v22, %v9323_v54  ;;  %v19017_v22 = vpop.xlane.xlu0 %998  ;;  %v23941_v54 = vld [vmem:[#allocation118_spill] sm:$0xff] }
 0x276   :  { %23930 = vst [vmem:[#allocation161_spill] sm:$0xff] %v18987_v30  ;;  %23931 = vst [vmem:[#allocation176_spill] sm:$0xff] %v18989_v27  ;;  %v9350_v20 = vrot.slane %v17689_v24, %v16681_v42  ;;  %v9357_v28 = vrot.slane %v23936_v46, %v16681_v42  ;;  %v4925_v0 = vrot.slane %v23937_v9, %v16603_v43  ;;  %12942 = vperm.xlu1 %15587, %v9137_v59   ;;  %v23940_v24 = vld [vmem:[#allocation117_spill] sm:$0xff]  ;;  %v23954_v30 = vld [vmem:[#allocation171_spill] sm:$0xff] }
 0x277   :  { %23932 = vst [vmem:[#allocation177_spill] sm:$0xff] %v18995_v51  ;;  %23935 = vst [vmem:[#allocation21_spill] sm:$0xff] %v19001_v13  ;;  %v4932_v33 = vrot.slane %v23937_v9, %v16606_v21  ;;  %v4939_v35 = vrot.slane %v23937_v9, %v16615_v61  ;;  %v4946_v16 = vrot.slane %v23937_v9, %v16618_v5  ;;  %v23942_v59 = vld [vmem:[#allocation169_spill] sm:$0xff]  ;;  %v23943_v9 = vld [vmem:[#allocation170_spill] sm:$0xff] }
 0x278   :  { %23938 = vst [vmem:[#allocation23_spill] sm:$0xff] %v19015_v10  ;;  %23939 = vst [vmem:[#allocation32_spill] sm:$0xff] %v19017_v22  ;;  %v4897_v44 = vrot.slane %v23940_v24, %v16603_v43  ;;  %v4904_v56 = vrot.slane %v23940_v24, %v16606_v21  ;;  %v4911_v29 = vrot.slane %v23940_v24, %v16615_v61  ;;  %12975 = vperm.xlu0 %15586, %v9324_v58   ;;  %v19047_v12 = vpop.xlane.xlu1 %1007 }
 0x279   :  { %v4918_v15 = vrot.slane %v23940_v24, %v16618_v5  ;;  %v4981_v39 = vrot.slane %v23941_v54, %v16603_v43  ;;  %v9171_v37 = vcombine.low %v9163_v31, %v9170_v47  ;;  %v9197_v46 = vrot.slane %v23942_v59, %v16681_v42  ;;  %v23945_v24 = vld [vmem:[#allocation184_spill] sm:$0xff]  ;;  %v23946_v47 = vld [vmem:[#allocation119_spill] sm:$0xff]  ;;  %23947 = vst [vmem:[#allocation116_spill] sm:$0xff] %v19047_v12 }
 0x27a   :  { %v9204_v22 = vrot.slane %v23943_v9, %v16681_v42  ;;  %v4988_v10 = vrot.slane %v23941_v54, %v16606_v21  ;;  %v9358_v4 = vcombine.low %v9350_v20, %v9357_v28  ;;  %v9384_v13 = vrot.slane %v23944_v19, %v16681_v42  ;;  %v19049_v20 = vpop.xlane.xlu0 %1004  ;;  %v23955_v12 = vld [vmem:[#allocation172_spill] sm:$0xff] }
 0x27b   :  { %v9391_v58 = vrot.slane %v23945_v24, %v16681_v42  ;;  %v4995_v27 = vrot.slane %v23941_v54, %v16615_v61  ;;  %v5002_v31 = vrot.slane %v23941_v54, %v16618_v5  ;;  %v4953_v59 = vrot.slane %v23946_v47, %v16603_v43  ;;  %12948 = vperm.xlu1 %15587, %v9171_v37  }
 0x27c   :  { %v4960_v9 = vrot.slane %v23946_v47, %v16606_v21  ;;  %23948 = vst [vmem:[#allocation117_spill] sm:$0xff] %v19049_v20  ;;  %v19051_v19 = vcombine.low %v4925_v0, %v4932_v33  ;;  %v19053_v28 = vcombine.low %v4939_v35, %v4946_v16  ;;  %v19055_v24 = vcombine.low %v4855_v36, %v4862_v23  ;;  %v23956_v35 = vld [vmem:[#allocation36_spill] sm:$0xff] }
 0x27d   :  { %v19057_v17 = vcombine.low %v4897_v44, %v4904_v56  ;;  %12981 = vperm.xlu0 %15586, %v9358_v4   ;;  %v19059_v54 = vcombine.low %v4911_v29, %v4918_v15  ;;  %v9205_v51 = vcombine.low %v9197_v46, %v9204_v22  ;;  %v9231_v40 = vrot.slane %v23954_v30, %v16681_v42  ;;  %v23957_v23 = vld [vmem:[#allocation188_spill] sm:$0xff] }
 0x27e   :  { %23949 = vst [vmem:[#allocation118_spill] sm:$0xff] %v19051_v19  ;;  %23950 = vst [vmem:[#allocation169_spill] sm:$0xff] %v19053_v28  ;;  %v9238_v37 = vrot.slane %v23955_v12, %v16681_v42  ;;  %v4967_v0 = vrot.slane %v23946_v47, %v16615_v61  ;;  %v9392_v33 = vcombine.low %v9384_v13, %v9391_v58  ;;  %v19079_v12 = vpop.xlane.xlu1 %1013  ;;  %v19081_v56 = vpop.xlane.xlu0 %1010  ;;  %v23963_v13 = vld [vmem:[#allocation122_spill] sm:$0xff]  ;;  %v23978_v19 = vld [vmem:[#allocation197_spill] sm:$0xff] }
 0x27f   :  { %23951 = vst [vmem:[#allocation170_spill] sm:$0xff] %v19055_v24  ;;  %23952 = vst [vmem:[#allocation183_spill] sm:$0xff] %v19057_v17  ;;  %v9418_v36 = vrot.slane %v23956_v35, %v16681_v42  ;;  %v9425_v16 = vrot.slane %v23957_v23, %v16681_v42  ;;  %v19071_v4 = vcombine.low %v4981_v39, %v4988_v10  ;;  %12954 = vperm.xlu1 %15587, %v9205_v51   ;;  %v23964_v39 = vld [vmem:[#allocation123_spill] sm:$0xff]  ;;  %v23965_v51 = vld [vmem:[#allocation174_spill] sm:$0xff] }
 0x280   :  { %23953 = vst [vmem:[#allocation184_spill] sm:$0xff] %v19059_v54  ;;  %v19073_v44 = vcombine.low %v4995_v27, %v5002_v31  ;;  %v4974_v30 = vrot.slane %v23946_v47, %v16618_v5  ;;  %v19077_v22 = vcombine.low %v4953_v59, %v4960_v9  ;;  %23961 = vst [vmem:[#allocation36_spill] sm:$0xff] %v19079_v12  ;;  %v23966_v47 = vld [vmem:[#allocation175_spill] sm:$0xff]  ;;  %v23967_v23 = vld [vmem:[#allocation190_spill] sm:$0xff] }
 0x281   :  { %23958 = vst [vmem:[#allocation119_spill] sm:$0xff] %v19071_v4  ;;  %23962 = vst [vmem:[#allocation188_spill] sm:$0xff] %v19081_v56  ;;  %v5037_v29 = vrot.slane %v23963_v13, %v16603_v43  ;;  %v5044_v15 = vrot.slane %v23963_v13, %v16606_v21  ;;  %v5051_v27 = vrot.slane %v23963_v13, %v16615_v61  ;;  %12987 = vperm.xlu0 %15586, %v9392_v33   ;;  %v23969_v12 = vld [vmem:[#allocation124_spill] sm:$0xff] }
 0x282   :  { %23959 = vst [vmem:[#allocation171_spill] sm:$0xff] %v19073_v44  ;;  %23960 = vst [vmem:[#allocation172_spill] sm:$0xff] %v19077_v22  ;;  %v5058_v10 = vrot.slane %v23963_v13, %v16618_v5  ;;  %v5009_v46 = vrot.slane %v23964_v39, %v16603_v43  ;;  %v9239_v58 = vcombine.low %v9231_v40, %v9238_v37  ;;  %v23968_v13 = vld [vmem:[#allocation192_spill] sm:$0xff] }
 0x283   :  { %v9265_v31 = vrot.slane %v23965_v51, %v16681_v42  ;;  %v9272_v59 = vrot.slane %v23966_v47, %v16681_v42  ;;  %v5016_v9 = vrot.slane %v23964_v39, %v16606_v21  ;;  %v9426_v35 = vcombine.low %v9418_v36, %v9425_v16  ;;  %v19111_v47 = vpop.xlane.xlu1 %1019  ;;  %v19113_v36 = vpop.xlane.xlu0 %1016 }
 0x284   :  { %v9452_v56 = vrot.slane %v23967_v23, %v16681_v42  ;;  %v9459_v33 = vrot.slane %v23968_v13, %v16681_v42  ;;  %v5093_v20 = vrot.slane %v23969_v12, %v16603_v43  ;;  %v5100_v40 = vrot.slane %v23969_v12, %v16606_v21  ;;  %23970 = vst [vmem:[#allocation122_spill] sm:$0xff] %v19111_v47  ;;  %v23972_v13 = vld [vmem:[#allocation125_spill] sm:$0xff] }
 0x285   :  { %v5023_v37 = vrot.slane %v23964_v39, %v16615_v61  ;;  %v5030_v51 = vrot.slane %v23964_v39, %v16618_v5  ;;  %12960 = vperm.xlu1 %15587, %v9239_v58   ;;  %23971 = vst [vmem:[#allocation123_spill] sm:$0xff] %v19113_v36  ;;  %v5107_v16 = vrot.slane %v23969_v12, %v16615_v61  ;;  %v23974_v58 = vld [vmem:[#allocation29_spill] sm:$0xff]  ;;  %v23975_v36 = vld [vmem:[#allocation180_spill] sm:$0xff] }
 0x286   :  { %v5114_v23 = vrot.slane %v23969_v12, %v16618_v5  ;;  %v5065_v22 = vrot.slane %v23972_v13, %v16603_v43  ;;  %v5072_v54 = vrot.slane %v23972_v13, %v16606_v21  ;;  %12993 = vperm.xlu0 %15586, %v9426_v35   ;;  %v19123_v17 = vcombine.low %v4967_v0, %v4974_v30  ;;  %v23977_v12 = vld [vmem:[#allocation196_spill] sm:$0xff]  ;;  %v23988_v35 = vld [vmem:[#allocation181_spill] sm:$0xff] }
 0x287   :  { %v9273_v39 = vcombine.low %v9265_v31, %v9272_v59  ;;  %v9299_v47 = vrot.slane %v23974_v58, %v16681_v42  ;;  %v9306_v24 = vrot.slane %v23975_v36, %v16681_v42  ;;  %v19129_v44 = vcombine.low %v5037_v29, %v5044_v15  ;;  %v19143_v59 = vpop.xlane.xlu1 %1025  ;;  %v19145_v29 = vpop.xlane.xlu0 %1022  ;;  %v23990_v36 = vld [vmem:[#allocation199_spill] sm:$0xff] }
 0x288   :  { %23973 = vst [vmem:[#allocation174_spill] sm:$0xff] %v19123_v17  ;;  %v9460_v4 = vcombine.low %v9452_v56, %v9459_v33  ;;  %v9486_v28 = vrot.slane %v23977_v12, %v16681_v42  ;;  %v9493_v25 = vrot.slane %v23978_v19, %v16681_v42  ;;  %v19135_v8 = vcombine.low %v5051_v27, %v5058_v10  ;;  %v23987_v10 = vld [vmem:[#allocation130_spill] sm:$0xff] }
 0x289   :  { %23976 = vst [vmem:[#allocation175_spill] sm:$0xff] %v19129_v44  ;;  %v19137_v0 = vcombine.low %v5009_v46, %v5016_v9  ;;  %v19139_v30 = vcombine.low %v5023_v37, %v5030_v51  ;;  %v5079_v31 = vrot.slane %v23972_v13, %v16615_v61  ;;  %23982 = vst [vmem:[#allocation125_spill] sm:$0xff] %v19143_v59  ;;  %12966 = vperm.xlu1 %15587, %v9273_v39   ;;  %v23989_v37 = vld [vmem:[#allocation182_spill] sm:$0xff] }
 0x28a   :  { %23979 = vst [vmem:[#allocation190_spill] sm:$0xff] %v19135_v8  ;;  %23983 = vst [vmem:[#allocation29_spill] sm:$0xff] %v19145_v29  ;;  %v19147_v56 = vcombine.low %v5093_v20, %v5100_v40  ;;  %v19149_v15 = vcombine.low %v5107_v16, %v5114_v23  ;;  %v5086_v19 = vrot.slane %v23972_v13, %v16618_v5  ;;  %12999 = vperm.xlu0 %15586, %v9460_v4   ;;  %v24007_v8 = vld [vmem:[#allocation189_spill] sm:$0xff] }
 0x28b   :  { %23980 = vst [vmem:[#allocation192_spill] sm:$0xff] %v19137_v0  ;;  %23981 = vst [vmem:[#allocation124_spill] sm:$0xff] %v19139_v30  ;;  %v19153_v27 = vcombine.low %v5065_v22, %v5072_v54  ;;  %v5149_v46 = vrot.slane %v23987_v10, %v16603_v43  ;;  %v9307_v9 = vcombine.low %v9299_v47, %v9306_v24  ;;  %v23991_v54 = vld [vmem:[#allocation41_spill] sm:$0xff]  ;;  %v23992_v47 = vld [vmem:[#allocation131_spill] sm:$0xff]  ;;  %v19175_v39 = vpop.xlane.xlu1 %1031 }
 0x28c   :  { %23984 = vst [vmem:[#allocation180_spill] sm:$0xff] %v19147_v56  ;;  %23985 = vst [vmem:[#allocation196_spill] sm:$0xff] %v19149_v15  ;;  %v9333_v33 = vrot.slane %v23988_v35, %v16681_v42  ;;  %v9340_v51 = vrot.slane %v23989_v37, %v16681_v42  ;;  %v5156_v20 = vrot.slane %v23987_v10, %v16606_v21  ;;  %v24000_v0 = vld [vmem:[#allocation135_spill] sm:$0xff] }
 0x28d   :  { %23986 = vst [vmem:[#allocation197_spill] sm:$0xff] %v19153_v27  ;;  %v9494_v40 = vcombine.low %v9486_v28, %v9493_v25  ;;  %v9520_v16 = vrot.slane %v23990_v36, %v16681_v42  ;;  %v9527_v4 = vrot.slane %v23991_v54, %v16681_v42  ;;  %v5163_v22 = vrot.slane %v23987_v10, %v16615_v61  ;;  %v19177_v25 = vpop.xlane.xlu0 %1028  ;;  %v23995_v28 = vld [vmem:[#allocation134_spill] sm:$0xff]  ;;  %v23998_v27 = vld [vmem:[#allocation205_spill] sm:$0xff] }
 0x28e   :  { %v5170_v24 = vrot.slane %v23987_v10, %v16618_v5  ;;  %v5121_v23 = vrot.slane %v23992_v47, %v16603_v43  ;;  %v5128_v13 = vrot.slane %v23992_v47, %v16606_v21  ;;  %23993 = vst [vmem:[#allocation130_spill] sm:$0xff] %v19175_v39  ;;  %12972 = vperm.xlu1 %15587, %v9307_v9   ;;  %23994 = vst [vmem:[#allocation181_spill] sm:$0xff] %v19177_v25  ;;  %v23996_v9 = vld [vmem:[#allocation185_spill] sm:$0xff] }
 0x28f   :  { %v5205_v58 = vrot.slane %v23995_v28, %v16603_v43  ;;  %v5212_v12 = vrot.slane %v23995_v28, %v16606_v21  ;;  %v5135_v10 = vrot.slane %v23992_v47, %v16615_v61  ;;  %v5142_v35 = vrot.slane %v23992_v47, %v16618_v5  ;;  %13005 = vperm.xlu0 %15586, %v9494_v40   ;;  %v23997_v25 = vld [vmem:[#allocation33_spill] sm:$0xff]  ;;  %v23999_v47 = vld [vmem:[#allocation206_spill] sm:$0xff] }
 0x290   :  { %v5219_v37 = vrot.slane %v23995_v28, %v16615_v61  ;;  %v9341_v36 = vcombine.low %v9333_v33, %v9340_v51  ;;  %v9367_v54 = vrot.slane %v23996_v9, %v16681_v42  ;;  %v9374_v39 = vrot.slane %v23997_v25, %v16681_v42 }
 0x291   :  { %v5226_v29 = vrot.slane %v23995_v28, %v16618_v5  ;;  %v9528_v59 = vcombine.low %v9520_v16, %v9527_v4  ;;  %v9554_v30 = vrot.slane %v23998_v27, %v16681_v42  ;;  %v9561_v40 = vrot.slane %v23999_v47, %v16681_v42  ;;  %v19207_v28 = vpop.xlane.xlu1 %1037  ;;  %v19209_v16 = vpop.xlane.xlu0 %1034 }
 0x292   :  { %v5177_v17 = vrot.slane %v24000_v0, %v16603_v43  ;;  %v5184_v33 = vrot.slane %v24000_v0, %v16606_v21  ;;  %v5191_v51 = vrot.slane %v24000_v0, %v16615_v61  ;;  %v5198_v25 = vrot.slane %v24000_v0, %v16618_v5  ;;  %24001 = vst [vmem:[#allocation182_spill] sm:$0xff] %v19207_v28  ;;  %v24008_v28 = vld [vmem:[#allocation191_spill] sm:$0xff] }
 0x293   :  { %12978 = vperm.xlu1 %15587, %v9341_v36   ;;  %24002 = vst [vmem:[#allocation199_spill] sm:$0xff] %v19209_v16  ;;  %v19211_v27 = vcombine.low %v5149_v46, %v5156_v20  ;;  %v19213_v4 = vcombine.low %v5163_v22, %v5170_v24  ;;  %v19215_v9 = vcombine.low %v5079_v31, %v5086_v19  ;;  %v24010_v20 = vld [vmem:[#allocation45_spill] sm:$0xff] }
 0x294   :  { %v19217_v47 = vcombine.low %v5121_v23, %v5128_v13  ;;  %13011 = vperm.xlu0 %15586, %v9528_v59   ;;  %v19219_v15 = vcombine.low %v5135_v10, %v5142_v35  ;;  %v9375_v56 = vcombine.low %v9367_v54, %v9374_v39  ;;  %v9401_v0 = vrot.slane %v24007_v8, %v16681_v42  ;;  %v24011_v31 = vld [vmem:[#allocation209_spill] sm:$0xff]  ;;  %v24013_v59 = vld [vmem:[#allocation136_spill] sm:$0xff] }
 0x295   :  { %24003 = vst [vmem:[#allocation41_spill] sm:$0xff] %v19213_v4  ;;  %24004 = vst [vmem:[#allocation131_spill] sm:$0xff] %v19215_v9  ;;  %v9408_v36 = vrot.slane %v24008_v28, %v16681_v42  ;;  %v19225_v44 = vcombine.low %v5205_v58, %v5212_v12  ;;  %v9562_v46 = vcombine.low %v9554_v30, %v9561_v40  ;;  %v19239_v39 = vpop.xlane.xlu1 %1043  ;;  %v19241_v58 = vpop.xlane.xlu0 %1040  ;;  %v24018_v10 = vld [vmem:[#allocation137_spill] sm:$0xff]  ;;  %v24029_v9 = vld [vmem:[#allocation50_spill] sm:$0xff] }
 0x296   :  { %24005 = vst [vmem:[#allocation134_spill] sm:$0xff] %v19217_v47  ;;  %24006 = vst [vmem:[#allocation185_spill] sm:$0xff] %v19219_v15  ;;  %v9588_v22 = vrot.slane %v24010_v20, %v16681_v42  ;;  %v9595_v19 = vrot.slane %v24011_v31, %v16681_v42  ;;  %v19231_v24 = vcombine.low %v5219_v37, %v5226_v29  ;;  %v24020_v40 = vld [vmem:[#allocation37_spill] sm:$0xff]  ;;  %v24022_v31 = vld [vmem:[#allocation214_spill] sm:$0xff] }
 0x297   :  { %24009 = vst [vmem:[#allocation33_spill] sm:$0xff] %v19225_v44  ;;  %v5261_v23 = vrot.slane %v24013_v59, %v16603_v43  ;;  %v19235_v13 = vcombine.low %v5177_v17, %v5184_v33  ;;  %v19237_v8 = vcombine.low %v5191_v51, %v5198_v25  ;;  %24016 = vst [vmem:[#allocation189_spill] sm:$0xff] %v19239_v39  ;;  %12984 = vperm.xlu1 %15587, %v9375_v56   ;;  %v24019_v56 = vld [vmem:[#allocation193_spill] sm:$0xff] }
 0x298   :  { %24012 = vst [vmem:[#allocation205_spill] sm:$0xff] %v19231_v24  ;;  %24017 = vst [vmem:[#allocation191_spill] sm:$0xff] %v19241_v58  ;;  %v5268_v30 = vrot.slane %v24013_v59, %v16606_v21  ;;  %v5275_v12 = vrot.slane %v24013_v59, %v16615_v61  ;;  %v5282_v29 = vrot.slane %v24013_v59, %v16618_v5  ;;  %13017 = vperm.xlu0 %15586, %v9562_v46   ;;  %v24021_v28 = vld [vmem:[#allocation213_spill] sm:$0xff] }
 0x299   :  { %24014 = vst [vmem:[#allocation206_spill] sm:$0xff] %v19235_v13  ;;  %24015 = vst [vmem:[#allocation135_spill] sm:$0xff] %v19237_v8  ;;  %v5233_v17 = vrot.slane %v24018_v10, %v16603_v43  ;;  %v5240_v35 = vrot.slane %v24018_v10, %v16606_v21  ;;  %v9409_v37 = vcombine.low %v9401_v0, %v9408_v36  ;;  %v24023_v59 = vld [vmem:[#allocation145_spill] sm:$0xff]  ;;  %v19283_v8 = vpop.xlane.xlu0 %1046 }
 0x29a   :  { %v9435_v54 = vrot.slane %v24019_v56, %v16681_v42  ;;  %v9442_v33 = vrot.slane %v24020_v40, %v16681_v42  ;;  %v5247_v51 = vrot.slane %v24018_v10, %v16615_v61  ;;  %v9596_v25 = vcombine.low %v9588_v22, %v9595_v19  ;;  %v19271_v40 = vpop.xlane.xlu1 %1049  ;;  %v24025_v19 = vld [vmem:[#allocation146_spill] sm:$0xff]  ;;  %24026 = vst [vmem:[#allocation209_spill] sm:$0xff] %v19283_v8 }
 0x29b   :  { %v9622_v20 = vrot.slane %v24021_v28, %v16681_v42  ;;  %v9629_v46 = vrot.slane %v24022_v31, %v16681_v42  ;;  %v5317_v58 = vrot.slane %v24023_v59, %v16603_v43  ;;  %v5324_v0 = vrot.slane %v24023_v59, %v16606_v21  ;;  %24024 = vst [vmem:[#allocation45_spill] sm:$0xff] %v19271_v40 }
 0x29c   :  { %v5331_v36 = vrot.slane %v24023_v59, %v16615_v61  ;;  %v5254_v56 = vrot.slane %v24018_v10, %v16618_v5  ;;  %12990 = vperm.xlu1 %15587, %v9409_v37   ;;  %v5338_v22 = vrot.slane %v24023_v59, %v16618_v5  ;;  %v5289_v28 = vrot.slane %v24025_v19, %v16603_v43  ;;  %v24027_v37 = vld [vmem:[#allocation40_spill] sm:$0xff]  ;;  %v24028_v59 = vld [vmem:[#allocation198_spill] sm:$0xff] }
 0x29d   :  { %v5296_v31 = vrot.slane %v24025_v19, %v16606_v21  ;;  %v5303_v39 = vrot.slane %v24025_v19, %v16615_v61  ;;  %13023 = vperm.xlu0 %15586, %v9596_v25   ;;  %v5310_v16 = vrot.slane %v24025_v19, %v16618_v5  ;;  %v9443_v10 = vcombine.low %v9435_v54, %v9442_v33  ;;  %v24030_v25 = vld [vmem:[#allocation215_spill] sm:$0xff] }
 0x29e   :  { %v9469_v40 = vrot.slane %v24027_v37, %v16681_v42  ;;  %v9476_v13 = vrot.slane %v24028_v59, %v16681_v42  ;;  %v19289_v15 = vcombine.low %v5261_v23, %v5268_v30  ;;  %v9630_v47 = vcombine.low %v9622_v20, %v9629_v46  ;;  %v19303_v37 = vpop.permute.xlu1 %12831  ;;  %v24036_v30 = vld [vmem:[#allocation10_spill] sm:$0xff]  ;;  %v24047_v59 = vld [vmem:[#allocation149_spill] sm:$0xff] }
 0x29f   :  { %v9656_v24 = vrot.slane %v24029_v9, %v16681_v42  ;;  %v9663_v44 = vrot.slane %v24030_v25, %v16681_v42  ;;  %v19295_v4 = vcombine.low %v5275_v12, %v5282_v29  ;;  %v19297_v54 = vcombine.low %v5317_v58, %v5324_v0  ;;  %24034 = vst [vmem:[#allocation37_spill] sm:$0xff] %v19303_v37  ;;  %v24039_v29 = vld [vmem:[#allocation202_spill] sm:$0xff]  ;;  %v24050_v37 = vld [vmem:[#allocation225_spill] sm:$0xff] }
 0x2a0   :  { %v19299_v33 = vcombine.low %v5233_v17, %v5240_v35  ;;  %v19301_v19 = vcombine.low %v5247_v51, %v5254_v56  ;;  %12996 = vperm.xlu1 %15587, %v9443_v10   ;;  %v19305_v23 = vcombine.low %v5331_v36, %v5338_v22  ;;  %v5373_v20 = vrot.slane %v24036_v30, %v16603_v43  ;;  %v24040_v35 = vld [vmem:[#allocation203_spill] sm:$0xff] }
 0x2a1   :  { %24031 = vst [vmem:[#allocation136_spill] sm:$0xff] %v19297_v54  ;;  %v5380_v9 = vrot.slane %v24036_v30, %v16606_v21  ;;  %v19311_v46 = vcombine.low %v5289_v28, %v5296_v31  ;;  %13029 = vperm.xlu0 %15586, %v9630_v47   ;;  %v19313_v58 = vcombine.low %v5303_v39, %v5310_v16  ;;  %v24041_v56 = vld [vmem:[#allocation51_spill] sm:$0xff]  ;;  %v24042_v28 = vld [vmem:[#allocation221_spill] sm:$0xff] }
 0x2a2   :  { %24032 = vst [vmem:[#allocation137_spill] sm:$0xff] %v19299_v33  ;;  %24033 = vst [vmem:[#allocation193_spill] sm:$0xff] %v19301_v19  ;;  %v9477_v12 = vcombine.low %v9469_v40, %v9476_v13  ;;  %v9503_v17 = vrot.slane %v24039_v29, %v16681_v42  ;;  %v9510_v51 = vrot.slane %v24040_v35, %v16681_v42  ;;  %v24043_v47 = vld [vmem:[#allocation11_spill] sm:$0xff]  ;;  %v19333_v10 = vpop.permute.xlu1 %12834  ;;  %v24059_v19 = vld [vmem:[#allocation14_spill] sm:$0xff] }
 0x2a3   :  { %24035 = vst [vmem:[#allocation213_spill] sm:$0xff] %v19305_v23  ;;  %24037 = vst [vmem:[#allocation214_spill] sm:$0xff] %v19311_v46  ;;  %v5387_v0 = vrot.slane %v24036_v30, %v16615_v61  ;;  %v9664_v36 = vcombine.low %v9656_v24, %v9663_v44  ;;  %v9690_v22 = vrot.slane %v24041_v56, %v16681_v42  ;;  %v19335_v44 = vpop.permute.xlu0 %12828 }
 0x2a4   :  { %24038 = vst [vmem:[#allocation145_spill] sm:$0xff] %v19313_v58  ;;  %v9697_v31 = vrot.slane %v24042_v28, %v16681_v42  ;;  %v5394_v16 = vrot.slane %v24036_v30, %v16618_v5  ;;  %v5345_v13 = vrot.slane %v24043_v47, %v16603_v43  ;;  %v5352_v39 = vrot.slane %v24043_v47, %v16606_v21  ;;  %v24052_v58 = vld [vmem:[#allocation150_spill] sm:$0xff] }
 0x2a5   :  { %v5359_v40 = vrot.slane %v24043_v47, %v16615_v61  ;;  %24044 = vst [vmem:[#allocation146_spill] sm:$0xff] %v19333_v10  ;;  %13002 = vperm.xlu1 %15587, %v9477_v12   ;;  %24045 = vst [vmem:[#allocation40_spill] sm:$0xff] %v19335_v44  ;;  %v19337_v24 = vcombine.low %v5373_v20, %v5380_v9  ;;  %v5429_v25 = vrot.slane %v24047_v59, %v16603_v43  ;;  %v24048_v12 = vld [vmem:[#allocation43_spill] sm:$0xff]  ;;  %v24049_v20 = vld [vmem:[#allocation44_spill] sm:$0xff] }
 0x2a6   :  { %v5436_v30 = vrot.slane %v24047_v59, %v16606_v21  ;;  %v5366_v29 = vrot.slane %v24043_v47, %v16618_v5  ;;  %13035 = vperm.xlu0 %15586, %v9664_v36   ;;  %v5443_v35 = vrot.slane %v24047_v59, %v16615_v61  ;;  %v9511_v56 = vcombine.low %v9503_v17, %v9510_v51  ;;  %v24051_v47 = vld [vmem:[#allocation54_spill] sm:$0xff] }
 0x2a7   :  { %24046 = vst [vmem:[#allocation198_spill] sm:$0xff] %v19337_v24  ;;  %v9537_v28 = vrot.slane %v24048_v12, %v16681_v42  ;;  %v9544_v9 = vrot.slane %v24049_v20, %v16681_v42  ;;  %v5450_v8 = vrot.slane %v24047_v59, %v16618_v5  ;;  %v9698_v10 = vcombine.low %v9690_v22, %v9697_v31  ;;  %v19365_v59 = vpop.permute.xlu1 %12837  ;;  %v19367_v22 = vpop.permute.xlu0 %12855 }
 0x2a8   :  { %v9724_v44 = vrot.slane %v24050_v37, %v16681_v42  ;;  %v9731_v36 = vrot.slane %v24051_v47, %v16681_v42  ;;  %v5401_v46 = vrot.slane %v24052_v58, %v16603_v43  ;;  %v5408_v17 = vrot.slane %v24052_v58, %v16606_v21  ;;  %24053 = vst [vmem:[#allocation50_spill] sm:$0xff] %v19365_v59 }
 0x2a9   :  { %v5415_v51 = vrot.slane %v24052_v58, %v16615_v61  ;;  %v5422_v12 = vrot.slane %v24052_v58, %v16618_v5  ;;  %13008 = vperm.xlu1 %15587, %v9511_v56   ;;  %24054 = vst [vmem:[#allocation215_spill] sm:$0xff] %v19367_v22  ;;  %v19369_v37 = vcombine.low %v5387_v0, %v5394_v16  ;;  %v24060_v58 = vld [vmem:[#allocation210_spill] sm:$0xff]  ;;  %v24061_v56 = vld [vmem:[#allocation211_spill] sm:$0xff] }
 0x2aa   :  { %v19371_v31 = vcombine.low %v5429_v25, %v5436_v30  ;;  %v19373_v20 = vcombine.low %v5345_v13, %v5352_v39  ;;  %v19375_v47 = vcombine.low %v5359_v40, %v5366_v29  ;;  %13041 = vperm.xlu0 %15586, %v9698_v10   ;;  %v5485_v33 = vrot.slane %v24059_v19, %v16603_v43  ;;  %v24062_v13 = vld [vmem:[#allocation55_spill] sm:$0xff] }
 0x2ab   :  { %24055 = vst [vmem:[#allocation10_spill] sm:$0xff] %v19369_v37  ;;  %v9545_v24 = vcombine.low %v9537_v28, %v9544_v9  ;;  %v9571_v23 = vrot.slane %v24060_v58, %v16681_v42  ;;  %v9578_v59 = vrot.slane %v24061_v56, %v16681_v42  ;;  %v5492_v0 = vrot.slane %v24059_v19, %v16606_v21  ;;  %v24063_v40 = vld [vmem:[#allocation227_spill] sm:$0xff]  ;;  %v19397_v9 = vpop.permute.xlu1 %12840  ;;  %v19399_v58 = vpop.permute.xlu0 %12861 }
 0x2ac   :  { %24056 = vst [vmem:[#allocation202_spill] sm:$0xff] %v19371_v31  ;;  %24057 = vst [vmem:[#allocation203_spill] sm:$0xff] %v19373_v20  ;;  %v9732_v16 = vcombine.low %v9724_v44, %v9731_v36  ;;  %v9758_v39 = vrot.slane %v24062_v13, %v16681_v42  ;;  %v9765_v10 = vrot.slane %v24063_v40, %v16681_v42  ;;  %v24069_v36 = vld [vmem:[#allocation15_spill] sm:$0xff] }
 0x2ad   :  { %24058 = vst [vmem:[#allocation51_spill] sm:$0xff] %v19375_v47  ;;  %v19389_v25 = vcombine.low %v5443_v35, %v5450_v8  ;;  %v5499_v30 = vrot.slane %v24059_v19, %v16615_v61  ;;  %v19393_v29 = vcombine.low %v5401_v46, %v5408_v17  ;;  %v19395_v28 = vcombine.low %v5415_v51, %v5422_v12  ;;  %v24071_v12 = vld [vmem:[#allocation216_spill] sm:$0xff]  ;;  %v24083_v37 = vld [vmem:[#allocation59_spill] sm:$0xff] }
 0x2ae   :  { %24067 = vst [vmem:[#allocation43_spill] sm:$0xff] %v19397_v9  ;;  %13014 = vperm.xlu1 %15587, %v9545_v24   ;;  %24068 = vst [vmem:[#allocation44_spill] sm:$0xff] %v19399_v58  ;;  %v5506_v44 = vrot.slane %v24059_v19, %v16618_v5  ;;  %v5457_v56 = vrot.slane %v24069_v36, %v16603_v43  ;;  %v5464_v8 = vrot.slane %v24069_v36, %v16606_v21  ;;  %v24070_v24 = vld [vmem:[#allocation49_spill] sm:$0xff] }
 0x2af   :  { %24064 = vst [vmem:[#allocation221_spill] sm:$0xff] %v19389_v25  ;;  %24065 = vst [vmem:[#allocation11_spill] sm:$0xff] %v19393_v29  ;;  %v5471_v46 = vrot.slane %v24069_v36, %v16615_v61  ;;  %13047 = vperm.xlu0 %15586, %v9732_v16   ;;  %v5478_v35 = vrot.slane %v24069_v36, %v16618_v5  ;;  %v9579_v17 = vcombine.low %v9571_v23, %v9578_v59  ;;  %v24073_v58 = vld [vmem:[#allocation57_spill] sm:$0xff]  ;;  %v24075_v16 = vld [vmem:[#allocation99_spill] sm:$0xff] }
 0x2b0   :  { %24066 = vst [vmem:[#allocation149_spill] sm:$0xff] %v19395_v28  ;;  %v9605_v51 = vrot.slane %v24070_v24, %v16681_v42  ;;  %v9612_v19 = vrot.slane %v24071_v12, %v16681_v42  ;;  %v19415_v13 = vcombine.low %v5485_v33, %v5492_v0  ;;  %v9766_v40 = vcombine.low %v9758_v39, %v9765_v10  ;;  %v24074_v9 = vld [vmem:[#allocation229_spill] sm:$0xff]  ;;  %v19429_v0 = vpop.permute.xlu1 %12843  ;;  %v19431_v39 = vpop.permute.xlu0 %12867  ;;  %v24078_v10 = vld [vmem:[#allocation156_spill] sm:$0xff]  ;;  %v24082_v25 = vld [vmem:[#allocation126_spill] sm:$0xff] }
 0x2b1   :  { %v9792_v22 = vrot.slane %v24073_v58, %v16681_v42  ;;  %v9799_v28 = vrot.slane %v24074_v9, %v16681_v42  ;;  %v5541_v29 = vrot.slane %v24075_v16, %v16603_v43  ;;  %v5548_v23 = vrot.slane %v24075_v16, %v16606_v21  ;;  %24076 = vst [vmem:[#allocation54_spill] sm:$0xff] %v19429_v0 }
 0x2b2   :  { %24072 = vst [vmem:[#allocation225_spill] sm:$0xff] %v19415_v13  ;;  %v5555_v59 = vrot.slane %v24075_v16, %v16615_v61  ;;  %v5562_v33 = vrot.slane %v24075_v16, %v16618_v5  ;;  %13020 = vperm.xlu1 %15587, %v9579_v17   ;;  %24077 = vst [vmem:[#allocation150_spill] sm:$0xff] %v19431_v39  ;;  %v5513_v9 = vrot.slane %v24078_v10, %v16603_v43  ;;  %v24079_v17 = vld [vmem:[#allocation217_spill] sm:$0xff]  ;;  %v24080_v39 = vld [vmem:[#allocation220_spill] sm:$0xff] }
 0x2b3   :  { %v5520_v58 = vrot.slane %v24078_v10, %v16606_v21  ;;  %v5527_v36 = vrot.slane %v24078_v10, %v16615_v61  ;;  %v5534_v24 = vrot.slane %v24078_v10, %v16618_v5  ;;  %13053 = vperm.xlu0 %15586, %v9766_v40   ;;  %v19441_v12 = vcombine.low %v5499_v30, %v5506_v44  ;;  %v24085_v44 = vld [vmem:[#allocation159_spill] sm:$0xff] }
 0x2b4   :  { %v9613_v16 = vcombine.low %v9605_v51, %v9612_v19  ;;  %v9639_v0 = vrot.slane %v24079_v17, %v16681_v42  ;;  %v9646_v47 = vrot.slane %v24080_v39, %v16681_v42  ;;  %v19447_v20 = vcombine.low %v5457_v56, %v5464_v8  ;;  %v19461_v40 = vpop.permute.xlu1 %12846 }
 0x2b5   :  { %v9800_v13 = vcombine.low %v9792_v22, %v9799_v28  ;;  %v9826_v31 = vrot.slane %v24082_v25, %v16681_v42  ;;  %v9833_v54 = vrot.slane %v24083_v37, %v16681_v42  ;;  %v19453_v10 = vcombine.low %v5541_v29, %v5548_v23  ;;  %24086 = vst [vmem:[#allocation211_spill] sm:$0xff] %v19461_v40  ;;  %v19463_v22 = vpop.permute.xlu0 %12873  ;;  %v24091_v23 = vld [vmem:[#allocation223_spill] sm:$0xff] }
 0x2b6   :  { %24081 = vst [vmem:[#allocation14_spill] sm:$0xff] %v19447_v20  ;;  %v19455_v30 = vcombine.low %v5471_v46, %v5478_v35  ;;  %v5597_v51 = vrot.slane %v24085_v44, %v16603_v43  ;;  %v5604_v19 = vrot.slane %v24085_v44, %v16606_v21  ;;  %13026 = vperm.xlu1 %15587, %v9613_v16   ;;  %24087 = vst [vmem:[#allocation55_spill] sm:$0xff] %v19463_v22  ;;  %v24090_v46 = vld [vmem:[#allocation222_spill] sm:$0xff] }
 0x2b7   :  { %v19465_v28 = vcombine.low %v5555_v59, %v5562_v33  ;;  %v5611_v37 = vrot.slane %v24085_v44, %v16615_v61  ;;  %v19469_v25 = vcombine.low %v5513_v9, %v5520_v58  ;;  %v19471_v29 = vcombine.low %v5527_v36, %v5534_v24  ;;  %13059 = vperm.xlu0 %15586, %v9800_v13   ;;  %v24092_v59 = vld [vmem:[#allocation160_spill] sm:$0xff]  ;;  %v24093_v9 = vld [vmem:[#allocation62_spill] sm:$0xff]  ;;  %v24094_v36 = vld [vmem:[#allocation107_spill] sm:$0xff] }
 0x2b8   :  { %24084 = vst [vmem:[#allocation210_spill] sm:$0xff] %v19455_v30  ;;  %v5618_v56 = vrot.slane %v24085_v44, %v16618_v5  ;;  %v9647_v8 = vcombine.low %v9639_v0, %v9646_v47  ;;  %v9673_v35 = vrot.slane %v24090_v46, %v16681_v42  ;;  %v9680_v39 = vrot.slane %v24091_v23, %v16681_v42  ;;  %v19493_v44 = vpop.permute.xlu1 %12849 }
 0x2b9   :  { %24088 = vst [vmem:[#allocation227_spill] sm:$0xff] %v19469_v25  ;;  %24089 = vst [vmem:[#allocation15_spill] sm:$0xff] %v19471_v29  ;;  %v5569_v33 = vrot.slane %v24092_v59, %v16603_v43  ;;  %v9834_v16 = vcombine.low %v9826_v31, %v9833_v54  ;;  %v9860_v58 = vrot.slane %v24093_v9, %v16681_v42  ;;  %v19495_v54 = vpop.permute.xlu0 %12879  ;;  %v24098_v31 = vld [vmem:[#allocation162_spill] sm:$0xff]  ;;  %v24102_v25 = vld [vmem:[#allocation63_spill] sm:$0xff] }
 0x2ba   :  { %v9867_v13 = vrot.slane %v24094_v36, %v16681_v42  ;;  %v19485_v24 = vcombine.low %v5597_v51, %v5604_v19  ;;  %v5576_v47 = vrot.slane %v24092_v59, %v16606_v21  ;;  %v5583_v0 = vrot.slane %v24092_v59, %v16615_v61  ;;  %24096 = vst [vmem:[#allocation216_spill] sm:$0xff] %v19493_v44 }
 0x2bb   :  { %v5590_v17 = vrot.slane %v24092_v59, %v16618_v5  ;;  %13032 = vperm.xlu1 %15587, %v9647_v8   ;;  %24097 = vst [vmem:[#allocation57_spill] sm:$0xff] %v19495_v54  ;;  %v5653_v46 = vrot.slane %v24098_v31, %v16603_v43  ;;  %v5660_v51 = vrot.slane %v24098_v31, %v16606_v21  ;;  %v24099_v59 = vld [vmem:[#allocation163_spill] sm:$0xff]  ;;  %v24100_v8 = vld [vmem:[#allocation56_spill] sm:$0xff]  ;;  %v24101_v54 = vld [vmem:[#allocation226_spill] sm:$0xff] }
 0x2bc   :  { %24095 = vst [vmem:[#allocation49_spill] sm:$0xff] %v19485_v24  ;;  %v5667_v19 = vrot.slane %v24098_v31, %v16615_v61  ;;  %v5674_v23 = vrot.slane %v24098_v31, %v16618_v5  ;;  %13065 = vperm.xlu0 %15586, %v9834_v16   ;;  %v5625_v9 = vrot.slane %v24099_v59, %v16603_v43  ;;  %v24103_v31 = vld [vmem:[#allocation237_spill] sm:$0xff] }
 0x2bd   :  { %v9681_v36 = vcombine.low %v9673_v35, %v9680_v39  ;;  %v9707_v22 = vrot.slane %v24100_v8, %v16681_v42  ;;  %v9714_v44 = vrot.slane %v24101_v54, %v16681_v42  ;;  %v5632_v40 = vrot.slane %v24099_v59, %v16606_v21  ;;  %v19525_v54 = vpop.permute.xlu1 %12852 }
 0x2be   :  { %v9868_v29 = vcombine.low %v9860_v58, %v9867_v13  ;;  %v9894_v30 = vrot.slane %v24102_v25, %v16681_v42  ;;  %v9901_v16 = vrot.slane %v24103_v31, %v16681_v42  ;;  %v19517_v20 = vcombine.low %v5611_v37, %v5618_v56  ;;  %24105 = vst [vmem:[#allocation99_spill] sm:$0xff] %v19525_v54  ;;  %v19527_v58 = vpop.permute.xlu0 %12885  ;;  %v24109_v37 = vld [vmem:[#allocation22_spill] sm:$0xff] }
 0x2bf   :  { %v19519_v24 = vcombine.low %v5569_v33, %v5576_v47  ;;  %v5639_v35 = vrot.slane %v24099_v59, %v16615_v61  ;;  %v5646_v39 = vrot.slane %v24099_v59, %v16618_v5  ;;  %13038 = vperm.xlu1 %15587, %v9681_v36   ;;  %24106 = vst [vmem:[#allocation156_spill] sm:$0xff] %v19527_v58  ;;  %v24111_v59 = vld [vmem:[#allocation228_spill] sm:$0xff]  ;;  %v24112_v36 = vld [vmem:[#allocation230_spill] sm:$0xff] }
 0x2c0   :  { %v19529_v13 = vcombine.low %v5653_v46, %v5660_v51  ;;  %v19531_v25 = vcombine.low %v5583_v0, %v5590_v17  ;;  %v5709_v56 = vrot.slane %v24109_v37, %v16603_v43  ;;  %v5716_v33 = vrot.slane %v24109_v37, %v16606_v21  ;;  %13071 = vperm.xlu0 %15586, %v9868_v29   ;;  %v24114_v17 = vld [vmem:[#allocation129_spill] sm:$0xff] }
 0x2c1   :  { %24104 = vst [vmem:[#allocation229_spill] sm:$0xff] %v19519_v24  ;;  %v19537_v47 = vcombine.low %v5667_v19, %v5674_v23  ;;  %v9715_v8 = vcombine.low %v9707_v22, %v9714_v44  ;;  %v9741_v31 = vrot.slane %v24111_v59, %v16681_v42  ;;  %v9748_v58 = vrot.slane %v24112_v36, %v16681_v42  ;;  %v24116_v19 = vld [vmem:[#allocation167_spill] sm:$0xff] }
 0x2c2   :  { %24107 = vst [vmem:[#allocation217_spill] sm:$0xff] %v19529_v13  ;;  %24108 = vst [vmem:[#allocation220_spill] sm:$0xff] %v19531_v25  ;;  %v19543_v46 = vcombine.low %v5625_v9, %v5632_v40  ;;  %v9902_v0 = vcombine.low %v9894_v30, %v9901_v16  ;;  %v9928_v51 = vrot.slane %v24114_v17, %v16681_v42  ;;  %v19557_v40 = vpop.permute.xlu1 %12858  ;;  %v19559_v30 = vpop.permute.xlu0 %12891 }
 0x2c3   :  { %24110 = vst [vmem:[#allocation126_spill] sm:$0xff] %v19537_v47  ;;  %v9935_v54 = vrot.slane %v18340_v45, %v16681_v42  ;;  %v5723_v29 = vrot.slane %v24109_v37, %v16615_v61  ;;  %v5730_v22 = vrot.slane %v24109_v37, %v16618_v5  ;;  %v19553_v44 = vcombine.low %v5639_v35, %v5646_v39  ;;  %v24120_v39 = vld [vmem:[#allocation24_spill] sm:$0xff] }
 0x2c4   :  { %24113 = vst [vmem:[#allocation59_spill] sm:$0xff] %v19543_v46  ;;  %v5681_v23 = vrot.slane %v24116_v19, %v16603_v43  ;;  %24117 = vst [vmem:[#allocation222_spill] sm:$0xff] %v19557_v40  ;;  %13044 = vperm.xlu1 %15587, %v9715_v8   ;;  %v19561_v9 = vcombine.low %v5709_v56, %v5716_v33  ;;  %v5688_v45 = vrot.slane %v24116_v19, %v16606_v21  ;;  %v24121_v8 = vld [vmem:[#allocation233_spill] sm:$0xff]  ;;  %v24122_v56 = vld [vmem:[#allocation234_spill] sm:$0xff] }
 0x2c5   :  { %24115 = vst [vmem:[#allocation159_spill] sm:$0xff] %v19553_v44  ;;  %24118 = vst [vmem:[#allocation223_spill] sm:$0xff] %v19559_v30  ;;  %v5695_v16 = vrot.slane %v24116_v19, %v16615_v61  ;;  %v5702_v35 = vrot.slane %v24116_v19, %v16618_v5  ;;  %13077 = vperm.xlu0 %15586, %v9902_v0   ;;  %v5765_v37 = vrot.slane %v24120_v39, %v16603_v43  ;;  %v24123_v40 = vld [vmem:[#allocation65_spill] sm:$0xff]  ;;  %v24124_v19 = vld [vmem:[#allocation66_spill] sm:$0xff] }
 0x2c6   :  { %24119 = vst [vmem:[#allocation160_spill] sm:$0xff] %v19561_v9  ;;  %v9749_v59 = vcombine.low %v9741_v31, %v9748_v58  ;;  %v9775_v36 = vrot.slane %v24121_v8, %v16681_v42  ;;  %v9782_v33 = vrot.slane %v24122_v56, %v16681_v42  ;;  %v5772_v17 = vrot.slane %v24120_v39, %v16606_v21  ;;  %v24125_v31 = vld [vmem:[#allocation168_spill] sm:$0xff]  ;;  %v19589_v25 = vpop.permute.xlu1 %12864 }
 0x2c7   :  { %v9936_v30 = vcombine.low %v9928_v51, %v9935_v54  ;;  %v9962_v44 = vrot.slane %v24123_v40, %v16681_v42  ;;  %v9969_v0 = vrot.slane %v24124_v19, %v16681_v42  ;;  %v5779_v46 = vrot.slane %v24120_v39, %v16615_v61  ;;  %24126 = vst [vmem:[#allocation62_spill] sm:$0xff] %v19589_v25  ;;  %v19591_v54 = vpop.permute.xlu0 %12897  ;;  %v24131_v47 = vld [vmem:[#allocation104_spill] sm:$0xff] }
 0x2c8   :  { %v5786_v58 = vrot.slane %v24120_v39, %v16618_v5  ;;  %v5737_v8 = vrot.slane %v24125_v31, %v16603_v43  ;;  %v5744_v56 = vrot.slane %v24125_v31, %v16606_v21  ;;  %13050 = vperm.xlu1 %15587, %v9749_v59   ;;  %24127 = vst [vmem:[#allocation107_spill] sm:$0xff] %v19591_v54  ;;  %v24132_v59 = vld [vmem:[#allocation235_spill] sm:$0xff] }
 0x2c9   :  { %v19593_v51 = vcombine.low %v5723_v29, %v5730_v22  ;;  %v19595_v40 = vcombine.low %v5681_v23, %v5688_v45  ;;  %v5751_v19 = vrot.slane %v24125_v31, %v16615_v61  ;;  %v5758_v39 = vrot.slane %v24125_v31, %v16618_v5  ;;  %13083 = vperm.xlu0 %15586, %v9936_v30   ;;  %v24134_v23 = vld [vmem:[#allocation133_spill] sm:$0xff] }
 0x2ca   :  { %v19601_v24 = vcombine.low %v5695_v16, %v5702_v35  ;;  %v9783_v9 = vcombine.low %v9775_v36, %v9782_v33  ;;  %v9809_v25 = vrot.slane %v24131_v47, %v16681_v42  ;;  %v9816_v54 = vrot.slane %v24132_v59, %v16681_v42  ;;  %v24137_v30 = vld [vmem:[#allocation25_spill] sm:$0xff]  ;;  %v19621_v36 = vpop.permute.xlu1 %12870 }
 0x2cb   :  { %24128 = vst [vmem:[#allocation162_spill] sm:$0xff] %v19593_v51  ;;  %24129 = vst [vmem:[#allocation163_spill] sm:$0xff] %v19595_v40  ;;  %v19607_v29 = vcombine.low %v5765_v37, %v5772_v17  ;;  %v9970_v22 = vcombine.low %v9962_v44, %v9969_v0  ;;  %v9996_v45 = vrot.slane %v24134_v23, %v16681_v42  ;;  %v24135_v40 = vld [vmem:[#allocation68_spill] sm:$0xff]  ;;  %v19623_v44 = vpop.permute.xlu0 %12903  ;;  %v24142_v17 = vld [vmem:[#allocation173_spill] sm:$0xff] }
 0x2cc   :  { %24130 = vst [vmem:[#allocation56_spill] sm:$0xff] %v19601_v24  ;;  %v10003_v51 = vrot.slane %v24135_v40, %v16681_v42  ;;  %v19613_v31 = vcombine.low %v5779_v46, %v5786_v58  ;;  %v5821_v16 = vrot.slane %v24137_v30, %v16603_v43  ;;  %v5828_v47 = vrot.slane %v24137_v30, %v16606_v21  ;;  %v24144_v40 = vld [vmem:[#allocation110_spill] sm:$0xff] }
 0x2cd   :  { %24133 = vst [vmem:[#allocation226_spill] sm:$0xff] %v19607_v29  ;;  %v19619_v35 = vcombine.low %v5737_v8, %v5744_v56  ;;  %24139 = vst [vmem:[#allocation22_spill] sm:$0xff] %v19621_v36  ;;  %13056 = vperm.xlu1 %15587, %v9783_v9   ;;  %v5835_v37 = vrot.slane %v24137_v30, %v16615_v61  ;;  %v5842_v46 = vrot.slane %v24137_v30, %v16618_v5  ;;  %v24143_v9 = vld [vmem:[#allocation236_spill] sm:$0xff] }
 0x2ce   :  { %24136 = vst [vmem:[#allocation63_spill] sm:$0xff] %v19613_v31  ;;  %24140 = vst [vmem:[#allocation228_spill] sm:$0xff] %v19623_v44  ;;  %v19629_v33 = vcombine.low %v5751_v19, %v5758_v39  ;;  %v5793_v0 = vrot.slane %v24142_v17, %v16603_v43  ;;  %13089 = vperm.xlu0 %15586, %v9970_v22   ;;  %v5800_v58 = vrot.slane %v24142_v17, %v16606_v21  ;;  %v24145_v19 = vld [vmem:[#allocation138_spill] sm:$0xff]  ;;  %v19653_v44 = vpop.permute.xlu1 %12876 }
 0x2cf   :  { %24138 = vst [vmem:[#allocation237_spill] sm:$0xff] %v19619_v35  ;;  %v9817_v8 = vcombine.low %v9809_v25, %v9816_v54  ;;  %v9843_v56 = vrot.slane %v24143_v9, %v16681_v42  ;;  %v9850_v59 = vrot.slane %v24144_v40, %v16681_v42  ;;  %v5807_v23 = vrot.slane %v24142_v17, %v16615_v61  ;;  %v24147_v25 = vld [vmem:[#allocation27_spill] sm:$0xff] }
 0x2d0   :  { %24141 = vst [vmem:[#allocation230_spill] sm:$0xff] %v19629_v33  ;;  %v10004_v30 = vcombine.low %v9996_v45, %v10003_v51  ;;  %v10030_v39 = vrot.slane %v24145_v19, %v16681_v42  ;;  %v10037_v22 = vrot.slane %v18437_v11, %v16681_v42  ;;  %v19645_v36 = vcombine.low %v5821_v16, %v5828_v47  ;;  %v19655_v51 = vpop.permute.xlu0 %12909  ;;  %v24150_v16 = vld [vmem:[#allocation28_spill] sm:$0xff] }
 0x2d1   :  { %v5877_v54 = vrot.slane %v24147_v25, %v16603_v43  ;;  %v5884_v9 = vrot.slane %v24147_v25, %v16606_v21  ;;  %v5814_v40 = vrot.slane %v24142_v17, %v16618_v5  ;;  %24148 = vst [vmem:[#allocation167_spill] sm:$0xff] %v19653_v44  ;;  %13062 = vperm.xlu1 %15587, %v9817_v8   ;;  %24149 = vst [vmem:[#allocation24_spill] sm:$0xff] %v19655_v51  ;;  %v24152_v8 = vld [vmem:[#allocation238_spill] sm:$0xff]  ;;  %v24153_v51 = vld [vmem:[#allocation239_spill] sm:$0xff] }
 0x2d2   :  { %24146 = vst [vmem:[#allocation129_spill] sm:$0xff] %v19645_v36  ;;  %v5891_v45 = vrot.slane %v24147_v25, %v16615_v61  ;;  %v5898_v11 = vrot.slane %v24147_v25, %v16618_v5  ;;  %v5849_v47 = vrot.slane %v24150_v16, %v16603_v43  ;;  %v5856_v19 = vrot.slane %v24150_v16, %v16606_v21 }
 0x2d3   :  { %13095 = vperm.xlu0 %15586, %v10004_v30   ;;  %v19665_v33 = vcombine.low %v5835_v37, %v5842_v46  ;;  %v9851_v17 = vcombine.low %v9843_v56, %v9850_v59  ;;  %v9877_v44 = vrot.slane %v24152_v8, %v16681_v42  ;;  %v9884_v35 = vrot.slane %v24153_v51, %v16681_v42  ;;  %v19685_v59 = vpop.permute.xlu1 %12882 }
 0x2d4   :  { %v19671_v24 = vcombine.low %v5793_v0, %v5800_v58  ;;  %v10038_v36 = vcombine.low %v10030_v39, %v10037_v22  ;;  %v10064_v25 = vrot.slane %v18446_v1, %v16681_v42  ;;  %v10071_v31 = vrot.slane %v18448_v18, %v16681_v42  ;;  %24157 = vst [vmem:[#allocation168_spill] sm:$0xff] %v19685_v59  ;;  %v19687_v0 = vpop.permute.xlu0 %12915  ;;  %v24160_v1 = vld [vmem:[#allocation178_spill] sm:$0xff] }
 0x2d5   :  { %24151 = vst [vmem:[#allocation233_spill] sm:$0xff] %v19665_v33  ;;  %v19677_v29 = vcombine.low %v5877_v54, %v5884_v9  ;;  %v19679_v37 = vcombine.low %v5807_v23, %v5814_v40  ;;  %v5863_v46 = vrot.slane %v24150_v16, %v16615_v61  ;;  %v5870_v56 = vrot.slane %v24150_v16, %v16618_v5  ;;  %v24162_v54 = vld [vmem:[#allocation132_spill] sm:$0xff]  ;;  %v24163_v40 = vld [vmem:[#allocation103_spill] sm:$0xff] }
 0x2d6   :  { %24154 = vst [vmem:[#allocation234_spill] sm:$0xff] %v19671_v24  ;;  %13068 = vperm.xlu1 %15587, %v9851_v17   ;;  %24158 = vst [vmem:[#allocation104_spill] sm:$0xff] %v19687_v0  ;;  %v19689_v58 = vcombine.low %v5891_v45, %v5898_v11  ;;  %v5933_v18 = vrot.slane %v24160_v1, %v16603_v43  ;;  %v5940_v23 = vrot.slane %v24160_v1, %v16606_v21  ;;  %v24164_v16 = vld [vmem:[#allocation164_spill] sm:$0xff] }
 0x2d7   :  { %24155 = vst [vmem:[#allocation65_spill] sm:$0xff] %v19677_v29  ;;  %24156 = vst [vmem:[#allocation66_spill] sm:$0xff] %v19679_v37  ;;  %v19695_v30 = vcombine.low %v5849_v47, %v5856_v19  ;;  %13101 = vperm.xlu0 %15586, %v10038_v36   ;;  %v5947_v39 = vrot.slane %v24160_v1, %v16615_v61  ;;  %v9885_v22 = vcombine.low %v9877_v44, %v9884_v35  ;;  %v24165_v47 = vld [vmem:[#allocation16_spill] sm:$0xff]  ;;  %v24166_v19 = vld [vmem:[#allocation179_spill] sm:$0xff] }
 0x2d8   :  { %24159 = vst [vmem:[#allocation235_spill] sm:$0xff] %v19689_v58  ;;  %v9911_v9 = vrot.slane %v24162_v54, %v16681_v42  ;;  %v9918_v51 = vrot.slane %v24163_v40, %v16681_v42  ;;  %v5954_v45 = vrot.slane %v24160_v1, %v16618_v5  ;;  %v10072_v11 = vcombine.low %v10064_v25, %v10071_v31  ;;  %v19717_v1 = vpop.permute.xlu1 %12888  ;;  %v19719_v31 = vpop.permute.xlu0 %12921  ;;  %v24169_v25 = vld [vmem:[#allocation30_spill] sm:$0xff]  ;;  %v24173_v29 = vld [vmem:[#allocation140_spill] sm:$0xff] }
 0x2d9   :  { %24161 = vst [vmem:[#allocation133_spill] sm:$0xff] %v19695_v30  ;;  %v10098_v17 = vrot.slane %v24164_v16, %v16681_v42  ;;  %v10105_v36 = vrot.slane %v24165_v47, %v16681_v42  ;;  %v5905_v8 = vrot.slane %v24166_v19, %v16603_v43  ;;  %v5912_v35 = vrot.slane %v24166_v19, %v16606_v21  ;;  %v24172_v30 = vld [vmem:[#allocation69_spill] sm:$0xff] }
 0x2da   :  { %v5919_v44 = vrot.slane %v24166_v19, %v16615_v61  ;;  %v5926_v54 = vrot.slane %v24166_v19, %v16618_v5  ;;  %24167 = vst [vmem:[#allocation68_spill] sm:$0xff] %v19717_v1  ;;  %13074 = vperm.xlu1 %15587, %v9885_v22   ;;  %24168 = vst [vmem:[#allocation25_spill] sm:$0xff] %v19719_v31  ;;  %v5989_v40 = vrot.slane %v24169_v25, %v16603_v43  ;;  %v24170_v19 = vld [vmem:[#allocation31_spill] sm:$0xff]  ;;  %v24171_v22 = vld [vmem:[#allocation128_spill] sm:$0xff] }
 0x2db   :  { %v5996_v16 = vrot.slane %v24169_v25, %v16606_v21  ;;  %v6003_v47 = vrot.slane %v24169_v25, %v16615_v61  ;;  %v6010_v0 = vrot.slane %v24169_v25, %v16618_v5  ;;  %13107 = vperm.xlu0 %15586, %v10072_v11   ;;  %v5961_v59 = vrot.slane %v24170_v19, %v16603_v43 }
 0x2dc   :  { %v9919_v1 = vcombine.low %v9911_v9, %v9918_v51  ;;  %v9945_v31 = vrot.slane %v24171_v22, %v16681_v42  ;;  %v9952_v37 = vrot.slane %v24172_v30, %v16681_v42  ;;  %v5968_v24 = vrot.slane %v24170_v19, %v16606_v21  ;;  %v19749_v22 = vpop.permute.xlu1 %12894  ;;  %v19751_v30 = vpop.permute.xlu0 %12927 }
 0x2dd   :  { %v10106_v58 = vcombine.low %v10098_v17, %v10105_v36  ;;  %v10132_v33 = vrot.slane %v24173_v29, %v16681_v42  ;;  %v10139_v11 = vrot.slane %v18538_v63, %v16681_v42  ;;  %v19741_v25 = vcombine.low %v5933_v18, %v5940_v23  ;;  %24177 = vst [vmem:[#allocation138_spill] sm:$0xff] %v19749_v22  ;;  %v24182_v18 = vld [vmem:[#allocation142_spill] sm:$0xff] }
 0x2de   :  { %v19743_v13 = vcombine.low %v5947_v39, %v5954_v45  ;;  %v19745_v9 = vcombine.low %v5863_v46, %v5870_v56  ;;  %v19747_v51 = vcombine.low %v5905_v8, %v5912_v35  ;;  %13080 = vperm.xlu1 %15587, %v9919_v1   ;;  %24178 = vst [vmem:[#allocation27_spill] sm:$0xff] %v19751_v30  ;;  %v24183_v39 = vld [vmem:[#allocation9_spill] sm:$0xff] }
 0x2df   :  { %v19753_v17 = vcombine.low %v5989_v40, %v5996_v16  ;;  %v19755_v36 = vcombine.low %v5919_v44, %v5926_v54  ;;  %v5975_v63 = vrot.slane %v24170_v19, %v16615_v61  ;;  %v5982_v29 = vrot.slane %v24170_v19, %v16618_v5  ;;  %13113 = vperm.xlu0 %15586, %v10106_v58   ;;  %v24185_v58 = vld [vmem:[#allocation186_spill] sm:$0xff] }
 0x2e0   :  { %24174 = vst [vmem:[#allocation173_spill] sm:$0xff] %v19743_v13  ;;  %24175 = vst [vmem:[#allocation236_spill] sm:$0xff] %v19745_v9  ;;  %v19761_v46 = vcombine.low %v6003_v47, %v6010_v0  ;;  %v9953_v56 = vcombine.low %v9945_v31, %v9952_v37  ;;  %v9979_v23 = vrot.slane %v24182_v18, %v16681_v42  ;;  %v24189_v47 = vld [vmem:[#allocation34_spill] sm:$0xff]  ;;  %v24201_v9 = vld [vmem:[#allocation73_spill] sm:$0xff] }
 0x2e1   :  { %24176 = vst [vmem:[#allocation110_spill] sm:$0xff] %v19747_v51  ;;  %24179 = vst [vmem:[#allocation28_spill] sm:$0xff] %v19753_v17  ;;  %v9986_v45 = vrot.slane %v24183_v39, %v16681_v42  ;;  %v19767_v8 = vcombine.low %v5961_v59, %v5968_v24  ;;  %v10140_v35 = vcombine.low %v10132_v33, %v10139_v11  ;;  %v19781_v59 = vpop.permute.xlu1 %12900  ;;  %v19783_v33 = vpop.permute.xlu0 %12933  ;;  %v24191_v39 = vld [vmem:[#allocation72_spill] sm:$0xff] }
 0x2e2   :  { %24180 = vst [vmem:[#allocation238_spill] sm:$0xff] %v19755_v36  ;;  %24181 = vst [vmem:[#allocation239_spill] sm:$0xff] %v19761_v46  ;;  %v10166_v44 = vrot.slane %v18540_v52, %v16681_v42  ;;  %v10173_v54 = vrot.slane %v18551_v14, %v16681_v42  ;;  %v6045_v0 = vrot.slane %v24185_v58, %v16603_v43  ;;  %13086 = vperm.xlu1 %15587, %v9953_v56   ;;  %v24188_v52 = vld [vmem:[#allocation187_spill] sm:$0xff] }
 0x2e3   :  { %24184 = vst [vmem:[#allocation178_spill] sm:$0xff] %v19767_v8  ;;  %v6052_v37 = vrot.slane %v24185_v58, %v16606_v21  ;;  %v6059_v1 = vrot.slane %v24185_v58, %v16615_v61  ;;  %v6066_v24 = vrot.slane %v24185_v58, %v16618_v5  ;;  %24186 = vst [vmem:[#allocation132_spill] sm:$0xff] %v19781_v59  ;;  %13119 = vperm.xlu0 %15586, %v10140_v35   ;;  %v24190_v56 = vld [vmem:[#allocation155_spill] sm:$0xff] }
 0x2e4   :  { %24187 = vst [vmem:[#allocation103_spill] sm:$0xff] %v19783_v33  ;;  %v6017_v14 = vrot.slane %v24188_v52, %v16603_v43  ;;  %v6024_v31 = vrot.slane %v24188_v52, %v16606_v21  ;;  %v6031_v40 = vrot.slane %v24188_v52, %v16615_v61  ;;  %v6038_v16 = vrot.slane %v24188_v52, %v16618_v5  ;;  %v24192_v52 = vld [vmem:[#allocation80_spill] sm:$0xff] }
 0x2e5   :  { %v6101_v19 = vrot.slane %v24189_v47, %v16603_v43  ;;  %v9987_v11 = vcombine.low %v9979_v23, %v9986_v45  ;;  %v10013_v18 = vrot.slane %v24190_v56, %v16681_v42  ;;  %v10020_v58 = vrot.slane %v24191_v39, %v16681_v42  ;;  %v24193_v45 = vld [vmem:[#allocation35_spill] sm:$0xff]  ;;  %v19813_v8 = vpop.permute.xlu1 %12906 }
 0x2e6   :  { %v6108_v59 = vrot.slane %v24189_v47, %v16606_v21  ;;  %v10174_v33 = vcombine.low %v10166_v44, %v10173_v54  ;;  %v10200_v22 = vrot.slane %v18560_v48, %v16681_v42  ;;  %v10207_v35 = vrot.slane %v24192_v52, %v16681_v42  ;;  %24194 = vst [vmem:[#allocation164_spill] sm:$0xff] %v19813_v8  ;;  %v19815_v44 = vpop.permute.xlu0 %12939  ;;  %v24202_v8 = vld [vmem:[#allocation74_spill] sm:$0xff] }
 0x2e7   :  { %v6115_v30 = vrot.slane %v24189_v47, %v16615_v61  ;;  %v6122_v23 = vrot.slane %v24189_v47, %v16618_v5  ;;  %v6073_v56 = vrot.slane %v24193_v45, %v16603_v43  ;;  %v6080_v39 = vrot.slane %v24193_v45, %v16606_v21  ;;  %13092 = vperm.xlu1 %15587, %v9987_v11  }
 0x2e8   :  { %24195 = vst [vmem:[#allocation16_spill] sm:$0xff] %v19815_v44  ;;  %v19817_v48 = vcombine.low %v6045_v0, %v6052_v37  ;;  %v19819_v54 = vcombine.low %v6059_v1, %v6066_v24  ;;  %v19821_v52 = vcombine.low %v5975_v63, %v5982_v29  ;;  %v19823_v36 = vcombine.low %v6017_v14, %v6024_v31  ;;  %v24203_v1 = vld [vmem:[#allocation246_spill] sm:$0xff]  ;;  %v24204_v29 = vld [vmem:[#allocation84_spill] sm:$0xff] }
 0x2e9   :  { %13125 = vperm.xlu0 %15586, %v10174_v33   ;;  %v19825_v47 = vcombine.low %v6031_v40, %v6038_v16  ;;  %v10021_v51 = vcombine.low %v10013_v18, %v10020_v58  ;;  %v10047_v46 = vrot.slane %v24201_v9, %v16681_v42  ;;  %v10054_v11 = vrot.slane %v24202_v8, %v16681_v42  ;;  %v19845_v8 = vpop.permute.xlu1 %12912 }
 0x2ea   :  { %24196 = vst [vmem:[#allocation179_spill] sm:$0xff] %v19817_v48  ;;  %24197 = vst [vmem:[#allocation30_spill] sm:$0xff] %v19819_v54  ;;  %v6087_v0 = vrot.slane %v24193_v45, %v16615_v61  ;;  %v10208_v37 = vcombine.low %v10200_v22, %v10207_v35  ;;  %v10234_v63 = vrot.slane %v24203_v1, %v16681_v42  ;;  %v19847_v40 = vpop.permute.xlu0 %12945  ;;  %v24210_v22 = vld [vmem:[#allocation194_spill] sm:$0xff]  ;;  %v24223_v48 = vld [vmem:[#allocation251_spill] sm:$0xff] }
 0x2eb   :  { %24198 = vst [vmem:[#allocation31_spill] sm:$0xff] %v19821_v52  ;;  %24199 = vst [vmem:[#allocation128_spill] sm:$0xff] %v19823_v36  ;;  %v10241_v24 = vrot.slane %v24204_v29, %v16681_v42  ;;  %v19837_v33 = vcombine.low %v6101_v19, %v6108_v59  ;;  %v19839_v14 = vcombine.low %v6115_v30, %v6122_v23  ;;  %13098 = vperm.xlu1 %15587, %v10021_v51   ;;  %v24211_v19 = vld [vmem:[#allocation195_spill] sm:$0xff]  ;;  %v24212_v51 = vld [vmem:[#allocation152_spill] sm:$0xff] }
 0x2ec   :  { %24200 = vst [vmem:[#allocation69_spill] sm:$0xff] %v19825_v47  ;;  %v6094_v9 = vrot.slane %v24193_v45, %v16618_v5  ;;  %v19843_v31 = vcombine.low %v6073_v56, %v6080_v39  ;;  %24208 = vst [vmem:[#allocation186_spill] sm:$0xff] %v19845_v8  ;;  %v6157_v16 = vrot.slane %v24210_v22, %v16603_v43  ;;  %v24213_v45 = vld [vmem:[#allocation75_spill] sm:$0xff]  ;;  %v24214_v29 = vld [vmem:[#allocation100_spill] sm:$0xff] }
 0x2ed   :  { %24205 = vst [vmem:[#allocation140_spill] sm:$0xff] %v19837_v33  ;;  %24206 = vst [vmem:[#allocation142_spill] sm:$0xff] %v19839_v14  ;;  %v6164_v18 = vrot.slane %v24210_v22, %v16606_v21  ;;  %v6171_v30 = vrot.slane %v24210_v22, %v16615_v61  ;;  %v6178_v59 = vrot.slane %v24210_v22, %v16618_v5  ;;  %13131 = vperm.xlu0 %15586, %v10208_v37   ;;  %v24215_v22 = vld [vmem:[#allocation247_spill] sm:$0xff] }
 0x2ee   :  { %24207 = vst [vmem:[#allocation9_spill] sm:$0xff] %v19843_v31  ;;  %24209 = vst [vmem:[#allocation187_spill] sm:$0xff] %v19847_v40  ;;  %v6129_v58 = vrot.slane %v24211_v19, %v16603_v43  ;;  %v10055_v35 = vcombine.low %v10047_v46, %v10054_v11  ;;  %v10081_v23 = vrot.slane %v24212_v51, %v16681_v42  ;;  %v24216_v40 = vld [vmem:[#allocation38_spill] sm:$0xff] }
 0x2ef   :  { %v10088_v56 = vrot.slane %v24213_v45, %v16681_v42  ;;  %v6136_v39 = vrot.slane %v24211_v19, %v16606_v21  ;;  %v10242_v1 = vcombine.low %v10234_v63, %v10241_v24  ;;  %v10268_v8 = vrot.slane %v24214_v29, %v16681_v42  ;;  %v19877_v45 = vpop.permute.xlu1 %12918  ;;  %v19879_v63 = vpop.permute.xlu0 %12951 }
 0x2f0   :  { %v10275_v37 = vrot.slane %v24215_v22, %v16681_v42  ;;  %v6213_v44 = vrot.slane %v24216_v40, %v16603_v43  ;;  %v6220_v46 = vrot.slane %v24216_v40, %v16606_v21  ;;  %v6143_v11 = vrot.slane %v24211_v19, %v16615_v61  ;;  %24217 = vst [vmem:[#allocation34_spill] sm:$0xff] %v19877_v45  ;;  %v24219_v22 = vld [vmem:[#allocation39_spill] sm:$0xff] }
 0x2f1   :  { %v6150_v51 = vrot.slane %v24211_v19, %v16618_v5  ;;  %13104 = vperm.xlu1 %15587, %v10055_v35   ;;  %24218 = vst [vmem:[#allocation155_spill] sm:$0xff] %v19879_v63  ;;  %v6227_v24 = vrot.slane %v24216_v40, %v16615_v61  ;;  %v6234_v29 = vrot.slane %v24216_v40, %v16618_v5  ;;  %v24220_v35 = vld [vmem:[#allocation141_spill] sm:$0xff]  ;;  %v24222_v40 = vld [vmem:[#allocation250_spill] sm:$0xff] }
 0x2f2   :  { %v6185_v31 = vrot.slane %v24219_v22, %v16603_v43  ;;  %v6192_v47 = vrot.slane %v24219_v22, %v16606_v21  ;;  %13137 = vperm.xlu0 %15586, %v10242_v1   ;;  %v19889_v36 = vcombine.low %v6087_v0, %v6094_v9  ;;  %v10089_v19 = vcombine.low %v10081_v23, %v10088_v56  ;;  %v24221_v63 = vld [vmem:[#allocation157_spill] sm:$0xff]  ;;  %v24231_v1 = vld [vmem:[#allocation79_spill] sm:$0xff] }
 0x2f3   :  { %v10115_v45 = vrot.slane %v24220_v35, %v16681_v42  ;;  %v10122_v52 = vrot.slane %v24221_v63, %v16681_v42  ;;  %v19895_v14 = vcombine.low %v6157_v16, %v6164_v18  ;;  %v10276_v33 = vcombine.low %v10268_v8, %v10275_v37  ;;  %v19909_v56 = vpop.permute.xlu1 %12924  ;;  %v19911_v16 = vpop.permute.xlu0 %12957 }
 0x2f4   :  { %v10302_v54 = vrot.slane %v24222_v40, %v16681_v42  ;;  %v10309_v17 = vrot.slane %v24223_v48, %v16681_v42  ;;  %v19901_v13 = vcombine.low %v6171_v30, %v6178_v59  ;;  %v19903_v0 = vcombine.low %v6129_v58, %v6136_v39  ;;  %24225 = vst [vmem:[#allocation80_spill] sm:$0xff] %v19909_v56  ;;  %v24230_v59 = vld [vmem:[#allocation200_spill] sm:$0xff] }
 0x2f5   :  { %v19905_v9 = vcombine.low %v6143_v11, %v6150_v51  ;;  %v6199_v23 = vrot.slane %v24219_v22, %v16615_v61  ;;  %13110 = vperm.xlu1 %15587, %v10089_v19   ;;  %24226 = vst [vmem:[#allocation35_spill] sm:$0xff] %v19911_v16  ;;  %v19913_v8 = vcombine.low %v6213_v44, %v6220_v46  ;;  %v24232_v11 = vld [vmem:[#allocation81_spill] sm:$0xff] }
 0x2f6   :  { %v19915_v18 = vcombine.low %v6227_v24, %v6234_v29  ;;  %v6206_v48 = vrot.slane %v24219_v22, %v16618_v5  ;;  %v19919_v30 = vcombine.low %v6185_v31, %v6192_v47  ;;  %13143 = vperm.xlu0 %15586, %v10276_v33   ;;  %v6269_v58 = vrot.slane %v24230_v59, %v16603_v43  ;;  %v24233_v31 = vld [vmem:[#allocation201_spill] sm:$0xff] }
 0x2f7   :  { %24224 = vst [vmem:[#allocation72_spill] sm:$0xff] %v19905_v9  ;;  %24227 = vst [vmem:[#allocation73_spill] sm:$0xff] %v19913_v8  ;;  %v10123_v39 = vcombine.low %v10115_v45, %v10122_v52  ;;  %v10149_v37 = vrot.slane %v24231_v1, %v16681_v42  ;;  %v10156_v51 = vrot.slane %v24232_v11, %v16681_v42  ;;  %v19941_v29 = vpop.permute.xlu1 %12930  ;;  %v24238_v1 = vld [vmem:[#allocation245_spill] sm:$0xff] }
 0x2f8   :  { %24228 = vst [vmem:[#allocation74_spill] sm:$0xff] %v19915_v18  ;;  %24229 = vst [vmem:[#allocation246_spill] sm:$0xff] %v19919_v30  ;;  %v6276_v44 = vrot.slane %v24230_v59, %v16606_v21  ;;  %v10310_v46 = vcombine.low %v10302_v54, %v10309_v17  ;;  %v10336_v63 = vrot.slane %v18728_v3, %v16681_v42  ;;  %v19943_v17 = vpop.permute.xlu0 %12963  ;;  %v24236_v3 = vld [vmem:[#allocation42_spill] sm:$0xff] }
 0x2f9   :  { %v10343_v47 = vrot.slane %v18730_v6, %v16681_v42  ;;  %v6283_v33 = vrot.slane %v24230_v59, %v16615_v61  ;;  %v6290_v52 = vrot.slane %v24230_v59, %v16618_v5  ;;  %v6241_v45 = vrot.slane %v24233_v31, %v16603_v43  ;;  %24234 = vst [vmem:[#allocation84_spill] sm:$0xff] %v19941_v29  ;;  %v24237_v59 = vld [vmem:[#allocation244_spill] sm:$0xff]  ;;  %v24242_v30 = vld [vmem:[#allocation86_spill] sm:$0xff] }
 0x2fa   :  { %v6248_v24 = vrot.slane %v24233_v31, %v16606_v21  ;;  %13116 = vperm.xlu1 %15587, %v10123_v39   ;;  %24235 = vst [vmem:[#allocation194_spill] sm:$0xff] %v19943_v17  ;;  %v6325_v6 = vrot.slane %v24236_v3, %v16603_v43  ;;  %v6332_v54 = vrot.slane %v24236_v3, %v16606_v21 }
 0x2fb   :  { %v6255_v22 = vrot.slane %v24233_v31, %v16615_v61  ;;  %v6262_v19 = vrot.slane %v24233_v31, %v16618_v5  ;;  %13149 = vperm.xlu0 %15586, %v10310_v46   ;;  %v6339_v35 = vrot.slane %v24236_v3, %v16615_v61  ;;  %v10157_v40 = vcombine.low %v10149_v37, %v10156_v51  ;;  %v24239_v31 = vld [vmem:[#allocation204_spill] sm:$0xff] }
 0x2fc   :  { %v10183_v39 = vrot.slane %v24237_v59, %v16681_v42  ;;  %v10190_v11 = vrot.slane %v24238_v1, %v16681_v42  ;;  %v6346_v17 = vrot.slane %v24236_v3, %v16618_v5  ;;  %v10344_v16 = vcombine.low %v10336_v63, %v10343_v47  ;;  %v19973_v3 = vpop.permute.xlu1 %12936  ;;  %v19975_v63 = vpop.permute.xlu0 %12969 }
 0x2fd   :  { %v10370_v29 = vrot.slane %v18741_v38, %v16681_v42  ;;  %v10377_v46 = vrot.slane %v18743_v26, %v16681_v42  ;;  %v6297_v56 = vrot.slane %v24239_v31, %v16603_v43  ;;  %v6304_v37 = vrot.slane %v24239_v31, %v16606_v21  ;;  %24240 = vst [vmem:[#allocation195_spill] sm:$0xff] %v19973_v3  ;;  %v24243_v3 = vld [vmem:[#allocation87_spill] sm:$0xff] }
 0x2fe   :  { %v6311_v51 = vrot.slane %v24239_v31, %v16615_v61  ;;  %v6318_v59 = vrot.slane %v24239_v31, %v16618_v5  ;;  %13122 = vperm.xlu1 %15587, %v10157_v40   ;;  %24241 = vst [vmem:[#allocation152_spill] sm:$0xff] %v19975_v63  ;;  %v19977_v38 = vcombine.low %v6269_v58, %v6276_v44 }
 0x2ff   :  { %v19979_v26 = vcombine.low %v6283_v33, %v6290_v52  ;;  %v19981_v47 = vcombine.low %v6199_v23, %v6206_v48  ;;  %v19983_v1 = vcombine.low %v6241_v45, %v6248_v24  ;;  %13155 = vperm.xlu0 %15586, %v10344_v16   ;;  %v19985_v18 = vcombine.low %v6255_v22, %v6262_v19  ;;  %v24246_v16 = vld [vmem:[#allocation207_spill] sm:$0xff]  ;;  %v24251_v19 = vld [vmem:[#allocation249_spill] sm:$0xff] }
 0x300   :  { %v10191_v8 = vcombine.low %v10183_v39, %v10190_v11  ;;  %v10217_v31 = vrot.slane %v24242_v30, %v16681_v42  ;;  %v10224_v40 = vrot.slane %v24243_v3, %v16681_v42  ;;  %v19991_v9 = vcombine.low %v6325_v6, %v6332_v54  ;;  %v20005_v45 = vpop.permute.xlu1 %12942  ;;  %v20007_v24 = vpop.permute.xlu0 %12975 }
 0x301   :  { %v10378_v58 = vcombine.low %v10370_v29, %v10377_v46  ;;  %v10404_v44 = vrot.slane %v18758_v7, %v16681_v42  ;;  %v10411_v23 = vrot.slane %v18760_v34, %v16681_v42  ;;  %v19997_v48 = vcombine.low %v6339_v35, %v6346_v17  ;;  %24247 = vst [vmem:[#allocation247_spill] sm:$0xff] %v20005_v45  ;;  %v24249_v17 = vld [vmem:[#allocation208_spill] sm:$0xff] }
 0x302   :  { %24244 = vst [vmem:[#allocation75_spill] sm:$0xff] %v19991_v9  ;;  %v6381_v33 = vrot.slane %v24246_v16, %v16603_v43  ;;  %v20001_v52 = vcombine.low %v6297_v56, %v6304_v37  ;;  %v20003_v30 = vcombine.low %v6311_v51, %v6318_v59  ;;  %13128 = vperm.xlu1 %15587, %v10191_v8   ;;  %24248 = vst [vmem:[#allocation38_spill] sm:$0xff] %v20007_v24  ;;  %v24250_v8 = vld [vmem:[#allocation248_spill] sm:$0xff]  ;;  %v24252_v51 = vld [vmem:[#allocation46_spill] sm:$0xff] }
 0x303   :  { %24245 = vst [vmem:[#allocation100_spill] sm:$0xff] %v19997_v48  ;;  %v6388_v7 = vrot.slane %v24246_v16, %v16606_v21  ;;  %v6395_v34 = vrot.slane %v24246_v16, %v16615_v61  ;;  %v6402_v29 = vrot.slane %v24246_v16, %v16618_v5  ;;  %v6353_v56 = vrot.slane %v24249_v17, %v16603_v43 }
 0x304   :  { %13161 = vperm.xlu0 %15586, %v10378_v58   ;;  %v6360_v6 = vrot.slane %v24249_v17, %v16606_v21  ;;  %v10225_v54 = vcombine.low %v10217_v31, %v10224_v40  ;;  %v10251_v22 = vrot.slane %v24250_v8, %v16681_v42  ;;  %v10258_v35 = vrot.slane %v24251_v19, %v16681_v42  ;;  %v20037_v58 = vpop.permute.xlu1 %12948 }
 0x305   :  { %v6367_v39 = vrot.slane %v24249_v17, %v16615_v61  ;;  %v10412_v11 = vcombine.low %v10404_v44, %v10411_v23  ;;  %v10438_v46 = vrot.slane %v18804_v32, %v16681_v42  ;;  %v10445_v37 = vrot.slane %v18824_v55, %v16681_v42  ;;  %24253 = vst [vmem:[#allocation39_spill] sm:$0xff] %v20037_v58  ;;  %v20039_v44 = vpop.permute.xlu0 %12981  ;;  %v24255_v55 = vld [vmem:[#allocation212_spill] sm:$0xff] }
 0x306   :  { %v6437_v59 = vrot.slane %v24252_v51, %v16603_v43  ;;  %v6444_v3 = vrot.slane %v24252_v51, %v16606_v21  ;;  %v6451_v31 = vrot.slane %v24252_v51, %v16615_v61  ;;  %v6374_v40 = vrot.slane %v24249_v17, %v16618_v5  ;;  %13134 = vperm.xlu1 %15587, %v10225_v54   ;;  %v24256_v54 = vld [vmem:[#allocation19_spill] sm:$0xff] }
 0x307   :  { %24254 = vst [vmem:[#allocation141_spill] sm:$0xff] %v20039_v44  ;;  %v6458_v32 = vrot.slane %v24252_v51, %v16618_v5  ;;  %v6409_v23 = vrot.slane %v24255_v55, %v16603_v43  ;;  %v6416_v16 = vrot.slane %v24255_v55, %v16606_v21  ;;  %v6423_v8 = vrot.slane %v24255_v55, %v16615_v61  ;;  %v24257_v44 = vld [vmem:[#allocation88_spill] sm:$0xff] }
 0x308   :  { %13167 = vperm.xlu0 %15586, %v10412_v11   ;;  %v6430_v17 = vrot.slane %v24255_v55, %v16618_v5  ;;  %v10259_v19 = vcombine.low %v10251_v22, %v10258_v35  ;;  %v10285_v63 = vrot.slane %v24256_v54, %v16681_v42  ;;  %v10292_v51 = vrot.slane %v24257_v44, %v16681_v42  ;;  %v20069_v55 = vpop.permute.xlu1 %12954  ;;  %v24271_v54 = vld [vmem:[#allocation91_spill] sm:$0xff] }
 0x309   :  { %v20055_v24 = vcombine.low %v6381_v33, %v6388_v7  ;;  %v10446_v58 = vcombine.low %v10438_v46, %v10445_v37  ;;  %v10472_v45 = vrot.slane %v18832_v53, %v16681_v42  ;;  %v10479_v48 = vrot.slane %v18834_v41, %v16681_v42  ;;  %24261 = vst [vmem:[#allocation200_spill] sm:$0xff] %v20069_v55  ;;  %v20071_v33 = vpop.permute.xlu0 %12987  ;;  %v24264_v53 = vld [vmem:[#allocation47_spill] sm:$0xff] }
 0x30a   :  { %v20061_v11 = vcombine.low %v6395_v34, %v6402_v29  ;;  %v20063_v9 = vcombine.low %v6437_v59, %v6444_v3  ;;  %v20065_v22 = vcombine.low %v6353_v56, %v6360_v6  ;;  %v20067_v35 = vcombine.low %v6367_v39, %v6374_v40  ;;  %13140 = vperm.xlu1 %15587, %v10259_v19  }
 0x30b   :  { %24258 = vst [vmem:[#allocation157_spill] sm:$0xff] %v20055_v24  ;;  %24262 = vst [vmem:[#allocation79_spill] sm:$0xff] %v20071_v33  ;;  %v20073_v7 = vcombine.low %v6451_v31, %v6458_v32  ;;  %v6493_v46 = vrot.slane %v24264_v53, %v16603_v43  ;;  %v6500_v41 = vrot.slane %v24264_v53, %v16606_v21  ;;  %v24265_v31 = vld [vmem:[#allocation255_spill] sm:$0xff]  ;;  %v24278_v33 = vld [vmem:[#allocation52_spill] sm:$0xff] }
 0x30c   :  { %24259 = vst [vmem:[#allocation250_spill] sm:$0xff] %v20061_v11  ;;  %24260 = vst [vmem:[#allocation251_spill] sm:$0xff] %v20063_v9  ;;  %v20079_v34 = vcombine.low %v6409_v23, %v6416_v16  ;;  %13173 = vperm.xlu0 %15586, %v10446_v58   ;;  %v20081_v29 = vcombine.low %v6423_v8, %v6430_v17  ;;  %v10293_v56 = vcombine.low %v10285_v63, %v10292_v51  ;;  %v24266_v63 = vld [vmem:[#allocation48_spill] sm:$0xff]  ;;  %v20101_v32 = vpop.permute.xlu1 %12960  ;;  %v24311_v9 = vld [vmem:[#allocation169_spill] sm:$0xff] }
 0x30d   :  { %24263 = vst [vmem:[#allocation81_spill] sm:$0xff] %v20073_v7  ;;  %v10319_v6 = vrot.slane %v18732_v50, %v16681_v42  ;;  %v10326_v39 = vrot.slane %v18745_v49, %v16681_v42  ;;  %v6507_v37 = vrot.slane %v24264_v53, %v16615_v61  ;;  %v10480_v59 = vcombine.low %v10472_v45, %v10479_v48  ;;  %v20103_v48 = vpop.permute.xlu0 %12993  ;;  %v24270_v45 = vld [vmem:[#allocation218_spill] sm:$0xff] }
 0x30e   :  { %v10506_v3 = vrot.slane %v18851_v57, %v16681_v42  ;;  %v10513_v40 = vrot.slane %v24265_v31, %v16681_v42  ;;  %v6514_v58 = vrot.slane %v24264_v53, %v16618_v5  ;;  %v6465_v44 = vrot.slane %v24266_v63, %v16603_v43  ;;  %24267 = vst [vmem:[#allocation201_spill] sm:$0xff] %v20101_v32  ;;  %v24272_v53 = vld [vmem:[#allocation92_spill] sm:$0xff]  ;;  %v24332_v24 = vld [vmem:[#allocation190_spill] sm:$0xff] }
 0x30f   :  { %v6472_v50 = vrot.slane %v24266_v63, %v16606_v21  ;;  %v6479_v49 = vrot.slane %v24266_v63, %v16615_v61  ;;  %13146 = vperm.xlu1 %15587, %v10293_v56   ;;  %24268 = vst [vmem:[#allocation42_spill] sm:$0xff] %v20103_v48  ;;  %v20105_v57 = vcombine.low %v6493_v46, %v6500_v41 }
 0x310   :  { %v6549_v23 = vrot.slane %v24270_v45, %v16603_v43  ;;  %v6556_v16 = vrot.slane %v24270_v45, %v16606_v21  ;;  %v6486_v8 = vrot.slane %v24266_v63, %v16618_v5  ;;  %13179 = vperm.xlu0 %15586, %v10480_v59   ;;  %v6563_v17 = vrot.slane %v24270_v45, %v16615_v61  ;;  %v24273_v63 = vld [vmem:[#allocation219_spill] sm:$0xff] }
 0x311   :  { %24269 = vst [vmem:[#allocation244_spill] sm:$0xff] %v20105_v57  ;;  %v10327_v19 = vcombine.low %v10319_v6, %v10326_v39  ;;  %v10353_v51 = vrot.slane %v24271_v54, %v16681_v42  ;;  %v10360_v46 = vrot.slane %v24272_v53, %v16681_v42  ;;  %v6570_v41 = vrot.slane %v24270_v45, %v16618_v5  ;;  %v20133_v45 = vpop.permute.xlu1 %12966 }
 0x312   :  { %v10514_v56 = vcombine.low %v10506_v3, %v10513_v40  ;;  %v10540_v31 = vrot.slane %v18897_v62, %v16681_v42  ;;  %v10547_v59 = vrot.slane %v18903_v60, %v16681_v42  ;;  %v6521_v48 = vrot.slane %v24273_v63, %v16603_v43  ;;  %24274 = vst [vmem:[#allocation245_spill] sm:$0xff] %v20133_v45  ;;  %v20135_v3 = vpop.permute.xlu0 %12999 }
 0x313   :  { %v6528_v6 = vrot.slane %v24273_v63, %v16606_v21  ;;  %v6535_v39 = vrot.slane %v24273_v63, %v16615_v61  ;;  %v6542_v54 = vrot.slane %v24273_v63, %v16618_v5  ;;  %13152 = vperm.xlu1 %15587, %v10327_v19   ;;  %24275 = vst [vmem:[#allocation204_spill] sm:$0xff] %v20135_v3  ;;  %v24279_v63 = vld [vmem:[#allocation93_spill] sm:$0xff]  ;;  %v24290_v3 = vld [vmem:[#allocation26_spill] sm:$0xff] }
 0x314   :  { %v20137_v62 = vcombine.low %v6507_v37, %v6514_v58  ;;  %v20139_v60 = vcombine.low %v6549_v23, %v6556_v16  ;;  %v20141_v40 = vcombine.low %v6465_v44, %v6472_v50  ;;  %v20143_v53 = vcombine.low %v6479_v49, %v6486_v8  ;;  %13185 = vperm.xlu0 %15586, %v10514_v56   ;;  %v24280_v19 = vld [vmem:[#allocation165_spill] sm:$0xff]  ;;  %v24281_v50 = vld [vmem:[#allocation258_spill] sm:$0xff] }
 0x315   :  { %v6605_v32 = vrot.slane %v24278_v33, %v16603_v43  ;;  %v10361_v55 = vcombine.low %v10353_v51, %v10360_v46  ;;  %v10387_v57 = vrot.slane %v24279_v63, %v16681_v42  ;;  %v10394_v45 = vrot.slane %v24280_v19, %v16681_v42  ;;  %v20165_v46 = vpop.permute.xlu1 %12972 }
 0x316   :  { %24276 = vst [vmem:[#allocation86_spill] sm:$0xff] %v20137_v62  ;;  %24277 = vst [vmem:[#allocation87_spill] sm:$0xff] %v20139_v60  ;;  %v6612_v37 = vrot.slane %v24278_v33, %v16606_v21  ;;  %v10548_v58 = vcombine.low %v10540_v31, %v10547_v59  ;;  %v10574_v44 = vrot.slane %v18911_v2, %v16681_v42  ;;  %v20167_v56 = vpop.permute.xlu0 %13005  ;;  %v24285_v31 = vld [vmem:[#allocation224_spill] sm:$0xff] }
 0x317   :  { %v10581_v49 = vrot.slane %v24281_v50, %v16681_v42  ;;  %v20157_v23 = vcombine.low %v6563_v17, %v6570_v41  ;;  %v6619_v16 = vrot.slane %v24278_v33, %v16615_v61  ;;  %v20161_v8 = vcombine.low %v6521_v48, %v6528_v6  ;;  %24283 = vst [vmem:[#allocation208_spill] sm:$0xff] %v20165_v46  ;;  %v24289_v50 = vld [vmem:[#allocation18_spill] sm:$0xff] }
 0x318   :  { %v20163_v51 = vcombine.low %v6535_v39, %v6542_v54  ;;  %13158 = vperm.xlu1 %15587, %v10361_v55   ;;  %24284 = vst [vmem:[#allocation248_spill] sm:$0xff] %v20167_v56  ;;  %v6626_v2 = vrot.slane %v24278_v33, %v16618_v5  ;;  %v6577_v59 = vrot.slane %v24285_v31, %v16603_v43  ;;  %v24286_v55 = vld [vmem:[#allocation98_spill] sm:$0xff]  ;;  %v24287_v54 = vld [vmem:[#allocation13_spill] sm:$0xff] }
 0x319   :  { %24282 = vst [vmem:[#allocation207_spill] sm:$0xff] %v20157_v23  ;;  %v6584_v17 = vrot.slane %v24285_v31, %v16606_v21  ;;  %v6591_v48 = vrot.slane %v24285_v31, %v16615_v61  ;;  %13191 = vperm.xlu0 %15586, %v10548_v58   ;;  %v6598_v41 = vrot.slane %v24285_v31, %v16618_v5  ;;  %v24291_v58 = vld [vmem:[#allocation53_spill] sm:$0xff] }
 0x31a   :  { %v10395_v6 = vcombine.low %v10387_v57, %v10394_v45  ;;  %v10421_v39 = vrot.slane %v24286_v55, %v16681_v42  ;;  %v10428_v33 = vrot.slane %v24287_v54, %v16681_v42  ;;  %v20183_v63 = vcombine.low %v6605_v32, %v6612_v37  ;;  %v20197_v37 = vpop.permute.xlu1 %12978  ;;  %v24295_v31 = vld [vmem:[#allocation121_spill] sm:$0xff] }
 0x31b   :  { %v10582_v19 = vcombine.low %v10574_v44, %v10581_v49  ;;  %v10608_v56 = vrot.slane %v24289_v50, %v16681_v42  ;;  %v10615_v46 = vrot.slane %v24290_v3, %v16681_v42  ;;  %v6661_v23 = vrot.slane %v24291_v58, %v16603_v43  ;;  %24292 = vst [vmem:[#allocation46_spill] sm:$0xff] %v20197_v37  ;;  %v20199_v44 = vpop.permute.xlu0 %13011  ;;  %v24296_v37 = vld [vmem:[#allocation151_spill] sm:$0xff] }
 0x31c   :  { %24288 = vst [vmem:[#allocation249_spill] sm:$0xff] %v20183_v63  ;;  %v6668_v57 = vrot.slane %v24291_v58, %v16606_v21  ;;  %v6675_v45 = vrot.slane %v24291_v58, %v16615_v61  ;;  %v6682_v32 = vrot.slane %v24291_v58, %v16618_v5  ;;  %13164 = vperm.xlu1 %15587, %v10395_v6   ;;  %24293 = vst [vmem:[#allocation212_spill] sm:$0xff] %v20199_v44  ;;  %v24297_v44 = vld [vmem:[#allocation101_spill] sm:$0xff] }
 0x31d   :  { %v20201_v49 = vcombine.low %v6619_v16, %v6626_v2  ;;  %v20203_v3 = vcombine.low %v6577_v59, %v6584_v17  ;;  %v6633_v55 = vrot.slane %v24295_v31, %v16603_v43  ;;  %v6640_v54 = vrot.slane %v24295_v31, %v16606_v21  ;;  %13197 = vperm.xlu0 %15586, %v10582_v19   ;;  %v24298_v17 = vld [vmem:[#allocation161_spill] sm:$0xff] }
 0x31e   :  { %v6647_v50 = vrot.slane %v24295_v31, %v16615_v61  ;;  %v10429_v58 = vcombine.low %v10421_v39, %v10428_v33  ;;  %v10455_v6 = vrot.slane %v24296_v37, %v16681_v42  ;;  %v10462_v16 = vrot.slane %v24297_v44, %v16681_v42  ;;  %v24299_v63 = vld [vmem:[#allocation177_spill] sm:$0xff]  ;;  %v20230_v44 = vpop.permute.xlu1 %12984 }
 0x31f   :  { %24294 = vst [vmem:[#allocation19_spill] sm:$0xff] %v20201_v49  ;;  %v6654_v2 = vrot.slane %v24295_v31, %v16618_v5  ;;  %v10616_v59 = vcombine.low %v10608_v56, %v10615_v46  ;;  %v10642_v49 = vrot.slane %v24298_v17, %v16681_v42  ;;  %v10649_v19 = vrot.slane %v24299_v63, %v16681_v42  ;;  %v20232_v31 = vpop.permute.xlu0 %13017  ;;  %v24305_v46 = vld [vmem:[#allocation231_spill] sm:$0xff] }
 0x320   :  { %v20221_v60 = vcombine.low %v6661_v23, %v6668_v57  ;;  %v20223_v62 = vcombine.low %v6675_v45, %v6682_v32  ;;  %v20225_v39 = vcombine.low %v6591_v48, %v6598_v41  ;;  %v24302_v33 = vlaneseq  ;;  %24303 = vst [vmem:[#allocation255_spill] sm:$0xff] %v20230_v44  ;;  %13170 = vperm.xlu1 %15587, %v10429_v58   ;;  %24304 = vst [vmem:[#allocation48_spill] sm:$0xff] %v20232_v31  ;;  %v24307_v45 = vld [vmem:[#allocation106_spill] sm:$0xff]  ;;  %v24308_v58 = vld [vmem:[#allocation108_spill] sm:$0xff] }
 0x321   :  { %v6717_v56 = vrot.slane %v24305_v46, %v16603_v43  ;;  %v6724_v63 = vrot.slane %v24305_v46, %v16606_v21  ;;  %v6731_v23 = vrot.slane %v24305_v46, %v16615_v61  ;;  %v6738_v48 = vrot.slane %v24305_v46, %v16618_v5  ;;  %13203 = vperm.xlu0 %15586, %v10616_v59   ;;  %v24310_v44 = vld [vmem:[#allocation118_spill] sm:$0xff]  ;;  %v24312_v59 = vld [vmem:[#allocation232_spill] sm:$0xff] }
 0x322   :  { %24300 = vst [vmem:[#allocation88_spill] sm:$0xff] %v20221_v60  ;;  %24301 = vst [vmem:[#allocation47_spill] sm:$0xff] %v20223_v62  ;;  %v20228_v37 = vand.u32 127, %v24302_v33  ;;  %v20242_v41 = vcombine.low %v6633_v55, %v6640_v54  ;;  %v10463_v57 = vcombine.low %v10455_v6, %v10462_v16  ;;  %v10489_v32 = vrot.slane %v24307_v45, %v16681_v42  ;;  %v20262_v16 = vpop.permute.xlu1 %12990 }
 0x323   :  { %v10496_v17 = vrot.slane %v24308_v58, %v16681_v42  ;;  %v20248_v33 = vcombine.low %v6647_v50, %v6654_v2  ;;  %v10650_v31 = vcombine.low %v10642_v49, %v10649_v19  ;;  %v10676_v7 = vrot.slane %v24310_v44, %v16681_v42  ;;  %24313 = vst [vmem:[#allocation92_spill] sm:$0xff] %v20262_v16  ;;  %v20264_v49 = vpop.permute.xlu0 %13023  ;;  %v24317_v19 = vld [vmem:[#allocation58_spill] sm:$0xff] }
 0x324   :  { %24306 = vst [vmem:[#allocation218_spill] sm:$0xff] %v20242_v41  ;;  %v10683_v62 = vrot.slane %v24311_v9, %v16681_v42  ;;  %v6689_v55 = vrot.slane %v24312_v59, %v16603_v43  ;;  %v6696_v54 = vrot.slane %v24312_v59, %v16606_v21  ;;  %v6703_v6 = vrot.slane %v24312_v59, %v16615_v61 }
 0x325   :  { %24309 = vst [vmem:[#allocation91_spill] sm:$0xff] %v20248_v33  ;;  %v6710_v50 = vrot.slane %v24312_v59, %v16618_v5  ;;  %13176 = vperm.xlu1 %15587, %v10463_v57   ;;  %24314 = vst [vmem:[#allocation219_spill] sm:$0xff] %v20264_v49  ;;  %v20266_v2 = vcombine.low %v6717_v56, %v6724_v63  ;;  %v20268_v9 = vcombine.low %v6731_v23, %v6738_v48  ;;  %v24318_v59 = vld [vmem:[#allocation154_spill] sm:$0xff]  ;;  %v24319_v49 = vld [vmem:[#allocation109_spill] sm:$0xff] }
 0x326   :  { %v6773_v44 = vrot.slane %v24317_v19, %v16603_v43  ;;  %v6780_v46 = vrot.slane %v24317_v19, %v16606_v21  ;;  %13209 = vperm.xlu0 %15586, %v10650_v31   ;;  %v6787_v45 = vrot.slane %v24317_v19, %v16615_v61  ;;  %v10497_v58 = vcombine.low %v10489_v32, %v10496_v17  ;;  %v24320_v48 = vld [vmem:[#allocation119_spill] sm:$0xff] }
 0x327   :  { %24315 = vst [vmem:[#allocation52_spill] sm:$0xff] %v20266_v2  ;;  %24316 = vst [vmem:[#allocation93_spill] sm:$0xff] %v20268_v9  ;;  %v10523_v57 = vrot.slane %v24318_v59, %v16681_v42  ;;  %v10530_v56 = vrot.slane %v24319_v49, %v16681_v42  ;;  %v6794_v63 = vrot.slane %v24317_v19, %v16618_v5  ;;  %v24321_v9 = vld [vmem:[#allocation171_spill] sm:$0xff]  ;;  %v13601_v32 = vadd.s32 4294967288, %v20228_v37  ;;  %v20292_v59 = vpop.permute.xlu1 %12996  ;;  %v20294_v49 = vpop.permute.xlu0 %13029 }
 0x328   :  { %v10684_v23 = vcombine.low %v10676_v7, %v10683_v62  ;;  %v10710_v16 = vrot.slane %v24320_v48, %v16681_v42  ;;  %v10717_v31 = vrot.slane %v24321_v9, %v16681_v42  ;;  %v20286_v2 = vcombine.low %v6689_v55, %v6696_v54  ;;  %24324 = vst [vmem:[#allocation224_spill] sm:$0xff] %v20292_v59  ;;  %v24326_v7 = vld [vmem:[#allocation127_spill] sm:$0xff]  ;;  %v24329_v48 = vld [vmem:[#allocation112_spill] sm:$0xff] }
 0x329   :  { %v20288_v60 = vcombine.low %v6703_v6, %v6710_v50  ;;  %v13608_v17 = vadd.s32 4294967280, %v20228_v37  ;;  %13182 = vperm.xlu1 %15587, %v10497_v58   ;;  %24325 = vst [vmem:[#allocation98_spill] sm:$0xff] %v20294_v49  ;;  %v6745_v62 = vrot.slane %v24326_v7, %v16603_v43  ;;  %v6752_v19 = vrot.slane %v24326_v7, %v16606_v21  ;;  %v24328_v9 = vld [vmem:[#allocation259_spill] sm:$0xff] }
 0x32a   :  { %24322 = vst [vmem:[#allocation165_spill] sm:$0xff] %v20286_v2  ;;  %v6759_v55 = vrot.slane %v24326_v7, %v16615_v61  ;;  %v6766_v54 = vrot.slane %v24326_v7, %v16618_v5  ;;  %13215 = vperm.xlu0 %15586, %v10684_v23   ;;  %v20304_v6 = vcombine.low %v6773_v44, %v6780_v46  ;;  %v24331_v2 = vld [vmem:[#allocation175_spill] sm:$0xff]  ;;  %v24333_v23 = vld [vmem:[#allocation60_spill] sm:$0xff] }
 0x32b   :  { %24323 = vst [vmem:[#allocation258_spill] sm:$0xff] %v20288_v60  ;;  %v10531_v50 = vcombine.low %v10523_v57, %v10530_v56  ;;  %v10557_v58 = vrot.slane %v24328_v9, %v16681_v42  ;;  %v10564_v49 = vrot.slane %v24329_v48, %v16681_v42  ;;  %v20310_v59 = vcombine.low %v6787_v45, %v6794_v63  ;;  %v24334_v57 = vld [vmem:[#allocation85_spill] sm:$0xff]  ;;  %v20326_v45 = vpop.permute.xlu1 %13002  ;;  %v24343_v48 = vld [vmem:[#allocation176_spill] sm:$0xff] }
 0x32c   :  { %24327 = vst [vmem:[#allocation13_spill] sm:$0xff] %v20304_v6  ;;  %v10718_v60 = vcombine.low %v10710_v16, %v10717_v31  ;;  %v10744_v11 = vrot.slane %v24331_v2, %v16681_v42  ;;  %v10751_v33 = vrot.slane %v24332_v24, %v16681_v42  ;;  %v6829_v44 = vrot.slane %v24333_v23, %v16603_v43  ;;  %v20328_v16 = vpop.permute.xlu0 %13035 }
 0x32d   :  { %24330 = vst [vmem:[#allocation18_spill] sm:$0xff] %v20310_v59  ;;  %v6836_v46 = vrot.slane %v24333_v23, %v16606_v21  ;;  %v20321_v56 = vsub.s32 %v13601_v32, %v24334_v57  ;;  %v20324_v7 = vsub.s32 %v13608_v17, %v24334_v57  ;;  %24337 = vst [vmem:[#allocation121_spill] sm:$0xff] %v20326_v45  ;;  %13188 = vperm.xlu1 %15587, %v10531_v50   ;;  %v24342_v50 = vld [vmem:[#allocation113_spill] sm:$0xff] }
 0x32e   :  { %24338 = vst [vmem:[#allocation151_spill] sm:$0xff] %v20328_v16  ;;  %v6843_v24 = vrot.slane %v24333_v23, %v16615_v61  ;;  %v6850_v2 = vrot.slane %v24333_v23, %v16618_v5  ;;  %v20334_v63 = vcombine.low %v6745_v62, %v6752_v19  ;;  %v20336_v31 = vcombine.low %v6759_v55, %v6766_v54  ;;  %v24344_v45 = vld [vmem:[#allocation61_spill] sm:$0xff]  ;;  %v24345_v62 = vld [vmem:[#allocation180_spill] sm:$0xff] }
 0x32f   :  { %24335 = vst [vmem:[#allocation26_spill] sm:$0xff] %v20321_v56  ;;  %24336 = vst [vmem:[#allocation53_spill] sm:$0xff] %v20324_v7  ;;  %13221 = vperm.xlu0 %15586, %v10718_v60   ;;  %v20340_v32 = vsub.s32 %v20228_v37, %v24334_v57  ;;  %v10565_v17 = vcombine.low %v10557_v58, %v10564_v49  ;;  %v10591_v9 = vrot.slane %v24342_v50, %v16681_v42  ;;  %v24346_v60 = vld [vmem:[#allocation196_spill] sm:$0xff] }
 0x330   :  { %24339 = vst [vmem:[#allocation101_spill] sm:$0xff] %v20334_v63  ;;  %24340 = vst [vmem:[#allocation161_spill] sm:$0xff] %v20336_v31  ;;  %v10598_v16 = vrot.slane %v24343_v48, %v16681_v42  ;;  %v6801_v7 = vrot.slane %v24344_v45, %v16603_v43  ;;  %v10752_v23 = vcombine.low %v10744_v11, %v10751_v33  ;;  %v20360_v48 = vpop.permute.xlu1 %13008  ;;  %v20362_v11 = vpop.permute.xlu0 %13041 }
 0x331   :  { %24341 = vst [vmem:[#allocation177_spill] sm:$0xff] %v20340_v32  ;;  %v10778_v19 = vrot.slane %v24345_v62, %v16681_v42  ;;  %v10785_v55 = vrot.slane %v24346_v60, %v16681_v42  ;;  %v20352_v54 = vcombine.low %v6829_v44, %v6836_v46  ;;  %v6808_v49 = vrot.slane %v24344_v45, %v16606_v21  ;;  %v24351_v62 = vld [vmem:[#allocation240_spill] sm:$0xff]  ;;  %v24354_v32 = vld [vmem:[#allocation41_spill] sm:$0xff] }
 0x332   :  { %v6815_v58 = vrot.slane %v24344_v45, %v16615_v61  ;;  %v6822_v50 = vrot.slane %v24344_v45, %v16618_v5  ;;  %24348 = vst [vmem:[#allocation106_spill] sm:$0xff] %v20360_v48  ;;  %13194 = vperm.xlu1 %15587, %v10565_v17   ;;  %24349 = vst [vmem:[#allocation108_spill] sm:$0xff] %v20362_v11  ;;  %v20364_v33 = vcombine.low %v6843_v24, %v6850_v2  ;;  %v24352_v17 = vld [vmem:[#allocation21_spill] sm:$0xff]  ;;  %v24353_v24 = vld [vmem:[#allocation170_spill] sm:$0xff] }
 0x333   :  { %24347 = vst [vmem:[#allocation231_spill] sm:$0xff] %v20352_v54  ;;  %v6885_v44 = vrot.slane %v24351_v62, %v16603_v43  ;;  %v6892_v46 = vrot.slane %v24351_v62, %v16606_v21  ;;  %v6899_v60 = vrot.slane %v24351_v62, %v16615_v61  ;;  %13227 = vperm.xlu0 %15586, %v10752_v23   ;;  %v13615_v11 = vadd.s32 4294967272, %v20228_v37 }
 0x334   :  { %24350 = vst [vmem:[#allocation118_spill] sm:$0xff] %v20364_v33  ;;  %v6906_v45 = vrot.slane %v24351_v62, %v16618_v5  ;;  %v10599_v54 = vcombine.low %v10591_v9, %v10598_v16  ;;  %v10625_v48 = vrot.slane %v24352_v17, %v16681_v42  ;;  %v10632_v2 = vrot.slane %v24353_v24, %v16681_v42  ;;  %v24357_v16 = vld [vmem:[#allocation115_spill] sm:$0xff]  ;;  %v20390_v17 = vpop.permute.xlu1 %13014  ;;  %v20392_v24 = vpop.permute.xlu0 %13047 }
 0x335   :  { %v10786_v33 = vcombine.low %v10778_v19, %v10785_v55  ;;  %v10812_v56 = vrot.slane %v19211_v27, %v16681_v42  ;;  %v10819_v59 = vrot.slane %v24354_v32, %v16681_v42  ;;  %v20383_v23 = vcombine.low %v6801_v7, %v6808_v49  ;;  %24358 = vst [vmem:[#allocation58_spill] sm:$0xff] %v20390_v17  ;;  %v24365_v17 = vld [vmem:[#allocation33_spill] sm:$0xff] }
 0x336   :  { %v20385_v6 = vcombine.low %v6815_v58, %v6822_v50  ;;  %v6857_v9 = vrot.slane %v24357_v16, %v16603_v43  ;;  %v13657_v62 = vadd.s32 4294967224, %v20228_v37  ;;  %13200 = vperm.xlu1 %15587, %v10599_v54   ;;  %24359 = vst [vmem:[#allocation154_spill] sm:$0xff] %v20392_v24  ;;  %v20394_v19 = vcombine.low %v6885_v44, %v6892_v46  ;;  %v24362_v58 = vld [vmem:[#allocation183_spill] sm:$0xff]  ;;  %v24363_v50 = vld [vmem:[#allocation184_spill] sm:$0xff] }
 0x337   :  { %24355 = vst [vmem:[#allocation169_spill] sm:$0xff] %v20383_v23  ;;  %v6864_v27 = vrot.slane %v24357_v16, %v16606_v21  ;;  %v6871_v7 = vrot.slane %v24357_v16, %v16615_v61  ;;  %v6878_v32 = vrot.slane %v24357_v16, %v16618_v5  ;;  %13233 = vperm.xlu0 %15586, %v10786_v33   ;;  %v24367_v33 = vld [vmem:[#allocation64_spill] sm:$0xff]  ;;  %v24434_v23 = vld [vmem:[#allocation49_spill] sm:$0xff] }
 0x338   :  { %24356 = vst [vmem:[#allocation232_spill] sm:$0xff] %v20385_v6  ;;  %24360 = vst [vmem:[#allocation109_spill] sm:$0xff] %v20394_v19  ;;  %v20402_v55 = vcombine.low %v6899_v60, %v6906_v45  ;;  %v10633_v49 = vcombine.low %v10625_v48, %v10632_v2  ;;  %v10659_v54 = vrot.slane %v24362_v58, %v16681_v42  ;;  %v24366_v6 = vld [vmem:[#allocation205_spill] sm:$0xff]  ;;  %v20423_v2 = vpop.permute.xlu1 %13020  ;;  %v13622_v58 = vadd.s32 4294967264, %v20228_v37 }
 0x339   :  { %v10666_v44 = vrot.slane %v24363_v50, %v16681_v42  ;;  %v20409_v46 = vsub.s32 %v13615_v11, %v24334_v57  ;;  %v10820_v24 = vcombine.low %v10812_v56, %v10819_v59  ;;  %v10846_v19 = vrot.slane %v24365_v17, %v16681_v42  ;;  %24368 = vst [vmem:[#allocation127_spill] sm:$0xff] %v20423_v2  ;;  %v20425_v59 = vpop.permute.xlu0 %13053  ;;  %v24373_v50 = vld [vmem:[#allocation120_spill] sm:$0xff] }
 0x33a   :  { %24361 = vst [vmem:[#allocation119_spill] sm:$0xff] %v20402_v55  ;;  %v10853_v16 = vrot.slane %v24366_v6, %v16681_v42  ;;  %v6941_v60 = vrot.slane %v24367_v33, %v16603_v43  ;;  %v6948_v48 = vrot.slane %v24367_v33, %v16606_v21  ;;  %v6955_v45 = vrot.slane %v24367_v33, %v16615_v61 }
 0x33b   :  { %24364 = vst [vmem:[#allocation171_spill] sm:$0xff] %v20409_v46  ;;  %v6962_v11 = vrot.slane %v24367_v33, %v16618_v5  ;;  %13206 = vperm.xlu1 %15587, %v10633_v49   ;;  %24369 = vst [vmem:[#allocation259_spill] sm:$0xff] %v20425_v59  ;;  %v20427_v56 = vcombine.low %v6857_v9, %v6864_v27  ;;  %v20429_v6 = vcombine.low %v6871_v7, %v6878_v32  ;;  %v24374_v33 = vld [vmem:[#allocation172_spill] sm:$0xff]  ;;  %v24375_v49 = vld [vmem:[#allocation174_spill] sm:$0xff] }
 0x33c   :  { %v20432_v17 = vsub.s32 %v13657_v62, %v24334_v57  ;;  %13239 = vperm.xlu0 %15586, %v10820_v24   ;;  %v6913_v55 = vrot.slane %v24373_v50, %v16603_v43  ;;  %v10667_v46 = vcombine.low %v10659_v54, %v10666_v44  ;;  %v10693_v2 = vrot.slane %v24374_v33, %v16681_v42  ;;  %v20455_v33 = vpop.permute.xlu1 %13026 }
 0x33d   :  { %24370 = vst [vmem:[#allocation112_spill] sm:$0xff] %v20427_v56  ;;  %24371 = vst [vmem:[#allocation175_spill] sm:$0xff] %v20429_v6  ;;  %v10700_v59 = vrot.slane %v24375_v49, %v16681_v42  ;;  %v6920_v9 = vrot.slane %v24373_v50, %v16606_v21  ;;  %v10854_v27 = vcombine.low %v10846_v19, %v10853_v16  ;;  %v20457_v19 = vpop.permute.xlu0 %13059  ;;  %v24383_v49 = vld [vmem:[#allocation124_spill] sm:$0xff] }
 0x33e   :  { %24372 = vst [vmem:[#allocation190_spill] sm:$0xff] %v20432_v17  ;;  %v10880_v62 = vrot.slane %v19289_v15, %v16681_v42  ;;  %v10887_v24 = vrot.slane %v19295_v4, %v16681_v42  ;;  %v20447_v7 = vcombine.low %v6941_v60, %v6948_v48  ;;  %v20449_v32 = vcombine.low %v6955_v45, %v6962_v11  ;;  %v24380_v15 = vld [vmem:[#allocation148_spill] sm:$0xff]  ;;  %v24393_v17 = vld [vmem:[#allocation197_spill] sm:$0xff] }
 0x33f   :  { %v6927_v54 = vrot.slane %v24373_v50, %v16615_v61  ;;  %v6934_v44 = vrot.slane %v24373_v50, %v16618_v5  ;;  %24378 = vst [vmem:[#allocation113_spill] sm:$0xff] %v20455_v33  ;;  %13212 = vperm.xlu1 %15587, %v10667_v46   ;;  %24379 = vst [vmem:[#allocation176_spill] sm:$0xff] %v20457_v19  ;;  %v6997_v16 = vrot.slane %v24380_v15, %v16603_v43  ;;  %v24382_v46 = vld [vmem:[#allocation192_spill] sm:$0xff] }
 0x340   :  { %24376 = vst [vmem:[#allocation60_spill] sm:$0xff] %v20447_v7  ;;  %24377 = vst [vmem:[#allocation85_spill] sm:$0xff] %v20449_v32  ;;  %v7004_v4 = vrot.slane %v24380_v15, %v16606_v21  ;;  %v7011_v60 = vrot.slane %v24380_v15, %v16615_v61  ;;  %v20466_v48 = vsub.s32 %v13622_v58, %v24334_v57  ;;  %13245 = vperm.xlu0 %15586, %v10854_v27   ;;  %v24384_v7 = vld [vmem:[#allocation136_spill] sm:$0xff]  ;;  %v24385_v58 = vld [vmem:[#allocation213_spill] sm:$0xff] }
 0x341   :  { %v7018_v45 = vrot.slane %v24380_v15, %v16618_v5  ;;  %v10701_v11 = vcombine.low %v10693_v2, %v10700_v59  ;;  %v10727_v50 = vrot.slane %v24382_v46, %v16681_v42  ;;  %v10734_v19 = vrot.slane %v24383_v49, %v16681_v42  ;;  %v24387_v15 = vld [vmem:[#allocation67_spill] sm:$0xff]  ;;  %v20486_v49 = vpop.permute.xlu1 %13032 }
 0x342   :  { %24381 = vst [vmem:[#allocation61_spill] sm:$0xff] %v20466_v48  ;;  %v13671_v33 = vadd.s32 4294967208, %v20228_v37  ;;  %v10888_v32 = vcombine.low %v10880_v62, %v10887_v24  ;;  %v10914_v6 = vrot.slane %v24384_v7, %v16681_v42  ;;  %v10921_v56 = vrot.slane %v24385_v58, %v16681_v42  ;;  %24388 = vst [vmem:[#allocation196_spill] sm:$0xff] %v20486_v49  ;;  %v20488_v62 = vpop.permute.xlu0 %13065 }
 0x343   :  { %v20479_v27 = vcombine.low %v6913_v55, %v6920_v9  ;;  %v6969_v2 = vrot.slane %v24387_v15, %v16603_v43  ;;  %v6976_v59 = vrot.slane %v24387_v15, %v16606_v21  ;;  %v13629_v46 = vadd.s32 4294967256, %v20228_v37  ;;  %13218 = vperm.xlu1 %15587, %v10701_v11   ;;  %24389 = vst [vmem:[#allocation240_spill] sm:$0xff] %v20488_v62  ;;  %v24394_v11 = vld [vmem:[#allocation131_spill] sm:$0xff] }
 0x344   :  { %v20490_v24 = vcombine.low %v6997_v16, %v7004_v4  ;;  %v20492_v7 = vcombine.low %v6927_v54, %v6934_v44  ;;  %v6983_v55 = vrot.slane %v24387_v15, %v16615_v61  ;;  %v6990_v9 = vrot.slane %v24387_v15, %v16618_v5  ;;  %13251 = vperm.xlu0 %15586, %v10888_v32   ;;  %v24396_v44 = vld [vmem:[#allocation198_spill] sm:$0xff] }
 0x345   :  { %24386 = vst [vmem:[#allocation180_spill] sm:$0xff] %v20479_v27  ;;  %v20498_v58 = vcombine.low %v7011_v60, %v7018_v45  ;;  %v10735_v27 = vcombine.low %v10727_v50, %v10734_v19  ;;  %v10761_v49 = vrot.slane %v24393_v17, %v16681_v42  ;;  %v10768_v62 = vrot.slane %v24394_v11, %v16681_v42  ;;  %v24398_v32 = vld [vmem:[#allocation70_spill] sm:$0xff] }
 0x346   :  { %24390 = vst [vmem:[#allocation21_spill] sm:$0xff] %v20490_v24  ;;  %24391 = vst [vmem:[#allocation170_spill] sm:$0xff] %v20492_v7  ;;  %v20505_v16 = vsub.s32 %v13671_v33, %v24334_v57  ;;  %v10922_v54 = vcombine.low %v10914_v6, %v10921_v56  ;;  %v10948_v4 = vrot.slane %v24396_v44, %v16681_v42  ;;  %v24397_v24 = vld [vmem:[#allocation10_spill] sm:$0xff]  ;;  %v20520_v33 = vpop.permute.xlu1 %13038  ;;  %v20522_v56 = vpop.permute.xlu0 %13071  ;;  %v13636_v11 = vadd.s32 4294967248, %v20228_v37 }
 0x347   :  { %24392 = vst [vmem:[#allocation41_spill] sm:$0xff] %v20498_v58  ;;  %v10955_v15 = vrot.slane %v24397_v24, %v16681_v42  ;;  %v7053_v60 = vrot.slane %v24398_v32, %v16603_v43  ;;  %v7060_v19 = vrot.slane %v24398_v32, %v16606_v21  ;;  %v20515_v17 = vcombine.low %v6969_v2, %v6976_v59  ;;  %v24403_v2 = vld [vmem:[#allocation241_spill] sm:$0xff]  ;;  %v24404_v44 = vld [vmem:[#allocation134_spill] sm:$0xff] }
 0x348   :  { %24395 = vst [vmem:[#allocation115_spill] sm:$0xff] %v20505_v16  ;;  %v20518_v45 = vsub.s32 %v13629_v46, %v24334_v57  ;;  %24401 = vst [vmem:[#allocation33_spill] sm:$0xff] %v20520_v33  ;;  %13224 = vperm.xlu1 %15587, %v10735_v27   ;;  %v7067_v6 = vrot.slane %v24398_v32, %v16615_v61  ;;  %v7074_v50 = vrot.slane %v24398_v32, %v16618_v5  ;;  %v24405_v33 = vld [vmem:[#allocation185_spill] sm:$0xff]  ;;  %v24406_v32 = vld [vmem:[#allocation202_spill] sm:$0xff] }
 0x349   :  { %24399 = vst [vmem:[#allocation183_spill] sm:$0xff] %v20515_v17  ;;  %24402 = vst [vmem:[#allocation205_spill] sm:$0xff] %v20522_v56  ;;  %v13685_v24 = vadd.s32 4294967192, %v20228_v37  ;;  %13257 = vperm.xlu0 %15586, %v10922_v54   ;;  %v7025_v59 = vrot.slane %v24403_v2, %v16603_v43  ;;  %v10769_v46 = vcombine.low %v10761_v49, %v10768_v62  ;;  %v24407_v16 = vld [vmem:[#allocation221_spill] sm:$0xff] }
 0x34a   :  { %24400 = vst [vmem:[#allocation184_spill] sm:$0xff] %v20518_v45  ;;  %v10795_v27 = vrot.slane %v24404_v44, %v16681_v42  ;;  %v10802_v56 = vrot.slane %v24405_v33, %v16681_v42  ;;  %v7032_v58 = vrot.slane %v24403_v2, %v16606_v21  ;;  %v10956_v17 = vcombine.low %v10948_v4, %v10955_v15  ;;  %v20550_v33 = vpop.permute.xlu1 %13044  ;;  %v20552_v4 = vpop.permute.xlu0 %13077  ;;  %v24413_v44 = vld [vmem:[#allocation139_spill] sm:$0xff] }
 0x34b   :  { %v10982_v7 = vrot.slane %v24406_v32, %v16681_v42  ;;  %v10989_v54 = vrot.slane %v24407_v16, %v16681_v42  ;;  %v20542_v45 = vcombine.low %v7053_v60, %v7060_v19  ;;  %v20544_v48 = vcombine.low %v6983_v55, %v6990_v9  ;;  %24410 = vst [vmem:[#allocation172_spill] sm:$0xff] %v20550_v33 }
 0x34c   :  { %v7039_v49 = vrot.slane %v24403_v2, %v16615_v61  ;;  %v7046_v62 = vrot.slane %v24403_v2, %v16618_v5  ;;  %13230 = vperm.xlu1 %15587, %v10769_v46   ;;  %24411 = vst [vmem:[#allocation174_spill] sm:$0xff] %v20552_v4  ;;  %v20554_v15 = vcombine.low %v7067_v6, %v7074_v50  ;;  %v24416_v2 = vld [vmem:[#allocation206_spill] sm:$0xff]  ;;  %v24417_v6 = vld [vmem:[#allocation135_spill] sm:$0xff] }
 0x34d   :  { %24408 = vst [vmem:[#allocation64_spill] sm:$0xff] %v20542_v45  ;;  %24409 = vst [vmem:[#allocation120_spill] sm:$0xff] %v20544_v48  ;;  %v7109_v16 = vrot.slane %v24413_v44, %v16603_v43  ;;  %v20559_v60 = vsub.s32 %v13685_v24, %v24334_v57  ;;  %v20562_v55 = vsub.s32 %v13636_v11, %v24334_v57  ;;  %13263 = vperm.xlu0 %15586, %v10956_v17   ;;  %v24419_v24 = vld [vmem:[#allocation225_spill] sm:$0xff] }
 0x34e   :  { %24412 = vst [vmem:[#allocation148_spill] sm:$0xff] %v20554_v15  ;;  %v7116_v9 = vrot.slane %v24413_v44, %v16606_v21  ;;  %v10803_v19 = vcombine.low %v10795_v27, %v10802_v56  ;;  %v10829_v46 = vrot.slane %v24416_v2, %v16681_v42  ;;  %v10836_v50 = vrot.slane %v24417_v6, %v16681_v42  ;;  %v20583_v6 = vpop.permute.xlu1 %13050  ;;  %v24432_v48 = vld [vmem:[#allocation145_spill] sm:$0xff] }
 0x34f   :  { %24414 = vst [vmem:[#allocation192_spill] sm:$0xff] %v20559_v60  ;;  %24415 = vst [vmem:[#allocation124_spill] sm:$0xff] %v20562_v55  ;;  %v20570_v32 = vcombine.low %v7025_v59, %v7032_v58  ;;  %v10990_v33 = vcombine.low %v10982_v7, %v10989_v54  ;;  %v11016_v4 = vrot.slane %v24419_v24, %v16681_v42  ;;  %v13699_v2 = vadd.s32 4294967176, %v20228_v37  ;;  %v20585_v7 = vpop.permute.xlu0 %13083  ;;  %v24423_v58 = vld [vmem:[#allocation71_spill] sm:$0xff] }
 0x350   :  { %v11023_v11 = vrot.slane %v19441_v12, %v16681_v42  ;;  %v7123_v17 = vrot.slane %v24413_v44, %v16615_v61  ;;  %v7130_v56 = vrot.slane %v24413_v44, %v16618_v5  ;;  %v20580_v27 = vcombine.low %v7039_v49, %v7046_v62  ;;  %24421 = vst [vmem:[#allocation67_spill] sm:$0xff] %v20583_v6  ;;  %v24426_v6 = vld [vmem:[#allocation193_spill] sm:$0xff] }
 0x351   :  { %24418 = vst [vmem:[#allocation136_spill] sm:$0xff] %v20570_v32  ;;  %13236 = vperm.xlu1 %15587, %v10803_v19   ;;  %24422 = vst [vmem:[#allocation197_spill] sm:$0xff] %v20585_v7  ;;  %v7081_v59 = vrot.slane %v24423_v58, %v16603_v43  ;;  %v7088_v12 = vrot.slane %v24423_v58, %v16606_v21  ;;  %v7095_v54 = vrot.slane %v24423_v58, %v16615_v61  ;;  %v24425_v19 = vld [vmem:[#allocation137_spill] sm:$0xff] }
 0x352   :  { %24420 = vst [vmem:[#allocation213_spill] sm:$0xff] %v20580_v27  ;;  %v7102_v49 = vrot.slane %v24423_v58, %v16618_v5  ;;  %13269 = vperm.xlu0 %15586, %v10990_v33   ;;  %v20595_v62 = vcombine.low %v7109_v16, %v7116_v9  ;;  %v10837_v44 = vcombine.low %v10829_v46, %v10836_v50  ;;  %v13643_v15 = vadd.s32 4294967240, %v20228_v37  ;;  %v24427_v33 = vld [vmem:[#allocation242_spill] sm:$0xff] }
 0x353   :  { %v10863_v24 = vrot.slane %v24425_v19, %v16681_v42  ;;  %v10870_v7 = vrot.slane %v24426_v6, %v16681_v42  ;;  %v11024_v45 = vcombine.low %v11016_v4, %v11023_v11  ;;  %v11050_v27 = vrot.slane %v19453_v10, %v16681_v42  ;;  %v20613_v6 = vpop.permute.xlu1 %13056  ;;  %v20615_v4 = vpop.permute.xlu0 %13089 }
 0x354   :  { %24424 = vst [vmem:[#allocation131_spill] sm:$0xff] %v20595_v62  ;;  %v11057_v32 = vrot.slane %v19465_v28, %v16681_v42  ;;  %v7165_v16 = vrot.slane %v24427_v33, %v16603_v43  ;;  %v7172_v9 = vrot.slane %v24427_v33, %v16606_v21  ;;  %v7179_v46 = vrot.slane %v24427_v33, %v16615_v61  ;;  %v24430_v28 = vld [vmem:[#allocation243_spill] sm:$0xff] }
 0x355   :  { %v13650_v50 = vadd.s32 4294967232, %v20228_v37  ;;  %24428 = vst [vmem:[#allocation198_spill] sm:$0xff] %v20613_v6  ;;  %13242 = vperm.xlu1 %15587, %v10837_v44   ;;  %24429 = vst [vmem:[#allocation10_spill] sm:$0xff] %v20615_v4  ;;  %v7186_v10 = vrot.slane %v24427_v33, %v16618_v5  ;;  %v7137_v11 = vrot.slane %v24430_v28, %v16603_v43  ;;  %v24431_v44 = vld [vmem:[#allocation214_spill] sm:$0xff] }
 0x356   :  { %v7144_v58 = vrot.slane %v24430_v28, %v16606_v21  ;;  %v7151_v19 = vrot.slane %v24430_v28, %v16615_v61  ;;  %13275 = vperm.xlu0 %15586, %v11024_v45   ;;  %v7158_v62 = vrot.slane %v24430_v28, %v16618_v5  ;;  %v10871_v6 = vcombine.low %v10863_v24, %v10870_v7 }
 0x357   :  { %v10897_v4 = vrot.slane %v24431_v44, %v16681_v42  ;;  %v10904_v33 = vrot.slane %v24432_v48, %v16681_v42  ;;  %v20631_v60 = vcombine.low %v7123_v17, %v7130_v56  ;;  %v11058_v55 = vcombine.low %v11050_v27, %v11057_v32  ;;  %v20646_v28 = vpop.permute.xlu1 %13062  ;;  %v20648_v48 = vpop.permute.xlu0 %13095 }
 0x358   :  { %v11084_v31 = vrot.slane %v24434_v23, %v16681_v42  ;;  %v11091_v63 = vrot.slane %v19517_v20, %v16681_v42  ;;  %v20637_v45 = vcombine.low %v7165_v16, %v7172_v9  ;;  %v20639_v41 = vcombine.low %v7081_v59, %v7088_v12  ;;  %24439 = vst [vmem:[#allocation221_spill] sm:$0xff] %v20646_v28  ;;  %v24447_v12 = vld [vmem:[#allocation51_spill] sm:$0xff] }
 0x359   :  { %24433 = vst [vmem:[#allocation70_spill] sm:$0xff] %v20631_v60  ;;  %v20641_v7 = vcombine.low %v7095_v54, %v7102_v49  ;;  %v20644_v24 = vsub.s32 %v13699_v2, %v24334_v57  ;;  %13248 = vperm.xlu1 %15587, %v10871_v6   ;;  %24440 = vst [vmem:[#allocation139_spill] sm:$0xff] %v20648_v48  ;;  %v20650_v32 = vcombine.low %v7179_v46, %v7186_v10  ;;  %v24446_v2 = vld [vmem:[#allocation203_spill] sm:$0xff]  ;;  %v24448_v49 = vld [vmem:[#allocation76_spill] sm:$0xff] }
 0x35a   :  { %24435 = vst [vmem:[#allocation241_spill] sm:$0xff] %v20637_v45  ;;  %24436 = vst [vmem:[#allocation134_spill] sm:$0xff] %v20639_v41  ;;  %v20652_v23 = vcombine.low %v7137_v11, %v7144_v58  ;;  %v20655_v20 = vsub.s32 %v13643_v15, %v24334_v57  ;;  %v20658_v17 = vsub.s32 %v13650_v50, %v24334_v57  ;;  %13281 = vperm.xlu0 %15586, %v11058_v55   ;;  %v24449_v15 = vld [vmem:[#allocation217_spill] sm:$0xff]  ;;  %v24450_v50 = vld [vmem:[#allocation126_spill] sm:$0xff] }
 0x35b   :  { %24437 = vst [vmem:[#allocation185_spill] sm:$0xff] %v20641_v7  ;;  %24438 = vst [vmem:[#allocation202_spill] sm:$0xff] %v20644_v24  ;;  %v20660_v56 = vcombine.low %v7151_v19, %v7158_v62  ;;  %v10905_v27 = vcombine.low %v10897_v4, %v10904_v33  ;;  %v10931_v59 = vrot.slane %v24446_v2, %v16681_v42  ;;  %v24451_v10 = vld [vmem:[#allocation77_spill] sm:$0xff]  ;;  %v20680_v58 = vpop.permute.xlu1 %13068  ;;  %v13664_v33 = vadd.s32 4294967216, %v20228_v37  ;;  %v24454_v2 = vld [vmem:[#allocation78_spill] sm:$0xff] }
 0x35c   :  { %24441 = vst [vmem:[#allocation206_spill] sm:$0xff] %v20650_v32  ;;  %24442 = vst [vmem:[#allocation135_spill] sm:$0xff] %v20652_v23  ;;  %v10938_v54 = vrot.slane %v24447_v12, %v16681_v42  ;;  %v7221_v16 = vrot.slane %v24448_v49, %v16603_v43  ;;  %v11092_v9 = vcombine.low %v11084_v31, %v11091_v63  ;;  %v20682_v63 = vpop.permute.xlu0 %13101  ;;  %v24458_v60 = vld [vmem:[#allocation162_spill] sm:$0xff]  ;;  %v24488_v23 = vld [vmem:[#allocation65_spill] sm:$0xff] }
 0x35d   :  { %24443 = vst [vmem:[#allocation225_spill] sm:$0xff] %v20655_v20  ;;  %24444 = vst [vmem:[#allocation71_spill] sm:$0xff] %v20658_v17  ;;  %v11118_v46 = vrot.slane %v24449_v15, %v16681_v42  ;;  %v11125_v6 = vrot.slane %v24450_v50, %v16681_v42  ;;  %v7228_v55 = vrot.slane %v24448_v49, %v16606_v21  ;;  %13254 = vperm.xlu1 %15587, %v10905_v27   ;;  %v24455_v27 = vld [vmem:[#allocation11_spill] sm:$0xff]  ;;  %v24456_v50 = vld [vmem:[#allocation149_spill] sm:$0xff] }
 0x35e   :  { %24445 = vst [vmem:[#allocation137_spill] sm:$0xff] %v20660_v56  ;;  %v7235_v62 = vrot.slane %v24448_v49, %v16615_v61  ;;  %v7242_v4 = vrot.slane %v24448_v49, %v16618_v5  ;;  %v7193_v11 = vrot.slane %v24451_v10, %v16603_v43  ;;  %24452 = vst [vmem:[#allocation193_spill] sm:$0xff] %v20680_v58  ;;  %13287 = vperm.xlu0 %15586, %v11092_v9   ;;  %v24457_v58 = vld [vmem:[#allocation160_spill] sm:$0xff]  ;;  %v24466_v20 = vld [vmem:[#allocation14_spill] sm:$0xff] }
 0x35f   :  { %24453 = vst [vmem:[#allocation242_spill] sm:$0xff] %v20682_v63  ;;  %v7200_v31 = vrot.slane %v24451_v10, %v16606_v21  ;;  %v7207_v19 = vrot.slane %v24451_v10, %v16615_v61  ;;  %v7214_v44 = vrot.slane %v24451_v10, %v16618_v5  ;;  %v7277_v12 = vrot.slane %v24454_v2, %v16603_v43  ;;  %v20711_v41 = vpop.permute.xlu1 %13074 }
 0x360   :  { %v10939_v49 = vcombine.low %v10931_v59, %v10938_v54  ;;  %v10965_v15 = vrot.slane %v24455_v27, %v16681_v42  ;;  %v10972_v28 = vrot.slane %v24456_v50, %v16681_v42  ;;  %v7284_v63 = vrot.slane %v24454_v2, %v16606_v21  ;;  %v24459_v54 = vld [vmem:[#allocation158_spill] sm:$0xff]  ;;  %24460 = vst [vmem:[#allocation243_spill] sm:$0xff] %v20711_v41 }
 0x361   :  { %v11126_v48 = vcombine.low %v11118_v46, %v11125_v6  ;;  %v11152_v10 = vrot.slane %v24457_v58, %v16681_v42  ;;  %v11159_v9 = vrot.slane %v24458_v60, %v16681_v42  ;;  %v7291_v7 = vrot.slane %v24454_v2, %v16615_v61  ;;  %v20713_v46 = vpop.permute.xlu0 %13107 }
 0x362   :  { %v7298_v59 = vrot.slane %v24454_v2, %v16618_v5  ;;  %v7249_v27 = vrot.slane %v24459_v54, %v16603_v43  ;;  %v7256_v50 = vrot.slane %v24459_v54, %v16606_v21  ;;  %13260 = vperm.xlu1 %15587, %v10939_v49   ;;  %24461 = vst [vmem:[#allocation214_spill] sm:$0xff] %v20713_v46  ;;  %v24467_v49 = vld [vmem:[#allocation210_spill] sm:$0xff] }
 0x363   :  { %v20715_v6 = vcombine.low %v7221_v16, %v7228_v55  ;;  %v20717_v60 = vcombine.low %v7235_v62, %v7242_v4  ;;  %v20719_v58 = vcombine.low %v7193_v11, %v7200_v31  ;;  %v20721_v24 = vcombine.low %v7207_v19, %v7214_v44  ;;  %13293 = vperm.xlu0 %15586, %v11126_v48   ;;  %v24468_v62 = vld [vmem:[#allocation226_spill] sm:$0xff]  ;;  %v24469_v11 = vld [vmem:[#allocation63_spill] sm:$0xff]  ;;  %v20744_v44 = vpop.permute.xlu1 %13080 }
 0x364   :  { %v7263_v2 = vrot.slane %v24459_v54, %v16615_v61  ;;  %v10973_v17 = vcombine.low %v10965_v15, %v10972_v28  ;;  %v10999_v56 = vrot.slane %v24466_v20, %v16681_v42  ;;  %v11006_v41 = vrot.slane %v24467_v49, %v16681_v42  ;;  %24474 = vst [vmem:[#allocation78_spill] sm:$0xff] %v20744_v44  ;;  %v24482_v44 = vld [vmem:[#allocation144_spill] sm:$0xff] }
 0x365   :  { %24462 = vst [vmem:[#allocation145_spill] sm:$0xff] %v20715_v6  ;;  %24463 = vst [vmem:[#allocation49_spill] sm:$0xff] %v20717_v60  ;;  %v7270_v16 = vrot.slane %v24459_v54, %v16618_v5  ;;  %v11160_v55 = vcombine.low %v11152_v10, %v11159_v9  ;;  %v11186_v4 = vrot.slane %v24468_v62, %v16681_v42  ;;  %v20746_v15 = vpop.permute.xlu0 %13113  ;;  %v24476_v10 = vld [vmem:[#allocation143_spill] sm:$0xff] }
 0x366   :  { %24464 = vst [vmem:[#allocation203_spill] sm:$0xff] %v20719_v58  ;;  %24465 = vst [vmem:[#allocation51_spill] sm:$0xff] %v20721_v24  ;;  %v11193_v48 = vrot.slane %v24469_v11, %v16681_v42  ;;  %v20735_v31 = vcombine.low %v7277_v12, %v7284_v63  ;;  %v20737_v19 = vcombine.low %v7291_v7, %v7298_v59  ;;  %13266 = vperm.xlu1 %15587, %v10973_v17   ;;  %v24478_v17 = vld [vmem:[#allocation227_spill] sm:$0xff] }
 0x367   :  { %v20739_v28 = vcombine.low %v7249_v27, %v7256_v50  ;;  %v20742_v20 = vsub.s32 %v13664_v33, %v24334_v57  ;;  %24475 = vst [vmem:[#allocation11_spill] sm:$0xff] %v20746_v15  ;;  %v7333_v9 = vrot.slane %v24476_v10, %v16603_v43  ;;  %v7340_v54 = vrot.slane %v24476_v10, %v16606_v21  ;;  %v24477_v33 = vld [vmem:[#allocation82_spill] sm:$0xff]  ;;  %v24479_v50 = vld [vmem:[#allocation15_spill] sm:$0xff]  ;;  %v24480_v15 = vld [vmem:[#allocation129_spill] sm:$0xff] }
 0x368   :  { %24470 = vst [vmem:[#allocation76_spill] sm:$0xff] %v20735_v31  ;;  %24471 = vst [vmem:[#allocation217_spill] sm:$0xff] %v20737_v19  ;;  %v7347_v7 = vrot.slane %v24476_v10, %v16615_v61  ;;  %v7354_v63 = vrot.slane %v24476_v10, %v16618_v5  ;;  %13299 = vperm.xlu0 %15586, %v11160_v55   ;;  %v7305_v12 = vrot.slane %v24477_v33, %v16603_v43  ;;  %v24481_v10 = vld [vmem:[#allocation233_spill] sm:$0xff]  ;;  %v24489_v58 = vld [vmem:[#allocation235_spill] sm:$0xff] }
 0x369   :  { %24472 = vst [vmem:[#allocation126_spill] sm:$0xff] %v20739_v28  ;;  %24473 = vst [vmem:[#allocation77_spill] sm:$0xff] %v20742_v20  ;;  %v11007_v59 = vcombine.low %v10999_v56, %v11006_v41  ;;  %v11033_v27 = vrot.slane %v24478_v17, %v16681_v42  ;;  %v11040_v49 = vrot.slane %v24479_v50, %v16681_v42  ;;  %v20776_v50 = vpop.permute.xlu1 %13086  ;;  %v24487_v28 = vld [vmem:[#allocation220_spill] sm:$0xff] }
 0x36a   :  { %v7312_v62 = vrot.slane %v24477_v33, %v16606_v21  ;;  %v11194_v11 = vcombine.low %v11186_v4, %v11193_v48  ;;  %v11220_v46 = vrot.slane %v24480_v15, %v16681_v42  ;;  %v11227_v55 = vrot.slane %v24481_v10, %v16681_v42  ;;  %24483 = vst [vmem:[#allocation149_spill] sm:$0xff] %v20776_v50  ;;  %v20778_v4 = vpop.permute.xlu0 %13119  ;;  %v24485_v10 = vld [vmem:[#allocation83_spill] sm:$0xff] }
 0x36b   :  { %v7389_v20 = vrot.slane %v24482_v44, %v16603_v43  ;;  %v7396_v41 = vrot.slane %v24482_v44, %v16606_v21  ;;  %v7319_v56 = vrot.slane %v24477_v33, %v16615_v61  ;;  %v7326_v17 = vrot.slane %v24477_v33, %v16618_v5  ;;  %13272 = vperm.xlu1 %15587, %v11007_v59   ;;  %v24486_v59 = vld [vmem:[#allocation229_spill] sm:$0xff] }
 0x36c   :  { %24484 = vst [vmem:[#allocation160_spill] sm:$0xff] %v20778_v4  ;;  %v7403_v48 = vrot.slane %v24482_v44, %v16615_v61  ;;  %v7410_v15 = vrot.slane %v24482_v44, %v16618_v5  ;;  %v7361_v19 = vrot.slane %v24485_v10, %v16603_v43  ;;  %v7368_v31 = vrot.slane %v24485_v10, %v16606_v21 }
 0x36d   :  { %13305 = vperm.xlu0 %15586, %v11194_v11   ;;  %v7375_v33 = vrot.slane %v24485_v10, %v16615_v61  ;;  %v11041_v50 = vcombine.low %v11033_v27, %v11040_v49  ;;  %v11067_v4 = vrot.slane %v24486_v59, %v16681_v42  ;;  %v11074_v60 = vrot.slane %v24487_v28, %v16681_v42  ;;  %v20808_v59 = vpop.permute.xlu1 %13092 }
 0x36e   :  { %v7382_v44 = vrot.slane %v24485_v10, %v16618_v5  ;;  %v11228_v6 = vcombine.low %v11220_v46, %v11227_v55  ;;  %v11254_v24 = vrot.slane %v24488_v23, %v16681_v42  ;;  %v11261_v11 = vrot.slane %v24489_v58, %v16681_v42  ;;  %24490 = vst [vmem:[#allocation162_spill] sm:$0xff] %v20808_v59  ;;  %v20810_v28 = vpop.permute.xlu0 %13125 }
 0x36f   :  { %v20800_v32 = vcombine.low %v7333_v9, %v7340_v54  ;;  %v20802_v45 = vcombine.low %v7347_v7, %v7354_v63  ;;  %v20804_v27 = vcombine.low %v7263_v2, %v7270_v16  ;;  %v20806_v49 = vcombine.low %v7305_v12, %v7312_v62  ;;  %13278 = vperm.xlu1 %15587, %v11041_v50   ;;  %v24494_v16 = vld [vmem:[#allocation59_spill] sm:$0xff] }
 0x370   :  { %24491 = vst [vmem:[#allocation158_spill] sm:$0xff] %v20810_v28  ;;  %v20812_v46 = vcombine.low %v7389_v20, %v7396_v41  ;;  %v20814_v55 = vcombine.low %v7403_v48, %v7410_v15  ;;  %v20816_v23 = vcombine.low %v7319_v56, %v7326_v17  ;;  %v13678_v58 = vadd.s32 4294967200, %v20228_v37  ;;  %v24495_v7 = vld [vmem:[#allocation159_spill] sm:$0xff]  ;;  %v24497_v41 = vld [vmem:[#allocation173_spill] sm:$0xff] }
 0x371   :  { %13311 = vperm.xlu0 %15586, %v11228_v6   ;;  %v20819_v9 = vcombine.low %v7361_v19, %v7368_v31  ;;  %v11075_v2 = vcombine.low %v11067_v4, %v11074_v60  ;;  %v11101_v54 = vrot.slane %v24494_v16, %v16681_v42  ;;  %v11108_v63 = vrot.slane %v24495_v7, %v16681_v42  ;;  %v24498_v6 = vld [vmem:[#allocation252_spill] sm:$0xff]  ;;  %v20839_v50 = vpop.permute.xlu1 %13098 }
 0x372   :  { %24492 = vst [vmem:[#allocation14_spill] sm:$0xff] %v20812_v46  ;;  %24493 = vst [vmem:[#allocation210_spill] sm:$0xff] %v20814_v55  ;;  %v20825_v12 = vcombine.low %v7375_v33, %v7382_v44  ;;  %v11262_v20 = vcombine.low %v11254_v24, %v11261_v11  ;;  %v11288_v62 = vrot.slane %v19741_v25, %v16681_v42  ;;  %v20841_v24 = vpop.permute.xlu0 %13131  ;;  %v24501_v25 = vld [vmem:[#allocation253_spill] sm:$0xff]  ;;  %v24502_v33 = vld [vmem:[#allocation12_spill] sm:$0xff] }
 0x373   :  { %v11295_v56 = vrot.slane %v24497_v41, %v16681_v42  ;;  %v7445_v31 = vrot.slane %v24498_v6, %v16603_v43  ;;  %v7452_v60 = vrot.slane %v24498_v6, %v16606_v21  ;;  %v7459_v19 = vrot.slane %v24498_v6, %v16615_v61  ;;  %24499 = vst [vmem:[#allocation63_spill] sm:$0xff] %v20839_v50  ;;  %v24504_v7 = vld [vmem:[#allocation56_spill] sm:$0xff] }
 0x374   :  { %24496 = vst [vmem:[#allocation226_spill] sm:$0xff] %v20825_v12  ;;  %v7466_v17 = vrot.slane %v24498_v6, %v16618_v5  ;;  %13284 = vperm.xlu1 %15587, %v11075_v2   ;;  %24500 = vst [vmem:[#allocation143_spill] sm:$0xff] %v20841_v24  ;;  %v7417_v4 = vrot.slane %v24501_v25, %v16603_v43  ;;  %v7424_v48 = vrot.slane %v24501_v25, %v16606_v21  ;;  %v24503_v2 = vld [vmem:[#allocation163_spill] sm:$0xff]  ;;  %v24505_v24 = vld [vmem:[#allocation28_spill] sm:$0xff] }
 0x375   :  { %v7431_v15 = vrot.slane %v24501_v25, %v16615_v61  ;;  %v7438_v10 = vrot.slane %v24501_v25, %v16618_v5  ;;  %13317 = vperm.xlu0 %15586, %v11262_v20   ;;  %v7501_v44 = vrot.slane %v24502_v33, %v16603_v43  ;;  %v11109_v11 = vcombine.low %v11101_v54, %v11108_v63  ;;  %v24506_v25 = vld [vmem:[#allocation239_spill] sm:$0xff]  ;;  %v24507_v63 = vld [vmem:[#allocation89_spill] sm:$0xff]  ;;  %v20871_v55 = vpop.permute.xlu1 %13104 }
 0x376   :  { %v11135_v16 = vrot.slane %v24503_v2, %v16681_v42  ;;  %v11142_v41 = vrot.slane %v24504_v7, %v16681_v42  ;;  %v7508_v6 = vrot.slane %v24502_v33, %v16606_v21  ;;  %v11296_v50 = vcombine.low %v11288_v62, %v11295_v56  ;;  %24508 = vst [vmem:[#allocation82_spill] sm:$0xff] %v20871_v55  ;;  %v20873_v62 = vpop.permute.xlu0 %13137  ;;  %v24513_v55 = vld [vmem:[#allocation237_spill] sm:$0xff] }
 0x377   :  { %v11322_v59 = vrot.slane %v24505_v24, %v16681_v42  ;;  %v11329_v20 = vrot.slane %v24506_v25, %v16681_v42  ;;  %v7515_v28 = vrot.slane %v24502_v33, %v16615_v61  ;;  %v7522_v54 = vrot.slane %v24502_v33, %v16618_v5  ;;  %24509 = vst [vmem:[#allocation227_spill] sm:$0xff] %v20873_v62  ;;  %v24514_v62 = vld [vmem:[#allocation230_spill] sm:$0xff] }
 0x378   :  { %v7473_v2 = vrot.slane %v24507_v63, %v16603_v43  ;;  %v7480_v7 = vrot.slane %v24507_v63, %v16606_v21  ;;  %13290 = vperm.xlu1 %15587, %v11109_v11   ;;  %v20875_v56 = vcombine.low %v7445_v31, %v7452_v60  ;;  %v20877_v24 = vcombine.low %v7459_v19, %v7466_v17  ;;  %v24516_v17 = vld [vmem:[#allocation179_spill] sm:$0xff] }
 0x379   :  { %v7487_v25 = vrot.slane %v24507_v63, %v16615_v61  ;;  %v7494_v33 = vrot.slane %v24507_v63, %v16618_v5  ;;  %13323 = vperm.xlu0 %15586, %v11296_v50   ;;  %v20884_v46 = vsub.s32 %v13678_v58, %v24334_v57  ;;  %v11143_v12 = vcombine.low %v11135_v16, %v11142_v41 }
 0x37a   :  { %24510 = vst [vmem:[#allocation15_spill] sm:$0xff] %v20875_v56  ;;  %24511 = vst [vmem:[#allocation129_spill] sm:$0xff] %v20877_v24  ;;  %v11169_v11 = vrot.slane %v24513_v55, %v16681_v42  ;;  %v11176_v31 = vrot.slane %v24514_v62, %v16681_v42  ;;  %v20890_v60 = vcombine.low %v7417_v4, %v7424_v48  ;;  %v24517_v56 = vld [vmem:[#allocation30_spill] sm:$0xff]  ;;  %v20904_v55 = vpop.permute.xlu1 %13110  ;;  %v20906_v4 = vpop.permute.xlu0 %13143 }
 0x37b   :  { %24512 = vst [vmem:[#allocation233_spill] sm:$0xff] %v20884_v46  ;;  %v11330_v19 = vcombine.low %v11322_v59, %v11329_v20  ;;  %v11356_v24 = vrot.slane %v24516_v17, %v16681_v42  ;;  %v11363_v63 = vrot.slane %v24517_v56, %v16681_v42  ;;  %v20896_v50 = vcombine.low %v7501_v44, %v7508_v6  ;;  %v24524_v59 = vld [vmem:[#allocation147_spill] sm:$0xff]  ;;  %v24526_v44 = vld [vmem:[#allocation234_spill] sm:$0xff]  ;;  %v24528_v56 = vld [vmem:[#allocation140_spill] sm:$0xff] }
 0x37c   :  { %24515 = vst [vmem:[#allocation144_spill] sm:$0xff] %v20890_v60  ;;  %v20898_v58 = vcombine.low %v7515_v28, %v7522_v54  ;;  %v20900_v16 = vcombine.low %v7431_v15, %v7438_v10  ;;  %v20902_v41 = vcombine.low %v7473_v2, %v7480_v7  ;;  %24522 = vst [vmem:[#allocation235_spill] sm:$0xff] %v20904_v55  ;;  %13296 = vperm.xlu1 %15587, %v11143_v12   ;;  %v24527_v6 = vld [vmem:[#allocation66_spill] sm:$0xff] }
 0x37d   :  { %24518 = vst [vmem:[#allocation83_spill] sm:$0xff] %v20896_v50  ;;  %24523 = vst [vmem:[#allocation59_spill] sm:$0xff] %v20906_v4  ;;  %v7557_v48 = vrot.slane %v24524_v59, %v16603_v43  ;;  %v7564_v20 = vrot.slane %v24524_v59, %v16606_v21  ;;  %v20912_v62 = vcombine.low %v7487_v25, %v7494_v33  ;;  %v13692_v28 = vadd.s32 4294967184, %v20228_v37  ;;  %v24529_v37 = vld [vmem:[#allocation142_spill] sm:$0xff] }
 0x37e   :  { %24519 = vst [vmem:[#allocation229_spill] sm:$0xff] %v20898_v58  ;;  %24520 = vst [vmem:[#allocation220_spill] sm:$0xff] %v20900_v16  ;;  %13329 = vperm.xlu0 %15586, %v11330_v19   ;;  %v7571_v15 = vrot.slane %v24524_v59, %v16615_v61  ;;  %v11177_v10 = vcombine.low %v11169_v11, %v11176_v31  ;;  %v11203_v12 = vrot.slane %v24526_v44, %v16681_v42  ;;  %v24530_v19 = vld [vmem:[#allocation90_spill] sm:$0xff]  ;;  %v24536_v58 = vld [vmem:[#allocation236_spill] sm:$0xff] }
 0x37f   :  { %24521 = vst [vmem:[#allocation65_spill] sm:$0xff] %v20902_v41  ;;  %24525 = vst [vmem:[#allocation159_spill] sm:$0xff] %v20912_v62  ;;  %v11210_v54 = vrot.slane %v24527_v6, %v16681_v42  ;;  %v7578_v2 = vrot.slane %v24524_v59, %v16618_v5  ;;  %v11364_v7 = vcombine.low %v11356_v24, %v11363_v63  ;;  %v20935_v59 = vpop.permute.xlu1 %13116  ;;  %v20937_v24 = vpop.permute.xlu0 %13149  ;;  %v24533_v63 = vld [vmem:[#allocation166_spill] sm:$0xff] }
 0x380   :  { %v11390_v25 = vrot.slane %v24528_v56, %v16681_v42  ;;  %v11397_v33 = vrot.slane %v24529_v37, %v16681_v42  ;;  %v7529_v17 = vrot.slane %v24530_v19, %v16603_v43  ;;  %v7536_v11 = vrot.slane %v24530_v19, %v16606_v21  ;;  %24531 = vst [vmem:[#allocation173_spill] sm:$0xff] %v20935_v59 }
 0x381   :  { %v7543_v31 = vrot.slane %v24530_v19, %v16615_v61  ;;  %v7550_v44 = vrot.slane %v24530_v19, %v16618_v5  ;;  %13302 = vperm.xlu1 %15587, %v11177_v10   ;;  %24532 = vst [vmem:[#allocation252_spill] sm:$0xff] %v20937_v24  ;;  %v7613_v6 = vrot.slane %v24533_v63, %v16603_v43  ;;  %v24534_v19 = vld [vmem:[#allocation95_spill] sm:$0xff]  ;;  %v24535_v10 = vld [vmem:[#allocation133_spill] sm:$0xff] }
 0x382   :  { %v7620_v56 = vrot.slane %v24533_v63, %v16606_v21  ;;  %v7627_v37 = vrot.slane %v24533_v63, %v16615_v61  ;;  %v7634_v55 = vrot.slane %v24533_v63, %v16618_v5  ;;  %13335 = vperm.xlu0 %15586, %v11364_v7   ;;  %v7585_v4 = vrot.slane %v24534_v19, %v16603_v43 }
 0x383   :  { %v11211_v59 = vcombine.low %v11203_v12, %v11210_v54  ;;  %v11237_v24 = vrot.slane %v24535_v10, %v16681_v42  ;;  %v11244_v50 = vrot.slane %v24536_v58, %v16681_v42  ;;  %v7592_v62 = vrot.slane %v24534_v19, %v16606_v21  ;;  %v20968_v58 = vpop.permute.xlu1 %13122  ;;  %v20970_v10 = vpop.permute.xlu0 %13155 }
 0x384   :  { %v11398_v41 = vcombine.low %v11390_v25, %v11397_v33  ;;  %v11424_v16 = vrot.slane %v19895_v14, %v16681_v42  ;;  %v11431_v7 = vrot.slane %v19901_v13, %v16681_v42  ;;  %v20959_v63 = vcombine.low %v7557_v48, %v7564_v20  ;;  %24541 = vst [vmem:[#allocation28_spill] sm:$0xff] %v20968_v58 }
 0x385   :  { %v20961_v60 = vcombine.low %v7571_v15, %v7578_v2  ;;  %v20963_v12 = vcombine.low %v7529_v17, %v7536_v11  ;;  %v20966_v54 = vsub.s32 %v13692_v28, %v24334_v57  ;;  %13308 = vperm.xlu1 %15587, %v11211_v59   ;;  %24542 = vst [vmem:[#allocation239_spill] sm:$0xff] %v20970_v10  ;;  %v24544_v28 = vld [vmem:[#allocation110_spill] sm:$0xff] }
 0x386   :  { %24537 = vst [vmem:[#allocation253_spill] sm:$0xff] %v20959_v63  ;;  %v20972_v25 = vcombine.low %v7613_v6, %v7620_v56  ;;  %v20974_v14 = vcombine.low %v7543_v31, %v7550_v44  ;;  %v7599_v13 = vrot.slane %v24534_v19, %v16615_v61  ;;  %v7606_v48 = vrot.slane %v24534_v19, %v16618_v5  ;;  %v24545_v2 = vld [vmem:[#allocation238_spill] sm:$0xff] }
 0x387   :  { %24538 = vst [vmem:[#allocation12_spill] sm:$0xff] %v20961_v60  ;;  %24539 = vst [vmem:[#allocation163_spill] sm:$0xff] %v20963_v12  ;;  %13341 = vperm.xlu0 %15586, %v11398_v41   ;;  %v20980_v20 = vcombine.low %v7627_v37, %v7634_v55  ;;  %v11245_v57 = vcombine.low %v11237_v24, %v11244_v50  ;;  %v11271_v15 = vrot.slane %v24544_v28, %v16681_v42  ;;  %v24546_v41 = vld [vmem:[#allocation96_spill] sm:$0xff]  ;;  %v24550_v37 = vld [vmem:[#allocation102_spill] sm:$0xff] }
 0x388   :  { %24540 = vst [vmem:[#allocation56_spill] sm:$0xff] %v20966_v54  ;;  %24543 = vst [vmem:[#allocation89_spill] sm:$0xff] %v20974_v14  ;;  %v11278_v33 = vrot.slane %v24545_v2, %v16681_v42  ;;  %v20986_v17 = vcombine.low %v7585_v4, %v7592_v62  ;;  %v11432_v11 = vcombine.low %v11424_v16, %v11431_v7  ;;  %v21000_v62 = vpop.permute.xlu1 %13128  ;;  %v21002_v16 = vpop.permute.xlu0 %13161  ;;  %v24552_v2 = vld [vmem:[#allocation31_spill] sm:$0xff]  ;;  %v24556_v60 = vld [vmem:[#allocation128_spill] sm:$0xff] }
 0x389   :  { %v11475_v31 = vrot.slane %v19983_v1, %v16681_v42  ;;  %v11482_v44 = vrot.slane %v19985_v18, %v16681_v42  ;;  %v7669_v55 = vrot.slane %v24546_v41, %v16603_v43  ;;  %v7676_v50 = vrot.slane %v24546_v41, %v16606_v21  ;;  %24547 = vst [vmem:[#allocation237_spill] sm:$0xff] %v21000_v62  ;;  %v24549_v1 = vld [vmem:[#allocation97_spill] sm:$0xff] }
 0x38a   :  { %v7683_v59 = vrot.slane %v24546_v41, %v16615_v61  ;;  %v7690_v4 = vrot.slane %v24546_v41, %v16618_v5  ;;  %13314 = vperm.xlu1 %15587, %v11245_v57   ;;  %24548 = vst [vmem:[#allocation230_spill] sm:$0xff] %v21002_v16  ;;  %v7641_v18 = vrot.slane %v24549_v1, %v16603_v43  ;;  %v24551_v57 = vld [vmem:[#allocation178_spill] sm:$0xff] }
 0x38b   :  { %v7648_v24 = vrot.slane %v24549_v1, %v16606_v21  ;;  %v7655_v6 = vrot.slane %v24549_v1, %v16615_v61  ;;  %v7662_v56 = vrot.slane %v24549_v1, %v16618_v5  ;;  %13347 = vperm.xlu0 %15586, %v11432_v11   ;;  %v7725_v19 = vrot.slane %v24550_v37, %v16603_v43 }
 0x38c   :  { %v11279_v7 = vcombine.low %v11271_v15, %v11278_v33  ;;  %v11305_v28 = vrot.slane %v24551_v57, %v16681_v42  ;;  %v11312_v41 = vrot.slane %v24552_v2, %v16681_v42  ;;  %v7732_v16 = vrot.slane %v24550_v37, %v16606_v21  ;;  %v24553_v33 = vld [vmem:[#allocation254_spill] sm:$0xff]  ;;  %v21032_v58 = vpop.permute.xlu1 %13134 }
 0x38d   :  { %v11483_v10 = vcombine.low %v11475_v31, %v11482_v44  ;;  %v11509_v62 = vrot.slane %v20001_v52, %v16681_v42  ;;  %v11516_v11 = vrot.slane %v20003_v30, %v16681_v42  ;;  %v7739_v1 = vrot.slane %v24550_v37, %v16615_v61  ;;  %24554 = vst [vmem:[#allocation179_spill] sm:$0xff] %v21032_v58  ;;  %v21034_v31 = vpop.permute.xlu0 %13167  ;;  %v24557_v58 = vld [vmem:[#allocation69_spill] sm:$0xff] }
 0x38e   :  { %v7746_v15 = vrot.slane %v24550_v37, %v16618_v5  ;;  %v7697_v57 = vrot.slane %v24553_v33, %v16603_v43  ;;  %v7704_v2 = vrot.slane %v24553_v33, %v16606_v21  ;;  %13320 = vperm.xlu1 %15587, %v11279_v7   ;;  %24555 = vst [vmem:[#allocation30_spill] sm:$0xff] %v21034_v31 }
 0x38f   :  { %v21036_v52 = vcombine.low %v7669_v55, %v7676_v50  ;;  %v21038_v30 = vcombine.low %v7683_v59, %v7690_v4  ;;  %v21040_v44 = vcombine.low %v7599_v13, %v7606_v48  ;;  %v21042_v14 = vcombine.low %v7641_v18, %v7648_v24  ;;  %13356 = vperm.xlu0 %15586, %v11483_v10  }
 0x390   :  { %v21044_v37 = vcombine.low %v7655_v6, %v7662_v56  ;;  %v11313_v12 = vcombine.low %v11305_v28, %v11312_v41  ;;  %v11339_v63 = vrot.slane %v24556_v60, %v16681_v42  ;;  %v11346_v7 = vrot.slane %v24557_v58, %v16681_v42  ;;  %v21064_v58 = vpop.permute.xlu1 %13140  ;;  %v24561_v6 = vld [vmem:[#allocation153_spill] sm:$0xff] }
 0x391   :  { %v7711_v55 = vrot.slane %v24553_v33, %v16615_v61  ;;  %v11517_v50 = vcombine.low %v11509_v62, %v11516_v11  ;;  %v11543_v13 = vrot.slane %v20065_v22, %v16681_v42  ;;  %v11550_v48 = vrot.slane %v20067_v35, %v16681_v42  ;;  %24558 = vst [vmem:[#allocation147_spill] sm:$0xff] %v21064_v58  ;;  %v21066_v18 = vpop.permute.xlu0 %13173  ;;  %v24560_v62 = vld [vmem:[#allocation105_spill] sm:$0xff] }
 0x392   :  { %v21056_v10 = vcombine.low %v7725_v19, %v7732_v16  ;;  %v21058_v59 = vcombine.low %v7739_v1, %v7746_v15  ;;  %v7718_v60 = vrot.slane %v24553_v33, %v16618_v5  ;;  %v21062_v4 = vcombine.low %v7697_v57, %v7704_v2  ;;  %13326 = vperm.xlu1 %15587, %v11313_v12   ;;  %v24562_v12 = vld [vmem:[#allocation9_spill] sm:$0xff]  ;;  %v24563_v57 = vld [vmem:[#allocation256_spill] sm:$0xff] }
 0x393   :  { %24559 = vst [vmem:[#allocation234_spill] sm:$0xff] %v21066_v18  ;;  %v7781_v22 = vrot.slane %v24560_v62, %v16603_v43  ;;  %v7788_v35 = vrot.slane %v24560_v62, %v16606_v21  ;;  %v7795_v16 = vrot.slane %v24560_v62, %v16615_v61  ;;  %v7802_v24 = vrot.slane %v24560_v62, %v16618_v5 }
 0x394   :  { %13362 = vperm.xlu0 %15586, %v11517_v50   ;;  %v7753_v56 = vrot.slane %v24561_v6, %v16603_v43  ;;  %v11347_v19 = vcombine.low %v11339_v63, %v11346_v7  ;;  %v11373_v28 = vrot.slane %v24562_v12, %v16681_v42  ;;  %v11380_v41 = vrot.slane %v19889_v36, %v16681_v42  ;;  %v21096_v50 = vpop.permute.xlu1 %13146 }
 0x395   :  { %v7760_v11 = vrot.slane %v24561_v6, %v16606_v21  ;;  %v11551_v1 = vcombine.low %v11543_v13, %v11550_v48  ;;  %v11577_v15 = vrot.slane %v20079_v34, %v16681_v42  ;;  %v11584_v33 = vrot.slane %v20081_v29, %v16681_v42  ;;  %24564 = vst [vmem:[#allocation66_spill] sm:$0xff] %v21096_v50  ;;  %v21098_v13 = vpop.permute.xlu0 %13179  ;;  %v24566_v48 = vld [vmem:[#allocation257_spill] sm:$0xff]  ;;  %v24567_v50 = vld [vmem:[#allocation72_spill] sm:$0xff] }
 0x396   :  { %v7837_v2 = vrot.slane %v24563_v57, %v16603_v43  ;;  %v7844_v63 = vrot.slane %v24563_v57, %v16606_v21  ;;  %v7767_v7 = vrot.slane %v24561_v6, %v16615_v61  ;;  %v7774_v36 = vrot.slane %v24561_v6, %v16618_v5  ;;  %13332 = vperm.xlu1 %15587, %v11347_v19  }
 0x397   :  { %24565 = vst [vmem:[#allocation140_spill] sm:$0xff] %v21098_v13  ;;  %v7851_v34 = vrot.slane %v24563_v57, %v16615_v61  ;;  %v7858_v29 = vrot.slane %v24563_v57, %v16618_v5  ;;  %v7809_v62 = vrot.slane %v24566_v48, %v16603_v43  ;;  %v7816_v12 = vrot.slane %v24566_v48, %v16606_v21 }
 0x398   :  { %13368 = vperm.xlu0 %15586, %v11551_v1   ;;  %v21108_v58 = vcombine.low %v7711_v55, %v7718_v60  ;;  %v11381_v6 = vcombine.low %v11373_v28, %v11380_v41  ;;  %v11407_v19 = vrot.slane %v19903_v0, %v16681_v42  ;;  %v11414_v13 = vrot.slane %v24567_v50, %v16681_v42  ;;  %v21128_v28 = vpop.permute.xlu1 %13152  ;;  %v24574_v50 = vld [vmem:[#allocation111_spill] sm:$0xff] }
 0x399   :  { %v21114_v18 = vcombine.low %v7781_v22, %v7788_v35  ;;  %v11585_v31 = vcombine.low %v11577_v15, %v11584_v33  ;;  %v11611_v57 = vrot.slane %v20141_v40, %v16681_v42  ;;  %v11618_v54 = vrot.slane %v20143_v53, %v16681_v42  ;;  %24568 = vst [vmem:[#allocation142_spill] sm:$0xff] %v21128_v28  ;;  %v21130_v22 = vpop.permute.xlu0 %13185 }
 0x39a   :  { %v21120_v46 = vcombine.low %v7795_v16, %v7802_v24  ;;  %v21122_v55 = vcombine.low %v7753_v56, %v7760_v11  ;;  %v21124_v60 = vcombine.low %v7767_v7, %v7774_v36  ;;  %v7823_v0 = vrot.slane %v24566_v48, %v16615_v61  ;;  %13338 = vperm.xlu1 %15587, %v11381_v6   ;;  %v24572_v24 = vld [vmem:[#allocation17_spill] sm:$0xff]  ;;  %v24573_v11 = vld [vmem:[#allocation246_spill] sm:$0xff] }
 0x39b   :  { %24569 = vst [vmem:[#allocation90_spill] sm:$0xff] %v21130_v22  ;;  %v21132_v35 = vcombine.low %v7837_v2, %v7844_v63  ;;  %v21134_v40 = vcombine.low %v7851_v34, %v7858_v29  ;;  %v7830_v53 = vrot.slane %v24566_v48, %v16618_v5  ;;  %v21138_v16 = vcombine.low %v7809_v62, %v7816_v12  ;;  %v24585_v22 = vld [vmem:[#allocation75_spill] sm:$0xff] }
 0x39c   :  { %13374 = vperm.xlu0 %15586, %v11585_v31   ;;  %v7893_v56 = vrot.slane %v24572_v24, %v16603_v43  ;;  %v11415_v41 = vcombine.low %v11407_v19, %v11414_v13  ;;  %v11441_v1 = vrot.slane %v24573_v11, %v16681_v42  ;;  %v11448_v15 = vrot.slane %v19981_v47, %v16681_v42  ;;  %v21160_v34 = vpop.permute.xlu1 %13158 }
 0x39d   :  { %24570 = vst [vmem:[#allocation166_spill] sm:$0xff] %v21132_v35  ;;  %24571 = vst [vmem:[#allocation95_spill] sm:$0xff] %v21134_v40  ;;  %v7900_v33 = vrot.slane %v24572_v24, %v16606_v21  ;;  %v11619_v2 = vcombine.low %v11611_v57, %v11618_v54  ;;  %v11645_v63 = vrot.slane %v20161_v8, %v16681_v42  ;;  %v21162_v54 = vpop.permute.xlu0 %13191  ;;  %v24577_v8 = vld [vmem:[#allocation114_spill] sm:$0xff] }
 0x39e   :  { %v11652_v31 = vrot.slane %v20163_v51, %v16681_v42  ;;  %v7907_v7 = vrot.slane %v24572_v24, %v16615_v61  ;;  %v7914_v36 = vrot.slane %v24572_v24, %v16618_v5  ;;  %v7865_v13 = vrot.slane %v24574_v50, %v16603_v43  ;;  %24575 = vst [vmem:[#allocation133_spill] sm:$0xff] %v21160_v34 }
 0x39f   :  { %v7872_v47 = vrot.slane %v24574_v50, %v16606_v21  ;;  %13344 = vperm.xlu1 %15587, %v11415_v41   ;;  %24576 = vst [vmem:[#allocation236_spill] sm:$0xff] %v21162_v54  ;;  %v7949_v51 = vrot.slane %v24577_v8, %v16603_v43  ;;  %v7956_v29 = vrot.slane %v24577_v8, %v16606_v21 }
 0x3a0   :  { %v7879_v48 = vrot.slane %v24574_v50, %v16615_v61  ;;  %v7886_v62 = vrot.slane %v24574_v50, %v16618_v5  ;;  %13380 = vperm.xlu0 %15586, %v11619_v2   ;;  %v7963_v12 = vrot.slane %v24577_v8, %v16615_v61  ;;  %v11449_v6 = vcombine.low %v11441_v1, %v11448_v15  ;;  %v24578_v50 = vld [vmem:[#allocation20_spill] sm:$0xff]  ;;  %v21192_v15 = vpop.permute.xlu1 %13164 }
 0x3a1   :  { %v11492_v19 = vrot.slane %v19977_v38, %v16681_v42  ;;  %v11499_v57 = vrot.slane %v19979_v26, %v16681_v42  ;;  %v7970_v24 = vrot.slane %v24577_v8, %v16618_v5  ;;  %v11653_v41 = vcombine.low %v11645_v63, %v11652_v31  ;;  %24579 = vst [vmem:[#allocation110_spill] sm:$0xff] %v21192_v15  ;;  %v21194_v63 = vpop.permute.xlu0 %13197  ;;  %v24586_v15 = vld [vmem:[#allocation100_spill] sm:$0xff] }
 0x3a2   :  { %v11679_v11 = vrot.slane %v20203_v3, %v16681_v42  ;;  %v11686_v2 = vrot.slane %v20225_v39, %v16681_v42  ;;  %v7921_v34 = vrot.slane %v24578_v50, %v16603_v43  ;;  %v7928_v1 = vrot.slane %v24578_v50, %v16606_v21  ;;  %24580 = vst [vmem:[#allocation238_spill] sm:$0xff] %v21194_v63 }
 0x3a3   :  { %v7935_v38 = vrot.slane %v24578_v50, %v16615_v61  ;;  %v7942_v26 = vrot.slane %v24578_v50, %v16618_v5  ;;  %13350 = vperm.xlu1 %15587, %v11449_v6   ;;  %v21196_v3 = vcombine.low %v7893_v56, %v7900_v33  ;;  %v21198_v39 = vcombine.low %v7907_v7, %v7914_v36  ;;  %v24588_v33 = vld [vmem:[#allocation218_spill] sm:$0xff] }
 0x3a4   :  { %v21200_v31 = vcombine.low %v7823_v0, %v7830_v53  ;;  %v21202_v8 = vcombine.low %v7865_v13, %v7872_v47  ;;  %13386 = vperm.xlu0 %15586, %v11653_v41   ;;  %v21204_v28 = vcombine.low %v7879_v48, %v7886_v62  ;;  %v11500_v54 = vcombine.low %v11492_v19, %v11499_v57  ;;  %v24589_v0 = vld [vmem:[#allocation91_spill] sm:$0xff]  ;;  %v21224_v62 = vpop.permute.xlu1 %13170  ;;  %v24596_v57 = vld [vmem:[#allocation32_spill] sm:$0xff] }
 0x3a5   :  { %24581 = vst [vmem:[#allocation96_spill] sm:$0xff] %v21196_v3  ;;  %24582 = vst [vmem:[#allocation97_spill] sm:$0xff] %v21198_v39  ;;  %v11526_v50 = vrot.slane %v24585_v22, %v16681_v42  ;;  %v11533_v6 = vrot.slane %v24586_v15, %v16681_v42  ;;  %v21210_v40 = vcombine.low %v7949_v51, %v7956_v29  ;;  %v24591_v13 = vld [vmem:[#allocation23_spill] sm:$0xff]  ;;  %v21226_v51 = vpop.permute.xlu0 %13203  ;;  %v24599_v15 = vld [vmem:[#allocation88_spill] sm:$0xff] }
 0x3a6   :  { %24583 = vst [vmem:[#allocation102_spill] sm:$0xff] %v21202_v8  ;;  %24584 = vst [vmem:[#allocation178_spill] sm:$0xff] %v21204_v28  ;;  %v11687_v56 = vcombine.low %v11679_v11, %v11686_v2  ;;  %v11713_v7 = vrot.slane %v24588_v33, %v16681_v42  ;;  %v11720_v53 = vrot.slane %v24589_v0, %v16681_v42  ;;  %v24598_v2 = vld [vmem:[#allocation250_spill] sm:$0xff]  ;;  %v24600_v0 = vld [vmem:[#allocation47_spill] sm:$0xff] }
 0x3a7   :  { %24587 = vst [vmem:[#allocation31_spill] sm:$0xff] %v21210_v40  ;;  %v21216_v36 = vcombine.low %v7963_v12, %v7970_v24  ;;  %v8005_v47 = vrot.slane %v24591_v13, %v16603_v43  ;;  %v21220_v48 = vcombine.low %v7921_v34, %v7928_v1  ;;  %v21222_v22 = vcombine.low %v7935_v38, %v7942_v26  ;;  %v24609_v3 = vld [vmem:[#allocation93_spill] sm:$0xff]  ;;  %v24670_v8 = vld [vmem:[#allocation18_spill] sm:$0xff] }
 0x3a8   :  { %24594 = vst [vmem:[#allocation105_spill] sm:$0xff] %v21224_v62  ;;  %13359 = vperm.xlu1 %15587, %v11500_v54   ;;  %24595 = vst [vmem:[#allocation153_spill] sm:$0xff] %v21226_v51  ;;  %v8012_v29 = vrot.slane %v24591_v13, %v16606_v21  ;;  %v8019_v19 = vrot.slane %v24591_v13, %v16615_v61  ;;  %v8026_v12 = vrot.slane %v24591_v13, %v16618_v5  ;;  %v24597_v54 = vld [vmem:[#allocation157_spill] sm:$0xff]  ;;  %v24601_v13 = vld [vmem:[#allocation116_spill] sm:$0xff] }
 0x3a9   :  { %24590 = vst [vmem:[#allocation254_spill] sm:$0xff] %v21216_v36  ;;  %24592 = vst [vmem:[#allocation128_spill] sm:$0xff] %v21220_v48  ;;  %v7977_v34 = vrot.slane %v24596_v57, %v16603_v43  ;;  %13392 = vperm.xlu0 %15586, %v11687_v56   ;;  %v7984_v24 = vrot.slane %v24596_v57, %v16606_v21  ;;  %v11534_v41 = vcombine.low %v11526_v50, %v11533_v6  ;;  %v24606_v36 = vld [vmem:[#allocation81_spill] sm:$0xff]  ;;  %v24608_v48 = vld [vmem:[#allocation52_spill] sm:$0xff] }
 0x3aa   :  { %24593 = vst [vmem:[#allocation69_spill] sm:$0xff] %v21222_v22  ;;  %v11560_v11 = vrot.slane %v24597_v54, %v16681_v42  ;;  %v11567_v1 = vrot.slane %v24598_v2, %v16681_v42  ;;  %v7991_v38 = vrot.slane %v24596_v57, %v16615_v61  ;;  %v11721_v26 = vcombine.low %v11713_v7, %v11720_v53  ;;  %v21256_v2 = vpop.permute.xlu1 %13176  ;;  %v21258_v7 = vpop.permute.xlu0 %13209 }
 0x3ab   :  { %v11730_v33 = vrot.slane %v24599_v15, %v16681_v42  ;;  %v11737_v56 = vrot.slane %v24600_v0, %v16681_v42  ;;  %v8061_v51 = vrot.slane %v24601_v13, %v16603_v43  ;;  %v8068_v50 = vrot.slane %v24601_v13, %v16606_v21  ;;  %24602 = vst [vmem:[#allocation9_spill] sm:$0xff] %v21256_v2  ;;  %v24604_v15 = vld [vmem:[#allocation117_spill] sm:$0xff] }
 0x3ac   :  { %v8075_v6 = vrot.slane %v24601_v13, %v16615_v61  ;;  %v7998_v54 = vrot.slane %v24596_v57, %v16618_v5  ;;  %13365 = vperm.xlu1 %15587, %v11534_v41   ;;  %24603 = vst [vmem:[#allocation256_spill] sm:$0xff] %v21258_v7  ;;  %v8082_v53 = vrot.slane %v24601_v13, %v16618_v5  ;;  %v24605_v41 = vld [vmem:[#allocation251_spill] sm:$0xff] }
 0x3ad   :  { %v8033_v0 = vrot.slane %v24604_v15, %v16603_v43  ;;  %v8040_v63 = vrot.slane %v24604_v15, %v16606_v21  ;;  %v8047_v62 = vrot.slane %v24604_v15, %v16615_v61  ;;  %13398 = vperm.xlu0 %15586, %v11721_v26   ;;  %v8054_v57 = vrot.slane %v24604_v15, %v16618_v5  ;;  %v14978_v26 = vld [vmem:[%s23128_s1 + $0xf8] sm:$0xff] }
 0x3ae   :  { %v11568_v2 = vcombine.low %v11560_v11, %v11567_v1  ;;  %v11594_v7 = vrot.slane %v24605_v41, %v16681_v42  ;;  %v11601_v13 = vrot.slane %v24606_v36, %v16681_v42  ;;  %v21274_v40 = vcombine.low %v8005_v47, %v8012_v29  ;;  %v15010_v11 = vld [vmem:[%s23128_s1 + $0x1f8] sm:$0xff]  ;;  %v21292_v29 = vpop.permute.xlu1 %13182  ;;  %15438 = vmatprep.subr.mxu0 %v14978_v26  ;;  %v15009_v26 = vld [vmem:[%s23128_s1 + $0x1f0] sm:$0xff] }
 0x3af   :  { %v11738_v22 = vcombine.low %v11730_v33, %v11737_v56  ;;  %v11764_v39 = vrot.slane %v24608_v48, %v16681_v42  ;;  %v11771_v28 = vrot.slane %v24609_v3, %v16681_v42  ;;  %v21286_v1 = vcombine.low %v8019_v19, %v8026_v12  ;;  %24613 = vst [vmem:[#allocation111_spill] sm:$0xff] %v21292_v29  ;;  %v21294_v48 = vpop.permute.xlu0 %13215 }
 0x3b0   :  { %24607 = vst [vmem:[#allocation257_spill] sm:$0xff] %v21274_v40  ;;  %v21288_v36 = vcombine.low %v7977_v34, %v7984_v24  ;;  %v21290_v47 = vcombine.low %v7991_v38, %v7998_v54  ;;  %13371 = vperm.xlu1 %15587, %v11568_v2   ;;  %24614 = vst [vmem:[#allocation114_spill] sm:$0xff] %v21294_v48  ;;  %v21296_v3 = vcombine.low %v8061_v51, %v8068_v50  ;;  %v24615_v34 = vld [vmem:[#allocation244_spill] sm:$0xff]  ;;  %v24616_v38 = vld [vmem:[#allocation86_spill] sm:$0xff] }
 0x3b1   :  { %24610 = vst [vmem:[#allocation72_spill] sm:$0xff] %v21286_v1  ;;  %v21298_v33 = vcombine.low %v8075_v6, %v8082_v53  ;;  %v21300_v56 = vcombine.low %v8033_v0, %v8040_v63  ;;  %13401 = vperm.xlu0 %15586, %v11738_v22   ;;  %15473 = vmatprep.subr.mxu1 %v15010_v11  ;;  %v24617_v2 = vld [vmem:[#allocation36_spill] sm:$0xff]  ;;  %v24618_v50 = vld [vmem:[#allocation241_spill] sm:$0xff]  ;;  %v24619_v63 = vld [vmem:[#allocation206_spill] sm:$0xff] }
 0x3b2   :  { %24611 = vst [vmem:[#allocation17_spill] sm:$0xff] %v21288_v36  ;;  %24612 = vst [vmem:[#allocation246_spill] sm:$0xff] %v21290_v47  ;;  %v21302_v19 = vcombine.low %v8047_v62, %v8054_v57  ;;  %v11602_v12 = vcombine.low %v11594_v7, %v11601_v13  ;;  %v11628_v24 = vrot.slane %v24615_v34, %v16681_v42  ;;  %v14962_v62 = vld [vmem:[%s23128_s1 + $0x78] sm:$0xff]  ;;  %v14977_v53 = vld [vmem:[%s23128_s1 + $0xf0] sm:$0xff]  ;;  %v21329_v41 = vpop.permute.xlu1 %13188 }
 0x3b3   :  { %v11635_v54 = vrot.slane %v24616_v38, %v16681_v42  ;;  %v8117_v15 = vrot.slane %v24617_v2, %v16603_v43  ;;  %v11772_v51 = vcombine.low %v11764_v39, %v11771_v28  ;;  %v12036_v6 = vrot.slane %v24618_v50, %v16681_v42  ;;  %v14994_v7 = vld [vmem:[%s23128_s1 + $0x178] sm:$0xff]  ;;  %v24620_v39 = vld [vmem:[#allocation188_spill] sm:$0xff]  ;;  %24621 = vst [vmem:[#allocation20_spill] sm:$0xff] %v21329_v41  ;;  %v21331_v13 = vpop.permute.xlu0 %13221  ;;  %v24623_v41 = vld [vmem:[#allocation87_spill] sm:$0xff] }
 0x3b4   :  { %v12043_v22 = vrot.slane %v24619_v63, %v16681_v42  ;;  %v8124_v28 = vrot.slane %v24617_v2, %v16606_v21  ;;  %v8089_v0 = vrot.slane %v24620_v39, %v16603_v43  ;;  %v8096_v57 = vrot.slane %v24620_v39, %v16606_v21  ;;  %13377 = vperm.xlu1 %15587, %v11602_v12   ;;  %v14961_v11 = vld [vmem:[%s23128_s1 + $0x70] sm:$0xff]  ;;  %v14976_v63 = vld [vmem:[%s23128_s1 + $0xe8] sm:$0xff]  ;;  %v24634_v36 = vld [vmem:[#allocation74_spill] sm:$0xff] }
 0x3b5   :  { %24622 = vst [vmem:[#allocation75_spill] sm:$0xff] %v21331_v13  ;;  %15439 = vmatpush3.msra.mxu0 %v14962_v62  ;;  %v14993_v34 = vld [vmem:[%s23128_s1 + $0x170] sm:$0xff]  ;;  %v8103_v12 = vrot.slane %v24620_v39, %v16615_v61  ;;  %v8110_v50 = vrot.slane %v24620_v39, %v16618_v5  ;;  %13407 = vperm.xlu0 %15586, %v11772_v51   ;;  %v24624_v1 = vld [vmem:[#allocation207_spill] sm:$0xff] }
 0x3b6   :  { %15474 = vmatpush3.msra.mxu1 %v14994_v7  ;;  %v11636_v62 = vcombine.low %v11628_v24, %v11635_v54  ;;  %v11662_v29 = vrot.slane %v24623_v41, %v16681_v42  ;;  %v11669_v40 = vrot.slane %v24624_v1, %v16681_v42  ;;  %15440 = vmatprep.subr.mxu0 %v14977_v53  ;;  %v15008_v38 = vld [vmem:[%s23128_s1 + $0x1e8] sm:$0xff]  ;;  %v14975_v53 = vld [vmem:[%s23128_s1 + $0xe0] sm:$0xff] }
 0x3b7   :  { %15475 = vmatprep.subr.mxu1 %v15009_v26  ;;  %v12044_v39 = vcombine.low %v12036_v6, %v12043_v22  ;;  %v12308_v51 = vrot.slane %v20972_v25, %v16681_v42  ;;  %v12315_v7 = vrot.slane %v20980_v20, %v16681_v42  ;;  %15441 = vmatpush3.msra.mxu0 %v14961_v11  ;;  %v14960_v24 = vld [vmem:[%s23128_s1 + $0x68] sm:$0xff]  ;;  %v21374_v25 = vpop.permute.xlu1 %13194  ;;  %v21376_v20 = vpop.permute.xlu0 %13227  ;;  %v15007_v41 = vld [vmem:[%s23128_s1 + $0x1e0] sm:$0xff] }
 0x3b8   :  { %15476 = vmatpush3.msra.mxu1 %v14993_v34  ;;  %v14992_v1 = vld [vmem:[%s23128_s1 + $0x168] sm:$0xff]  ;;  %v8138_v54 = vrot.slane %v24617_v2, %v16618_v5  ;;  %v21370_v6 = vcombine.low %v8117_v15, %v8124_v28  ;;  %v21372_v22 = vcombine.low %v8089_v0, %v8096_v57  ;;  %24625 = vst [vmem:[#allocation100_spill] sm:$0xff] %v21374_v25  ;;  %24626 = vst [vmem:[#allocation218_spill] sm:$0xff] %v21376_v20  ;;  %v24627_v26 = vld [vmem:[#allocation122_spill] sm:$0xff] }
 0x3b9   :  { %13383 = vperm.xlu1 %15587, %v11636_v62   ;;  %15442 = vmatprep.subr.mxu0 %v14976_v63  ;;  %v8173_v15 = vrot.slane %v24627_v26, %v16603_v43  ;;  %v8180_v28 = vrot.slane %v24627_v26, %v16606_v21  ;;  %v21388_v0 = vcombine.low %v8103_v12, %v8110_v50  ;;  %v14959_v57 = vld [vmem:[%s23128_s1 + $0x60] sm:$0xff]  ;;  %v24628_v34 = vld [vmem:[#allocation249_spill] sm:$0xff] }
 0x3ba   :  { %13455 = vperm.xlu0 %15586, %v12044_v39   ;;  %15477 = vmatprep.subr.mxu1 %v15008_v38  ;;  %v11670_v11 = vcombine.low %v11662_v29, %v11669_v40  ;;  %v11696_v63 = vrot.slane %v24628_v34, %v16681_v42  ;;  %v24629_v62 = vld [vmem:[#allocation19_spill] sm:$0xff]  ;;  %v12316_v50 = vcombine.low %v12308_v51, %v12315_v7  ;;  %v14974_v40 = vld [vmem:[%s23128_s1 + $0xd8] sm:$0xff]  ;;  %v15005_v20 = vld [vmem:[%s23128_s1 + $0x1d0] sm:$0xff] }
 0x3bb   :  { %v11703_v25 = vrot.slane %v24629_v62, %v16681_v42  ;;  %15443 = vmatpush3.msra.mxu0 %v14960_v24  ;;  %15478 = vmatpush3.msra.mxu1 %v14992_v1  ;;  %v14991_v12 = vld [vmem:[%s23128_s1 + $0x160] sm:$0xff]  ;;  %v12580_v38 = vrot.slane %v21296_v3, %v16681_v42  ;;  %v12587_v39 = vrot.slane %v21298_v33, %v16681_v42  ;;  %v15006_v29 = vld [vmem:[%s23128_s1 + $0x1d8] sm:$0xff]  ;;  %v21416_v33 = vpop.permute.xlu1 %13200  ;;  %v21418_v1 = vpop.permute.xlu0 %13233 }
 0x3bc   :  { %15444 = vmatprep.subr.mxu0 %v14975_v53  ;;  %15479 = vmatprep.subr.mxu1 %v15007_v41  ;;  %v8187_v24 = vrot.slane %v24627_v26, %v16615_v61  ;;  %v8194_v51 = vrot.slane %v24627_v26, %v16618_v5  ;;  %v24630_v3 = vld [vmem:[#allocation123_spill] sm:$0xff]  ;;  %24631 = vst [vmem:[#allocation91_spill] sm:$0xff] %v21416_v33  ;;  %24632 = vst [vmem:[#allocation23_spill] sm:$0xff] %v21418_v1  ;;  %v14958_v53 = vld [vmem:[%s23128_s1 + $0x58] sm:$0xff] }
 0x3bd   :  { %v8145_v7 = vrot.slane %v24630_v3, %v16603_v43  ;;  %13389 = vperm.xlu1 %15587, %v11670_v11   ;;  %15445 = vmatpush3.msra.mxu0 %v14959_v57  ;;  %v14990_v41 = vld [vmem:[%s23128_s1 + $0x158] sm:$0xff]  ;;  %v8152_v26 = vrot.slane %v24630_v3, %v16606_v21  ;;  %v8159_v34 = vrot.slane %v24630_v3, %v16615_v61  ;;  %v14973_v57 = vld [vmem:[%s23128_s1 + $0xd0] sm:$0xff]  ;;  %v24636_v13 = vld [vmem:[#allocation51_spill] sm:$0xff] }
 0x3be   :  { %v8166_v11 = vrot.slane %v24630_v3, %v16618_v5  ;;  %13503 = vperm.xlu0 %15586, %v12316_v50   ;;  %15480 = vmatpush3.msra.mxu1 %v14991_v12  ;;  %v11704_v62 = vcombine.low %v11696_v63, %v11703_v25  ;;  %v24633_v33 = vld [vmem:[#allocation73_spill] sm:$0xff]  ;;  %v11465_v1 = vrot.slane %v24634_v36, %v16681_v42  ;;  %v24635_v12 = vld [vmem:[#allocation203_spill] sm:$0xff] }
 0x3bf   :  { %v11458_v47 = vrot.slane %v24633_v33, %v16681_v42  ;;  %15446 = vmatprep.subr.mxu0 %v14974_v40  ;;  %15481 = vmatprep.subr.mxu1 %v15006_v29  ;;  %v12588_v3 = vcombine.low %v12580_v38, %v12587_v39  ;;  %v12053_v50 = vrot.slane %v24635_v12, %v16681_v42  ;;  %v14957_v25 = vld [vmem:[%s23128_s1 + $0x50] sm:$0xff]  ;;  %v21463_v29 = vpop.permute.xlu0 %13239  ;;  %v14972_v33 = vld [vmem:[%s23128_s1 + $0xc8] sm:$0xff] }
 0x3c0   :  { %v12060_v48 = vrot.slane %v24636_v13, %v16681_v42  ;;  %15447 = vmatpush3.msra.mxu0 %v14958_v53  ;;  %15482 = vmatpush3.msra.mxu1 %v14990_v41  ;;  %v14989_v36 = vld [vmem:[%s23128_s1 + $0x150] sm:$0xff]  ;;  %v24637_v63 = vrot.slane %v24617_v2, %v16615_v61  ;;  %v21457_v39 = vcombine.low %v8173_v15, %v8180_v28  ;;  %v21461_v13 = vpop.permute.xlu1 %13206  ;;  %v15004_v2 = vld [vmem:[%s23128_s1 + $0x1c8] sm:$0xff] }
 0x3c1   :  { %v21459_v40 = vcombine.low %v8187_v24, %v8194_v51  ;;  %24638 = vst [vmem:[#allocation32_spill] sm:$0xff] %v21461_v13  ;;  %13395 = vperm.xlu1 %15587, %v11704_v62   ;;  %24639 = vst [vmem:[#allocation157_spill] sm:$0xff] %v21463_v29  ;;  %15448 = vmatprep.subr.mxu0 %v14973_v57  ;;  %v21473_v28 = vcombine.low %v8145_v7, %v8152_v26  ;;  %v14956_v51 = vld [vmem:[%s23128_s1 + $0x48] sm:$0xff]  ;;  %v24641_v41 = vld [vmem:[#allocation165_spill] sm:$0xff] }
 0x3c2   :  { %v21455_v38 = vcombine.low %v24637_v63, %v8138_v54  ;;  %v24640_v54 = vld [vmem:[#allocation125_spill] sm:$0xff]  ;;  %v21475_v24 = vcombine.low %v8159_v34, %v8166_v11  ;;  %13551 = vperm.xlu0 %15586, %v12588_v3   ;;  %15483 = vmatprep.subr.mxu1 %v15005_v20  ;;  %v11466_v53 = vcombine.low %v11458_v47, %v11465_v1  ;;  %v24642_v62 = vld [vmem:[#allocation258_spill] sm:$0xff]  ;;  %v14988_v7 = vld [vmem:[%s23128_s1 + $0x148] sm:$0xff] }
 0x3c3   :  { %v8229_v15 = vrot.slane %v24640_v54, %v16603_v43  ;;  %v11747_v57 = vrot.slane %v24641_v41, %v16681_v42  ;;  %v11754_v12 = vrot.slane %v24642_v62, %v16681_v42  ;;  %15449 = vmatpush3.msra.mxu0 %v14957_v25  ;;  %15484 = vmatpush3.msra.mxu1 %v14989_v36  ;;  %v14971_v47 = vld [vmem:[%s23128_s1 + $0xc0] sm:$0xff]  ;;  %v21505_v3 = vpop.permute.xlu0 %13245  ;;  %v24645_v36 = vld [vmem:[#allocation29_spill] sm:$0xff] }
 0x3c4   :  { %v12061_v26 = vcombine.low %v12053_v50, %v12060_v48  ;;  %v12597_v20 = vrot.slane %v21372_v22, %v16681_v42  ;;  %v12604_v34 = vrot.slane %v21388_v0, %v16681_v42  ;;  %15450 = vmatprep.subr.mxu0 %v14972_v33  ;;  %15485 = vmatprep.subr.mxu1 %v15004_v2  ;;  %v15003_v1 = vld [vmem:[%s23128_s1 + $0x1c0] sm:$0xff]  ;;  %v21503_v0 = vpop.permute.xlu1 %13212  ;;  %v24647_v62 = vld [vmem:[#allocation137_spill] sm:$0xff] }
 0x3c5   :  { %v8236_v11 = vrot.slane %v24640_v54, %v16606_v21  ;;  %v8243_v48 = vrot.slane %v24640_v54, %v16615_v61  ;;  %v8250_v22 = vrot.slane %v24640_v54, %v16618_v5  ;;  %24643 = vst [vmem:[#allocation250_spill] sm:$0xff] %v21503_v0  ;;  %13353 = vperm.xlu1 %15587, %v11466_v53   ;;  %24644 = vst [vmem:[#allocation88_spill] sm:$0xff] %v21505_v3  ;;  %v14955_v50 = vld [vmem:[%s23128_s1 + $0x40] sm:$0xff]  ;;  %v14970_v54 = vld [vmem:[%s23128_s1 + $0xb8] sm:$0xff] }
 0x3c6   :  { %15451 = vmatpush3.msra.mxu0 %v14956_v51  ;;  %v14987_v25 = vld [vmem:[%s23128_s1 + $0x140] sm:$0xff]  ;;  %v8201_v63 = vrot.slane %v24645_v36, %v16603_v43  ;;  %v8208_v33 = vrot.slane %v24645_v36, %v16606_v21  ;;  %13458 = vperm.xlu0 %15586, %v12061_v26   ;;  %v11755_v51 = vcombine.low %v11747_v57, %v11754_v12  ;;  %v15002_v3 = vld [vmem:[%s23128_s1 + $0x1b8] sm:$0xff] }
 0x3c7   :  { %15486 = vmatpush3.msra.mxu1 %v14988_v7  ;;  %v24646_v53 = vld [vmem:[#allocation135_spill] sm:$0xff]  ;;  %v12026_v13 = vrot.slane %v24647_v62, %v16681_v42  ;;  %15452 = vmatprep.subr.mxu0 %v14971_v47  ;;  %v12605_v2 = vcombine.low %v12597_v20, %v12604_v34  ;;  %v24648_v7 = vld [vmem:[#allocation145_spill] sm:$0xff]  ;;  %v21539_v47 = vcombine.low %v8229_v15, %v8236_v11  ;;  %v24652_v11 = vld [vmem:[#allocation130_spill] sm:$0xff] }
 0x3c8   :  { %v12019_v41 = vrot.slane %v24646_v53, %v16681_v42  ;;  %15487 = vmatprep.subr.mxu1 %v15003_v1  ;;  %v12070_v26 = vrot.slane %v24648_v7, %v16681_v42  ;;  %v24649_v29 = vld [vmem:[#allocation49_spill] sm:$0xff]  ;;  %15453 = vmatpush3.msra.mxu0 %v14955_v50  ;;  %v21541_v1 = vcombine.low %v8243_v48, %v8250_v22  ;;  %v21545_v34 = vpop.permute.xlu1 %13218 }
 0x3c9   :  { %v12077_v0 = vrot.slane %v24649_v29, %v16681_v42  ;;  %15488 = vmatpush3.msra.mxu1 %v14987_v25  ;;  %v14954_v57 = vld [vmem:[%s23128_s1 + $0x38] sm:$0xff]  ;;  %v8222_v20 = vrot.slane %v24645_v36, %v16618_v5  ;;  %24650 = vst [vmem:[#allocation47_spill] sm:$0xff] %v21545_v34  ;;  %13404 = vperm.xlu1 %15587, %v11755_v51   ;;  %v21547_v29 = vpop.permute.xlu0 %13251  ;;  %v14969_v50 = vld [vmem:[%s23128_s1 + $0xb0] sm:$0xff] }
 0x3ca   :  { %v14986_v12 = vld [vmem:[%s23128_s1 + $0x138] sm:$0xff]  ;;  %24651 = vst [vmem:[#allocation116_spill] sm:$0xff] %v21547_v29  ;;  %15454 = vmatprep.subr.mxu0 %v14970_v54  ;;  %v15001_v15 = vld [vmem:[%s23128_s1 + $0x1b0] sm:$0xff]  ;;  %v8285_v48 = vrot.slane %v24652_v11, %v16603_v43  ;;  %v8292_v22 = vrot.slane %v24652_v11, %v16606_v21  ;;  %v21559_v25 = vcombine.low %v8201_v63, %v8208_v33  ;;  %v14999_v29 = vld [vmem:[%s23128_s1 + $0x1a0] sm:$0xff] }
 0x3cb   :  { %13554 = vperm.xlu0 %15586, %v12605_v2   ;;  %15489 = vmatprep.subr.mxu1 %v15002_v3  ;;  %v14953_v54 = vld [vmem:[%s23128_s1 + $0x30] sm:$0xff]  ;;  %v12027_v51 = vcombine.low %v12019_v41, %v12026_v13  ;;  %v12291_v53 = vrot.slane %v20986_v17, %v16681_v42  ;;  %v12298_v62 = vrot.slane %v21040_v44, %v16681_v42  ;;  %v14968_v17 = vld [vmem:[%s23128_s1 + $0xa8] sm:$0xff] }
 0x3cc   :  { %15455 = vmatpush3.msra.mxu0 %v14954_v57  ;;  %15490 = vmatpush3.msra.mxu1 %v14986_v12  ;;  %v14985_v63 = vld [vmem:[%s23128_s1 + $0x130] sm:$0xff]  ;;  %v12078_v33 = vcombine.low %v12070_v26, %v12077_v0  ;;  %v12614_v3 = vrot.slane %v21370_v6, %v16681_v42  ;;  %v12621_v2 = vrot.slane %v21455_v38, %v16681_v42  ;;  %v15000_v44 = vld [vmem:[%s23128_s1 + $0x1a8] sm:$0xff]  ;;  %v21587_v38 = vpop.permute.xlu1 %13224 }
 0x3cd   :  { %15456 = vmatprep.subr.mxu0 %v14969_v50  ;;  %15491 = vmatprep.subr.mxu1 %v15001_v15  ;;  %v8299_v13 = vrot.slane %v24652_v11, %v16615_v61  ;;  %v8306_v0 = vrot.slane %v24652_v11, %v16618_v5  ;;  %v24653_v6 = vld [vmem:[#allocation181_spill] sm:$0xff]  ;;  %24654 = vst [vmem:[#allocation117_spill] sm:$0xff] %v21587_v38  ;;  %v21589_v7 = vpop.permute.xlu0 %13257  ;;  %v14952_v26 = vld [vmem:[%s23128_s1 + $0x28] sm:$0xff]  ;;  %v14967_v11 = vld [vmem:[%s23128_s1 + $0xa0] sm:$0xff] }
 0x3ce   :  { %v8257_v41 = vrot.slane %v24653_v6, %v16603_v43  ;;  %13452 = vperm.xlu1 %15587, %v12027_v51   ;;  %24655 = vst [vmem:[#allocation251_spill] sm:$0xff] %v21589_v7  ;;  %15457 = vmatpush3.msra.mxu0 %v14953_v54  ;;  %v14984_v57 = vld [vmem:[%s23128_s1 + $0x128] sm:$0xff]  ;;  %v8264_v12 = vrot.slane %v24653_v6, %v16606_v21 }
 0x3cf   :  { %v8271_v50 = vrot.slane %v24653_v6, %v16615_v61  ;;  %v8278_v15 = vrot.slane %v24653_v6, %v16618_v5  ;;  %13461 = vperm.xlu0 %15586, %v12078_v33   ;;  %15492 = vmatpush3.msra.mxu1 %v14985_v63  ;;  %v12299_v54 = vcombine.low %v12291_v53, %v12298_v62  ;;  %v24656_v63 = vld [vmem:[#allocation126_spill] sm:$0xff] }
 0x3d0   :  { %v12563_v51 = vrot.slane %v21300_v56, %v16681_v42  ;;  %v12570_v7 = vrot.slane %v21302_v19, %v16681_v42  ;;  %15458 = vmatprep.subr.mxu0 %v14968_v17  ;;  %15493 = vmatprep.subr.mxu1 %v15000_v44  ;;  %v12622_v6 = vcombine.low %v12614_v3, %v12621_v2  ;;  %v14951_v56 = vld [vmem:[%s23128_s1 + $0x20] sm:$0xff]  ;;  %v14966_v44 = vld [vmem:[%s23128_s1 + $0x98] sm:$0xff] }
 0x3d1   :  { %v12087_v33 = vrot.slane %v24656_v63, %v16681_v42  ;;  %v12094_v38 = vrot.slane %v20804_v27, %v16681_v42  ;;  %15459 = vmatpush3.msra.mxu0 %v14952_v26  ;;  %15494 = vmatpush3.msra.mxu1 %v14984_v57  ;;  %v14983_v19 = vld [vmem:[%s23128_s1 + $0x120] sm:$0xff]  ;;  %v21623_v53 = vcombine.low %v8285_v48, %v8292_v22  ;;  %v21632_v27 = vpop.permute.xlu1 %13230  ;;  %v21634_v17 = vpop.permute.xlu0 %13263  ;;  %v14998_v48 = vld [vmem:[%s23128_s1 + $0x198] sm:$0xff] }
 0x3d2   :  { %v21625_v62 = vcombine.low %v8299_v13, %v8306_v0  ;;  %v24657_v3 = vrot.slane %v24645_v36, %v16615_v61  ;;  %24658 = vst [vmem:[#allocation81_spill] sm:$0xff] %v21632_v27  ;;  %13500 = vperm.xlu1 %15587, %v12299_v54   ;;  %15460 = vmatprep.subr.mxu0 %v14967_v11  ;;  %v24659_v22 = vld [vmem:[#allocation182_spill] sm:$0xff]  ;;  %v24660_v57 = vld [vmem:[#allocation101_spill] sm:$0xff] }
 0x3d3   :  { %v21644_v36 = vcombine.low %v8257_v41, %v8264_v12  ;;  %13557 = vperm.xlu0 %15586, %v12622_v6   ;;  %15495 = vmatprep.subr.mxu1 %v14999_v29  ;;  %v14950_v0 = vld [vmem:[%s23128_s1 + $0x18] sm:$0xff]  ;;  %v12571_v26 = vcombine.low %v12563_v51, %v12570_v7  ;;  %v11781_v11 = vrot.slane %v24660_v57, %v16681_v42  ;;  %v14965_v7 = vld [vmem:[%s23128_s1 + $0x90] sm:$0xff] }
 0x3d4   :  { %v21630_v2 = vcombine.low %v24657_v3, %v8222_v20  ;;  %v21646_v20 = vcombine.low %v8271_v50, %v8278_v15  ;;  %v24661_v54 = vld [vmem:[#allocation161_spill] sm:$0xff]  ;;  %15461 = vmatpush3.msra.mxu0 %v14951_v56  ;;  %15496 = vmatpush3.msra.mxu1 %v14983_v19  ;;  %v12095_v12 = vcombine.low %v12087_v33, %v12094_v38  ;;  %v24663_v19 = vld [vmem:[#allocation199_spill] sm:$0xff] }
 0x3d5   :  { %v11788_v63 = vrot.slane %v24661_v54, %v16681_v42  ;;  %v14982_v41 = vld [vmem:[%s23128_s1 + $0x118] sm:$0xff]  ;;  %v12631_v29 = vrot.slane %v21473_v28, %v16681_v42  ;;  %v12638_v50 = vrot.slane %v21475_v24, %v16681_v42  ;;  %15462 = vmatprep.subr.mxu0 %v14966_v44  ;;  %15497 = vmatprep.subr.mxu1 %v14998_v48  ;;  %v14997_v15 = vld [vmem:[%s23128_s1 + $0x190] sm:$0xff]  ;;  %v21674_v24 = vpop.permute.xlu1 %13236  ;;  %v21676_v6 = vpop.permute.xlu0 %13269  ;;  %v14996_v38 = vld [vmem:[%s23128_s1 + $0x188] sm:$0xff] }
 0x3d6   :  { %v8362_v28 = vrot.slane %v24659_v22, %v16618_v5  ;;  %24662 = vst [vmem:[#allocation52_spill] sm:$0xff] %v21674_v24  ;;  %13548 = vperm.xlu1 %15587, %v12571_v26   ;;  %15463 = vmatpush3.msra.mxu0 %v14950_v0  ;;  %v14949_v33 = vld [vmem:[%s23128_s1 + $0x10] sm:$0xff]  ;;  %v8313_v3 = vrot.slane %v24663_v19, %v16603_v43  ;;  %v14964_v0 = vld [vmem:[%s23128_s1 + $0x88] sm:$0xff] }
 0x3d7   :  { %v14981_v56 = vld [vmem:[%s23128_s1 + $0x110] sm:$0xff]  ;;  %v8320_v44 = vrot.slane %v24663_v19, %v16606_v21  ;;  %v8327_v48 = vrot.slane %v24663_v19, %v16615_v61  ;;  %13464 = vperm.xlu0 %15586, %v12095_v12   ;;  %15498 = vmatpush3.msra.mxu1 %v14982_v41  ;;  %v11789_v26 = vcombine.low %v11781_v11, %v11788_v63 }
 0x3d8   :  { %v12325_v57 = vrot.slane %v21042_v14, %v16681_v42  ;;  %v12332_v54 = vrot.slane %v21044_v37, %v16681_v42  ;;  %15464 = vmatprep.subr.mxu0 %v14965_v7  ;;  %15499 = vmatprep.subr.mxu1 %v14997_v15  ;;  %v12639_v13 = vcombine.low %v12631_v29, %v12638_v50  ;;  %v24664_v41 = vld [vmem:[#allocation76_spill] sm:$0xff]  ;;  %v24665_v51 = vld [vmem:[#allocation217_spill] sm:$0xff] }
 0x3d9   :  { %v12104_v12 = vrot.slane %v24664_v41, %v16681_v42  ;;  %v12111_v24 = vrot.slane %v24665_v51, %v16681_v42  ;;  %15465 = vmatpush3.msra.mxu0 %v14949_v33  ;;  %15500 = vmatpush3.msra.mxu1 %v14981_v56  ;;  %v14948_v14 = vld [vmem:[%s23128_s1 + $0x8] sm:$0xff]  ;;  %v24666_v11 = vld [vmem:[#allocation189_spill] sm:$0xff]  ;;  %v8334_v50 = vrot.slane %v24663_v19, %v16618_v5  ;;  %v21716_v7 = vpop.permute.xlu1 %13242  ;;  %v21718_v15 = vpop.permute.xlu0 %13275  ;;  %v14963_v51 = vld [vmem:[%s23128_s1 + $0x80] sm:$0xff] }
 0x3da   :  { %v14980_v37 = vld [vmem:[%s23128_s1 + $0x108] sm:$0xff]  ;;  %v8397_v63 = vrot.slane %v24666_v11, %v16603_v43  ;;  %v8404_v29 = vrot.slane %v24666_v11, %v16606_v21  ;;  %24667 = vst [vmem:[#allocation93_spill] sm:$0xff] %v21716_v7  ;;  %13410 = vperm.xlu1 %15587, %v11789_v26   ;;  %15466 = vmatprep.subr.mxu0 %v14964_v0  ;;  %v14995_v33 = vld [vmem:[%s23128_s1 + $0x180] sm:$0xff]  ;;  %v24669_v27 = vld [vmem:[#allocation13_spill] sm:$0xff] }
 0x3db   :  { %v8411_v56 = vrot.slane %v24666_v11, %v16615_v61  ;;  %v8418_v19 = vrot.slane %v24666_v11, %v16618_v5  ;;  %v24668_v41 = vld [vmem:[#allocation191_spill] sm:$0xff]  ;;  %13560 = vperm.xlu0 %15586, %v12639_v13   ;;  %15501 = vmatprep.subr.mxu1 %v14996_v38  ;;  %v12333_v7 = vcombine.low %v12325_v57, %v12332_v54 }
 0x3dc   :  { %v8369_v26 = vrot.slane %v24668_v41, %v16603_v43  ;;  %v14947_v0 = vld [vmem:[%s23128_s1] sm:$0xff]  ;;  %v11798_v34 = vrot.slane %v24669_v27, %v16681_v42  ;;  %v11805_v35 = vrot.slane %v24670_v8, %v16681_v42  ;;  %15467 = vmatpush3.msra.mxu0 %v14948_v14  ;;  %15502 = vmatpush3.msra.mxu1 %v14980_v37 }
 0x3dd   :  { %v14979_v11 = vld [vmem:[%s23128_s1 + $0x100] sm:$0xff]  ;;  %v12112_v13 = vcombine.low %v12104_v12, %v12111_v24  ;;  %v12648_v38 = vrot.slane %v21457_v39, %v16681_v42  ;;  %v12655_v57 = vrot.slane %v21459_v40, %v16681_v42  ;;  %15468 = vmatprep.subr.mxu0 %v14963_v51  ;;  %15503 = vmatprep.subr.mxu1 %v14995_v33  ;;  %v21752_v14 = vpop.permute.xlu1 %13248  ;;  %v21754_v24 = vpop.permute.xlu0 %13281 }
 0x3de   :  { %v8376_v27 = vrot.slane %v24668_v41, %v16606_v21  ;;  %v8383_v8 = vrot.slane %v24668_v41, %v16615_v61  ;;  %v8390_v54 = vrot.slane %v24668_v41, %v16618_v5  ;;  %24671 = vst [vmem:[#allocation244_spill] sm:$0xff] %v21752_v14  ;;  %13506 = vperm.xlu1 %15587, %v12333_v7  }
 0x3df   :  { %15469 = vmatpush3.msra.mxu0 %v14947_v0  ;;  %v24672_v39 = vrot.slane %v24659_v22, %v16606_v21  ;;  %v24673_v40 = vrot.slane %v24659_v22, %v16603_v43  ;;  %v24674_v37 = vrot.slane %v24659_v22, %v16615_v61  ;;  %v21769_v33 = vcombine.low %v8313_v3, %v8320_v44 }
 0x3e0   :  { %13467 = vperm.xlu0 %15586, %v12112_v13   ;;  %15504 = vmatpush3.msra.mxu1 %v14979_v11  ;;  %v21771_v7 = vcombine.low %v8327_v48, %v8334_v50  ;;  %v11806_v41 = vcombine.low %v11798_v34, %v11805_v35  ;;  %v12342_v0 = vrot.slane %v21036_v52, %v16681_v42  ;;  %v24677_v34 = vld [vmem:[#allocation177_spill] sm:$0xff]  ;;  %v24678_v52 = vld [vmem:[#allocation40_spill] sm:$0xff] }
 0x3e1   :  { %v21762_v12 = vcombine.low %v24673_v40, %v24672_v39  ;;  %v21767_v51 = vcombine.low %v24674_v37, %v8362_v28  ;;  %v12349_v39 = vrot.slane %v21038_v30, %v16681_v42  ;;  %v21777_v40 = vcombine.low %v8397_v63, %v8404_v29  ;;  %v21791_v11 = vpop.permute.xlu1 %13254  ;;  %v21793_v30 = vpop.permute.xlu0 %13287  ;;  %v24680_v63 = vld [vmem:[#allocation45_spill] sm:$0xff] }
 0x3e2   :  { %v12656_v22 = vcombine.low %v12648_v38, %v12655_v57  ;;  %v12121_v28 = vrot.slane %v20806_v49, %v16681_v42  ;;  %v12128_v3 = vrot.slane %v20816_v23, %v16681_v42  ;;  %v21783_v44 = vcombine.low %v8411_v56, %v8418_v19  ;;  %24679 = vst [vmem:[#allocation241_spill] sm:$0xff] %v21791_v11  ;;  %v24681_v19 = vld [vmem:[#allocation26_spill] sm:$0xff]  ;;  %v24683_v57 = vld [vmem:[#allocation169_spill] sm:$0xff] }
 0x3e3   :  { %24675 = vst [vmem:[#allocation86_spill] sm:$0xff] %v21777_v40  ;;  %v21785_v48 = vcombine.low %v8369_v26, %v8376_v27  ;;  %v21787_v35 = vcombine.low %v8383_v8, %v8390_v54  ;;  %v13600_v50 = vrot.slane %v24678_v52, %v24677_v34  ;;  %13413 = vperm.xlu1 %15587, %v11806_v41   ;;  %v24682_v26 = vld [vmem:[#allocation37_spill] sm:$0xff]  ;;  %v24684_v8 = vld [vmem:[#allocation232_spill] sm:$0xff]  ;;  %v24686_v41 = vld [vmem:[#allocation146_spill] sm:$0xff] }
 0x3e4   :  { %24676 = vst [vmem:[#allocation36_spill] sm:$0xff] %v21783_v44  ;;  %v8453_v49 = vrot.slane %v24680_v63, %v16603_v43  ;;  %v8460_v23 = vrot.slane %v24680_v63, %v16606_v21  ;;  %v8467_v29 = vrot.slane %v24680_v63, %v16615_v61  ;;  %v8474_v56 = vrot.slane %v24680_v63, %v16618_v5  ;;  %v24685_v37 = vld [vmem:[#allocation53_spill] sm:$0xff] }
 0x3e5   :  { %13563 = vperm.xlu0 %15586, %v12656_v22   ;;  %v13605_v13 = vrot.slane %v24682_v26, %v24681_v19  ;;  %v12350_v38 = vcombine.low %v12342_v0, %v12349_v39  ;;  %v11815_v27 = vrot.slane %v24683_v57, %v16681_v42  ;;  %v11822_v54 = vrot.slane %v24684_v8, %v16681_v42  ;;  %v24687_v26 = vld [vmem:[#allocation209_spill] sm:$0xff]  ;;  %v24688_v57 = vld [vmem:[#allocation171_spill] sm:$0xff]  ;;  %v24689_v8 = vld [vmem:[#allocation50_spill] sm:$0xff]  ;;  %v13261_v40 = vpop.permute.xlu1 %13260 }
 0x3e6   :  { %v13612_v52 = vrot.slane %v24686_v41, %v24685_v37  ;;  %v12129_v11 = vcombine.low %v12121_v28, %v12128_v3  ;;  %v12665_v63 = vrot.slane %v21559_v25, %v16681_v42  ;;  %v12672_v22 = vrot.slane %v21630_v2, %v16681_v42  ;;  %v21822_v28 = vpop.permute.xlu0 %13293  ;;  %v24691_v2 = vld [vmem:[#allocation61_spill] sm:$0xff]  ;;  %v24692_v41 = vld [vmem:[#allocation43_spill] sm:$0xff] }
 0x3e7   :  { %v8425_v14 = vrot.slane %v24687_v26, %v16603_v43  ;;  %v8432_v0 = vrot.slane %v24687_v26, %v16606_v21  ;;  %v13607_v39 = vsel %vm13606_vm1, %v13605_v13, %v13600_v50  ;;  %v13619_v44 = vrot.slane %v24689_v8, %v24688_v57  ;;  %13509 = vperm.xlu1 %15587, %v12350_v38  }
 0x3e8   :  { %v21824_v3 = vcombine.low %v8453_v49, %v8460_v23  ;;  %v13626_v21 = vrot.slane %v24692_v41, %v24691_v2  ;;  %v14341_v50 = vrot.slane %v13261_v40, %v24677_v34  ;;  %v11823_v13 = vcombine.low %v11815_v27, %v11822_v54  ;;  %v24694_v27 = vld [vmem:[#allocation184_spill] sm:$0xff]  ;;  %v24695_v54 = vld [vmem:[#allocation54_spill] sm:$0xff] }
 0x3e9   :  { %13470 = vperm.xlu0 %15586, %v12129_v11   ;;  %v12359_v38 = vrot.slane %v21062_v4, %v16681_v42  ;;  %v12366_v49 = vrot.slane %v21108_v58, %v16681_v42  ;;  %v13614_v23 = vsel %vm13613_vm2, %v13612_v52, %v13607_v39  ;;  %v12673_v8 = vcombine.low %v12665_v63, %v12672_v22  ;;  %v13267_v58 = vpop.permute.xlu1 %13266  ;;  %v24697_v22 = vld [vmem:[#allocation124_spill] sm:$0xff] }
 0x3ea   :  { %24690 = vst [vmem:[#allocation206_spill] sm:$0xff] %v21824_v3  ;;  %v12138_v25 = vrot.slane %v20800_v32, %v16681_v42  ;;  %v12145_v41 = vrot.slane %v20802_v45, %v16681_v42  ;;  %v21842_v11 = vcombine.low %v8467_v29, %v8474_v56  ;;  %v13621_v40 = vsel %vm13620_vm3, %v13619_v44, %v13614_v23  ;;  %v21849_v52 = vpop.permute.xlu0 %13299  ;;  %v24698_v45 = vld [vmem:[#allocation211_spill] sm:$0xff] }
 0x3eb   :  { %v13633_v43 = vrot.slane %v24695_v54, %v24694_v27  ;;  %v14345_v4 = vrot.slane %v21634_v17, %v24681_v19  ;;  %13416 = vperm.xlu1 %15587, %v11823_v13   ;;  %v21851_v63 = vcombine.low %v8425_v14, %v8432_v0  ;;  %v13628_v32 = vsel %vm13627_vm4, %v13626_v21, %v13621_v40  ;;  %v24699_v17 = vld [vmem:[#allocation231_spill] sm:$0xff]  ;;  %v24700_v13 = vld [vmem:[#allocation118_spill] sm:$0xff] }
 0x3ec   :  { %24693 = vst [vmem:[#allocation188_spill] sm:$0xff] %v21842_v11  ;;  %v13640_v29 = vrot.slane %v24698_v45, %v24697_v22  ;;  %v14350_v44 = vrot.slane %v13267_v58, %v24685_v37  ;;  %v12367_v39 = vcombine.low %v12359_v38, %v12366_v49  ;;  %v11832_v23 = vrot.slane %v24699_v17, %v16681_v42  ;;  %v24701_v58 = vld [vmem:[#allocation190_spill] sm:$0xff]  ;;  %v24703_v38 = vld [vmem:[#allocation225_spill] sm:$0xff]  ;;  %v24704_v49 = vld [vmem:[#allocation216_spill] sm:$0xff] }
 0x3ed   :  { %24696 = vst [vmem:[#allocation87_spill] sm:$0xff] %v21851_v63  ;;  %13566 = vperm.xlu0 %15586, %v12673_v8   ;;  %v14346_v56 = vsel %vm13606_vm1, %v14345_v4, %v14341_v50  ;;  %v11839_v54 = vrot.slane %v24700_v13, %v16681_v42  ;;  %v12146_v0 = vcombine.low %v12138_v25, %v12145_v41  ;;  %v24702_v8 = vld [vmem:[#allocation215_spill] sm:$0xff]  ;;  %v13273_v13 = vpop.permute.xlu1 %13272 }
 0x3ee   :  { %v14351_v14 = vsel %vm13613_vm2, %v14350_v44, %v14346_v56  ;;  %v12682_v21 = vrot.slane %v21539_v47, %v16681_v42  ;;  %v12689_v40 = vrot.slane %v21541_v1, %v16681_v42  ;;  %v13661_v45 = vrot.slane %v24702_v8, %v24701_v58  ;;  %v21874_v25 = vpop.permute.xlu0 %13305  ;;  %v24705_v41 = vld [vmem:[#allocation115_spill] sm:$0xff]  ;;  %v24706_v47 = vld [vmem:[#allocation44_spill] sm:$0xff] }
 0x3ef   :  { %v13635_v50 = vsel %vm13634_vm5, %v13633_v43, %v13628_v32  ;;  %v13647_v4 = vrot.slane %v24704_v49, %v24703_v38  ;;  %v14355_v17 = vrot.slane %v21676_v6, %v24688_v57  ;;  %13512 = vperm.xlu1 %15587, %v12367_v39   ;;  %v24707_v56 = vld [vmem:[#allocation71_spill] sm:$0xff]  ;;  %v14360_v43 = vrot.slane %v13273_v13, %v24691_v2  ;;  %v24710_v13 = vld [vmem:[#allocation192_spill] sm:$0xff] }
 0x3f0   :  { %v13642_v1 = vsel %vm13641_vm6, %v13640_v29, %v13635_v50  ;;  %v24708_v11 = vld [vmem:[#allocation99_spill] sm:$0xff]  ;;  %v11840_v49 = vcombine.low %v11832_v23, %v11839_v54  ;;  %v12376_v6 = vrot.slane %v21056_v10, %v16681_v42  ;;  %v12383_v39 = vrot.slane %v21058_v59, %v16681_v42 }
 0x3f1   :  { %v13654_v8 = vrot.slane %v24708_v11, %v24707_v56  ;;  %13473 = vperm.xlu0 %15586, %v12146_v0   ;;  %v14356_v32 = vsel %vm13620_vm3, %v14355_v17, %v14351_v14  ;;  %v12690_v44 = vcombine.low %v12682_v21, %v12689_v40  ;;  %v12155_v29 = vrot.slane %v20819_v9, %v16681_v42  ;;  %v24709_v11 = vld [vmem:[#allocation226_spill] sm:$0xff]  ;;  %v24712_v54 = vld [vmem:[#allocation167_spill] sm:$0xff]  ;;  %v13279_v14 = vpop.permute.xlu1 %13278  ;;  %v24714_v9 = vld [vmem:[#allocation57_spill] sm:$0xff] }
 0x3f2   :  { %v14361_v3 = vsel %vm13627_vm4, %v14360_v43, %v14356_v32  ;;  %v12162_v50 = vrot.slane %v24709_v11, %v16681_v42  ;;  %v24711_v0 = vld [vmem:[#allocation150_spill] sm:$0xff]  ;;  %v13649_v23 = vsel %vm13648_vm7, %v13647_v4, %v13642_v1  ;;  %v13709_v10 = vrot.slane %v24712_v54, %v24677_v34  ;;  %v21899_v21 = vpop.permute.xlu0 %13311  ;;  %v24715_v43 = vld [vmem:[#allocation168_spill] sm:$0xff]  ;;  %v24717_v54 = vld [vmem:[#allocation175_spill] sm:$0xff] }
 0x3f3   :  { %v14365_v59 = vrot.slane %v21718_v15, %v24694_v27  ;;  %13419 = vperm.xlu1 %15587, %v11840_v49   ;;  %24713 = vst [vmem:[#allocation207_spill] sm:$0xff] %v21899_v21  ;;  %v13713_v40 = vrot.slane %v24714_v9, %v24681_v19  ;;  %v13656_v17 = vsel %vm13655_vm8, %v13654_v8, %v13649_v23  ;;  %v24716_v15 = vld [vmem:[#allocation112_spill] sm:$0xff] }
 0x3f4   :  { %v13718_v32 = vrot.slane %v24715_v43, %v24685_v37  ;;  %v14370_v4 = vrot.slane %v13279_v14, %v24697_v22  ;;  %v12384_v11 = vcombine.low %v12376_v6, %v12383_v39  ;;  %v11849_v49 = vrot.slane %v24716_v15, %v16681_v42 }
 0x3f5   :  { %13569 = vperm.xlu0 %15586, %v12690_v44   ;;  %v14366_v1 = vsel %vm13634_vm5, %v14365_v59, %v14361_v3  ;;  %v11856_v63 = vrot.slane %v24717_v54, %v16681_v42  ;;  %v12163_v21 = vcombine.low %v12155_v29, %v12162_v50  ;;  %v12699_v8 = vrot.slane %v21644_v36, %v16681_v42  ;;  %v24718_v44 = vld [vmem:[#allocation156_spill] sm:$0xff]  ;;  %v13285_v59 = vpop.permute.xlu1 %13284  ;;  %v24719_v29 = vld [vmem:[#allocation77_spill] sm:$0xff]  ;;  %v24720_v50 = vld [vmem:[#allocation222_spill] sm:$0xff] }
 0x3f6   :  { %v14371_v9 = vsel %vm13641_vm6, %v14370_v4, %v14366_v1  ;;  %v12706_v23 = vrot.slane %v21646_v20, %v16681_v42  ;;  %v13723_v14 = vrot.slane %v24718_v44, %v24688_v57  ;;  %v13663_v3 = vsel %vm13662_vm9, %v13661_v45, %v13656_v17  ;;  %v21923_v43 = vpop.permute.xlu0 %13317  ;;  %v24721_v4 = vld [vmem:[#allocation68_spill] sm:$0xff]  ;;  %v24723_v44 = vld [vmem:[#allocation210_spill] sm:$0xff] }
 0x3f7   :  { %v13714_v6 = vsel %vm13606_vm1, %v13713_v40, %v13709_v10  ;;  %v14375_v39 = vrot.slane %v21754_v24, %v24703_v38  ;;  %13515 = vperm.xlu1 %15587, %v12384_v11   ;;  %v13668_v36 = vrot.slane %v24720_v50, %v24719_v29  ;;  %v13728_v1 = vrot.slane %v24721_v4, %v24691_v2  ;;  %v24727_v4 = vld [vmem:[#allocation84_spill] sm:$0xff] }
 0x3f8   :  { %v13719_v20 = vsel %vm13613_vm2, %v13718_v32, %v13714_v6  ;;  %v14380_v45 = vrot.slane %v13285_v59, %v24707_v56  ;;  %v11857_v24 = vcombine.low %v11849_v49, %v11856_v63  ;;  %v12393_v40 = vrot.slane %v21122_v55, %v16681_v42  ;;  %v24722_v32 = vld [vmem:[#allocation14_spill] sm:$0xff]  ;;  %v24725_v49 = vld [vmem:[#allocation80_spill] sm:$0xff] }
 0x3f9   :  { %13476 = vperm.xlu0 %15586, %v12163_v21   ;;  %v14376_v10 = vsel %vm13648_vm7, %v14375_v39, %v14371_v9  ;;  %v12400_v17 = vrot.slane %v21124_v60, %v16681_v42  ;;  %v12707_v15 = vcombine.low %v12699_v8, %v12706_v23  ;;  %v12172_v54 = vrot.slane %v24722_v32, %v16681_v42  ;;  %v24724_v21 = vld [vmem:[#allocation223_spill] sm:$0xff]  ;;  %v13291_v9 = vpop.permute.xlu1 %13290 }
 0x3fa   :  { %v14381_v11 = vsel %vm13655_vm8, %v14380_v45, %v14376_v10  ;;  %v12179_v6 = vrot.slane %v24723_v44, %v16681_v42  ;;  %v13733_v59 = vrot.slane %v24724_v21, %v24694_v27  ;;  %v13724_v63 = vsel %vm13620_vm3, %v13723_v14, %v13719_v20  ;;  %v21948_v8 = vpop.permute.xlu0 %13323  ;;  %v24726_v39 = vld [vmem:[#allocation27_spill] sm:$0xff]  ;;  %v24728_v10 = vld [vmem:[#allocation109_spill] sm:$0xff] }
 0x3fb   :  { %v13788_v55 = vrot.slane %v24725_v49, %v24677_v34  ;;  %v14385_v60 = vrot.slane %v21793_v30, %v24701_v58  ;;  %13422 = vperm.xlu1 %15587, %v11857_v24   ;;  %v13729_v23 = vsel %vm13627_vm4, %v13728_v1, %v13724_v63  ;;  %v13792_v50 = vrot.slane %v24726_v39, %v24681_v19  ;;  %v24729_v32 = vld [vmem:[#allocation119_spill] sm:$0xff] }
 0x3fc   :  { %v13797_v45 = vrot.slane %v24727_v4, %v24685_v37  ;;  %v14390_v14 = vrot.slane %v13291_v9, %v24719_v29  ;;  %v12401_v30 = vcombine.low %v12393_v40, %v12400_v17  ;;  %v11866_v24 = vrot.slane %v24728_v10, %v16681_v42  ;;  %v24730_v40 = vld [vmem:[#allocation138_spill] sm:$0xff]  ;;  %v24735_v10 = vld [vmem:[#allocation107_spill] sm:$0xff] }
 0x3fd   :  { %13572 = vperm.xlu0 %15586, %v12707_v15   ;;  %v14386_v20 = vsel %vm13662_vm9, %v14385_v60, %v14381_v11  ;;  %v11873_v44 = vrot.slane %v24729_v32, %v16681_v42  ;;  %v12180_v21 = vcombine.low %v12172_v54, %v12179_v6  ;;  %v12716_v63 = vrot.slane %v21623_v53, %v16681_v42  ;;  %v13297_v9 = vpop.permute.xlu1 %13296  ;;  %v24731_v53 = vld [vmem:[#allocation103_spill] sm:$0xff] }
 0x3fe   :  { %v14391_v1 = vsel %vm13669_vm10, %v14390_v14, %v14386_v20  ;;  %v12723_v15 = vrot.slane %v21625_v62, %v16681_v42  ;;  %v13670_v49 = vsel %vm13669_vm10, %v13668_v36, %v13663_v3  ;;  %v13738_v17 = vrot.slane %v24730_v40, %v24697_v22  ;;  %v21972_v39 = vpop.permute.xlu0 %13329  ;;  %v24732_v3 = vld [vmem:[#allocation233_spill] sm:$0xff] }
 0x3ff   :  { %v13793_v11 = vsel %vm13606_vm1, %v13792_v50, %v13788_v55  ;;  %v14395_v60 = vrot.slane %v21822_v28, %v24705_v41  ;;  %13518 = vperm.xlu1 %15587, %v12401_v30   ;;  %v13734_v54 = vsel %vm13634_vm5, %v13733_v59, %v13729_v23  ;;  %v13802_v6 = vrot.slane %v24731_v53, %v24688_v57  ;;  %v24733_v23 = vld [vmem:[#allocation144_spill] sm:$0xff] }
 0x400   :  { %v13798_v62 = vsel %vm13613_vm2, %v13797_v45, %v13793_v11  ;;  %v14400_v36 = vrot.slane %v13297_v9, %v24732_v3  ;;  %v11874_v55 = vcombine.low %v11866_v24, %v11873_v44  ;;  %v12410_v28 = vrot.slane %v21114_v18, %v16681_v42  ;;  %v24734_v45 = vld [vmem:[#allocation220_spill] sm:$0xff]  ;;  %v24736_v44 = vld [vmem:[#allocation195_spill] sm:$0xff] }
 0x401   :  { %13479 = vperm.xlu0 %15586, %v12180_v21   ;;  %v14396_v4 = vsel %vm13676_vm11, %v14395_v60, %v14391_v1  ;;  %v12417_v50 = vrot.slane %v21120_v46, %v16681_v42  ;;  %v12724_v59 = vcombine.low %v12716_v63, %v12723_v15  ;;  %v12189_v20 = vrot.slane %v24733_v23, %v16681_v42  ;;  %v13303_v1 = vpop.permute.xlu1 %13302  ;;  %v24737_v63 = vld [vmem:[#allocation132_spill] sm:$0xff] }
 0x402   :  { %v14401_v14 = vsel %vm13683_vm12, %v14400_v36, %v14396_v4  ;;  %v12196_v30 = vrot.slane %v24734_v45, %v16681_v42  ;;  %v13743_v32 = vrot.slane %v24735_v10, %v24703_v38  ;;  %v13739_v24 = vsel %vm13641_vm6, %v13738_v17, %v13734_v54  ;;  %v21996_v21 = vpop.permute.xlu0 %13335  ;;  %v24738_v11 = vld [vmem:[#allocation56_spill] sm:$0xff]  ;;  %v24740_v54 = vld [vmem:[#allocation202_spill] sm:$0xff] }
 0x403   :  { %v13807_v18 = vrot.slane %v24736_v44, %v24691_v2  ;;  %v14405_v46 = vrot.slane %v21849_v52, %v24710_v13  ;;  %13425 = vperm.xlu1 %15587, %v11874_v55   ;;  %v13748_v15 = vrot.slane %v24737_v63, %v24707_v56  ;;  %v13803_v40 = vsel %vm13620_vm3, %v13802_v6, %v13798_v62  ;;  %v24739_v17 = vld [vmem:[#allocation180_spill] sm:$0xff]  ;;  %v24741_v4 = vld [vmem:[#allocation170_spill] sm:$0xff] }
 0x404   :  { %v14410_v60 = vrot.slane %v13303_v1, %v24738_v11  ;;  %v11883_v9 = vrot.slane %v24739_v17, %v16681_v42  ;;  %v14415_v53 = vrot.slane %v21874_v25, %v24740_v54  ;;  %v12418_v36 = vcombine.low %v12410_v28, %v12417_v50  ;;  %v24742_v25 = vld [vmem:[#allocation247_spill] sm:$0xff]  ;;  %v24747_v44 = vld [vmem:[#allocation16_spill] sm:$0xff] }
 0x405   :  { %13575 = vperm.xlu0 %15586, %v12724_v59   ;;  %v14406_v52 = vsel %vm13690_vm13, %v14405_v46, %v14401_v14  ;;  %v11890_v55 = vrot.slane %v24741_v4, %v16681_v42  ;;  %v12197_v45 = vcombine.low %v12189_v20, %v12196_v30  ;;  %v12733_v6 = vrot.slane %v21769_v33, %v16681_v42  ;;  %v22021_v50 = vpop.permute.xlu1 %13308  ;;  %v24745_v33 = vld [vmem:[#allocation62_spill] sm:$0xff]  ;;  %v24748_v46 = vld [vmem:[#allocation228_spill] sm:$0xff] }
 0x406   :  { %v14411_v23 = vsel %vm13697_vm14, %v14410_v60, %v14406_v52  ;;  %v12740_v62 = vrot.slane %v21771_v7, %v16681_v42  ;;  %v13744_v59 = vsel %vm13648_vm7, %v13743_v32, %v13739_v24  ;;  %v13808_v10 = vsel %vm13627_vm4, %v13807_v18, %v13803_v40  ;;  %v22023_v20 = vpop.permute.xlu0 %13341  ;;  %v24746_v32 = vld [vmem:[#allocation164_spill] sm:$0xff] }
 0x407   :  { %v13817_v14 = vrot.slane %v24742_v25, %v24697_v22  ;;  %v22019_v28 = vsel %vm13704_vm15, %v14415_v53, %v14411_v23  ;;  %13521 = vperm.xlu1 %15587, %v12418_v36   ;;  %24744 = vst [vmem:[#allocation249_spill] sm:$0xff] %v22023_v20  ;;  %v13682_v30 = vrot.slane %v24745_v33, %v24732_v3  ;;  %v24749_v53 = vld [vmem:[#allocation15_spill] sm:$0xff]  ;;  %v24750_v36 = vld [vmem:[#allocation129_spill] sm:$0xff] }
 0x408   :  { %24743 = vst [vmem:[#allocation122_spill] sm:$0xff] %v22019_v28  ;;  %v13749_v7 = vsel %vm13655_vm8, %v13748_v15, %v13744_v59  ;;  %v13758_v24 = vrot.slane %v24746_v32, %v24719_v29  ;;  %v13812_v18 = vrot.slane %v24747_v44, %v24694_v27  ;;  %v13753_v1 = vrot.slane %v24748_v46, %v24701_v58  ;;  %v24757_v44 = vld [vmem:[#allocation60_spill] sm:$0xff]  ;;  %v24758_v46 = vld [vmem:[#allocation85_spill] sm:$0xff] }
 0x409   :  { %13482 = vperm.xlu0 %15586, %v12197_v45   ;;  %v11891_v63 = vcombine.low %v11883_v9, %v11890_v55  ;;  %v12427_v40 = vrot.slane %v21138_v16, %v16681_v42  ;;  %v12434_v60 = vrot.slane %v21200_v31, %v16681_v42  ;;  %v12741_v15 = vcombine.low %v12733_v6, %v12740_v62  ;;  %v24752_v31 = vld [vmem:[#allocation39_spill] sm:$0xff]  ;;  %v22051_v59 = vpop.permute.xlu1 %13314 }
 0x40a   :  { %v13813_v17 = vsel %vm13634_vm5, %v13812_v18, %v13808_v10  ;;  %v12206_v52 = vrot.slane %v24749_v53, %v16681_v42  ;;  %v12213_v4 = vrot.slane %v24750_v36, %v16681_v42  ;;  %v24751_v23 = vrot.slane %v24706_v47, %v24705_v41  ;;  %v22053_v6 = vpop.permute.xlu0 %13347  ;;  %v24754_v10 = vld [vmem:[#allocation24_spill] sm:$0xff]  ;;  %v24761_v53 = vld [vmem:[#allocation22_spill] sm:$0xff] }
 0x40b   :  { %v13754_v55 = vsel %vm13662_vm9, %v13753_v1, %v13749_v7  ;;  %v13818_v16 = vsel %vm13641_vm6, %v13817_v14, %v13813_v17  ;;  %v13827_v45 = vrot.slane %v24752_v31, %v24707_v56  ;;  %13428 = vperm.xlu1 %15587, %v11891_v63   ;;  %24753 = vst [vmem:[#allocation19_spill] sm:$0xff] %v22053_v6  ;;  %v24756_v14 = vld [vmem:[#allocation186_spill] sm:$0xff] }
 0x40c   :  { %v13677_v9 = vsel %vm13676_vm11, %v24751_v23, %v13670_v49  ;;  %v13763_v25 = vrot.slane %v24754_v10, %v24705_v41  ;;  %v13759_v47 = vsel %vm13669_vm10, %v13758_v24, %v13754_v55  ;;  %v24755_v49 = vld [vmem:[#allocation187_spill] sm:$0xff]  ;;  %v13768_v7 = vrot.slane %v24756_v14, %v24732_v3 }
 0x40d   :  { %v13684_v62 = vsel %vm13683_vm12, %v13682_v30, %v13677_v9  ;;  %v13822_v33 = vrot.slane %v24755_v49, %v24703_v38  ;;  %13578 = vperm.xlu0 %15586, %v12741_v15   ;;  %v12435_v32 = vcombine.low %v12427_v40, %v12434_v60  ;;  %v11900_v18 = vrot.slane %v24757_v44, %v16681_v42  ;;  %v24766_v49 = vld [vmem:[#allocation166_spill] sm:$0xff]  ;;  %v24767_v14 = vld [vmem:[#allocation95_spill] sm:$0xff] }
 0x40e   :  { %v11907_v1 = vrot.slane %v24758_v46, %v16681_v42  ;;  %v12214_v63 = vcombine.low %v12206_v52, %v12213_v4  ;;  %v12750_v24 = vrot.slane %v21762_v12, %v16681_v42  ;;  %v12757_v17 = vrot.slane %v21767_v51, %v16681_v42  ;;  %v24762_v52 = vld [vmem:[#allocation200_spill] sm:$0xff]  ;;  %v22085_v12 = vpop.permute.xlu1 %13320  ;;  %v22087_v51 = vpop.permute.xlu0 %13356 }
 0x40f   :  { %v13823_v30 = vsel %vm13648_vm7, %v13822_v33, %v13818_v16  ;;  %v24759_v15 = vrot.slane %v24687_v26, %v16618_v5  ;;  %v24760_v40 = vrot.slane %v24687_v26, %v16615_v61  ;;  %v13696_v36 = vrot.slane %v24761_v53, %v24738_v11  ;;  %13524 = vperm.xlu1 %15587, %v12435_v32   ;;  %v24763_v5 = vld [vmem:[#allocation55_spill] sm:$0xff] }
 0x410   :  { %v13828_v23 = vsel %vm13655_vm8, %v13827_v45, %v13823_v30  ;;  %v13837_v4 = vrot.slane %v24762_v52, %v24719_v29  ;;  %v13703_v9 = vrot.slane %v24763_v5, %v24740_v54  ;;  %v24764_v61 = vrot.slane %v24711_v0, %v24710_v13  ;;  %v24765_v16 = vld [vmem:[#allocation155_spill] sm:$0xff] }
 0x411   :  { %v22078_v60 = vcombine.low %v24760_v40, %v24759_v15  ;;  %v13764_v55 = vsel %vm13676_vm11, %v13763_v25, %v13759_v47  ;;  %v13832_v31 = vrot.slane %v24765_v16, %v24701_v58  ;;  %13485 = vperm.xlu0 %15586, %v12214_v63   ;;  %v11908_v10 = vcombine.low %v11900_v18, %v11907_v1  ;;  %v24769_v25 = vld [vmem:[#allocation159_spill] sm:$0xff]  ;;  %v24771_v1 = vld [vmem:[#allocation34_spill] sm:$0xff] }
 0x412   :  { %v13691_v26 = vsel %vm13690_vm13, %v24764_v61, %v13684_v62  ;;  %v13769_v45 = vsel %vm13683_vm12, %v13768_v7, %v13764_v55  ;;  %v12444_v33 = vrot.slane %v24766_v49, %v16681_v42  ;;  %v12451_v32 = vrot.slane %v24767_v14, %v16681_v42  ;;  %v24768_v62 = vld [vmem:[#allocation65_spill] sm:$0xff]  ;;  %v24770_v7 = vld [vmem:[#allocation104_spill] sm:$0xff]  ;;  %v22114_v40 = vpop.permute.xlu1 %13326  ;;  %v24776_v55 = vld [vmem:[#allocation35_spill] sm:$0xff] }
 0x413   :  { %v13833_v44 = vsel %vm13662_vm9, %v13832_v31, %v13828_v23  ;;  %v12758_v0 = vcombine.low %v12750_v24, %v12757_v17  ;;  %v12223_v46 = vrot.slane %v24768_v62, %v16681_v42  ;;  %v12230_v47 = vrot.slane %v24769_v25, %v16681_v42  ;;  %13431 = vperm.xlu1 %15587, %v11908_v10   ;;  %v22116_v24 = vpop.permute.xlu0 %13362  ;;  %v24772_v17 = vld [vmem:[#allocation201_spill] sm:$0xff]  ;;  %v24773_v23 = vld [vmem:[#allocation208_spill] sm:$0xff]  ;;  %v24777_v31 = vld [vmem:[#allocation46_spill] sm:$0xff] }
 0x414   :  { %v13698_v30 = vsel %vm13697_vm14, %v13696_v36, %v13691_v26  ;;  %v13773_v18 = vrot.slane %v24770_v7, %v24710_v13  ;;  %v13778_v63 = vrot.slane %v24771_v1, %v24738_v11  ;;  %v13838_v15 = vsel %vm13669_vm10, %v13837_v4, %v13833_v44  ;;  %v24774_v36 = vld [vmem:[#allocation183_spill] sm:$0xff]  ;;  %v24775_v61 = vld [vmem:[#allocation120_spill] sm:$0xff]  ;;  %v24778_v14 = vld [vmem:[#allocation38_spill] sm:$0xff] }
 0x415   :  { %v13847_v53 = vrot.slane %v24772_v17, %v24732_v3  ;;  %v13867_v52 = vrot.slane %v24773_v23, %v24677_v34  ;;  %13581 = vperm.xlu0 %15586, %v12758_v0   ;;  %v11917_v5 = vrot.slane %v24774_v36, %v16681_v42  ;;  %v11924_v26 = vrot.slane %v24775_v61, %v16681_v42  ;;  %v24784_v61 = vld [vmem:[#allocation178_spill] sm:$0xff] }
 0x416   :  { %v13774_v4 = vsel %vm13690_vm13, %v13773_v18, %v13769_v45  ;;  %v13842_v16 = vrot.slane %v24776_v55, %v24705_v41  ;;  %v13876_v10 = vrot.slane %v24777_v31, %v24685_v37  ;;  %v12452_v49 = vcombine.low %v12444_v33, %v12451_v32  ;;  %v24780_v45 = vld [vmem:[#allocation25_spill] sm:$0xff]  ;;  %v22144_v32 = vpop.permute.xlu1 %13332 }
 0x417   :  { %v13871_v44 = vrot.slane %v24778_v14, %v24681_v19  ;;  %v12231_v62 = vcombine.low %v12223_v46, %v12230_v47  ;;  %v12767_v0 = vrot.slane %v21785_v48, %v16681_v42  ;;  %v12774_v25 = vrot.slane %v21787_v35, %v16681_v42  ;;  %v22146_v46 = vpop.permute.xlu0 %13368  ;;  %v24781_v48 = vld [vmem:[#allocation194_spill] sm:$0xff]  ;;  %v24785_v55 = vld [vmem:[#allocation141_spill] sm:$0xff] }
 0x418   :  { %v22138_v7 = vsel %vm13704_vm15, %v13703_v9, %v13698_v30  ;;  %v13783_v18 = vrot.slane %v24780_v45, %v24740_v54  ;;  %v13779_v1 = vsel %vm13697_vm14, %v13778_v63, %v13774_v4  ;;  %v13843_v33 = vsel %vm13676_vm11, %v13842_v16, %v13838_v15  ;;  %13527 = vperm.xlu1 %15587, %v12452_v49   ;;  %v24782_v63 = vld [vmem:[#allocation255_spill] sm:$0xff]  ;;  %v24783_v15 = vld [vmem:[#allocation102_spill] sm:$0xff]  ;;  %v24805_v49 = vld [vmem:[#allocation148_spill] sm:$0xff] }
 0x419   :  { %24779 = vst [vmem:[#allocation123_spill] sm:$0xff] %v22138_v7  ;;  %v13852_v47 = vrot.slane %v24781_v48, %v24710_v13  ;;  %v13848_v35 = vsel %vm13683_vm12, %v13847_v53, %v13843_v33  ;;  %v13872_v9 = vsel %vm13606_vm1, %v13871_v44, %v13867_v52  ;;  %13488 = vperm.xlu0 %15586, %v12231_v62   ;;  %v24786_v53 = vld [vmem:[#allocation83_spill] sm:$0xff]  ;;  %v24791_v45 = vld [vmem:[#allocation42_spill] sm:$0xff] }
 0x41a   :  { %v11925_v30 = vcombine.low %v11917_v5, %v11924_v26  ;;  %v13877_v17 = vsel %vm13613_vm2, %v13876_v10, %v13872_v9  ;;  %v13886_v23 = vrot.slane %v24782_v63, %v24691_v2  ;;  %v12461_v36 = vrot.slane %v24783_v15, %v16681_v42  ;;  %v24787_v5 = vld [vmem:[#allocation229_spill] sm:$0xff]  ;;  %v24790_v44 = vld [vmem:[#allocation79_spill] sm:$0xff]  ;;  %v22174_v48 = vpop.permute.xlu1 %13338 }
 0x41b   :  { %v12468_v4 = vrot.slane %v24784_v61, %v16681_v42  ;;  %v13881_v16 = vrot.slane %v24785_v55, %v24688_v57  ;;  %v12775_v31 = vcombine.low %v12767_v0, %v12774_v25  ;;  %v12240_v52 = vrot.slane %v24786_v53, %v16681_v42  ;;  %v22176_v0 = vpop.permute.xlu0 %13374  ;;  %v24794_v63 = vld [vmem:[#allocation41_spill] sm:$0xff] }
 0x41c   :  { %v12247_v26 = vrot.slane %v24787_v5, %v16681_v42  ;;  %v22166_v10 = vsel %vm13704_vm15, %v13783_v18, %v13779_v1  ;;  %v13891_v62 = vrot.slane %v24790_v44, %v24694_v27  ;;  %v13901_v33 = vrot.slane %v24791_v45, %v24703_v38  ;;  %13434 = vperm.xlu1 %15587, %v11925_v30   ;;  %v24793_v1 = vld [vmem:[#allocation21_spill] sm:$0xff]  ;;  %v24796_v30 = vld [vmem:[#allocation92_spill] sm:$0xff] }
 0x41d   :  { %24788 = vst [vmem:[#allocation73_spill] sm:$0xff] %v22166_v10  ;;  %v22179_v25 = vsel %vm13690_vm13, %v13852_v47, %v13848_v35  ;;  %v13882_v18 = vsel %vm13620_vm3, %v13881_v16, %v13877_v17  ;;  %13584 = vperm.xlu0 %15586, %v12775_v31   ;;  %v11934_v9 = vrot.slane %v24793_v1, %v16681_v42  ;;  %v24797_v47 = vld [vmem:[#allocation204_spill] sm:$0xff]  ;;  %v24798_v16 = vld [vmem:[#allocation86_spill] sm:$0xff] }
 0x41e   :  { %24792 = vst [vmem:[#allocation74_spill] sm:$0xff] %v22179_v25  ;;  %v11941_v15 = vrot.slane %v24794_v63, %v16681_v42  ;;  %v13887_v53 = vsel %vm13627_vm4, %v13886_v23, %v13882_v18  ;;  %v13896_v5 = vrot.slane %v24796_v30, %v24697_v22  ;;  %v12469_v44 = vcombine.low %v12461_v36, %v12468_v4  ;;  %v24799_v45 = vld [vmem:[#allocation36_spill] sm:$0xff]  ;;  %v22197_v63 = vpop.permute.xlu1 %13344  ;;  %v24801_v36 = vld [vmem:[#allocation213_spill] sm:$0xff] }
 0x41f   :  { %v13911_v35 = vrot.slane %v24797_v47, %v24701_v58  ;;  %v12248_v17 = vcombine.low %v12240_v52, %v12247_v26  ;;  %v12784_v31 = vrot.slane %v24798_v16, %v16681_v42  ;;  %v12791_v1 = vrot.slane %v24799_v45, %v16681_v42  ;;  %v22199_v14 = vpop.permute.xlu0 %13380  ;;  %v24800_v23 = vld [vmem:[#allocation136_spill] sm:$0xff]  ;;  %v24802_v30 = vld [vmem:[#allocation253_spill] sm:$0xff] }
 0x420   :  { %13530 = vperm.xlu1 %15587, %v12469_v44   ;;  %v11951_v18 = vrot.slane %v24800_v23, %v16681_v42  ;;  %v11958_v4 = vrot.slane %v24801_v36, %v16681_v42  ;;  %v12274_v52 = vrot.slane %v24802_v30, %v16681_v42  ;;  %v24803_v26 = vld [vmem:[#allocation12_spill] sm:$0xff]  ;;  %v13892_v16 = vsel %vm13634_vm5, %v13891_v62, %v13887_v53  ;;  %v24809_v62 = vld [vmem:[#allocation250_spill] sm:$0xff]  ;;  %v24810_v53 = vld [vmem:[#allocation163_spill] sm:$0xff] }
 0x421   :  { %v12281_v47 = vrot.slane %v24803_v26, %v16681_v42  ;;  %13491 = vperm.xlu0 %15586, %v12248_v17   ;;  %v11942_v45 = vcombine.low %v11934_v9, %v11941_v15  ;;  %v24804_v44 = vld [vmem:[#allocation64_spill] sm:$0xff]  ;;  %v11975_v7 = vrot.slane %v24805_v49, %v16681_v42  ;;  %v13897_v23 = vsel %vm13641_vm6, %v13896_v5, %v13892_v16  ;;  %v24808_v26 = vld [vmem:[#allocation97_spill] sm:$0xff]  ;;  %v24816_v16 = vld [vmem:[#allocation134_spill] sm:$0xff] }
 0x422   :  { %v11968_v55 = vrot.slane %v24804_v44, %v16681_v42  ;;  %v24806_v36 = vld [vmem:[#allocation224_spill] sm:$0xff]  ;;  %v12485_v61 = vrot.slane %v24808_v26, %v16681_v42  ;;  %v14262_v9 = vrot.slane %v24809_v62, %v24677_v34  ;;  %v12792_v15 = vcombine.low %v12784_v31, %v12791_v1  ;;  %v24811_v49 = vld [vmem:[#allocation89_spill] sm:$0xff]  ;;  %v24815_v1 = vld [vmem:[#allocation114_spill] sm:$0xff] }
 0x423   :  { %v13906_v28 = vrot.slane %v24806_v36, %v24707_v56  ;;  %v24807_v30 = vld [vmem:[#allocation96_spill] sm:$0xff]  ;;  %v12257_v17 = vrot.slane %v24810_v53, %v16681_v42  ;;  %v12264_v44 = vrot.slane %v24811_v49, %v16681_v42  ;;  %v24813_v36 = vld [vmem:[#allocation47_spill] sm:$0xff]  ;;  %v22233_v26 = vpop.permute.xlu0 %13386  ;;  %v11959_v6 = vcombine.low %v11951_v18, %v11958_v4 }
 0x424   :  { %v12478_v10 = vrot.slane %v24807_v30, %v16681_v42  ;;  %v24812_v5 = vld [vmem:[#allocation248_spill] sm:$0xff]  ;;  %v14271_v25 = vrot.slane %v24813_v36, %v24685_v37  ;;  %v22231_v30 = vpop.permute.xlu1 %13350  ;;  %13437 = vperm.xlu1 %15587, %v11942_v45   ;;  %v22235_v62 = vcombine.low %v12274_v52, %v12281_v47  ;;  %v13902_v31 = vsel %vm13648_vm7, %v13901_v33, %v13897_v23  ;;  %v24817_v45 = vld [vmem:[#allocation185_spill] sm:$0xff]  ;;  %v24818_v18 = vld [vmem:[#allocation131_spill] sm:$0xff] }
 0x425   :  { %24814 = vst [vmem:[#allocation203_spill] sm:$0xff] %v22231_v30  ;;  %v14266_v53 = vrot.slane %v24815_v1, %v24681_v19  ;;  %13587 = vperm.xlu0 %15586, %v12792_v15   ;;  %v22240_v49 = vcombine.low %v11968_v55, %v11975_v7  ;;  %v11985_v54 = vrot.slane %v24816_v16, %v16681_v42  ;;  %v24819_v47 = vld [vmem:[#allocation87_spill] sm:$0xff]  ;;  %v24821_v16 = vld [vmem:[#allocation128_spill] sm:$0xff] }
 0x426   :  { %v13907_v36 = vsel %vm13655_vm8, %v13906_v28, %v13902_v31  ;;  %v12486_v30 = vcombine.low %v12478_v10, %v12485_v61  ;;  %v11992_v20 = vrot.slane %v24817_v45, %v16681_v42  ;;  %v12002_v4 = vrot.slane %v24818_v18, %v16681_v42  ;;  %v24820_v28 = vld [vmem:[#allocation117_spill] sm:$0xff]  ;;  %v24846_v18 = vld [vmem:[#allocation58_spill] sm:$0xff] }
 0x427   :  { %v14267_v33 = vsel %vm13606_vm1, %v14266_v53, %v14262_v9  ;;  %v12265_v52 = vcombine.low %v12257_v17, %v12264_v44  ;;  %v12801_v23 = vrot.slane %v24819_v47, %v16681_v42  ;;  %v12808_v7 = vrot.slane %v22078_v60, %v16681_v42  ;;  %v22257_v15 = vpop.permute.xlu0 %13392  ;;  %v24822_v9 = vld [vmem:[#allocation69_spill] sm:$0xff]  ;;  %v24823_v44 = vld [vmem:[#allocation75_spill] sm:$0xff]  ;;  %v24824_v47 = vld [vmem:[#allocation70_spill] sm:$0xff] }
 0x428   :  { %v14272_v55 = vsel %vm13613_vm2, %v14271_v25, %v14267_v33  ;;  %v14281_v10 = vrot.slane %v24820_v28, %v24691_v2  ;;  %v13360_v61 = vpop.permute.xlu1 %13359  ;;  %13533 = vperm.xlu1 %15587, %v12486_v30   ;;  %v12495_v31 = vrot.slane %v24821_v16, %v16681_v42  ;;  %v12502_v17 = vrot.slane %v24822_v9, %v16681_v42 }
 0x429   :  { %v14276_v1 = vrot.slane %v24823_v44, %v24688_v57  ;;  %v14420_v60 = vrot.slane %v22021_v50, %v24677_v34  ;;  %v14499_v25 = vrot.slane %v22087_v51, %v24677_v34  ;;  %v14503_v53 = vrot.slane %v13360_v61, %v24681_v19  ;;  %13494 = vperm.xlu0 %15586, %v12265_v52   ;;  %v24825_v50 = vld [vmem:[#allocation207_spill] sm:$0xff]  ;;  %v24826_v52 = vld [vmem:[#allocation121_spill] sm:$0xff] }
 0x42a   :  { %v13912_v30 = vsel %vm13662_vm9, %v13911_v35, %v13907_v36  ;;  %v14429_v45 = vrot.slane %v22051_v59, %v24685_v37  ;;  %v22273_v33 = vcombine.low %v11985_v54, %v11992_v20  ;;  %v12009_v28 = vrot.slane %v24824_v47, %v16681_v42  ;;  %v24827_v59 = vld [vmem:[#allocation81_spill] sm:$0xff] }
 0x42b   :  { %v14277_v16 = vsel %vm13620_vm3, %v14276_v1, %v14272_v55  ;;  %v14424_v9 = vrot.slane %v24825_v50, %v24681_v19  ;;  %v14504_v51 = vsel %vm13606_vm1, %v14503_v53, %v14499_v25  ;;  %v12809_v44 = vcombine.low %v12801_v23, %v12808_v7  ;;  %v22288_v55 = vpop.permute.xlu0 %13398  ;;  %v24828_v1 = vld [vmem:[#allocation218_spill] sm:$0xff] }
 0x42c   :  { %v13916_v61 = vrot.slane %v24826_v52, %v24719_v29  ;;  %v14282_v35 = vsel %vm13627_vm4, %v14281_v10, %v14277_v16  ;;  %v14291_v54 = vrot.slane %v24827_v59, %v24697_v22  ;;  %v14508_v20 = vrot.slane %v22116_v24, %v24685_v37  ;;  %v13366_v36 = vpop.permute.xlu1 %13365  ;;  %13440 = vperm.xlu1 %15587, %v11959_v6   ;;  %v24829_v6 = vld [vmem:[#allocation206_spill] sm:$0xff] }
 0x42d   :  { %v14286_v50 = vrot.slane %v24828_v1, %v24694_v27  ;;  %v14425_v23 = vsel %vm13606_vm1, %v14424_v9, %v14420_v60  ;;  %v14513_v7 = vrot.slane %v13366_v36, %v24688_v57  ;;  %13590 = vperm.xlu0 %15586, %v12809_v44   ;;  %v12503_v25 = vcombine.low %v12495_v31, %v12502_v17  ;;  %v24830_v9 = vld [vmem:[#allocation188_spill] sm:$0xff] }
 0x42e   :  { %v14430_v10 = vsel %vm13613_vm2, %v14429_v45, %v14425_v23  ;;  %v14439_v53 = vrot.slane %v22085_v12, %v24691_v2  ;;  %v14509_v24 = vsel %vm13613_vm2, %v14508_v20, %v14504_v51  ;;  %v12818_v16 = vrot.slane %v24829_v6, %v16681_v42  ;;  %v24831_v12 = vld [vmem:[#allocation52_spill] sm:$0xff] }
 0x42f   :  { %v14287_v52 = vsel %vm13634_vm5, %v14286_v50, %v14282_v35  ;;  %v14434_v59 = vrot.slane %v21923_v43, %v24688_v57  ;;  %v14514_v60 = vsel %vm13620_vm3, %v14513_v7, %v14509_v24  ;;  %v12825_v31 = vrot.slane %v24830_v9, %v16681_v42  ;;  %v22312_v35 = vpop.permute.xlu0 %13401  ;;  %v24832_v43 = vld [vmem:[#allocation23_spill] sm:$0xff]  ;;  %v24834_v7 = vld [vmem:[#allocation254_spill] sm:$0xff] }
 0x430   :  { %v13917_v17 = vsel %vm13669_vm10, %v13916_v61, %v13912_v30  ;;  %v14292_v45 = vsel %vm13641_vm6, %v14291_v54, %v14287_v52  ;;  %v14301_v51 = vrot.slane %v24831_v12, %v24707_v56  ;;  %v14518_v44 = vrot.slane %v22146_v46, %v24691_v2  ;;  %v13372_v20 = vpop.permute.xlu1 %13371  ;;  %13536 = vperm.xlu1 %15587, %v12503_v25   ;;  %v24833_v30 = vld [vmem:[#allocation31_spill] sm:$0xff]  ;;  %v24835_v52 = vld [vmem:[#allocation106_spill] sm:$0xff] }
 0x431   :  { %v14296_v36 = vrot.slane %v24832_v43, %v24703_v38  ;;  %v14435_v1 = vsel %vm13620_vm3, %v14434_v59, %v14430_v10  ;;  %v14523_v50 = vrot.slane %v13372_v20, %v24694_v27  ;;  %13497 = vperm.xlu0 %15586, %v22235_v62   ;;  %v12512_v61 = vrot.slane %v24833_v30, %v16681_v42 }
 0x432   :  { %v14440_v54 = vsel %vm13627_vm4, %v14439_v53, %v14435_v1  ;;  %v14449_v46 = vrot.slane %v22114_v40, %v24697_v22  ;;  %v14519_v23 = vsel %vm13627_vm4, %v14518_v44, %v14514_v60  ;;  %v12519_v25 = vrot.slane %v24834_v7, %v16681_v42  ;;  %v24836_v40 = vld [vmem:[#allocation93_spill] sm:$0xff]  ;;  %v24839_v7 = vld [vmem:[#allocation244_spill] sm:$0xff] }
 0x433   :  { %v14297_v24 = vsel %vm13648_vm7, %v14296_v36, %v14292_v45  ;;  %v14444_v10 = vrot.slane %v21948_v8, %v24694_v27  ;;  %v14524_v62 = vsel %vm13634_vm5, %v14523_v50, %v14519_v23  ;;  %v12826_v6 = vcombine.low %v12818_v16, %v12825_v31  ;;  %v22339_v45 = vpop.permute.xlu0 %13407  ;;  %v15042_v8 = vld [vmem:[%s23128_s1 + $0x2f8] sm:$0xff] }
 0x434   :  { %v13926_v59 = vrot.slane %v24835_v52, %v24732_v3  ;;  %v14302_v53 = vsel %vm13655_vm8, %v14301_v51, %v14297_v24  ;;  %v14311_v9 = vrot.slane %v24836_v40, %v24719_v29  ;;  %v14528_v60 = vrot.slane %v22176_v0, %v24697_v22  ;;  %v13378_v12 = vpop.permute.xlu1 %13377  ;;  %13443 = vperm.xlu1 %15587, %v22240_v49   ;;  %v15074_v16 = vld [vmem:[%s23128_s1 + $0x3f8] sm:$0xff]  ;;  %v24840_v24 = vld [vmem:[#allocation88_spill] sm:$0xff] }
 0x435   :  { %v24837_v31 = vld [vmem:[#allocation157_spill] sm:$0xff]  ;;  %v14445_v44 = vsel %vm13634_vm5, %v14444_v10, %v14440_v54  ;;  %v14533_v0 = vrot.slane %v13378_v12, %v24703_v38  ;;  %13593 = vperm.xlu0 %15586, %v12826_v6   ;;  %15508 = vmatprep.subr.mxu0 %v15042_v8  ;;  %v14459_v20 = vrot.slane %v22144_v32, %v24707_v56  ;;  %v24842_v40 = vld [vmem:[#allocation246_spill] sm:$0xff] }
 0x436   :  { %v14306_v51 = vrot.slane %v24837_v31, %v24701_v58  ;;  %v14450_v49 = vsel %vm13641_vm6, %v14449_v46, %v14445_v44  ;;  %v14529_v43 = vsel %vm13641_vm6, %v14528_v60, %v14524_v62  ;;  %v12520_v36 = vcombine.low %v12512_v61, %v12519_v25  ;;  %15543 = vmatprep.subr.mxu1 %v15074_v16  ;;  %v24841_v6 = vld [vmem:[#allocation17_spill] sm:$0xff]  ;;  %v24843_v60 = vld [vmem:[#allocation212_spill] sm:$0xff] }
 0x437   :  { %v24838_v1 = vrot.slane %v24812_v5, %v24705_v41  ;;  %v14454_v54 = vrot.slane %v21972_v39, %v24703_v38  ;;  %v14534_v23 = vsel %vm13648_vm7, %v14533_v0, %v14529_v43  ;;  %v14321_v61 = vrot.slane %v24839_v7, %v24732_v3  ;;  %v24844_v44 = vld [vmem:[#allocation241_spill] sm:$0xff] }
 0x438   :  { %v14307_v30 = vsel %vm13662_vm9, %v14306_v51, %v14302_v53  ;;  %v14538_v25 = vrot.slane %v22199_v14, %v24707_v56  ;;  %v13384_v5 = vpop.permute.xlu1 %13383  ;;  %13539 = vperm.xlu1 %15587, %v12520_v36   ;;  %v14316_v10 = vrot.slane %v24840_v24, %v24705_v41  ;;  %v12529_v52 = vrot.slane %v24841_v6, %v16681_v42  ;;  %v24845_v36 = vld [vmem:[#allocation116_spill] sm:$0xff]  ;;  %v24851_v6 = vld [vmem:[#allocation251_spill] sm:$0xff] }
 0x439   :  { %v13922_v50 = vsel %vm13676_vm11, %v24838_v1, %v13917_v17  ;;  %v14312_v32 = vsel %vm13669_vm10, %v14311_v9, %v14307_v30  ;;  %v22369_v17 = vpop.permute.xlu0 %13455  ;;  %v14455_v39 = vsel %vm13648_vm7, %v14454_v54, %v14450_v49  ;;  %v14543_v62 = vrot.slane %v13384_v5, %v24701_v58  ;;  %v24848_v5 = vld [vmem:[#allocation257_spill] sm:$0xff] }
 0x43a   :  { %v13927_v46 = vsel %vm13683_vm12, %v13926_v59, %v13922_v50  ;;  %v14460_v59 = vsel %vm13655_vm8, %v14459_v20, %v14455_v39  ;;  %v14469_v53 = vrot.slane %v22174_v48, %v24719_v29  ;;  %v14539_v14 = vsel %vm13655_vm8, %v14538_v25, %v14534_v23  ;;  %v24847_v23 = vld [vmem:[#allocation249_spill] sm:$0xff] }
 0x43b   :  { %v12536_v9 = vrot.slane %v24842_v40, %v16681_v42  ;;  %v13931_v12 = vrot.slane %v24843_v60, %v24710_v13  ;;  %v14317_v8 = vsel %vm13676_vm11, %v14316_v10, %v14312_v32  ;;  %v14464_v16 = vrot.slane %v21996_v21, %v24701_v58  ;;  %v24849_v10 = vld [vmem:[#allocation72_spill] sm:$0xff] }
 0x43c   :  { %v14544_v31 = vsel %vm13662_vm9, %v14543_v62, %v14539_v14  ;;  %v14322_v51 = vsel %vm13683_vm12, %v14321_v61, %v14317_v8  ;;  %v14331_v48 = vrot.slane %v24844_v44, %v24738_v11  ;;  %v14548_v0 = vrot.slane %v22233_v26, %v24719_v29  ;;  %v13390_v49 = vpop.permute.xlu1 %13389  ;;  %13446 = vperm.xlu1 %15587, %v22273_v33   ;;  %v24850_v62 = vld [vmem:[#allocation202_spill] sm:$0xff]  ;;  %v24852_v14 = vld [vmem:[#allocation203_spill] sm:$0xff] }
 0x43d   :  { %v22395_v20 = vpop.permute.xlu0 %13503  ;;  %v12010_v21 = vcombine.low %v12002_v4, %v12009_v28  ;;  %v13932_v43 = vsel %vm13690_vm13, %v13931_v12, %v13927_v46  ;;  %v14326_v1 = vrot.slane %v24845_v36, %v24710_v13  ;;  %v14465_v50 = vsel %vm13662_vm9, %v14464_v16, %v14460_v59  ;;  %v24853_v8 = vld [vmem:[#allocation19_spill] sm:$0xff]  ;;  %v24854_v44 = vld [vmem:[#allocation74_spill] sm:$0xff] }
 0x43e   :  { %v14553_v26 = vrot.slane %v13390_v49, %v24705_v41  ;;  %v14470_v33 = vsel %vm13669_vm10, %v14469_v53, %v14465_v50  ;;  %v14479_v30 = vrot.slane %v22197_v63, %v24732_v3  ;;  %v14549_v47 = vsel %vm13669_vm10, %v14548_v0, %v14544_v31 }
 0x43f   :  { %v12537_v54 = vcombine.low %v12529_v52, %v12536_v9  ;;  %v13936_v4 = vrot.slane %v24846_v18, %v24738_v11  ;;  %v14327_v28 = vsel %vm13690_vm13, %v14326_v1, %v14322_v51  ;;  %v14474_v46 = vrot.slane %v24847_v23, %v24705_v41  ;;  %v24860_v23 = vld [vmem:[#allocation123_spill] sm:$0xff] }
 0x440   :  { %v14554_v32 = vsel %vm13676_vm11, %v14553_v26, %v14549_v47  ;;  %v14332_v7 = vsel %vm13697_vm14, %v14331_v48, %v14327_v28  ;;  %v14558_v61 = vrot.slane %v22257_v15, %v24732_v3  ;;  %v13396_v25 = vpop.permute.xlu1 %13395  ;;  %v12546_v24 = vrot.slane %v24848_v5, %v16681_v42  ;;  %v24855_v48 = vld [vmem:[#allocation245_spill] sm:$0xff] }
 0x441   :  { %13542 = vperm.xlu1 %15587, %v12537_v54   ;;  %v22421_v63 = vpop.permute.xlu0 %13551  ;;  %v12553_v39 = vrot.slane %v24849_v10, %v16681_v42  ;;  %v14336_v52 = vrot.slane %v24851_v6, %v24850_v62  ;;  %v14475_v59 = vsel %vm13676_vm11, %v14474_v46, %v14470_v33  ;;  %v14563_v53 = vrot.slane %v13396_v25, %v24710_v13  ;;  %v24857_v26 = vld [vmem:[#allocation73_spill] sm:$0xff]  ;;  %v24858_v33 = vld [vmem:[#allocation122_spill] sm:$0xff]  ;;  %v24861_v46 = vld [vmem:[#allocation152_spill] sm:$0xff] }
 0x442   :  { %v14480_v15 = vsel %vm13683_vm12, %v14479_v30, %v14475_v59  ;;  %v14489_v40 = vrot.slane %v24852_v14, %v24738_v11  ;;  %v14568_v9 = vrot.slane %v22288_v55, %v24738_v11  ;;  %v14559_v60 = vsel %vm13683_vm12, %v14558_v61, %v14554_v32 }
 0x443   :  { %v14337_v12 = vsel %vm13704_vm15, %v14336_v52, %v14332_v7  ;;  %v14484_v16 = vrot.slane %v24853_v8, %v24710_v13  ;;  %v14573_v31 = vrot.slane %v22312_v35, %v24850_v62  ;;  %v14564_v51 = vsel %vm13690_vm13, %v14563_v53, %v14559_v60  ;;  %v24859_v35 = vld [vmem:[#allocation48_spill] sm:$0xff] }
 0x444   :  { %v24856_v0 = vrot.slane %v24855_v48, %v24738_v11  ;;  %v13937_v55 = vsel %vm13697_vm14, %v13936_v4, %v13932_v43  ;;  %v14569_v36 = vsel %vm13697_vm14, %v14568_v9, %v14564_v51  ;;  %v13354_v1 = vpop.permute.xlu1 %13353  ;;  %v14893_v30 = vsel %vm14891_vm0, %v24858_v33, %v24857_v26 }
 0x445   :  { %13449 = vperm.xlu1 %15587, %v12010_v21   ;;  %v13459_v50 = vpop.permute.xlu0 %13458  ;;  %v13941_v47 = vrot.slane %v24859_v35, %v24850_v62  ;;  %v14485_v54 = vsel %vm13690_vm13, %v14484_v16, %v14480_v15  ;;  %v14574_v18 = vsel %vm13704_vm15, %v14573_v31, %v14569_v36  ;;  %v14494_v28 = vrot.slane %v13354_v1, %v24850_v62 }
 0x446   :  { %v13858_v49 = vsel %vm13697_vm14, %v24856_v0, %v24854_v44  ;;  %v14490_v43 = vsel %vm13697_vm14, %v14489_v40, %v14485_v54  ;;  %v12554_v4 = vcombine.low %v12546_v24, %v12553_v39  ;;  %v14892_v21 = vsel %vm14891_vm0, %v14337_v12, %v24860_v23 }
 0x447   :  { %v24862_v32 = vrot.slane %v24861_v46, %v24850_v62  ;;  %v13942_v61 = vsel %vm13704_vm15, %v13941_v47, %v13937_v55  ;;  %v14495_v25 = vsel %vm13704_vm15, %v14494_v28, %v14490_v43  ;;  %v14900_v5 = vcombine.low %v14892_v21, %v14893_v30  ;;  %v15026_v30 = vld [vmem:[%s23128_s1 + $0x278] sm:$0xff]  ;;  %v15073_v28 = vld [vmem:[%s23128_s1 + $0x3f0] sm:$0xff] }
 0x448   :  { %v13405_v6 = vpop.permute.xlu1 %13404  ;;  %v14895_v24 = vsel %vm14891_vm0, %v14574_v18, %v13942_v61  ;;  %v14582_v39 = vrot.slane %v22339_v45, %v24681_v19  ;;  %v14661_v12 = vrot.slane %v22369_v17, %v24681_v19  ;;  %v14666_v45 = vrot.slane %v13459_v50, %v24685_v37  ;;  %v15058_v47 = vld [vmem:[%s23128_s1 + $0x378] sm:$0xff]  ;;  %v15025_v43 = vld [vmem:[%s23128_s1 + $0x270] sm:$0xff]  ;;  %v15024_v61 = vld [vmem:[%s23128_s1 + $0x268] sm:$0xff] }
 0x449   :  { %v13863_v7 = vsel %vm13704_vm15, %v24862_v32, %v13858_v49  ;;  %13545 = vperm.xlu1 %15587, %v12554_v4   ;;  %v13555_v52 = vpop.permute.xlu0 %13554  ;;  %v14578_v59 = vrot.slane %v13405_v6, %v24677_v34  ;;  %v14908_v14 = vrot.slane %v14900_v5, %v16681_v42  ;;  %v14740_v17 = vrot.slane %v22395_v20, %v24681_v19  ;;  %v15041_v20 = vld [vmem:[%s23128_s1 + $0x2f0] sm:$0xff]  ;;  %v15040_v32 = vld [vmem:[%s23128_s1 + $0x2e8] sm:$0xff] }
 0x44a   :  { %v14894_v10 = vsel %vm14891_vm0, %v14495_v25, %v13863_v7  ;;  %v14819_v4 = vrot.slane %v22421_v63, %v24681_v19  ;;  %v15057_v46 = vld [vmem:[%s23128_s1 + $0x370] sm:$0xff]  ;;  %v14824_v7 = vrot.slane %v13555_v52, %v24685_v37  ;;  %v15072_v63 = vld [vmem:[%s23128_s1 + $0x3e8] sm:$0xff]  ;;  %v15039_v52 = vld [vmem:[%s23128_s1 + $0x2e0] sm:$0xff] }
 0x44b   :  { %v14901_v53 = vcombine.low %v14894_v10, %v14895_v24  ;;  %v22473_v15 = vsel %vm13606_vm1, %v14582_v39, %v14578_v59  ;;  %v15056_v6 = vld [vmem:[%s23128_s1 + $0x368] sm:$0xff] }
 0x44c   :  { %v13453_v9 = vpop.permute.xlu1 %13452 }
 0x44d   :  { %v14915_v40 = vrot.slane %v14901_v53, %v16681_v42  ;;  %v13462_v60 = vpop.permute.xlu0 %13461  ;;  %v14657_v8 = vrot.slane %v13453_v9, %v24677_v34  ;;  %v15071_v53 = vld [vmem:[%s23128_s1 + $0x3e0] sm:$0xff] }
 0x44e   :  { %v14671_v44 = vrot.slane %v13462_v60, %v24688_v57 }
 0x44f   :  { %v14916_v16 = vcombine.low %v14908_v14, %v14915_v40  ;;  %v15436_v31 = vcombine.low %v14915_v40, %v14915_v40  ;;  %v14662_v51 = vsel %vm13606_vm1, %v14661_v12, %v14657_v8  ;;  %v15023_v14 = vld [vmem:[%s23128_s1 + $0x260] sm:$0xff]  ;;  %v15038_v8 = vld [vmem:[%s23128_s1 + $0x2d8] sm:$0xff] }
 0x450   :  { %v14667_v49 = vsel %vm13613_vm2, %v14666_v45, %v14662_v51  ;;  %v13501_v55 = vpop.permute.xlu1 %13500  ;;  %v15055_v12 = vld [vmem:[%s23128_s1 + $0x360] sm:$0xff] }
 0x451   :  { %v15091_v48 = vrot.slane %v14916_v16, %v16681_v42  ;;  %14945 = vst [vmem:[#allocation3] sm:$0xff] %v14916_v16  ;;  %v15098_v0 = vrot.slane %v15436_v31, %v16681_v42  ;;  %v13558_v36 = vpop.permute.xlu0 %13557  ;;  %v14672_v1 = vsel %vm13620_vm3, %v14671_v44, %v14667_v49  ;;  %v14736_v50 = vrot.slane %v13501_v55, %v24677_v34  ;;  %v15070_v16 = vld [vmem:[%s23128_s1 + $0x3d8] sm:$0xff]  ;;  %v15021_v55 = vld [vmem:[%s23128_s1 + $0x250] sm:$0xff] }
 0x452   :  { %v14829_v25 = vrot.slane %v13558_v36, %v24688_v57  ;;  %v15022_v31 = vld [vmem:[%s23128_s1 + $0x258] sm:$0xff] }
 0x453   :  { %v15099_v26 = vcombine.high %v15091_v48, %v15091_v48  ;;  %v15100_v33 = vcombine.high %v15098_v0, %v15098_v0  ;;  %v22494_v35 = vsel %vm13606_vm1, %v14740_v17, %v14736_v50  ;;  %v15054_v44 = vld [vmem:[%s23128_s1 + $0x358] sm:$0xff]  ;;  %v15036_v50 = vld [vmem:[%s23128_s1 + $0x2c8] sm:$0xff] }
 0x454   :  { %v13549_v54 = vpop.permute.xlu1 %13548 }
 0x455   :  { %15190 = vmatprep.mubr.f32.mxu0 %v15099_v26  ;;  %15260 = vmatprep.mubr.f32.mxu1 %v15100_v33  ;;  %v13465_v18 = vpop.permute.xlu0 %13464  ;;  %v14815_v23 = vrot.slane %v13549_v54, %v24677_v34  ;;  %v15068_v26 = vld [vmem:[%s23128_s1 + $0x3c8] sm:$0xff]  ;;  %v15035_v54 = vld [vmem:[%s23128_s1 + $0x2c0] sm:$0xff] }
 0x456   :  { %15191 = vmatmul.mubr.f32.vlgmr.msra.gmra.mxu0 %v15091_v48  ;;  %15261 = vmatmul.mubr.f32.vlgmr.msra.gmra.mxu1 %v15098_v0  ;;  %v14676_v21 = vrot.slane %v13465_v18, %v24691_v2  ;;  %v15037_v48 = vld [vmem:[%s23128_s1 + $0x2d0] sm:$0xff]  ;;  %v15020_v33 = vld [vmem:[%s23128_s1 + $0x248] sm:$0xff] }
 0x457   :  { %15509 = vmatpush3.msra.mxu0 %v15026_v30  ;;  %15544 = vmatpush3.msra.mxu1 %v15058_v47  ;;  %v14820_v5 = vsel %vm13606_vm1, %v14819_v4, %v14815_v23 }
 0x458   :  { %15510 = vmatprep.subr.mxu0 %v15041_v20  ;;  %v14677_v10 = vsel %vm13627_vm4, %v14676_v21, %v14672_v1  ;;  %15545 = vmatprep.subr.mxu1 %v15073_v28  ;;  %v14825_v24 = vsel %vm13613_vm2, %v14824_v7, %v14820_v5  ;;  %v13411_v39 = vpop.permute.xlu1 %13410  ;;  %v15053_v1 = vld [vmem:[%s23128_s1 + $0x350] sm:$0xff]  ;;  %v15052_v20 = vld [vmem:[%s23128_s1 + $0x348] sm:$0xff]  ;;  %v15051_v21 = vld [vmem:[%s23128_s1 + $0x340] sm:$0xff] }
 0x459   :  { %15511 = vmatpush3.msra.mxu0 %v15025_v43  ;;  %v13561_v59 = vpop.permute.xlu0 %13560  ;;  %15546 = vmatpush3.msra.mxu1 %v15057_v46  ;;  %v14587_v40 = vrot.slane %v13411_v39, %v24685_v37  ;;  %v14830_v9 = vsel %vm13620_vm3, %v14829_v25, %v14825_v24  ;;  %v15019_v43 = vld [vmem:[%s23128_s1 + $0x240] sm:$0xff]  ;;  %v15034_v46 = vld [vmem:[%s23128_s1 + $0x2b8] sm:$0xff]  ;;  %v15033_v5 = vld [vmem:[%s23128_s1 + $0x2b0] sm:$0xff] }
 0x45a   :  { %15512 = vmatprep.subr.mxu0 %v15040_v32  ;;  %v14834_v60 = vrot.slane %v13561_v59, %v24691_v2  ;;  %15547 = vmatprep.subr.mxu1 %v15072_v63  ;;  %v15066_v32 = vld [vmem:[%s23128_s1 + $0x3b8] sm:$0xff]  ;;  %v15017_v24 = vld [vmem:[%s23128_s1 + $0x230] sm:$0xff] }
 0x45b   :  { %15513 = vmatpush3.msra.mxu0 %v15024_v61  ;;  %15548 = vmatpush3.msra.mxu1 %v15056_v6  ;;  %v14588_v45 = vsel %vm13613_vm2, %v14587_v40, %v22473_v15  ;;  %v15069_v15 = vld [vmem:[%s23128_s1 + $0x3d0] sm:$0xff]  ;;  %v15018_v7 = vld [vmem:[%s23128_s1 + $0x238] sm:$0xff]  ;;  %v15064_v40 = vld [vmem:[%s23128_s1 + $0x3a8] sm:$0xff] }
 0x45c   :  { %15514 = vmatprep.subr.mxu0 %v15039_v52  ;;  %v14835_v51 = vsel %vm13627_vm4, %v14834_v60, %v14830_v9  ;;  %15549 = vmatprep.subr.mxu1 %v15071_v53  ;;  %v13507_v0 = vpop.permute.xlu1 %13506  ;;  %v15050_v25 = vld [vmem:[%s23128_s1 + $0x338] sm:$0xff]  ;;  %v15065_v52 = vld [vmem:[%s23128_s1 + $0x3b0] sm:$0xff]  ;;  %v15016_v9 = vld [vmem:[%s23128_s1 + $0x228] sm:$0xff] }
 0x45d   :  { %15515 = vmatpush3.msra.mxu0 %v15023_v14  ;;  %v13468_v49 = vpop.permute.xlu0 %13467  ;;  %15550 = vmatpush3.msra.mxu1 %v15055_v12  ;;  %v14745_v36 = vrot.slane %v13507_v0, %v24685_v37  ;;  %v15049_v53 = vld [vmem:[%s23128_s1 + $0x330] sm:$0xff]  ;;  %v15032_v14 = vld [vmem:[%s23128_s1 + $0x2a8] sm:$0xff]  ;;  %v15047_v0 = vld [vmem:[%s23128_s1 + $0x320] sm:$0xff] }
 0x45e   :  { %15516 = vmatprep.subr.mxu0 %v15038_v8  ;;  %v14681_v17 = vrot.slane %v13468_v49, %v24694_v27  ;;  %15551 = vmatprep.subr.mxu1 %v15070_v16  ;;  %v15048_v8 = vld [vmem:[%s23128_s1 + $0x328] sm:$0xff]  ;;  %v15031_v16 = vld [vmem:[%s23128_s1 + $0x2a0] sm:$0xff]  ;;  %v15030_v49 = vld [vmem:[%s23128_s1 + $0x298] sm:$0xff] }
 0x45f   :  { %15517 = vmatpush3.msra.mxu0 %v15022_v31  ;;  %15552 = vmatpush3.msra.mxu1 %v15054_v44  ;;  %v14746_v30 = vsel %vm13613_vm2, %v14745_v36, %v22494_v35  ;;  %v15067_v35 = vld [vmem:[%s23128_s1 + $0x3c0] sm:$0xff] }
 0x460   :  { %15518 = vmatprep.subr.mxu0 %v15037_v48  ;;  %v14682_v47 = vsel %vm13634_vm5, %v14681_v17, %v14677_v10  ;;  %15553 = vmatprep.subr.mxu1 %v15069_v15  ;;  %v13414_v18 = vpop.permute.xlu1 %13413  ;;  %v15015_v44 = vld [vmem:[%s23128_s1 + $0x220] sm:$0xff]  ;;  %v15062_v15 = vld [vmem:[%s23128_s1 + $0x398] sm:$0xff] }
 0x461   :  { %15519 = vmatpush3.msra.mxu0 %v15021_v55  ;;  %v13564_v28 = vpop.permute.xlu0 %13563  ;;  %15554 = vmatpush3.msra.mxu1 %v15053_v1  ;;  %v14592_v4 = vrot.slane %v13414_v18, %v24688_v57  ;;  %v15014_v55 = vld [vmem:[%s23128_s1 + $0x218] sm:$0xff]  ;;  %v15029_v1 = vld [vmem:[%s23128_s1 + $0x290] sm:$0xff]  ;;  %v15060_v18 = vld [vmem:[%s23128_s1 + $0x388] sm:$0xff] }
 0x462   :  { %15520 = vmatprep.subr.mxu0 %v15036_v50  ;;  %v14839_v23 = vrot.slane %v13564_v28, %v24694_v27  ;;  %15555 = vmatprep.subr.mxu1 %v15068_v26  ;;  %v15046_v17 = vld [vmem:[%s23128_s1 + $0x318] sm:$0xff]  ;;  %v15012_v28 = vld [vmem:[%s23128_s1 + $0x208] sm:$0xff] }
 0x463   :  { %15521 = vmatpush3.msra.mxu0 %v15020_v33  ;;  %15556 = vmatpush3.msra.mxu1 %v15052_v20  ;;  %v14593_v63 = vsel %vm13620_vm3, %v14592_v4, %v14588_v45  ;;  %v15061_v33 = vld [vmem:[%s23128_s1 + $0x390] sm:$0xff]  ;;  %v15027_v4 = vld [vmem:[%s23128_s1 + $0x280] sm:$0xff] }
 0x464   :  { %15522 = vmatprep.subr.mxu0 %v15035_v54  ;;  %v22616_v61 = vsel %vm13634_vm5, %v14839_v23, %v14835_v51  ;;  %15557 = vmatprep.subr.mxu1 %v15067_v35  ;;  %v13510_v10 = vpop.permute.xlu1 %13509  ;;  %v15063_v51 = vld [vmem:[%s23128_s1 + $0x3a0] sm:$0xff]  ;;  %v15045_v20 = vld [vmem:[%s23128_s1 + $0x310] sm:$0xff]  ;;  %v15028_v54 = vld [vmem:[%s23128_s1 + $0x288] sm:$0xff] }
 0x465   :  { %15523 = vmatpush3.msra.mxu0 %v15019_v43  ;;  %v13471_v6 = vpop.permute.xlu0 %13470  ;;  %15558 = vmatpush3.msra.mxu1 %v15051_v21  ;;  %v14750_v39 = vrot.slane %v13510_v10, %v24688_v57  ;;  %v15044_v43 = vld [vmem:[%s23128_s1 + $0x308] sm:$0xff] }
 0x466   :  { %15524 = vmatprep.subr.mxu0 %v15034_v46  ;;  %v14686_v59 = vrot.slane %v13471_v6, %v24697_v22  ;;  %15559 = vmatprep.subr.mxu1 %v15066_v32  ;;  %v15059_v46 = vld [vmem:[%s23128_s1 + $0x380] sm:$0xff] }
 0x467   :  { %15525 = vmatpush3.msra.mxu0 %v15018_v7  ;;  %15560 = vmatpush3.msra.mxu1 %v15050_v25  ;;  %v14751_v60 = vsel %vm13620_vm3, %v14750_v39, %v14746_v30  ;;  %v15013_v30 = vld [vmem:[%s23128_s1 + $0x210] sm:$0xff]  ;;  %v15011_v32 = vld [vmem:[%s23128_s1 + $0x200] sm:$0xff] }
 0x468   :  { %15526 = vmatprep.subr.mxu0 %v15033_v5  ;;  %v22646_v12 = vsel %vm13641_vm6, %v14686_v59, %v14682_v47  ;;  %15561 = vmatprep.subr.mxu1 %v15065_v52  ;;  %v13417_v31 = vpop.permute.xlu1 %13416 }
 0x469   :  { %15527 = vmatpush3.msra.mxu0 %v15017_v24  ;;  %v22654_v45 = vpop.permute.xlu0 %13566  ;;  %15562 = vmatpush3.msra.mxu1 %v15049_v53  ;;  %v14597_v48 = vrot.slane %v13417_v31, %v24691_v2 }
 0x46a   :  { %15528 = vmatprep.subr.mxu0 %v15032_v14  ;;  %15563 = vmatprep.subr.mxu1 %v15064_v40 }
 0x46b   :  { %15529 = vmatpush3.msra.mxu0 %v15016_v9  ;;  %15564 = vmatpush3.msra.mxu1 %v15048_v8  ;;  %v14598_v36 = vsel %vm13627_vm4, %v14597_v48, %v14593_v63  ;;  %v15043_v63 = vld [vmem:[%s23128_s1 + $0x300] sm:$0xff]  ;;  %s15638_s1 = smov [#allocation3]  }
 0x46c   :  { %15530 = vmatprep.subr.mxu0 %v15031_v16  ;;  %15565 = vmatprep.subr.mxu1 %v15063_v51  ;;  %v13513_v50 = vpop.permute.xlu1 %13512  ;;  %s15413_s19 = sshll.u32 %s15638_s1, 4  ;;  %s15414_s19 = int_to_ptr.vmem [resolvable:$true] %s15413_s19 }
 0x46d   :  { %15531 = vmatpush3.msra.mxu0 %v15015_v44  ;;  %v22682_v26 = vpop.permute.xlu0 %13473  ;;  %15566 = vmatpush3.msra.mxu1 %v15047_v0  ;;  %v14755_v47 = vrot.slane %v13513_v50, %v24691_v2  ;;  %v24863_v0 = vld [vmem:[#allocation127_spill] sm:$0xff]  ;;  %s15588_s20 = scalar_lea.vmem %s15414_s19, 256  ;;  %p15593_p1 = scmp.lt.s32.totalorder %s15414_s19, %s15414_s19 }
 0x46e   :  { %15532 = vmatprep.subr.mxu0 %v15030_v49  ;;  %15567 = vmatprep.subr.mxu1 %v15062_v15  ;;  %v13946_v49 = vrot.slane %v24863_v0, %v24677_v34  ;;  %v24864_v15 = vld [vmem:[#allocation113_spill] sm:$0xff]  ;;  %p15589_p0 = scmp.ne.s32.totalorder %s15414_s19, %s15588_s20  ;;  %p15594_p2 = scmp.lt.s32.totalorder %s15588_s20, %s15588_s20 }
 0x46f   :  { %15533 = vmatpush3.msra.mxu0 %v15014_v55  ;;  %15568 = vmatpush3.msra.mxu1 %v15046_v17  ;;  %v14756_v35 = vsel %vm13627_vm4, %v14755_v47, %v14751_v60  ;;  %v13955_v55 = vrot.slane %v24864_v15, %v24685_v37  ;;  %v24867_v47 = vld [vmem:[#allocation243_spill] sm:$0xff] }
 0x470   :  { %15534 = vmatprep.subr.mxu0 %v15029_v1  ;;  %15569 = vmatprep.subr.mxu1 %v15061_v33  ;;  %v13420_v23 = vpop.permute.xlu1 %13419  ;;  %v24866_v1 = vld [vmem:[#allocation193_spill] sm:$0xff]  ;;  %p15595_p3 = por %p15594_p2, %p15593_p1 }
 0x471   :  { %15535 = vmatpush3.msra.mxu0 %v15013_v30  ;;  %v22710_v21 = vpop.permute.xlu0 %13569  ;;  %15570 = vmatpush3.msra.mxu1 %v15045_v20  ;;  %v14602_v7 = vrot.slane %v13420_v23, %v24694_v27  ;;  %v14025_v50 = vrot.slane %v24866_v1, %v24677_v34  ;;  %v14034_v20 = vrot.slane %v24867_v47, %v24685_v37  ;;  %v24870_v23 = vld [vmem:[#allocation98_spill] sm:$0xff]  ;;  %v24875_v1 = vld [vmem:[#allocation33_spill] sm:$0xff]  ;;  %v24876_v47 = vld [vmem:[#allocation160_spill] sm:$0xff] }
 0x472   :  { %15536 = vmatprep.subr.mxu0 %v15028_v54  ;;  %15571 = vmatprep.subr.mxu1 %v15060_v18  ;;  %v24868_v18 = vld [vmem:[#allocation205_spill] sm:$0xff]  ;;  %p15596_p4 = pnand %p15595_p3, %p15589_p0 }
 0x473   :  { %15537 = vmatpush3.msra.mxu0 %v15012_v28  ;;  %15572 = vmatpush3.msra.mxu1 %v15044_v43  ;;  %v14603_v25 = vsel %vm13634_vm5, %v14602_v7, %v14598_v36  ;;  %v24865_v36 = vld [vmem:[#allocation219_spill] sm:$0xff]  ;;  %v14029_v28 = vrot.slane %v24868_v18, %v24681_v19  ;;  %v24869_v43 = vld [vmem:[#allocation196_spill] sm:$0xff] }
 0x474   :  { %15538 = vmatprep.subr.mxu0 %v15027_v4  ;;  %15573 = vmatprep.subr.mxu1 %v15059_v46  ;;  %v13516_v5 = vpop.permute.xlu1 %13515  ;;  %v13950_v17 = vrot.slane %v24865_v36, %v24681_v19  ;;  %v13965_v4 = vrot.slane %v24869_v43, %v24691_v2  ;;  %v13960_v46 = vrot.slane %v24870_v23, %v24688_v57  ;;  %v24879_v23 = vld [vmem:[#allocation105_spill] sm:$0xff] }
 0x475   :  { %15539 = vmatpush3.msra.mxu0 %v15011_v32  ;;  %v22723_v10 = vpop.permute.xlu0 %13476  ;;  %15574 = vmatpush3.msra.mxu1 %v15043_v63  ;;  %v14760_v6 = vrot.slane %v13516_v5, %v24694_v27  ;;  %v14030_v32 = vsel %vm13606_vm1, %v14029_v28, %v14025_v50  ;;  %v24871_v5 = vld [vmem:[#allocation78_spill] sm:$0xff]  ;;  %v13975_v50 = vrot.slane %v24875_v1, %v24697_v22  ;;  %v24878_v28 = vld [vmem:[#allocation151_spill] sm:$0xff]  ;;  %v24882_v1 = vld [vmem:[#allocation197_spill] sm:$0xff] }
 0x476   :  { %v13951_v54 = vsel %vm13606_vm1, %v13950_v17, %v13946_v49  ;;  %v24873_v49 = vld [vmem:[#allocation174_spill] sm:$0xff] }
 0x477   :  { %v22727_v52 = vsel %vm13634_vm5, %v14760_v6, %v14756_v35  ;;  %v13956_v35 = vsel %vm13613_vm2, %v13955_v55, %v13951_v54  ;;  %v14044_v6 = vrot.slane %v24871_v5, %v24691_v2  ;;  %v14039_v15 = vrot.slane %v24873_v49, %v24688_v57  ;;  %v24874_v55 = vld [vmem:[#allocation28_spill] sm:$0xff]  ;;  %v24877_v54 = vld [vmem:[#allocation110_spill] sm:$0xff]  ;;  %v24880_v5 = vld [vmem:[#allocation149_spill] sm:$0xff] }
 0x478   :  { %v13423_v24 = vpop.permute.xlu1 %13422  ;;  %v13961_v0 = vsel %vm13620_vm3, %v13960_v46, %v13956_v35  ;;  %v14113_v36 = vrot.slane %v24874_v55, %v24685_v37  ;;  %v14183_v18 = vrot.slane %v24877_v54, %v24677_v34  ;;  %v13970_v35 = vrot.slane %v24878_v28, %v24694_v27  ;;  %v24881_v49 = vld [vmem:[#allocation30_spill] sm:$0xff]  ;;  %v24884_v28 = vld [vmem:[#allocation172_spill] sm:$0xff] }
 0x479   :  { %v22729_v39 = vpop.permute.xlu0 %13572  ;;  %v14607_v59 = vrot.slane %v13423_v24, %v24697_v22  ;;  %v24872_v24 = vld [vmem:[#allocation173_spill] sm:$0xff]  ;;  %v13966_v17 = vsel %vm13627_vm4, %v13965_v4, %v13961_v0  ;;  %v14192_v46 = vrot.slane %v24879_v23, %v24685_v37 }
 0x47a   :  { %v13971_v55 = vsel %vm13634_vm5, %v13970_v35, %v13966_v17  ;;  %v24883_v37 = vld [vmem:[#allocation237_spill] sm:$0xff]  ;;  %v24886_v35 = vld [vmem:[#allocation108_spill] sm:$0xff] }
 0x47b   :  { %v22733_v53 = vsel %vm13641_vm6, %v14607_v59, %v14603_v25  ;;  %v14035_v25 = vsel %vm13613_vm2, %v14034_v20, %v14030_v32  ;;  %v14104_v59 = vrot.slane %v24872_v24, %v24677_v34  ;;  %v14108_v20 = vrot.slane %v24876_v47, %v24681_v19 }
 0x47c   :  { %v22735_v14 = vpop.permute.xlu1 %13518  ;;  %v14040_v43 = vsel %vm13620_vm3, %v14039_v15, %v14035_v25  ;;  %v14054_v24 = vrot.slane %v24880_v5, %v24697_v22  ;;  %v14187_v34 = vrot.slane %v24881_v49, %v24681_v19  ;;  %v14049_v25 = vrot.slane %v24882_v1, %v24694_v27  ;;  %v24887_v5 = vld [vmem:[#allocation9_spill] sm:$0xff] }
 0x47d   :  { %v22737_v40 = vpop.permute.xlu0 %13479  ;;  %v14045_v4 = vsel %vm13627_vm4, %v14044_v6, %v14040_v43  ;;  %v14109_v0 = vsel %vm13606_vm1, %v14108_v20, %v14104_v59  ;;  %v14123_v47 = vrot.slane %v24883_v37, %v24691_v2  ;;  %v13976_v6 = vsel %vm13641_vm6, %v13975_v50, %v13971_v55  ;;  %v24885_v20 = vld [vmem:[#allocation158_spill] sm:$0xff] }
 0x47e   :  { %v14114_v15 = vsel %vm13613_vm2, %v14113_v36, %v14109_v0  ;;  %v13985_v59 = vrot.slane %v24884_v28, %v24707_v56  ;;  %v14118_v19 = vrot.slane %v24885_v20, %v24688_v57  ;;  %v14188_v17 = vsel %vm13606_vm1, %v14187_v34, %v14183_v18  ;;  %v24888_v55 = vld [vmem:[#allocation162_spill] sm:$0xff] }
 0x47f   :  { %v13980_v43 = vrot.slane %v24886_v35, %v24703_v38  ;;  %v14050_v36 = vsel %vm13634_vm5, %v14049_v25, %v14045_v4  ;;  %v14193_v23 = vsel %vm13613_vm2, %v14192_v46, %v14188_v17  ;;  %v14202_v0 = vrot.slane %v24887_v5, %v24691_v2  ;;  %v24889_v18 = vld [vmem:[#allocation234_spill] sm:$0xff]  ;;  %v24891_v2 = vld [vmem:[#allocation179_spill] sm:$0xff] }
 0x480   :  { %v22739_v9 = vpop.permute.xlu1 %13425  ;;  %v14055_v50 = vsel %vm13641_vm6, %v14054_v24, %v14050_v36  ;;  %v14064_v1 = vrot.slane %v24888_v55, %v24707_v56  ;;  %v14119_v37 = vsel %vm13620_vm3, %v14118_v19, %v14114_v15  ;;  %v14197_v34 = vrot.slane %v24889_v18, %v24688_v57  ;;  %v24890_v4 = vld [vmem:[#allocation10_spill] sm:$0xff]  ;;  %v24892_v17 = vld [vmem:[#allocation67_spill] sm:$0xff] }
 0x481   :  { %v22741_v60 = vpop.permute.xlu0 %13575  ;;  %v13981_v28 = vsel %vm13648_vm7, %v13980_v43, %v13976_v6  ;;  %v14059_v46 = vrot.slane %v24890_v4, %v24703_v38  ;;  %v14124_v25 = vsel %vm13627_vm4, %v14123_v47, %v14119_v37  ;;  %v14133_v20 = vrot.slane %v24891_v2, %v24697_v22  ;;  %v24893_v15 = vld [vmem:[#allocation143_spill] sm:$0xff]  ;;  %v24894_v6 = vld [vmem:[#allocation154_spill] sm:$0xff] }
 0x482   :  { %v13986_v24 = vsel %vm13655_vm8, %v13985_v59, %v13981_v28  ;;  %v13995_v35 = vrot.slane %v24892_v17, %v24719_v29  ;;  %v14128_v19 = vrot.slane %v24893_v15, %v24694_v27  ;;  %v14198_v57 = vsel %vm13620_vm3, %v14197_v34, %v14193_v23  ;;  %v24895_v5 = vld [vmem:[#allocation111_spill] sm:$0xff]  ;;  %v24897_v34 = vld [vmem:[#allocation140_spill] sm:$0xff] }
 0x483   :  { %v13990_v43 = vrot.slane %v24894_v6, %v24701_v58  ;;  %v14060_v36 = vsel %vm13648_vm7, %v14059_v46, %v14055_v50  ;;  %v14203_v47 = vsel %vm13627_vm4, %v14202_v0, %v14198_v57  ;;  %v14212_v55 = vrot.slane %v24895_v5, %v24697_v22  ;;  %v24896_v28 = vld [vmem:[#allocation63_spill] sm:$0xff]  ;;  %v24900_v6 = vld [vmem:[#allocation198_spill] sm:$0xff] }
 0x484   :  { %v22743_v8 = vpop.permute.xlu1 %13521  ;;  %v14065_v18 = vsel %vm13655_vm8, %v14064_v1, %v14060_v36  ;;  %v14074_v4 = vrot.slane %v24896_v28, %v24719_v29  ;;  %v14129_v23 = vsel %vm13634_vm5, %v14128_v19, %v14124_v25  ;;  %v14207_v2 = vrot.slane %v24897_v34, %v24694_v27  ;;  %v24898_v0 = vld [vmem:[#allocation139_spill] sm:$0xff]  ;;  %v24903_v28 = vld [vmem:[#allocation20_spill] sm:$0xff] }
 0x485   :  { %v22745_v16 = vpop.permute.xlu0 %13482  ;;  %v13991_v50 = vsel %vm13662_vm9, %v13990_v43, %v13986_v24  ;;  %v14069_v46 = vrot.slane %v24898_v0, %v24701_v58  ;;  %v14134_v17 = vsel %vm13641_vm6, %v14133_v20, %v14129_v23  ;;  %v24899_v15 = vld [vmem:[#allocation147_spill] sm:$0xff]  ;;  %v14005_v36 = vrot.slane %v24900_v6, %v24732_v3 }
 0x486   :  { %v14143_v57 = vrot.slane %v24899_v15, %v24707_v56  ;;  %v13996_v1 = vsel %vm13669_vm10, %v13995_v35, %v13991_v50  ;;  %v24901_v25 = vld [vmem:[#allocation227_spill] sm:$0xff]  ;;  %v14208_v27 = vsel %vm13634_vm5, %v14207_v2, %v14203_v47  ;;  %v14222_v23 = vrot.slane %v24903_v28, %v24707_v56  ;;  %v24904_v50 = vld [vmem:[#allocation82_spill] sm:$0xff]  ;;  %v24909_v28 = vld [vmem:[#allocation221_spill] sm:$0xff] }
 0x487   :  { %v14138_v19 = vrot.slane %v24901_v25, %v24703_v38  ;;  %v24902_v24 = vld [vmem:[#allocation259_spill] sm:$0xff]  ;;  %v14070_v5 = vsel %vm13662_vm9, %v14069_v46, %v14065_v18  ;;  %v14213_v20 = vsel %vm13641_vm6, %v14212_v55, %v14208_v27  ;;  %v14084_v0 = vrot.slane %v24904_v50, %v24732_v3  ;;  %v24905_v47 = vld [vmem:[#allocation90_spill] sm:$0xff] }
 0x488   :  { %v22747_v31 = vpop.permute.xlu1 %13428  ;;  %v14000_v43 = vrot.slane %v24902_v24, %v24705_v41  ;;  %v14075_v35 = vsel %vm13669_vm10, %v14074_v4, %v14070_v5  ;;  %v14217_v2 = vrot.slane %v24905_v47, %v24703_v38  ;;  %v24906_v18 = vld [vmem:[#allocation242_spill] sm:$0xff]  ;;  %v24908_v5 = vld [vmem:[#allocation59_spill] sm:$0xff] }
 0x489   :  { %v22749_v51 = vpop.permute.xlu0 %13578  ;;  %v14139_v15 = vsel %vm13648_vm7, %v14138_v19, %v14134_v17  ;;  %v14079_v55 = vrot.slane %v24906_v18, %v24705_v41  ;;  %v24907_v25 = vld [vmem:[#allocation66_spill] sm:$0xff]  ;;  %v14148_v17 = vrot.slane %v24908_v5, %v24701_v58  ;;  %v24913_v5 = vld [vmem:[#allocation176_spill] sm:$0xff] }
 0x48a   :  { %v14001_v6 = vsel %vm13676_vm11, %v14000_v43, %v13996_v1  ;;  %v14144_v46 = vsel %vm13655_vm8, %v14143_v57, %v14139_v15  ;;  %v14153_v27 = vrot.slane %v24907_v25, %v24719_v29  ;;  %v14218_v19 = vsel %vm13648_vm7, %v14217_v2, %v14213_v20  ;;  %v24910_v57 = vld [vmem:[#allocation100_spill] sm:$0xff] }
 0x48b   :  { %v14006_v4 = vsel %vm13683_vm12, %v14005_v36, %v14001_v6  ;;  %v14015_v1 = vrot.slane %v24909_v28, %v24738_v11  ;;  %v14080_v43 = vsel %vm13676_vm11, %v14079_v55, %v14075_v35  ;;  %v14223_v50 = vsel %vm13655_vm8, %v14222_v23, %v14218_v19  ;;  %v24911_v36 = vld [vmem:[#allocation235_spill] sm:$0xff]  ;;  %v24912_v20 = vld [vmem:[#allocation236_spill] sm:$0xff]  ;;  %v24914_v23 = vld [vmem:[#allocation214_spill] sm:$0xff] }
 0x48c   :  { %v22751_v44 = vpop.permute.xlu1 %13524  ;;  %v14232_v15 = vrot.slane %v24910_v57, %v24719_v29  ;;  %v14085_v18 = vsel %vm13683_vm12, %v14084_v0, %v14080_v43  ;;  %v14094_v6 = vrot.slane %v24911_v36, %v24738_v11  ;;  %v14149_v25 = vsel %vm13662_vm9, %v14148_v17, %v14144_v46  ;;  %v24915_v28 = vld [vmem:[#allocation142_spill] sm:$0xff]  ;;  %v24916_v0 = vld [vmem:[#allocation252_spill] sm:$0xff] }
 0x48d   :  { %v22753_v48 = vpop.permute.xlu0 %13485  ;;  %v14227_v2 = vrot.slane %v24912_v20, %v24701_v58  ;;  %v14010_v35 = vrot.slane %v24913_v5, %v24710_v13  ;;  %v14089_v55 = vrot.slane %v24914_v23, %v24710_v13  ;;  %v14154_v19 = vsel %vm13669_vm10, %v14153_v27, %v14149_v25  ;;  %v24917_v5 = vld [vmem:[#allocation91_spill] sm:$0xff] }
 0x48e   :  { %v14163_v57 = vrot.slane %v24915_v28, %v24732_v3  ;;  %v14158_v43 = vrot.slane %v24916_v0, %v24705_v41  ;;  %v14242_v42 = vrot.slane %v24917_v5, %v24732_v3 }
 0x48f   :  { %v14228_v36 = vsel %vm13662_vm9, %v14227_v2, %v14223_v50  ;;  %v14011_v46 = vsel %vm13690_vm13, %v14010_v35, %v14006_v4  ;;  %v14090_v17 = vsel %vm13690_vm13, %v14089_v55, %v14085_v18  ;;  %v24918_v50 = vld [vmem:[#allocation238_spill] sm:$0xff]  ;;  %v24919_v18 = vld [vmem:[#allocation240_spill] sm:$0xff] }
 0x490   :  { %v22763_v33 = vpop.permute.xlu1 %13431  ;;  %v14233_v20 = vsel %vm13669_vm10, %v14232_v15, %v14228_v36  ;;  %v14016_v25 = vsel %vm13697_vm14, %v14015_v1, %v14011_v46  ;;  %v14095_v28 = vsel %vm13697_vm14, %v14094_v6, %v14090_v17  ;;  %v14159_v0 = vsel %vm13676_vm11, %v14158_v43, %v14154_v19  ;;  %v24920_v15 = vld [vmem:[#allocation11_spill] sm:$0xff]  ;;  %v24921_v36 = vld [vmem:[#allocation133_spill] sm:$0xff] }
 0x491   :  { %v22765_v30 = vpop.permute.xlu0 %13581  ;;  %v14237_v4 = vrot.slane %v24918_v50, %v24705_v41  ;;  %v14020_v2 = vrot.slane %v24919_v18, %v24850_v62  ;;  %v14099_v35 = vrot.slane %v24920_v15, %v24850_v62  ;;  %v14164_v55 = vsel %vm13683_vm12, %v14163_v57, %v14159_v0  ;;  %v24922_v1 = vld [vmem:[#allocation239_spill] sm:$0xff]  ;;  %v24923_v18 = vld [vmem:[#allocation153_spill] sm:$0xff] }
 0x492   :  { %v14173_v5 = vrot.slane %v24921_v36, %v24738_v11  ;;  %v14168_v46 = vrot.slane %v24922_v1, %v24710_v13  ;;  %v14844_v50 = vrot.slane %v22654_v45, %v24697_v22  ;;  %v14247_v15 = vrot.slane %v24923_v18, %v24710_v13  ;;  %v24926_v1 = vld [vmem:[#allocation32_spill] sm:$0xff] }
 0x493   :  { %v14238_v6 = vsel %vm13676_vm11, %v14237_v4, %v14233_v20  ;;  %v22955_v19 = vsel %vm13704_vm15, %v14020_v2, %v14016_v25  ;;  %v22958_v43 = vsel %vm13704_vm15, %v14099_v35, %v14095_v28  ;;  %v14691_v20 = vrot.slane %v22682_v26, %v24703_v38  ;;  %v24924_v28 = vld [vmem:[#allocation230_spill] sm:$0xff] }
 0x494   :  { %v22778_v7 = vpop.permute.xlu1 %13527  ;;  %v14243_v17 = vsel %vm13683_vm12, %v14242_v42, %v14238_v6  ;;  %v14169_v0 = vsel %vm13690_vm13, %v14168_v46, %v14164_v55  ;;  %v14849_v25 = vrot.slane %v22710_v21, %v24703_v38  ;;  %v14178_v4 = vrot.slane %v24924_v28, %v24850_v62  ;;  %v24925_v55 = vld [vmem:[#allocation256_spill] sm:$0xff] }
 0x495   :  { %v22780_v63 = vpop.permute.xlu0 %13488  ;;  %v22975_v42 = vsel %vm13697_vm14, %v14173_v5, %v14169_v0  ;;  %v14696_v45 = vrot.slane %v22723_v10, %v24707_v56  ;;  %v14854_v2 = vrot.slane %v22729_v39, %v24707_v56  ;;  %v14257_v26 = vrot.slane %v24925_v55, %v24850_v62 }
 0x496   :  { %v22986_v36 = vsel %vm13690_vm13, %v14247_v15, %v14243_v17  ;;  %v14765_v21 = vrot.slane %v22735_v14, %v24697_v22  ;;  %v14701_v5 = vrot.slane %v22737_v40, %v24701_v58  ;;  %v14252_v10 = vrot.slane %v24926_v1, %v24738_v11 }
 0x497   :  { %v14845_v39 = vsel %vm13641_vm6, %v14844_v50, %v22616_v61  ;;  %v14612_v46 = vrot.slane %v22739_v9, %v24703_v38  ;;  %v14859_v6 = vrot.slane %v22741_v60, %v24701_v58  ;;  %v14692_v22 = vsel %vm13648_vm7, %v14691_v20, %v22646_v12 }
 0x498   :  { %v22804_v32 = vpop.permute.xlu1 %13434  ;;  %v14850_v14 = vsel %vm13648_vm7, %v14849_v25, %v14845_v39  ;;  %v14770_v40 = vrot.slane %v22743_v8, %v24703_v38  ;;  %v14706_v0 = vrot.slane %v22745_v16, %v24719_v29  ;;  %v14697_v61 = vsel %vm13655_vm8, %v14696_v45, %v14692_v22 }
 0x499   :  { %v22818_v54 = vpop.permute.xlu0 %13584  ;;  %v14855_v9 = vsel %vm13655_vm8, %v14854_v2, %v14850_v14  ;;  %v14617_v60 = vrot.slane %v22747_v31, %v24707_v56  ;;  %v14864_v50 = vrot.slane %v22749_v51, %v24719_v29  ;;  %v14766_v12 = vsel %vm13641_vm6, %v14765_v21, %v22727_v52 }
 0x49a   :  { %v14702_v18 = vsel %vm13662_vm9, %v14701_v5, %v14697_v61  ;;  %v14775_v38 = vrot.slane %v22751_v44, %v24707_v56  ;;  %v14711_v8 = vrot.slane %v22753_v48, %v24705_v41  ;;  %v14613_v16 = vsel %vm13648_vm7, %v14612_v46, %v22733_v53 }
 0x49b   :  { %v14860_v15 = vsel %vm13662_vm9, %v14859_v6, %v14855_v9  ;;  %v14622_v31 = vrot.slane %v22763_v33, %v24701_v58  ;;  %v14869_v51 = vrot.slane %v22765_v30, %v24705_v41  ;;  %v14771_v25 = vsel %vm13648_vm7, %v14770_v40, %v14766_v12 }
 0x49c   :  { %v22832_v49 = vpop.permute.xlu1 %13530  ;;  %v14707_v56 = vsel %vm13669_vm10, %v14706_v0, %v14702_v18  ;;  %v14780_v44 = vrot.slane %v22778_v7, %v24701_v58  ;;  %v14716_v53 = vrot.slane %v22780_v63, %v24732_v3  ;;  %v14618_v48 = vsel %vm13655_vm8, %v14617_v60, %v14613_v16 }
 0x49d   :  { %v22858_v37 = vpop.permute.xlu0 %13491  ;;  %v14865_v45 = vsel %vm13669_vm10, %v14864_v50, %v14860_v15  ;;  %v14627_v33 = vrot.slane %v22804_v32, %v24719_v29  ;;  %v14776_v2 = vsel %vm13655_vm8, %v14775_v38, %v14771_v25  ;;  %v14712_v21 = vsel %vm13676_vm11, %v14711_v8, %v14707_v56 }
 0x49e   :  { %v14721_v30 = vrot.slane %v22858_v37, %v24710_v13  ;;  %v14623_v63 = vsel %vm13662_vm9, %v14622_v31, %v14618_v48  ;;  %v14870_v5 = vsel %vm13676_vm11, %v14869_v51, %v14865_v45  ;;  %v14781_v46 = vsel %vm13662_vm9, %v14780_v44, %v14776_v2  ;;  %v24927_v45 = vld [vmem:[#allocation94_spill] sm:$0xff] }
 0x49f   :  { %v14717_v6 = vsel %vm13683_vm12, %v14716_v53, %v14712_v21  ;;  %v14628_v22 = vsel %vm13669_vm10, %v14627_v33, %v14623_v63  ;;  %v14785_v14 = vrot.slane %v22832_v49, %v24719_v29  ;;  %v14179_v56 = vsel %vm13704_vm15, %v14178_v4, %v22975_v42 }
 0x4a0   :  { %v22860_v59 = vpop.permute.xlu1 %13437 }
 0x4a1   :  { %v22900_v24 = vpop.permute.xlu0 %13587  ;;  %v14632_v58 = vrot.slane %v22860_v59, %v24705_v41  ;;  %v14874_v59 = vrot.slane %v22818_v54, %v24732_v3  ;;  %v14786_v8 = vsel %vm13669_vm10, %v14785_v14, %v14781_v46 }
 0x4a2   :  { %v14879_v9 = vrot.slane %v22900_v24, %v24710_v13 }
 0x4a3   :  { %v14633_v61 = vsel %vm13676_vm11, %v14632_v58, %v14628_v22  ;;  %v14875_v38 = vsel %vm13683_vm12, %v14874_v59, %v14870_v5 }
 0x4a4   :  { %v22886_v34 = vpop.permute.xlu1 %13533  ;;  %v14880_v16 = vsel %vm13690_vm13, %v14879_v9, %v14875_v38 }
 0x4a5   :  { %v22935_v23 = vpop.permute.xlu0 %13494  ;;  %v14790_v54 = vrot.slane %v22886_v34, %v24705_v41 }
 0x4a6   :  { %v14726_v7 = vrot.slane %v22935_v23, %v24738_v11 }
 0x4a8   :  { %v22912_v47 = vpop.permute.xlu1 %13440 }
 0x4a9   :  { %v22981_v35 = vpop.permute.xlu0 %13590  ;;  %v14637_v32 = vrot.slane %v22912_v47, %v24732_v3  ;;  %v14722_v47 = vsel %vm13690_vm13, %v14721_v30, %v14717_v6 }
 0x4aa   :  { %v14884_v29 = vrot.slane %v22981_v35, %v24738_v11 }
 0x4ab   :  { %v14638_v60 = vsel %vm13683_vm12, %v14637_v32, %v14633_v61 }
 0x4ac   :  { %v22937_v27 = vpop.permute.xlu1 %13536  ;;  %v14885_v15 = vsel %vm13697_vm14, %v14884_v29, %v14880_v16 }
 0x4ad   :  { %v13498_v52 = vpop.permute.xlu0 %13497  ;;  %v14795_v49 = vrot.slane %v22937_v27, %v24732_v3  ;;  %v14253_v27 = vsel %vm13697_vm14, %v14252_v10, %v22986_v36 }
 0x4ae   :  { %v14731_v39 = vrot.slane %v13498_v52, %v24850_v62 }
 0x4b0   :  { %v22963_v57 = vpop.permute.xlu1 %13443 }
 0x4b1   :  { %v14642_v23 = vrot.slane %v22963_v57, %v24710_v13  ;;  %v13594_v40 = vpop.permute.xlu0 %13593  ;;  %v14727_v57 = vsel %vm13697_vm14, %v14726_v7, %v14722_v47 }
 0x4b2   :  { %v14732_v50 = vsel %vm13704_vm15, %v14731_v39, %v14727_v57  ;;  %v14889_v24 = vrot.slane %v13594_v40, %v24850_v62 }
 0x4b3   :  { %v14643_v18 = vsel %vm13690_vm13, %v14642_v23, %v14638_v60  ;;  %v14897_v51 = vsel %vm14891_vm0, %v14732_v50, %v22958_v43 }
 0x4b4   :  { %v23000_v17 = vpop.permute.xlu1 %13539 }
 0x4b5   :  { %v14800_v41 = vrot.slane %v23000_v17, %v24710_v13  ;;  %v14791_v13 = vsel %vm13676_vm11, %v14790_v54, %v14786_v8 }
 0x4b6   :  { %v14796_v31 = vsel %vm13683_vm12, %v14795_v49, %v14791_v13 }
 0x4b7   :  { %v14801_v36 = vsel %vm13690_vm13, %v14800_v41, %v14796_v31 }
 0x4b8   :  { %v13447_v20 = vpop.permute.xlu1 %13446 }
 0x4b9   :  { %v14647_v0 = vrot.slane %v13447_v20, %v24738_v11 }
 0x4bb   :  { %v14648_v35 = vsel %vm13697_vm14, %v14647_v0, %v14643_v18 }
 0x4bc   :  { %v13543_v37 = vpop.permute.xlu1 %13542 }
 0x4bd   :  { %v14805_v3 = vrot.slane %v13543_v37, %v24738_v11  ;;  %v14890_v11 = vsel %vm13704_vm15, %v14889_v24, %v14885_v15 }
 0x4bf   :  { %v14806_v25 = vsel %vm13697_vm14, %v14805_v3, %v14801_v36 }
 0x4c0   :  { %v13450_v12 = vpop.permute.xlu1 %13449 }
 0x4c1   :  { %v14652_v34 = vrot.slane %v13450_v12, %v24850_v62 }
 0x4c3   :  { %v14653_v17 = vsel %vm13704_vm15, %v14652_v34, %v14648_v35 }
 0x4c4   :  { %v14896_v52 = vsel %vm14891_vm0, %v14653_v17, %v22955_v19  ;;  %v13546_v20 = vpop.permute.xlu1 %13545  ;;  %v14258_v19 = vsel %vm13704_vm15, %v14257_v26, %v14253_v27 }
 0x4c5   :  { %v14917_v1 = vcombine.low %v14896_v52, %v14897_v51  ;;  %v14810_v10 = vrot.slane %v13546_v20, %v24850_v62  ;;  %v14899_v44 = vsel %vm14891_vm0, %v14890_v11, %v14258_v19 }
 0x4c7   :  { %v14811_v43 = vsel %vm13704_vm15, %v14810_v10, %v14806_v25  ;;  %v14925_v33 = vrot.slane %v14917_v1, %v24927_v45 }
 0x4c8   :  { %v14898_v53 = vsel %vm14891_vm0, %v14811_v43, %v14179_v56 }
 0x4c9   :  { %v14918_v48 = vcombine.low %v14898_v53, %v14899_v44 }
 0x4cb   :  { %v14932_v30 = vrot.slane %v14918_v48, %v24927_v45 }
 0x4cd   :  { %v14933_v2 = vcombine.low %v14925_v33, %v14932_v30  ;;  %v15437_v28 = vcombine.low %v14932_v30, %v14932_v30 }
 0x4cf   :  { %v15108_v4 = vrot.slane %v14933_v2, %v24927_v45  ;;  %14946 = vst [vmem:[#allocation3 + $0x8] sm:$0xff] %v14933_v2  ;;  %v15115_v62 = vrot.slane %v15437_v28, %v24927_v45 }
 0x4d1   :  { %v15116_v42 = vcombine.high %v15108_v4, %v15108_v4  ;;  %v15117_v55 = vcombine.high %v15115_v62, %v15115_v62 }
 0x4d3   :  { %15330 = vmatprep.mubr.f32.mxu0 %v15116_v42  ;;  %15400 = vmatprep.mubr.f32.mxu1 %v15117_v55 }
 0x4d4   :  { %15331 = vmatmul.mubr.f32.vlgmr.msra.gmra.mxu0 %v15108_v4  ;;  %15401 = vmatmul.mubr.f32.vlgmr.msra.gmra.mxu1 %v15115_v62 }
 0x4d5   :  { %15599 = shalt.err (!%p15596_p4)
}
 0x4d6   :  { %15416 = dma.vmem_to_hbm [thread:$0]  %s15414_s19, 256, %s23130_s3, [#allocation4]   ;;  %v15435_v63 = vld [vmem:[%s23129_s2] ss:$0 sm:$0xff] }
 0x4d7   :  { %s15639_s25 = smov [#allocation5]  }
 0x4d8   :  { %s15423_s26 = sshll.u32 %s15639_s25, 4  ;;  %s15424_s26 = int_to_ptr.vmem [resolvable:$true] %s15423_s26 }
 0x4d9   :  { %s15608_s3 = scalar_lea.vmem %s15424_s26, 32  ;;  %p15613_p6 = scmp.lt.s32.totalorder %s15424_s26, %s15424_s26 }
 0x4da   :  { %p15609_p5 = scmp.ne.s32.totalorder %s15424_s26, %s15608_s3  ;;  %p15614_p7 = scmp.lt.s32.totalorder %s15608_s3, %s15608_s3 }
 0x4dc   :  { %p15615_p8 = por %p15614_p7, %p15613_p6 }
 0x4de   :  { %p15616_p9 = pnand %p15615_p8, %p15609_p5 }
 0x516   :  { %v15470_v26 = vpop.f32.mrf.mxu0  ;;  %v15505_v58 = vpop.f32.mrf.mxu1 }
 0x518   :  { %v15471_v21 = vpop.f32.mrf.mxu0  ;;  %v15506_v5 = vpop.f32.mrf.mxu1 }
 0x519   :  { %v15472_v7 = vadd.f32 %v15471_v21, %v15470_v26  ;;  %v15507_v46 = vadd.f32 %v15506_v5, %v15505_v58 }
 0x51b   :  { %v15193_v32 = vadd.f32 %v15472_v7, %v15435_v63 }
 0x51d   :  { %v15263_v23 = vadd.f32 %v15507_v46, %v15193_v32 }
 0x594   :  { %v15540_v39 = vpop.f32.mrf.mxu0  ;;  %v15575_v37 = vpop.f32.mrf.mxu1 }
 0x596   :  { %v15541_v6 = vpop.f32.mrf.mxu0  ;;  %v15576_v59 = vpop.f32.mrf.mxu1 }
 0x597   :  { %v15542_v22 = vadd.f32 %v15541_v6, %v15540_v39  ;;  %v15577_v47 = vadd.f32 %v15576_v59, %v15575_v37 }
 0x599   :  { %v15333_v14 = vadd.f32 %v15542_v22, %v15263_v23 }
 0x59b   :  { %v15403_v40 = vadd.f32 %v15577_v47, %v15333_v14 }
 0x59d   :  { %15406 = vst [vmem:[#allocation5] sm:$0x3] %v15403_v40 }
 0x59e   :  { %15619 = shalt.err (!%p15616_p9)
}
 0x59f   :  { %15426 = dma.vmem_to_hbm [thread:$0]  %s15424_s26, 32, %s23131_s4, [#allocation6]  }
 0x5a0   :  { %15628 = dma.done.wait [#allocation4], 256  }
 0x5a1   :  { %15629 = vsyncadd [#allocation4], 4294967040 }
 0x5a2   :  { %15630 = dma.done.wait [#allocation6], 32  }
 0x5a3   :  { %15631 = vsyncadd [#allocation6], 4294967264 }
 0x5a4   :  { %15433 = vsyncpa [#allocation4], 1 }
 0x5a5   :  { %15434 = vsyncpa [#allocation6], 1 }

</bundles_post_ra>
